<compile_context>
chip_gen: v7x
topology: tpu7x:2x2x1
jax: 0.10.0
libtpu: 0.0.40
codegen_flags: <defaults>
</compile_context>

<pallas_src>
import functools
import math

import jax
import jax.numpy as jnp
from jax.experimental import pallas as pl
from jax.experimental.pallas import tpu as pltpu


def _round_up(x, m):
    return ((x + m - 1) // m) * m


# ----------------------------- Pallas kernels ------------------------------

def _linear_kernel(x_ref, w_ref, b_ref, o_ref, *, act):
    # bf16 operands into the MXU, f32 accumulation.
    x = x_ref[...].astype(jnp.bfloat16)
    acc = jnp.dot(x, w_ref[...], preferred_element_type=jnp.float32)
    acc = acc + b_ref[...]
    if act == "silu":
        acc = acc * jax.nn.sigmoid(acc)
    o_ref[...] = acc.astype(o_ref.dtype)


def linear(x, w, b, act="none", tm=128, tn=None):
    """y = act(x @ w + b).  x:(M,K) f32, w:(K,N) bf16, b:(N,) f32 -> (M,N) f32."""
    M, K = x.shape
    N = w.shape[1]
    tm = min(tm, M)
    if tn is None:
        # Small N fits whole; large N tiled 256-wide (v6e/v7x MXU) or 128 (v5e).
        if N <= 512:
            tn = N
        elif N % 256 == 0:
            tn = 256
        elif N % 128 == 0:
            tn = 128
        else:
            tn = N
    assert M % tm == 0 and N % tn == 0, (M, tm, N, tn)
    # TODO(synk): add K tiling + f32 VMEM accumulator for very large K.
    return pl.pallas_call(
        functools.partial(_linear_kernel, act=act),
        out_shape=jax.ShapeDtypeStruct((M, N), jnp.float32),
        grid_spec=pltpu.PrefetchScalarGridSpec(
            num_scalar_prefetch=0,
            grid=(M // tm, N // tn),
            in_specs=[
                pl.BlockSpec((tm, K), lambda i, j: (i, 0)),
                pl.BlockSpec((K, tn), lambda i, j: (0, j)),
                pl.BlockSpec((1, tn), lambda i, j: (0, j)),
            ],
            out_specs=pl.BlockSpec((tm, tn), lambda i, j: (i, j)),
        ),
        compiler_params=pltpu.CompilerParams(
            dimension_semantics=("parallel", "parallel")),
    )(x, w, b.reshape(1, N))


def _linear_add_ln_kernel(x_ref, w_ref, b_ref, r_ref, g_ref, beta_ref, o_ref,
                          *, eps):
    # y = x @ W + b ; out = LayerNorm(res + y)   (post-norm encoder layer)
    x = x_ref[...].astype(jnp.bfloat16)
    y = jnp.dot(x, w_ref[...], preferred_element_type=jnp.float32) + b_ref[...]
    h = r_ref[...] + y
    mean = jnp.mean(h, axis=-1, keepdims=True)
    hc = h - mean
    var = jnp.mean(hc * hc, axis=-1, keepdims=True)
    o_ref[...] = (hc * jax.lax.rsqrt(var + eps)) * g_ref[...] + beta_ref[...]


def linear_add_layernorm(x, w, b, res, g, beta, eps=1e-5, tm=128):
    """LayerNorm(res + (x @ w + b)); w:(K,D) covers the full LN row."""
    M, K = x.shape
    D = w.shape[1]
    tm = min(tm, M)
    assert M % tm == 0
    return pl.pallas_call(
        functools.partial(_linear_add_ln_kernel, eps=eps),
        out_shape=jax.ShapeDtypeStruct((M, D), jnp.float32),
        grid_spec=pltpu.PrefetchScalarGridSpec(
            num_scalar_prefetch=0,
            grid=(M // tm,),
            in_specs=[
                pl.BlockSpec((tm, K), lambda i: (i, 0)),
                pl.BlockSpec((K, D), lambda i: (0, 0)),
                pl.BlockSpec((1, D), lambda i: (0, 0)),
                pl.BlockSpec((tm, D), lambda i: (i, 0)),
                pl.BlockSpec((1, D), lambda i: (0, 0)),
                pl.BlockSpec((1, D), lambda i: (0, 0)),
            ],
            out_specs=pl.BlockSpec((tm, D), lambda i: (i, 0)),
        ),
        compiler_params=pltpu.CompilerParams(dimension_semantics=("parallel",)),
    )(x, w, b.reshape(1, D), res, g.reshape(1, D), beta.reshape(1, D))


def _attn_kernel(qkv_ref, o_ref, *, n_head, d_model, scale):
    # One batch element per grid step; all heads handled in-kernel so the
    # output store is a lane-dense (S, D) slab.
    S = qkv_ref.shape[1]
    hd = d_model // n_head
    qkv = qkv_ref[0]                                           # (S, 3D) f32
    row = jax.lax.broadcasted_iota(jnp.int32, (S, S), 0)
    col = jax.lax.broadcasted_iota(jnp.int32, (S, S), 1)
    causal = col <= row                                        # in-kernel mask
    outs = []
    for h in range(n_head):                                    # static unroll
        q = qkv[:, h * hd:(h + 1) * hd].astype(jnp.bfloat16)
        k = qkv[:, d_model + h * hd:d_model + (h + 1) * hd].astype(jnp.bfloat16)
        v = qkv[:, 2 * d_model + h * hd:
                2 * d_model + (h + 1) * hd].astype(jnp.bfloat16)
        s = jnp.einsum("qd,kd->qk", q, k,
                       preferred_element_type=jnp.float32) * scale
        s = jnp.where(causal, s, -1e30)
        m = jnp.max(s, axis=-1, keepdims=True)
        p = jnp.exp(s - m)
        denom = jnp.sum(p, axis=-1, keepdims=True)
        p = p * pl.reciprocal(denom, approx=True)
        outs.append(jnp.dot(p.astype(jnp.bfloat16), v,
                            preferred_element_type=jnp.float32))
    o_ref[0] = jnp.concatenate(outs, axis=-1)                  # (S, D) dense


def attention(qkv, n_head, scale):
    """qkv:(B,S,3D) f32 -> (B,S,D) f32.  Grid over batch (parallel)."""
    # TODO(synk): for large S, switch to a flash-style KV-tiled online-softmax
    # loop instead of materializing the (S,S) scores per head.
    B, S, D3 = qkv.shape
    D = D3 // 3
    return pl.pallas_call(
        functools.partial(_attn_kernel, n_head=n_head, d_model=D, scale=scale),
        out_shape=jax.ShapeDtypeStruct((B, S, D), jnp.float32),
        grid_spec=pltpu.PrefetchScalarGridSpec(
            num_scalar_prefetch=0,
            grid=(B,),
            in_specs=[pl.BlockSpec((1, S, D3), lambda b: (b, 0, 0))],
            out_specs=pl.BlockSpec((1, S, D), lambda b: (b, 0, 0)),
        ),
        compiler_params=pltpu.CompilerParams(dimension_semantics=("parallel",)),
    )(qkv)


def _rmsnorm_kernel(x_ref, g_ref, o_ref, *, eps):
    x = x_ref[...]
    ms = jnp.mean(x * x, axis=-1, keepdims=True)
    o_ref[...] = x * jax.lax.rsqrt(ms + eps) * g_ref[...]


def rmsnorm(x, g, eps, tm=128):
    M, D = x.shape
    tm = min(tm, M)
    assert M % tm == 0
    return pl.pallas_call(
        functools.partial(_rmsnorm_kernel, eps=eps),
        out_shape=jax.ShapeDtypeStruct((M, D), jnp.float32),
        grid_spec=pltpu.PrefetchScalarGridSpec(
            num_scalar_prefetch=0,
            grid=(M // tm,),
            in_specs=[
                pl.BlockSpec((tm, D), lambda i: (i, 0)),
                pl.BlockSpec((1, D), lambda i: (0, 0)),
            ],
            out_specs=pl.BlockSpec((tm, D), lambda i: (i, 0)),
        ),
        compiler_params=pltpu.CompilerParams(dimension_semantics=("parallel",)),
    )(x, g.reshape(1, D))


# ------------------------- parameters / constants --------------------------

def make_positional_encoding(max_seq_len, d_model):
    # Matches the reference module: frequency base -log(max_seq_len*2)/d_model.
    pos = jnp.arange(max_seq_len, dtype=jnp.float32)[:, None]
    div = jnp.exp(jnp.arange(0, d_model, 2, dtype=jnp.float32)
                  * (-math.log(max_seq_len * 2.0) / d_model))
    pe = jnp.zeros((max_seq_len, d_model), jnp.float32)
    pe = pe.at[:, 0::2].set(jnp.sin(pos * div))
    pe = pe.at[:, 1::2].set(jnp.cos(pos * div))
    return pe.astype(jnp.bfloat16)        # matches .to(dtype=torch.bfloat16)


def init_params(key, vocab_size, d_model, n_head, n_layers, d_ff, seq_len):
    vocab_pad = _round_up(vocab_size, 128)   # lane-dense lm_head output

    def nrm(k, shape, scale=0.02, dtype=jnp.bfloat16):
        return (scale * jax.random.normal(k, shape, dtype=jnp.float32)).astype(dtype)

    keys = jax.random.split(key, 2 + n_layers)
    lm_w = nrm(keys[1], (d_model, vocab_size))
    lm_w = jnp.pad(lm_w, ((0, 0), (0, vocab_pad - vocab_size)))

    params = {
        "embedding": nrm(keys[0], (vocab_size, d_model), dtype=jnp.float32),
        "pe": make_positional_encoding(seq_len, d_model),
        "lm_head_w": lm_w,                                   # (D, vocab_pad) bf16
        "lm_head_b": jnp.zeros((vocab_pad,), jnp.float32),
        "final_norm_g": jnp.ones((d_model,), jnp.float32),
        "layers": [],
    }
    for l in range(n_layers):
        k = jax.random.split(keys[2 + l], 4)
        params["layers"].append({
            "in_proj_w": nrm(k[0], (d_model, 3 * d_model)),  # (in, 3*out) bf16
            "in_proj_b": jnp.zeros((3 * d_model,), jnp.float32),
            "out_proj_w": nrm(k[1], (d_model, d_model)),
            "out_proj_b": jnp.zeros((d_model,), jnp.float32),
            "lin1_w": nrm(k[2], (d_model, d_ff)),
            "lin1_b": jnp.zeros((d_ff,), jnp.float32),
            "lin2_w": nrm(k[3], (d_ff, d_model)),
            "lin2_b": jnp.zeros((d_model,), jnp.float32),
            "ln1_g": jnp.ones((d_model,), jnp.float32),
            "ln1_b": jnp.zeros((d_model,), jnp.float32),
            "ln2_g": jnp.ones((d_model,), jnp.float32),
            "ln2_b": jnp.zeros((d_model,), jnp.float32),
        })
    return params


# ------------------------------ forward pass -------------------------------

def transformer_lm_forward(params, tokens, *, n_head, vocab_size):
    B, S = tokens.shape
    D = params["embedding"].shape[1]
    hd = D // n_head
    scale = 1.0 / math.sqrt(hd)

    # embedding lookup + positional encoding (glue)
    x = jnp.take(params["embedding"], tokens, axis=0)            # (B,S,D) f32
    x = x + params["pe"][:S][None, :, :].astype(jnp.float32)
    x2 = x.reshape(B * S, D)

    for layer in params["layers"]:
        # --- multi-head causal self-attention (post-norm encoder layer) ---
        qkv = linear(x2, layer["in_proj_w"], layer["in_proj_b"])       # (M, 3D)
        attn = attention(qkv.reshape(B, S, 3 * D), n_head, scale)      # (B,S,D)
        # out_proj matmul with fused residual-add + LayerNorm epilogue
        x2 = linear_add_layernorm(attn.reshape(B * S, D),
                                  layer["out_proj_w"], layer["out_proj_b"],
                                  x2, layer["ln1_g"], layer["ln1_b"], eps=1e-5)

        # --- feed-forward (SiLU); lin2 fused with residual-add + LayerNorm ---
        h = linear(x2, layer["lin1_w"], layer["lin1_b"], act="silu")
        x2 = linear_add_layernorm(h, layer["lin2_w"], layer["lin2_b"],
                                  x2, layer["ln2_g"], layer["ln2_b"], eps=1e-5)

    # final RMSNorm (eps = f32 machine eps, matching nn.RMSNorm(eps=None))
    x2 = rmsnorm(x2, params["final_norm_g"],
                 eps=float(jnp.finfo(jnp.float32).eps))

    logits = linear(x2, params["lm_head_w"], params["lm_head_b"])      # (M,Vpad)
    return logits[:, :vocab_size].reshape(B, S, vocab_size)


# ---------------------------------- main -----------------------------------

if __name__ == "__main__":
    # Small, shape-consistent configuration of the reference module.
    vocab_size = 65
    d_model = 128            # lane-dense (multiple of 128); head_dim = 32
    n_head = 4
    n_layers = 2
    d_feedforward = d_model * 4
    seq_len = 128
    batch = 2

    key = jax.random.PRNGKey(0)
    pkey, tkey = jax.random.split(key)
    params = init_params(pkey, vocab_size, d_model, n_head, n_layers,
                         d_feedforward, seq_len)
    tokens = jax.random.randint(tkey, (batch, seq_len), 0, vocab_size,
                                dtype=jnp.int32)

    fwd = jax.jit(functools.partial(transformer_lm_forward,
                                    n_head=n_head, vocab_size=vocab_size))
    logits = fwd(params, tokens)
    jax.block_until_ready(logits)

    assert logits.shape == (batch, seq_len, vocab_size), logits.shape
    assert logits.dtype == jnp.float32
    assert bool(jnp.all(jnp.isfinite(logits)))
    print("KERNEL_OK")
</pallas_src>

<mosaic_0001>
module attributes {stable_mosaic.version = 11 : i64} {
  func.func @_attn_kernel(%arg0: i32, %arg1: memref<1x128x384xf32, #tpu.memory_space<vmem>>, %arg2: memref<1x128x128xf32, #tpu.memory_space<vmem>>) attributes {dimension_semantics = [#tpu.dimension_semantics<parallel>], iteration_bounds = array<i64: 2>, scalar_prefetch = 0 : i64, scratch_operands = 0 : i64, tpu.core_type = #tpu.core_type<tc>, window_params = [{transform_indices = @transform_0, window_bounds = array<i64: 1, 128, 384>}, {transform_indices = @transform_1, window_bounds = array<i64: 1, 128, 128>}]} {
    %c0 = arith.constant 0 : index
    %c0_0 = arith.constant 0 : index
    %c0_1 = arith.constant 0 : index
    %0 = vector.load %arg1[%c0, %c0_0, %c0_1] : memref<1x128x384xf32, #tpu.memory_space<vmem>>, vector<1x128x384xf32>
    %1 = vector.shape_cast %0 : vector<1x128x384xf32> to vector<128x384xf32>
    %2 = tpu.iota {dimensions = array<i32: 0>} : vector<128x128xi32>
    %3 = tpu.iota {dimensions = array<i32: 1>} : vector<128x128xi32>
    %4 = arith.cmpi sle, %3, %2 : vector<128x128xi32>
    %5 = vector.extract_strided_slice %1 {offsets = [0, 0], sizes = [128, 32], strides = [1, 1]} : vector<128x384xf32> to vector<128x32xf32>
    %6 = arith.truncf %5 : vector<128x32xf32> to vector<128x32xbf16>
    %7 = vector.extract_strided_slice %1 {offsets = [0, 128], sizes = [128, 32], strides = [1, 1]} : vector<128x384xf32> to vector<128x32xf32>
    %8 = arith.truncf %7 : vector<128x32xf32> to vector<128x32xbf16>
    %9 = vector.extract_strided_slice %1 {offsets = [0, 256], sizes = [128, 32], strides = [1, 1]} : vector<128x384xf32> to vector<128x32xf32>
    %10 = arith.truncf %9 : vector<128x32xf32> to vector<128x32xbf16>
    "tpu.trace_start"() <{level = 10 : i32, message = "qd,kd->qk"}> : () -> ()
    %cst = arith.constant dense<0.000000e+00> : vector<128x128xf32>
    %11 = tpu.matmul %6, %8, %cst {dimension_numbers = #tpu.dot_dimension_numbers<[1], [1], [0], [0], [0, 0, 1, 0], [], []>} : vector<128x32xbf16>, vector<128x32xbf16>, vector<128x128xf32> -> vector<128x128xf32>
    "tpu.trace_stop"() : () -> ()
    %cst_2 = arith.constant 0.176776692 : f32
    %12 = vector.broadcast %cst_2 : f32 to vector<128x128xf32>
    %13 = arith.mulf %11, %12 : vector<128x128xf32>
    %cst_3 = arith.constant -1.000000e+30 : f32
    %14 = vector.broadcast %cst_3 : f32 to vector<128x128xf32>
    %15 = arith.select %4, %13, %14 : vector<128x128xi1>, vector<128x128xf32>
    %cst_4 = arith.constant dense<0xFF800000> : vector<128xf32>
    %16 = vector.multi_reduction <maximumf>, %15, %cst_4 [1] : vector<128x128xf32> to vector<128xf32>
    %17 = vector.shape_cast %16 : vector<128xf32> to vector<128x1xf32>
    %18 = vector.broadcast %17 : vector<128x1xf32> to vector<128x128xf32>
    %19 = arith.subf %15, %18 : vector<128x128xf32>
    %20 = math.exp %19 : vector<128x128xf32>
    %cst_5 = arith.constant dense<0.000000e+00> : vector<128xf32>
    %21 = vector.multi_reduction <add>, %20, %cst_5 [1] : vector<128x128xf32> to vector<128xf32>
    %22 = vector.shape_cast %21 : vector<128xf32> to vector<128x1xf32>
    %23 = tpu.reciprocal %22 {approx = true} : vector<128x1xf32> -> vector<128x1xf32>
    %24 = vector.broadcast %23 : vector<128x1xf32> to vector<128x128xf32>
    %25 = arith.mulf %20, %24 : vector<128x128xf32>
    %26 = arith.truncf %25 : vector<128x128xf32> to vector<128x128xbf16>
    %cst_6 = arith.constant dense<0.000000e+00> : vector<128x32xf32>
    %27 = tpu.matmul %26, %10, %cst_6 {dimension_numbers = #tpu.dot_dimension_numbers<[1], [0], [0], [1], [0, 0, 1, 1], [], []>} : vector<128x128xbf16>, vector<128x32xbf16>, vector<128x32xf32> -> vector<128x32xf32>
    %28 = vector.extract_strided_slice %1 {offsets = [0, 32], sizes = [128, 32], strides = [1, 1]} : vector<128x384xf32> to vector<128x32xf32>
    %29 = arith.truncf %28 : vector<128x32xf32> to vector<128x32xbf16>
    %30 = vector.extract_strided_slice %1 {offsets = [0, 160], sizes = [128, 32], strides = [1, 1]} : vector<128x384xf32> to vector<128x32xf32>
    %31 = arith.truncf %30 : vector<128x32xf32> to vector<128x32xbf16>
    %32 = vector.extract_strided_slice %1 {offsets = [0, 288], sizes = [128, 32], strides = [1, 1]} : vector<128x384xf32> to vector<128x32xf32>
    %33 = arith.truncf %32 : vector<128x32xf32> to vector<128x32xbf16>
    "tpu.trace_start"() <{level = 10 : i32, message = "qd,kd->qk"}> : () -> ()
    %cst_7 = arith.constant dense<0.000000e+00> : vector<128x128xf32>
    %34 = tpu.matmul %29, %31, %cst_7 {dimension_numbers = #tpu.dot_dimension_numbers<[1], [1], [0], [0], [0, 0, 1, 0], [], []>} : vector<128x32xbf16>, vector<128x32xbf16>, vector<128x128xf32> -> vector<128x128xf32>
    "tpu.trace_stop"() : () -> ()
    %cst_8 = arith.constant 0.176776692 : f32
    %35 = vector.broadcast %cst_8 : f32 to vector<128x128xf32>
    %36 = arith.mulf %34, %35 : vector<128x128xf32>
    %cst_9 = arith.constant -1.000000e+30 : f32
    %37 = vector.broadcast %cst_9 : f32 to vector<128x128xf32>
    %38 = arith.select %4, %36, %37 : vector<128x128xi1>, vector<128x128xf32>
    %cst_10 = arith.constant dense<0xFF800000> : vector<128xf32>
    %39 = vector.multi_reduction <maximumf>, %38, %cst_10 [1] : vector<128x128xf32> to vector<128xf32>
    %40 = vector.shape_cast %39 : vector<128xf32> to vector<128x1xf32>
    %41 = vector.broadcast %40 : vector<128x1xf32> to vector<128x128xf32>
    %42 = arith.subf %38, %41 : vector<128x128xf32>
    %43 = math.exp %42 : vector<128x128xf32>
    %cst_11 = arith.constant dense<0.000000e+00> : vector<128xf32>
    %44 = vector.multi_reduction <add>, %43, %cst_11 [1] : vector<128x128xf32> to vector<128xf32>
    %45 = vector.shape_cast %44 : vector<128xf32> to vector<128x1xf32>
    %46 = tpu.reciprocal %45 {approx = true} : vector<128x1xf32> -> vector<128x1xf32>
    %47 = vector.broadcast %46 : vector<128x1xf32> to vector<128x128xf32>
    %48 = arith.mulf %43, %47 : vector<128x128xf32>
    %49 = arith.truncf %48 : vector<128x128xf32> to vector<128x128xbf16>
    %cst_12 = arith.constant dense<0.000000e+00> : vector<128x32xf32>
    %50 = tpu.matmul %49, %33, %cst_12 {dimension_numbers = #tpu.dot_dimension_numbers<[1], [0], [0], [1], [0, 0, 1, 1], [], []>} : vector<128x128xbf16>, vector<128x32xbf16>, vector<128x32xf32> -> vector<128x32xf32>
    %51 = vector.extract_strided_slice %1 {offsets = [0, 64], sizes = [128, 32], strides = [1, 1]} : vector<128x384xf32> to vector<128x32xf32>
    %52 = arith.truncf %51 : vector<128x32xf32> to vector<128x32xbf16>
    %53 = vector.extract_strided_slice %1 {offsets = [0, 192], sizes = [128, 32], strides = [1, 1]} : vector<128x384xf32> to vector<128x32xf32>
    %54 = arith.truncf %53 : vector<128x32xf32> to vector<128x32xbf16>
    %55 = vector.extract_strided_slice %1 {offsets = [0, 320], sizes = [128, 32], strides = [1, 1]} : vector<128x384xf32> to vector<128x32xf32>
    %56 = arith.truncf %55 : vector<128x32xf32> to vector<128x32xbf16>
    "tpu.trace_start"() <{level = 10 : i32, message = "qd,kd->qk"}> : () -> ()
    %cst_13 = arith.constant dense<0.000000e+00> : vector<128x128xf32>
    %57 = tpu.matmul %52, %54, %cst_13 {dimension_numbers = #tpu.dot_dimension_numbers<[1], [1], [0], [0], [0, 0, 1, 0], [], []>} : vector<128x32xbf16>, vector<128x32xbf16>, vector<128x128xf32> -> vector<128x128xf32>
    "tpu.trace_stop"() : () -> ()
    %cst_14 = arith.constant 0.176776692 : f32
    %58 = vector.broadcast %cst_14 : f32 to vector<128x128xf32>
    %59 = arith.mulf %57, %58 : vector<128x128xf32>
    %cst_15 = arith.constant -1.000000e+30 : f32
    %60 = vector.broadcast %cst_15 : f32 to vector<128x128xf32>
    %61 = arith.select %4, %59, %60 : vector<128x128xi1>, vector<128x128xf32>
    %cst_16 = arith.constant dense<0xFF800000> : vector<128xf32>
    %62 = vector.multi_reduction <maximumf>, %61, %cst_16 [1] : vector<128x128xf32> to vector<128xf32>
    %63 = vector.shape_cast %62 : vector<128xf32> to vector<128x1xf32>
    %64 = vector.broadcast %63 : vector<128x1xf32> to vector<128x128xf32>
    %65 = arith.subf %61, %64 : vector<128x128xf32>
    %66 = math.exp %65 : vector<128x128xf32>
    %cst_17 = arith.constant dense<0.000000e+00> : vector<128xf32>
    %67 = vector.multi_reduction <add>, %66, %cst_17 [1] : vector<128x128xf32> to vector<128xf32>
    %68 = vector.shape_cast %67 : vector<128xf32> to vector<128x1xf32>
    %69 = tpu.reciprocal %68 {approx = true} : vector<128x1xf32> -> vector<128x1xf32>
    %70 = vector.broadcast %69 : vector<128x1xf32> to vector<128x128xf32>
    %71 = arith.mulf %66, %70 : vector<128x128xf32>
    %72 = arith.truncf %71 : vector<128x128xf32> to vector<128x128xbf16>
    %cst_18 = arith.constant dense<0.000000e+00> : vector<128x32xf32>
    %73 = tpu.matmul %72, %56, %cst_18 {dimension_numbers = #tpu.dot_dimension_numbers<[1], [0], [0], [1], [0, 0, 1, 1], [], []>} : vector<128x128xbf16>, vector<128x32xbf16>, vector<128x32xf32> -> vector<128x32xf32>
    %74 = vector.extract_strided_slice %1 {offsets = [0, 96], sizes = [128, 32], strides = [1, 1]} : vector<128x384xf32> to vector<128x32xf32>
    %75 = arith.truncf %74 : vector<128x32xf32> to vector<128x32xbf16>
    %76 = vector.extract_strided_slice %1 {offsets = [0, 224], sizes = [128, 32], strides = [1, 1]} : vector<128x384xf32> to vector<128x32xf32>
    %77 = arith.truncf %76 : vector<128x32xf32> to vector<128x32xbf16>
    %78 = vector.extract_strided_slice %1 {offsets = [0, 352], sizes = [128, 32], strides = [1, 1]} : vector<128x384xf32> to vector<128x32xf32>
    %79 = arith.truncf %78 : vector<128x32xf32> to vector<128x32xbf16>
    "tpu.trace_start"() <{level = 10 : i32, message = "qd,kd->qk"}> : () -> ()
    %cst_19 = arith.constant dense<0.000000e+00> : vector<128x128xf32>
    %80 = tpu.matmul %75, %77, %cst_19 {dimension_numbers = #tpu.dot_dimension_numbers<[1], [1], [0], [0], [0, 0, 1, 0], [], []>} : vector<128x32xbf16>, vector<128x32xbf16>, vector<128x128xf32> -> vector<128x128xf32>
    "tpu.trace_stop"() : () -> ()
    %cst_20 = arith.constant 0.176776692 : f32
    %81 = vector.broadcast %cst_20 : f32 to vector<128x128xf32>
    %82 = arith.mulf %80, %81 : vector<128x128xf32>
    %cst_21 = arith.constant -1.000000e+30 : f32
    %83 = vector.broadcast %cst_21 : f32 to vector<128x128xf32>
    %84 = arith.select %4, %82, %83 : vector<128x128xi1>, vector<128x128xf32>
    %cst_22 = arith.constant dense<0xFF800000> : vector<128xf32>
    %85 = vector.multi_reduction <maximumf>, %84, %cst_22 [1] : vector<128x128xf32> to vector<128xf32>
    %86 = vector.shape_cast %85 : vector<128xf32> to vector<128x1xf32>
    %87 = vector.broadcast %86 : vector<128x1xf32> to vector<128x128xf32>
    %88 = arith.subf %84, %87 : vector<128x128xf32>
    %89 = math.exp %88 : vector<128x128xf32>
    %cst_23 = arith.constant dense<0.000000e+00> : vector<128xf32>
    %90 = vector.multi_reduction <add>, %89, %cst_23 [1] : vector<128x128xf32> to vector<128xf32>
    %91 = vector.shape_cast %90 : vector<128xf32> to vector<128x1xf32>
    %92 = tpu.reciprocal %91 {approx = true} : vector<128x1xf32> -> vector<128x1xf32>
    %93 = vector.broadcast %92 : vector<128x1xf32> to vector<128x128xf32>
    %94 = arith.mulf %89, %93 : vector<128x128xf32>
    %95 = arith.truncf %94 : vector<128x128xf32> to vector<128x128xbf16>
    %cst_24 = arith.constant dense<0.000000e+00> : vector<128x32xf32>
    %96 = tpu.matmul %95, %79, %cst_24 {dimension_numbers = #tpu.dot_dimension_numbers<[1], [0], [0], [1], [0, 0, 1, 1], [], []>} : vector<128x128xbf16>, vector<128x32xbf16>, vector<128x32xf32> -> vector<128x32xf32>
    %97 = tpu.concatenate %27, %50, %73, %96 in 1 : vector<128x32xf32>, vector<128x32xf32>, vector<128x32xf32>, vector<128x32xf32> -> vector<128x128xf32>
    %c0_25 = arith.constant 0 : index
    %c0_26 = arith.constant 0 : index
    %c0_27 = arith.constant 0 : index
    %98 = vector.load %arg2[%c0_25, %c0_26, %c0_27] : memref<1x128x128xf32, #tpu.memory_space<vmem>>, vector<1x128x128xf32>
    %99 = vector.shape_cast %98 : vector<1x128x128xf32> to vector<128x128xf32>
    %100 = vector.shape_cast %97 : vector<128x128xf32> to vector<1x128x128xf32>
    tpu.vector_store %arg2[%c0_25, %c0_26, %c0_27], %100 {strides = array<i32>} : memref<1x128x128xf32, #tpu.memory_space<vmem>>, vector<1x128x128xf32>,
    return
  }
  func.func @transform_0(%arg0: i32) -> (i32, i32, i32) {
    %c0_i32 = arith.constant 0 : i32
    %c0_i32_0 = arith.constant 0 : i32
    %c0_i32_1 = arith.constant 0 : i32
    return %arg0, %c0_i32, %c0_i32_0 : i32, i32, i32
  }
  func.func @transform_1(%arg0: i32) -> (i32, i32, i32) {
    %c0_i32 = arith.constant 0 : i32
    %c0_i32_0 = arith.constant 0 : i32
    %c0_i32_1 = arith.constant 0 : i32
    return %arg0, %c0_i32, %c0_i32_0 : i32, i32, i32
  }
}

module attributes {stable_mosaic.version = 11 : i64} {
  func.func @_linear_kernel(%arg0: i32, %arg1: i32, %arg2: memref<128x128xf32, #tpu.memory_space<vmem>>, %arg3: memref<128x384xbf16, #tpu.memory_space<vmem>>, %arg4: memref<1x384xf32, #tpu.memory_space<vmem>>, %arg5: memref<128x384xf32, #tpu.memory_space<vmem>>) attributes {dimension_semantics = [#tpu.dimension_semantics<parallel>, #tpu.dimension_semantics<parallel>], iteration_bounds = array<i64: 2, 1>, scalar_prefetch = 0 : i64, scratch_operands = 0 : i64, tpu.core_type = #tpu.core_type<tc>, window_params = [{transform_indices = @transform_0, window_bounds = array<i64: 128, 128>}, {transform_indices = @transform_1, window_bounds = array<i64: 128, 384>}, {transform_indices = @transform_2, window_bounds = array<i64: 1, 384>}, {transform_indices = @transform_3, window_bounds = array<i64: 128, 384>}]} {
    %c0 = arith.constant 0 : index
    %c0_0 = arith.constant 0 : index
    %0 = vector.load %arg2[%c0, %c0_0] : memref<128x128xf32, #tpu.memory_space<vmem>>, vector<128x128xf32>
    %1 = arith.truncf %0 : vector<128x128xf32> to vector<128x128xbf16>
    %c0_1 = arith.constant 0 : index
    %c0_2 = arith.constant 0 : index
    %2 = vector.load %arg3[%c0_1, %c0_2] : memref<128x384xbf16, #tpu.memory_space<vmem>>, vector<128x384xbf16>
    %cst = arith.constant dense<0.000000e+00> : vector<128x384xf32>
    %3 = tpu.matmul %1, %2, %cst {dimension_numbers = #tpu.dot_dimension_numbers<[1], [0], [0], [1], [0, 0, 1, 1], [], []>} : vector<128x128xbf16>, vector<128x384xbf16>, vector<128x384xf32> -> vector<128x384xf32>
    %c0_3 = arith.constant 0 : index
    %c0_4 = arith.constant 0 : index
    %4 = vector.load %arg4[%c0_3, %c0_4] : memref<1x384xf32, #tpu.memory_space<vmem>>, vector<1x384xf32>
    %5 = vector.broadcast %4 : vector<1x384xf32> to vector<128x384xf32>
    %6 = arith.addf %3, %5 : vector<128x384xf32>
    %c0_5 = arith.constant 0 : index
    %c0_6 = arith.constant 0 : index
    %7 = vector.load %arg5[%c0_5, %c0_6] : memref<128x384xf32, #tpu.memory_space<vmem>>, vector<128x384xf32>
    tpu.vector_store %arg5[%c0_5, %c0_6], %6 {strides = array<i32>} : memref<128x384xf32, #tpu.memory_space<vmem>>, vector<128x384xf32>,
    return
  }
  func.func @transform_0(%arg0: i32, %arg1: i32) -> (i32, i32) {
    %c0_i32 = arith.constant 0 : i32
    %c0_i32_0 = arith.constant 0 : i32
    return %arg0, %c0_i32 : i32, i32
  }
  func.func @transform_1(%arg0: i32, %arg1: i32) -> (i32, i32) {
    %c0_i32 = arith.constant 0 : i32
    %c0_i32_0 = arith.constant 0 : i32
    return %c0_i32, %arg1 : i32, i32
  }
  func.func @transform_2(%arg0: i32, %arg1: i32) -> (i32, i32) {
    %c0_i32 = arith.constant 0 : i32
    %c0_i32_0 = arith.constant 0 : i32
    return %c0_i32, %arg1 : i32, i32
  }
  func.func @transform_3(%arg0: i32, %arg1: i32) -> (i32, i32) {
    %c0_i32 = arith.constant 0 : i32
    return %arg0, %arg1 : i32, i32
  }
}

module attributes {stable_mosaic.version = 11 : i64} {
  func.func @_linear_kernel(%arg0: i32, %arg1: i32, %arg2: memref<128x128xf32, #tpu.memory_space<vmem>>, %arg3: memref<128x512xbf16, #tpu.memory_space<vmem>>, %arg4: memref<1x512xf32, #tpu.memory_space<vmem>>, %arg5: memref<128x512xf32, #tpu.memory_space<vmem>>) attributes {dimension_semantics = [#tpu.dimension_semantics<parallel>, #tpu.dimension_semantics<parallel>], iteration_bounds = array<i64: 2, 1>, scalar_prefetch = 0 : i64, scratch_operands = 0 : i64, tpu.core_type = #tpu.core_type<tc>, window_params = [{transform_indices = @transform_0, window_bounds = array<i64: 128, 128>}, {transform_indices = @transform_1, window_bounds = array<i64: 128, 512>}, {transform_indices = @transform_2, window_bounds = array<i64: 1, 512>}, {transform_indices = @transform_3, window_bounds = array<i64: 128, 512>}]} {
    %c0 = arith.constant 0 : index
    %c0_0 = arith.constant 0 : index
    %0 = vector.load %arg2[%c0, %c0_0] : memref<128x128xf32, #tpu.memory_space<vmem>>, vector<128x128xf32>
    %1 = arith.truncf %0 : vector<128x128xf32> to vector<128x128xbf16>
    %c0_1 = arith.constant 0 : index
    %c0_2 = arith.constant 0 : index
    %2 = vector.load %arg3[%c0_1, %c0_2] : memref<128x512xbf16, #tpu.memory_space<vmem>>, vector<128x512xbf16>
    %cst = arith.constant dense<0.000000e+00> : vector<128x512xf32>
    %3 = tpu.matmul %1, %2, %cst {dimension_numbers = #tpu.dot_dimension_numbers<[1], [0], [0], [1], [0, 0, 1, 1], [], []>} : vector<128x128xbf16>, vector<128x512xbf16>, vector<128x512xf32> -> vector<128x512xf32>
    %c0_3 = arith.constant 0 : index
    %c0_4 = arith.constant 0 : index
    %4 = vector.load %arg4[%c0_3, %c0_4] : memref<1x512xf32, #tpu.memory_space<vmem>>, vector<1x512xf32>
    %5 = vector.broadcast %4 : vector<1x512xf32> to vector<128x512xf32>
    %6 = arith.addf %3, %5 : vector<128x512xf32>
    %7 = arith.negf %6 : vector<128x512xf32>
    %8 = math.exp %7 : vector<128x512xf32>
    %cst_5 = arith.constant 1.000000e+00 : f32
    %9 = vector.broadcast %cst_5 : f32 to vector<128x512xf32>
    %10 = arith.addf %9, %8 : vector<128x512xf32>
    %11 = arith.divf %9, %10 : vector<128x512xf32>
    %12 = arith.mulf %6, %11 : vector<128x512xf32>
    %c0_6 = arith.constant 0 : index
    %c0_7 = arith.constant 0 : index
    %13 = vector.load %arg5[%c0_6, %c0_7] : memref<128x512xf32, #tpu.memory_space<vmem>>, vector<128x512xf32>
    tpu.vector_store %arg5[%c0_6, %c0_7], %12 {strides = array<i32>} : memref<128x512xf32, #tpu.memory_space<vmem>>, vector<128x512xf32>,
    return
  }
  func.func @transform_0(%arg0: i32, %arg1: i32) -> (i32, i32) {
    %c0_i32 = arith.constant 0 : i32
    %c0_i32_0 = arith.constant 0 : i32
    return %arg0, %c0_i32 : i32, i32
  }
  func.func @transform_1(%arg0: i32, %arg1: i32) -> (i32, i32) {
    %c0_i32 = arith.constant 0 : i32
    %c0_i32_0 = arith.constant 0 : i32
    return %c0_i32, %arg1 : i32, i32
  }
  func.func @transform_2(%arg0: i32, %arg1: i32) -> (i32, i32) {
    %c0_i32 = arith.constant 0 : i32
    %c0_i32_0 = arith.constant 0 : i32
    return %c0_i32, %arg1 : i32, i32
  }
  func.func @transform_3(%arg0: i32, %arg1: i32) -> (i32, i32) {
    %c0_i32 = arith.constant 0 : i32
    return %arg0, %arg1 : i32, i32
  }
}

module attributes {stable_mosaic.version = 11 : i64} {
  func.func @_linear_add_ln_kernel(%arg0: i32, %arg1: memref<128x128xf32, #tpu.memory_space<vmem>>, %arg2: memref<128x128xbf16, #tpu.memory_space<vmem>>, %arg3: memref<1x128xf32, #tpu.memory_space<vmem>>, %arg4: memref<128x128xf32, #tpu.memory_space<vmem>>, %arg5: memref<1x128xf32, #tpu.memory_space<vmem>>, %arg6: memref<1x128xf32, #tpu.memory_space<vmem>>, %arg7: memref<128x128xf32, #tpu.memory_space<vmem>>) attributes {dimension_semantics = [#tpu.dimension_semantics<parallel>], iteration_bounds = array<i64: 2>, scalar_prefetch = 0 : i64, scratch_operands = 0 : i64, tpu.core_type = #tpu.core_type<tc>, window_params = [{transform_indices = @transform_0, window_bounds = array<i64: 128, 128>}, {pipeline_mode = #tpu.pipeline_mode<synchronous>, transform_indices = @transform_1, window_bounds = array<i64: 128, 128>}, {pipeline_mode = #tpu.pipeline_mode<synchronous>, transform_indices = @transform_2, window_bounds = array<i64: 1, 128>}, {transform_indices = @transform_3, window_bounds = array<i64: 128, 128>}, {pipeline_mode = #tpu.pipeline_mode<synchronous>, transform_indices = @transform_4, window_bounds = array<i64: 1, 128>}, {pipeline_mode = #tpu.pipeline_mode<synchronous>, transform_indices = @transform_5, window_bounds = array<i64: 1, 128>}, {transform_indices = @transform_6, window_bounds = array<i64: 128, 128>}]} {
    %c0 = arith.constant 0 : index
    %c0_0 = arith.constant 0 : index
    %0 = vector.load %arg1[%c0, %c0_0] : memref<128x128xf32, #tpu.memory_space<vmem>>, vector<128x128xf32>
    %1 = arith.truncf %0 : vector<128x128xf32> to vector<128x128xbf16>
    %c0_1 = arith.constant 0 : index
    %c0_2 = arith.constant 0 : index
    %2 = vector.load %arg2[%c0_1, %c0_2] : memref<128x128xbf16, #tpu.memory_space<vmem>>, vector<128x128xbf16>
    %cst = arith.constant dense<0.000000e+00> : vector<128x128xf32>
    %3 = tpu.matmul %1, %2, %cst {dimension_numbers = #tpu.dot_dimension_numbers<[1], [0], [0], [1], [0, 0, 1, 1], [], []>} : vector<128x128xbf16>, vector<128x128xbf16>, vector<128x128xf32> -> vector<128x128xf32>
    %c0_3 = arith.constant 0 : index
    %c0_4 = arith.constant 0 : index
    %4 = vector.load %arg3[%c0_3, %c0_4] : memref<1x128xf32, #tpu.memory_space<vmem>>, vector<1x128xf32>
    %5 = vector.broadcast %4 : vector<1x128xf32> to vector<128x128xf32>
    %6 = arith.addf %3, %5 : vector<128x128xf32>
    %c0_5 = arith.constant 0 : index
    %c0_6 = arith.constant 0 : index
    %7 = vector.load %arg4[%c0_5, %c0_6] : memref<128x128xf32, #tpu.memory_space<vmem>>, vector<128x128xf32>
    %8 = arith.addf %7, %6 : vector<128x128xf32>
    %cst_7 = arith.constant dense<0.000000e+00> : vector<128xf32>
    %9 = vector.multi_reduction <add>, %8, %cst_7 [1] : vector<128x128xf32> to vector<128xf32>
    %10 = vector.shape_cast %9 : vector<128xf32> to vector<128x1xf32>
    %cst_8 = arith.constant 1.280000e+02 : f32
    %11 = vector.broadcast %cst_8 : f32 to vector<128x1xf32>
    %12 = arith.divf %10, %11 : vector<128x1xf32>
    %13 = vector.broadcast %12 : vector<128x1xf32> to vector<128x128xf32>
    %14 = arith.subf %8, %13 : vector<128x128xf32>
    %15 = arith.mulf %14, %14 : vector<128x128xf32>
    %cst_9 = arith.constant dense<0.000000e+00> : vector<128xf32>
    %16 = vector.multi_reduction <add>, %15, %cst_9 [1] : vector<128x128xf32> to vector<128xf32>
    %17 = vector.shape_cast %16 : vector<128xf32> to vector<128x1xf32>
    %cst_10 = arith.constant 1.280000e+02 : f32
    %18 = vector.broadcast %cst_10 : f32 to vector<128x1xf32>
    %19 = arith.divf %17, %18 : vector<128x1xf32>
    %cst_11 = arith.constant 9.99999974E-6 : f32
    %20 = vector.broadcast %cst_11 : f32 to vector<128x1xf32>
    %21 = arith.addf %19, %20 : vector<128x1xf32>
    %22 = math.rsqrt %21 : vector<128x1xf32>
    %23 = vector.broadcast %22 : vector<128x1xf32> to vector<128x128xf32>
    %24 = arith.mulf %14, %23 : vector<128x128xf32>
    %c0_12 = arith.constant 0 : index
    %c0_13 = arith.constant 0 : index
    %25 = vector.load %arg5[%c0_12, %c0_13] : memref<1x128xf32, #tpu.memory_space<vmem>>, vector<1x128xf32>
    %26 = vector.broadcast %25 : vector<1x128xf32> to vector<128x128xf32>
    %27 = arith.mulf %24, %26 : vector<128x128xf32>
    %c0_14 = arith.constant 0 : index
    %c0_15 = arith.constant 0 : index
    %28 = vector.load %arg6[%c0_14, %c0_15] : memref<1x128xf32, #tpu.memory_space<vmem>>, vector<1x128xf32>
    %29 = vector.broadcast %28 : vector<1x128xf32> to vector<128x128xf32>
    %30 = arith.addf %27, %29 : vector<128x128xf32>
    %c0_16 = arith.constant 0 : index
    %c0_17 = arith.constant 0 : index
    %31 = vector.load %arg7[%c0_16, %c0_17] : memref<128x128xf32, #tpu.memory_space<vmem>>, vector<128x128xf32>
    tpu.vector_store %arg7[%c0_16, %c0_17], %30 {strides = array<i32>} : memref<128x128xf32, #tpu.memory_space<vmem>>, vector<128x128xf32>,
    return
  }
  func.func @transform_0(%arg0: i32) -> (i32, i32) {
    %c0_i32 = arith.constant 0 : i32
    %c0_i32_0 = arith.constant 0 : i32
    return %arg0, %c0_i32 : i32, i32
  }
  func.func @transform_1(%arg0: i32) -> (i32, i32) {
    %c0_i32 = arith.constant 0 : i32
    %c0_i32_0 = arith.constant 0 : i32
    %c0_i32_1 = arith.constant 0 : i32
    return %c0_i32, %c0_i32_0 : i32, i32
  }
  func.func @transform_2(%arg0: i32) -> (i32, i32) {
    %c0_i32 = arith.constant 0 : i32
    %c0_i32_0 = arith.constant 0 : i32
    %c0_i32_1 = arith.constant 0 : i32
    return %c0_i32, %c0_i32_0 : i32, i32
  }
  func.func @transform_3(%arg0: i32) -> (i32, i32) {
    %c0_i32 = arith.constant 0 : i32
    %c0_i32_0 = arith.constant 0 : i32
    return %arg0, %c0_i32 : i32, i32
  }
  func.func @transform_4(%arg0: i32) -> (i32, i32) {
    %c0_i32 = arith.constant 0 : i32
    %c0_i32_0 = arith.constant 0 : i32
    %c0_i32_1 = arith.constant 0 : i32
    return %c0_i32, %c0_i32_0 : i32, i32
  }
  func.func @transform_5(%arg0: i32) -> (i32, i32) {
    %c0_i32 = arith.constant 0 : i32
    %c0_i32_0 = arith.constant 0 : i32
    %c0_i32_1 = arith.constant 0 : i32
    return %c0_i32, %c0_i32_0 : i32, i32
  }
  func.func @transform_6(%arg0: i32) -> (i32, i32) {
    %c0_i32 = arith.constant 0 : i32
    %c0_i32_0 = arith.constant 0 : i32
    return %arg0, %c0_i32 : i32, i32
  }
}

module attributes {stable_mosaic.version = 11 : i64} {
  func.func @_rmsnorm_kernel(%arg0: i32, %arg1: memref<128x128xf32, #tpu.memory_space<vmem>>, %arg2: memref<1x128xf32, #tpu.memory_space<vmem>>, %arg3: memref<128x128xf32, #tpu.memory_space<vmem>>) attributes {dimension_semantics = [#tpu.dimension_semantics<parallel>], iteration_bounds = array<i64: 2>, scalar_prefetch = 0 : i64, scratch_operands = 0 : i64, tpu.core_type = #tpu.core_type<tc>, window_params = [{transform_indices = @transform_0, window_bounds = array<i64: 128, 128>}, {pipeline_mode = #tpu.pipeline_mode<synchronous>, transform_indices = @transform_1, window_bounds = array<i64: 1, 128>}, {transform_indices = @transform_2, window_bounds = array<i64: 128, 128>}]} {
    %c0 = arith.constant 0 : index
    %c0_0 = arith.constant 0 : index
    %0 = vector.load %arg1[%c0, %c0_0] : memref<128x128xf32, #tpu.memory_space<vmem>>, vector<128x128xf32>
    %1 = arith.mulf %0, %0 : vector<128x128xf32>
    %cst = arith.constant dense<0.000000e+00> : vector<128xf32>
    %2 = vector.multi_reduction <add>, %1, %cst [1] : vector<128x128xf32> to vector<128xf32>
    %3 = vector.shape_cast %2 : vector<128xf32> to vector<128x1xf32>
    %cst_1 = arith.constant 1.280000e+02 : f32
    %4 = vector.broadcast %cst_1 : f32 to vector<128x1xf32>
    %5 = arith.divf %3, %4 : vector<128x1xf32>
    %cst_2 = arith.constant 1.1920929E-7 : f32
    %6 = vector.broadcast %cst_2 : f32 to vector<128x1xf32>
    %7 = arith.addf %5, %6 : vector<128x1xf32>
    %8 = math.rsqrt %7 : vector<128x1xf32>
    %9 = vector.broadcast %8 : vector<128x1xf32> to vector<128x128xf32>
    %10 = arith.mulf %0, %9 : vector<128x128xf32>
    %c0_3 = arith.constant 0 : index
    %c0_4 = arith.constant 0 : index
    %11 = vector.load %arg2[%c0_3, %c0_4] : memref<1x128xf32, #tpu.memory_space<vmem>>, vector<1x128xf32>
    %12 = vector.broadcast %11 : vector<1x128xf32> to vector<128x128xf32>
    %13 = arith.mulf %10, %12 : vector<128x128xf32>
    %c0_5 = arith.constant 0 : index
    %c0_6 = arith.constant 0 : index
    %14 = vector.load %arg3[%c0_5, %c0_6] : memref<128x128xf32, #tpu.memory_space<vmem>>, vector<128x128xf32>
    tpu.vector_store %arg3[%c0_5, %c0_6], %13 {strides = array<i32>} : memref<128x128xf32, #tpu.memory_space<vmem>>, vector<128x128xf32>,
    return
  }
  func.func @transform_0(%arg0: i32) -> (i32, i32) {
    %c0_i32 = arith.constant 0 : i32
    %c0_i32_0 = arith.constant 0 : i32
    return %arg0, %c0_i32 : i32, i32
  }
  func.func @transform_1(%arg0: i32) -> (i32, i32) {
    %c0_i32 = arith.constant 0 : i32
    %c0_i32_0 = arith.constant 0 : i32
    %c0_i32_1 = arith.constant 0 : i32
    return %c0_i32, %c0_i32_0 : i32, i32
  }
  func.func @transform_2(%arg0: i32) -> (i32, i32) {
    %c0_i32 = arith.constant 0 : i32
    %c0_i32_0 = arith.constant 0 : i32
    return %arg0, %c0_i32 : i32, i32
  }
}

module attributes {stable_mosaic.version = 11 : i64} {
  func.func @_linear_add_ln_kernel(%arg0: i32, %arg1: memref<128x512xf32, #tpu.memory_space<vmem>>, %arg2: memref<512x128xbf16, #tpu.memory_space<vmem>>, %arg3: memref<1x128xf32, #tpu.memory_space<vmem>>, %arg4: memref<128x128xf32, #tpu.memory_space<vmem>>, %arg5: memref<1x128xf32, #tpu.memory_space<vmem>>, %arg6: memref<1x128xf32, #tpu.memory_space<vmem>>, %arg7: memref<128x128xf32, #tpu.memory_space<vmem>>) attributes {dimension_semantics = [#tpu.dimension_semantics<parallel>], iteration_bounds = array<i64: 2>, scalar_prefetch = 0 : i64, scratch_operands = 0 : i64, tpu.core_type = #tpu.core_type<tc>, window_params = [{transform_indices = @transform_0, window_bounds = array<i64: 128, 512>}, {pipeline_mode = #tpu.pipeline_mode<synchronous>, transform_indices = @transform_1, window_bounds = array<i64: 512, 128>}, {pipeline_mode = #tpu.pipeline_mode<synchronous>, transform_indices = @transform_2, window_bounds = array<i64: 1, 128>}, {transform_indices = @transform_3, window_bounds = array<i64: 128, 128>}, {pipeline_mode = #tpu.pipeline_mode<synchronous>, transform_indices = @transform_4, window_bounds = array<i64: 1, 128>}, {pipeline_mode = #tpu.pipeline_mode<synchronous>, transform_indices = @transform_5, window_bounds = array<i64: 1, 128>}, {transform_indices = @transform_6, window_bounds = array<i64: 128, 128>}]} {
    %c0 = arith.constant 0 : index
    %c0_0 = arith.constant 0 : index
    %0 = vector.load %arg1[%c0, %c0_0] : memref<128x512xf32, #tpu.memory_space<vmem>>, vector<128x512xf32>
    %1 = arith.truncf %0 : vector<128x512xf32> to vector<128x512xbf16>
    %c0_1 = arith.constant 0 : index
    %c0_2 = arith.constant 0 : index
    %2 = vector.load %arg2[%c0_1, %c0_2] : memref<512x128xbf16, #tpu.memory_space<vmem>>, vector<512x128xbf16>
    %cst = arith.constant dense<0.000000e+00> : vector<128x128xf32>
    %3 = tpu.matmul %1, %2, %cst {dimension_numbers = #tpu.dot_dimension_numbers<[1], [0], [0], [1], [0, 0, 1, 1], [], []>} : vector<128x512xbf16>, vector<512x128xbf16>, vector<128x128xf32> -> vector<128x128xf32>
    %c0_3 = arith.constant 0 : index
    %c0_4 = arith.constant 0 : index
    %4 = vector.load %arg3[%c0_3, %c0_4] : memref<1x128xf32, #tpu.memory_space<vmem>>, vector<1x128xf32>
    %5 = vector.broadcast %4 : vector<1x128xf32> to vector<128x128xf32>
    %6 = arith.addf %3, %5 : vector<128x128xf32>
    %c0_5 = arith.constant 0 : index
    %c0_6 = arith.constant 0 : index
    %7 = vector.load %arg4[%c0_5, %c0_6] : memref<128x128xf32, #tpu.memory_space<vmem>>, vector<128x128xf32>
    %8 = arith.addf %7, %6 : vector<128x128xf32>
    %cst_7 = arith.constant dense<0.000000e+00> : vector<128xf32>
    %9 = vector.multi_reduction <add>, %8, %cst_7 [1] : vector<128x128xf32> to vector<128xf32>
    %10 = vector.shape_cast %9 : vector<128xf32> to vector<128x1xf32>
    %cst_8 = arith.constant 1.280000e+02 : f32
    %11 = vector.broadcast %cst_8 : f32 to vector<128x1xf32>
    %12 = arith.divf %10, %11 : vector<128x1xf32>
    %13 = vector.broadcast %12 : vector<128x1xf32> to vector<128x128xf32>
    %14 = arith.subf %8, %13 : vector<128x128xf32>
    %15 = arith.mulf %14, %14 : vector<128x128xf32>
    %cst_9 = arith.constant dense<0.000000e+00> : vector<128xf32>
    %16 = vector.multi_reduction <add>, %15, %cst_9 [1] : vector<128x128xf32> to vector<128xf32>
    %17 = vector.shape_cast %16 : vector<128xf32> to vector<128x1xf32>
    %cst_10 = arith.constant 1.280000e+02 : f32
    %18 = vector.broadcast %cst_10 : f32 to vector<128x1xf32>
    %19 = arith.divf %17, %18 : vector<128x1xf32>
    %cst_11 = arith.constant 9.99999974E-6 : f32
    %20 = vector.broadcast %cst_11 : f32 to vector<128x1xf32>
    %21 = arith.addf %19, %20 : vector<128x1xf32>
    %22 = math.rsqrt %21 : vector<128x1xf32>
    %23 = vector.broadcast %22 : vector<128x1xf32> to vector<128x128xf32>
    %24 = arith.mulf %14, %23 : vector<128x128xf32>
    %c0_12 = arith.constant 0 : index
    %c0_13 = arith.constant 0 : index
    %25 = vector.load %arg5[%c0_12, %c0_13] : memref<1x128xf32, #tpu.memory_space<vmem>>, vector<1x128xf32>
    %26 = vector.broadcast %25 : vector<1x128xf32> to vector<128x128xf32>
    %27 = arith.mulf %24, %26 : vector<128x128xf32>
    %c0_14 = arith.constant 0 : index
    %c0_15 = arith.constant 0 : index
    %28 = vector.load %arg6[%c0_14, %c0_15] : memref<1x128xf32, #tpu.memory_space<vmem>>, vector<1x128xf32>
    %29 = vector.broadcast %28 : vector<1x128xf32> to vector<128x128xf32>
    %30 = arith.addf %27, %29 : vector<128x128xf32>
    %c0_16 = arith.constant 0 : index
    %c0_17 = arith.constant 0 : index
    %31 = vector.load %arg7[%c0_16, %c0_17] : memref<128x128xf32, #tpu.memory_space<vmem>>, vector<128x128xf32>
    tpu.vector_store %arg7[%c0_16, %c0_17], %30 {strides = array<i32>} : memref<128x128xf32, #tpu.memory_space<vmem>>, vector<128x128xf32>,
    return
  }
  func.func @transform_0(%arg0: i32) -> (i32, i32) {
    %c0_i32 = arith.constant 0 : i32
    %c0_i32_0 = arith.constant 0 : i32
    return %arg0, %c0_i32 : i32, i32
  }
  func.func @transform_1(%arg0: i32) -> (i32, i32) {
    %c0_i32 = arith.constant 0 : i32
    %c0_i32_0 = arith.constant 0 : i32
    %c0_i32_1 = arith.constant 0 : i32
    return %c0_i32, %c0_i32_0 : i32, i32
  }
  func.func @transform_2(%arg0: i32) -> (i32, i32) {
    %c0_i32 = arith.constant 0 : i32
    %c0_i32_0 = arith.constant 0 : i32
    %c0_i32_1 = arith.constant 0 : i32
    return %c0_i32, %c0_i32_0 : i32, i32
  }
  func.func @transform_3(%arg0: i32) -> (i32, i32) {
    %c0_i32 = arith.constant 0 : i32
    %c0_i32_0 = arith.constant 0 : i32
    return %arg0, %c0_i32 : i32, i32
  }
  func.func @transform_4(%arg0: i32) -> (i32, i32) {
    %c0_i32 = arith.constant 0 : i32
    %c0_i32_0 = arith.constant 0 : i32
    %c0_i32_1 = arith.constant 0 : i32
    return %c0_i32, %c0_i32_0 : i32, i32
  }
  func.func @transform_5(%arg0: i32) -> (i32, i32) {
    %c0_i32 = arith.constant 0 : i32
    %c0_i32_0 = arith.constant 0 : i32
    %c0_i32_1 = arith.constant 0 : i32
    return %c0_i32, %c0_i32_0 : i32, i32
  }
  func.func @transform_6(%arg0: i32) -> (i32, i32) {
    %c0_i32 = arith.constant 0 : i32
    %c0_i32_0 = arith.constant 0 : i32
    return %arg0, %c0_i32 : i32, i32
  }
}

module attributes {stable_mosaic.version = 11 : i64} {
  func.func @_linear_kernel(%arg0: i32, %arg1: i32, %arg2: memref<128x128xf32, #tpu.memory_space<vmem>>, %arg3: memref<128x128xbf16, #tpu.memory_space<vmem>>, %arg4: memref<1x128xf32, #tpu.memory_space<vmem>>, %arg5: memref<128x128xf32, #tpu.memory_space<vmem>>) attributes {dimension_semantics = [#tpu.dimension_semantics<parallel>, #tpu.dimension_semantics<parallel>], iteration_bounds = array<i64: 2, 1>, scalar_prefetch = 0 : i64, scratch_operands = 0 : i64, tpu.core_type = #tpu.core_type<tc>, window_params = [{transform_indices = @transform_0, window_bounds = array<i64: 128, 128>}, {transform_indices = @transform_1, window_bounds = array<i64: 128, 128>}, {transform_indices = @transform_2, window_bounds = array<i64: 1, 128>}, {transform_indices = @transform_3, window_bounds = array<i64: 128, 128>}]} {
    %c0 = arith.constant 0 : index
    %c0_0 = arith.constant 0 : index
    %0 = vector.load %arg2[%c0, %c0_0] : memref<128x128xf32, #tpu.memory_space<vmem>>, vector<128x128xf32>
    %1 = arith.truncf %0 : vector<128x128xf32> to vector<128x128xbf16>
    %c0_1 = arith.constant 0 : index
    %c0_2 = arith.constant 0 : index
    %2 = vector.load %arg3[%c0_1, %c0_2] : memref<128x128xbf16, #tpu.memory_space<vmem>>, vector<128x128xbf16>
    %cst = arith.constant dense<0.000000e+00> : vector<128x128xf32>
    %3 = tpu.matmul %1, %2, %cst {dimension_numbers = #tpu.dot_dimension_numbers<[1], [0], [0], [1], [0, 0, 1, 1], [], []>} : vector<128x128xbf16>, vector<128x128xbf16>, vector<128x128xf32> -> vector<128x128xf32>
    %c0_3 = arith.constant 0 : index
    %c0_4 = arith.constant 0 : index
    %4 = vector.load %arg4[%c0_3, %c0_4] : memref<1x128xf32, #tpu.memory_space<vmem>>, vector<1x128xf32>
    %5 = vector.broadcast %4 : vector<1x128xf32> to vector<128x128xf32>
    %6 = arith.addf %3, %5 : vector<128x128xf32>
    %c0_5 = arith.constant 0 : index
    %c0_6 = arith.constant 0 : index
    %7 = vector.load %arg5[%c0_5, %c0_6] : memref<128x128xf32, #tpu.memory_space<vmem>>, vector<128x128xf32>
    tpu.vector_store %arg5[%c0_5, %c0_6], %6 {strides = array<i32>} : memref<128x128xf32, #tpu.memory_space<vmem>>, vector<128x128xf32>,
    return
  }
  func.func @transform_0(%arg0: i32, %arg1: i32) -> (i32, i32) {
    %c0_i32 = arith.constant 0 : i32
    %c0_i32_0 = arith.constant 0 : i32
    return %arg0, %c0_i32 : i32, i32
  }
  func.func @transform_1(%arg0: i32, %arg1: i32) -> (i32, i32) {
    %c0_i32 = arith.constant 0 : i32
    %c0_i32_0 = arith.constant 0 : i32
    return %c0_i32, %arg1 : i32, i32
  }
  func.func @transform_2(%arg0: i32, %arg1: i32) -> (i32, i32) {
    %c0_i32 = arith.constant 0 : i32
    %c0_i32_0 = arith.constant 0 : i32
    return %c0_i32, %arg1 : i32, i32
  }
  func.func @transform_3(%arg0: i32, %arg1: i32) -> (i32, i32) {
    %c0_i32 = arith.constant 0 : i32
    return %arg0, %arg1 : i32, i32
  }
}

</mosaic_0001>

<bundles_post_ra>
// kernel: transformer_lm_forward.14
= control target key start
LH: loop header
LB: loop body
LE: loop exit
PB: predicated region body
PF: predicated region fallthrough
CT: control target
= control target key end

     0   :  { %s988_s21 = smov 0   ;;  %s1294_s0 = inlined_call_operand.vmem [shape: f32[256,128], index: 0, kind: input, shape index: {}]   ;;  %s1295_s1 = inlined_call_operand.vmem [shape: bf16[128,128], index: 1, kind: input, shape index: {}]   ;;  %s1296_s2 = inlined_call_operand.vmem [shape: f32[1,128], index: 2, kind: input, shape index: {}]   ;;  %s1297_s3 = inlined_call_operand.vmem [shape: f32[256,128], index: 3, kind: input, shape index: {}]   ;;  %s1298_s4 = inlined_call_operand.vmem [shape: f32[1,128], index: 4, kind: input, shape index: {}]   ;;  %s1299_s5 = inlined_call_operand.vmem [shape: f32[1,128], index: 5, kind: input, shape index: {}]   ;;  %s1300_s6 = inlined_call_operand.vmem [shape: f32[256,128], index: 6, kind: output, shape index: {}]  }
   0x1 LB: > { %s809_s22 = sadd.s32 4294967295, %s951_s21   ;;  %p813_p0 = scmp.ge.s32.totalorder %s951_s21, 1  ;;  %s951_s21 = sphi %s988_s21, %s16_s21  }
   0x2   : > { %p224_p1 = scmp.lt.s32.totalorder %s951_s21, 3 }
   0x4   : > { %p225_p2 = pnand %p813_p0, %p224_p1 }
   0x5   : > { %v905_v0 = vld [vmem:[%s1295_s1] sm:$0xff] (!%p225_p2)   ;;  %s814_s25 = sshll.u32 (!%p225_p2), %s809_s22, 4  ;;  %v906_v1 = vld [vmem:[%s1295_s1 + $0x8] sm:$0xff] (!%p225_p2)   ;;  %v907_v2 = vld [vmem:[%s1295_s1 + $0x10] sm:$0xff] (!%p225_p2)  }
   0x6   : > { %228 = sbr.rel (%p225_p2) target bundleno = 599 (0x257), region = 44  ;;  %p260_p3 = scmp.lt.s32.totalorder (!%p225_p2), %s814_s25, 31  ;;  %849 = vmatprep.subr.bf16.mxu0 (!%p225_p2), %v905_v0  ;;  %881 = vmatprep.subr.bf16.mxu1 (!%p225_p2), %v905_v0  ;;  %v908_v3 = vld [vmem:[%s1295_s1 + $0x18] sm:$0xff] (!%p225_p2)   ;;  %v909_v10 = vld [vmem:[%s1295_s1 + $0x20] sm:$0xff] (!%p225_p2)   ;;  %v910_v11 = vld [vmem:[%s1295_s1 + $0x28] sm:$0xff] (!%p225_p2)  }
   0x7   : > { %850 = vmatpush3.bf16.msra.mxu0 (!%p225_p2), %v905_v0  ;;  %889 = vmatpush3.bf16.msra.mxu1 (!%p225_p2), %v905_v0  ;;  %v911_v12 = vld [vmem:[%s1295_s1 + $0x30] sm:$0xff] (!%p225_p2)   ;;  %v912_v13 = vld [vmem:[%s1295_s1 + $0x38] sm:$0xff] (!%p225_p2)   ;;  %v1053_v32 = vld [vmem:[%s1296_s2] ss:$0 sm:$0xff] (!%p225_p2) }
   0x8   : > { %851 = vmatprep.subr.bf16.mxu0 (!%p225_p2), %v906_v1  ;;  %882 = vmatprep.subr.bf16.mxu1 (!%p225_p2), %v906_v1 }
   0xb   : > { %852 = vmatpush3.bf16.msra.mxu0 (!%p225_p2), %v906_v1  ;;  %890 = vmatpush3.bf16.msra.mxu1 (!%p225_p2), %v906_v1 }
   0xc   : > { %853 = vmatprep.subr.bf16.mxu0 (!%p225_p2), %v907_v2  ;;  %883 = vmatprep.subr.bf16.mxu1 (!%p225_p2), %v907_v2 }
   0xd   : > { %s1302_s25 = smov (!%p260_p3, %s814_s25), 31 }
   0xe   : > { %s1005_s30 = sshll.u32 %s1302_s25, 3 }
   0xf   : > { %s1011_s9 = scalar_lea.vmem %s1294_s0, %s1005_s30  ;;  %854 = vmatpush3.bf16.msra.mxu0 %v907_v2  ;;  %891 = vmatpush3.bf16.msra.mxu1 %v907_v2  ;;  %s1048_s23 = scalar_lea.vmem %s1297_s3, %s1005_s30 }
  0x10   : > { %v278_v4 = vld [vmem:[%s1011_s9] sm:$0xff]  ;;  %v279_v5 = vld [vmem:[%s1011_s9 + $0x8] sm:$0xff]  ;;  %855 = vmatprep.subr.bf16.mxu0 %v908_v3  ;;  %884 = vmatprep.subr.bf16.mxu1 %v908_v3  ;;  %v280_v14 = vld [vmem:[%s1011_s9 + $0x10] sm:$0xff] }
  0x11   : > { %v286_v6 = vld [vmem:[%s1011_s9 + $0x40] sm:$0xff]  ;;  %v294_v7 = vpack.c.bf16 %v279_v5, %v278_v4  ;;  %v287_v8 = vld [vmem:[%s1011_s9 + $0x48] sm:$0xff]  ;;  %v281_v15 = vld [vmem:[%s1011_s9 + $0x18] sm:$0xff] }
  0x12   : > { %v298_v9 = vpack.c.bf16 %v287_v8, %v286_v6  ;;  %v288_v16 = vld [vmem:[%s1011_s9 + $0x50] sm:$0xff]  ;;  %v289_v17 = vld [vmem:[%s1011_s9 + $0x58] sm:$0xff]  ;;  %v282_v18 = vld [vmem:[%s1011_s9 + $0x20] sm:$0xff]  ;;  %v295_v22 = vpack.c.bf16 %v281_v15, %v280_v14 }
  0x13   : > { %865 = vmatprep.mubr.bf16.mxu0 %v294_v7  ;;  %856 = vmatpush3.bf16.msra.mxu0 %v908_v3  ;;  %v283_v19 = vld [vmem:[%s1011_s9 + $0x28] sm:$0xff]  ;;  %v290_v20 = vld [vmem:[%s1011_s9 + $0x60] sm:$0xff]  ;;  %v299_v23 = vpack.c.bf16 %v289_v17, %v288_v16  ;;  %v284_v26 = vld [vmem:[%s1011_s9 + $0x30] sm:$0xff] }
  0x14   : > { %873 = vmatprep.mubr.bf16.mxu1 %v298_v9  ;;  %892 = vmatpush3.bf16.msra.mxu1 %v908_v3  ;;  %v291_v21 = vld [vmem:[%s1011_s9 + $0x68] sm:$0xff]  ;;  %v296_v24 = vpack.c.bf16 %v283_v19, %v282_v18  ;;  %v285_v27 = vld [vmem:[%s1011_s9 + $0x38] sm:$0xff]  ;;  %v292_v28 = vld [vmem:[%s1011_s9 + $0x70] sm:$0xff] }
  0x15   : > { %857 = vmatprep.subr.bf16.mxu0 %v909_v10  ;;  %885 = vmatprep.subr.bf16.mxu1 %v909_v10  ;;  %v300_v25 = vpack.c.bf16 %v291_v21, %v290_v20  ;;  %v293_v29 = vld [vmem:[%s1011_s9 + $0x78] sm:$0xff]  ;;  %v297_v30 = vpack.c.bf16 %v285_v27, %v284_v26  ;;  %v480_v35 = vld [vmem:[%s1048_s23 + $0x50] sm:$0xff]  ;;  %v470_v50 = vld [vmem:[%s1048_s23] sm:$0xff]  ;;  %s1227_s9 = scalar_lea.vmem %s1300_s6, %s1005_s30 }
  0x16   : > { %v301_v31 = vpack.c.bf16 %v293_v29, %v292_v28  ;;  %v472_v36 = vld [vmem:[%s1048_s23 + $0x10] sm:$0xff]  ;;  %v473_v49 = vld [vmem:[%s1048_s23 + $0x18] sm:$0xff]  ;;  %v478_v56 = vld [vmem:[%s1048_s23 + $0x40] sm:$0xff] }
  0x17   : > { %858 = vmatpush3.bf16.msra.mxu0 %v909_v10  ;;  %v481_v55 = vld [vmem:[%s1048_s23 + $0x58] sm:$0xff]  ;;  %v479_v5 = vld [vmem:[%s1048_s23 + $0x48] sm:$0xff]  ;;  %v474_v18 = vld [vmem:[%s1048_s23 + $0x20] sm:$0xff] }
  0x18   : > { %893 = vmatpush3.bf16.msra.mxu1 %v909_v10  ;;  %859 = vmatprep.subr.bf16.mxu0 %v910_v11  ;;  %v471_v6 = vld [vmem:[%s1048_s23 + $0x8] sm:$0xff]  ;;  %v477_v9 = vld [vmem:[%s1048_s23 + $0x38] sm:$0xff]  ;;  %v476_v10 = vld [vmem:[%s1048_s23 + $0x30] sm:$0xff] }
  0x19   : > { %886 = vmatprep.subr.bf16.mxu1 %v910_v11  ;;  %v475_v17 = vld [vmem:[%s1048_s23 + $0x28] sm:$0xff]  ;;  %v485_v29 = vld [vmem:[%s1048_s23 + $0x78] sm:$0xff] }
  0x1a   : > { %v483_v21 = vld [vmem:[%s1048_s23 + $0x68] sm:$0xff] }
  0x1b   : > { %860 = vmatpush3.bf16.msra.mxu0 %v910_v11 }
  0x1c   : > { %894 = vmatpush3.bf16.msra.mxu1 %v910_v11  ;;  %861 = vmatprep.subr.bf16.mxu0 %v911_v12 }
  0x1d   : > { %887 = vmatprep.subr.bf16.mxu1 %v911_v12 }
  0x1f   : > { %862 = vmatpush3.bf16.msra.mxu0 %v911_v12 }
  0x20   : > { %895 = vmatpush3.bf16.msra.mxu1 %v911_v12  ;;  %863 = vmatprep.subr.bf16.mxu0 %v912_v13 }
  0x21   : > { %888 = vmatprep.subr.bf16.mxu1 %v912_v13 }
  0x23   : > { %864 = vmatpush3.bf16.msra.mxu0 %v912_v13 }
  0x24   : > { %896 = vmatpush3.bf16.msra.mxu1 %v912_v13 }
  0x26   : > { %866 = vmatmul.mubr.bf16.vlgmr.msra.gmra.mrb[0].mxu0 %v295_v22  ;;  %v482_v22 = vld [vmem:[%s1048_s23 + $0x60] sm:$0xff] }
  0x27   : > { %874 = vmatmul.mubr.bf16.vlgmr.msra.gmra.mrb[0].mxu1 %v299_v23  ;;  %869 = vmatprep.mubr.bf16.mxu0 %v296_v24 }
  0x28   : > { %877 = vmatprep.mubr.bf16.mxu1 %v300_v25 }
  0x2e   : > { %870 = vmatmul.mubr.bf16.gmra.mrb[4].mxu0 %v297_v30  ;;  %v484_v30 = vld [vmem:[%s1048_s23 + $0x70] sm:$0xff] }
  0x2f   : > { %878 = vmatmul.mubr.bf16.gmra.mrb[4].mxu1 %v301_v31 }
  0xf9   : > { %v867_v33 = vpop.f32.mrb[0].mxu0 }
  0xfa   : > { %v875_v34 = vpop.f32.mrb[0].mxu1  ;;  %v416_v37 = vadd.f32 %v867_v33, %v1053_v32  ;;  %v407_v39 = vpop.f32.mrb[1].mxu0 }
  0xfb   : > { %v448_v38 = vadd.f32 %v875_v34, %v1053_v32  ;;  %v439_v40 = vpop.f32.mrb[1].mxu1  ;;  %v868_v41 = vpop.f32.mrb[2].mxu0  ;;  %v408_v43 = vadd.f32 %v1053_v32, %v407_v39 }
  0xfc   : > { %v876_v42 = vpop.f32.mrb[2].mxu1  ;;  %v419_v44 = vadd.f32 %v868_v41, %v1053_v32  ;;  %v410_v45 = vpop.f32.mrb[3].mxu0  ;;  %v1063_v48 = vadd.f32 %v472_v36, %v416_v37  ;;  %v440_v51 = vadd.f32 %v1053_v32, %v439_v40 }
  0xfd   : > { %v442_v46 = vpop.f32.mrb[3].mxu1  ;;  %v1061_v47 = vadd.f32 %v480_v35, %v448_v38  ;;  %v451_v52 = vadd.f32 %v876_v42, %v1053_v32  ;;  %v1073_v54 = vadd.f32 %v470_v50, %v408_v43  ;;  %v411_v63 = vadd.f32 %v1053_v32, %v410_v45 }
  0xfe   : > { %506 = vadd.xlane.f32.xlu1 %v1063_v48  ;;  %v1071_v53 = vadd.f32 %v473_v49, %v419_v44  ;;  %v443_v0 = vadd.f32 %v1053_v32, %v442_v46  ;;  %v1083_v2 = vadd.f32 %v478_v56, %v440_v51 }
  0xff   : > { %522 = vadd.xlane.f32.xlu0 %v1061_v47  ;;  %v1081_v1 = vadd.f32 %v481_v55, %v451_v52  ;;  %v487_v12 = vadd.f32 %v471_v6, %v411_v63 }
 0x100   : > { %v1093_v11 = vadd.f32 %v479_v5, %v443_v0 }
 0x101   : > { %v871_v57 = vpop.f32.mrb[4].mxu0 }
 0x102   : > { %v879_v58 = vpop.f32.mrb[4].mxu1  ;;  %508 = vadd.xlane.f32.xlu1 %v1071_v53  ;;  %v423_v59 = vpop.f32.mrb[5].mxu0  ;;  %v432_v7 = vadd.f32 %v871_v57, %v1053_v32 }
 0x103   : > { %502 = vadd.xlane.f32.xlu0 %v1073_v54  ;;  %v455_v60 = vpop.f32.mrb[5].mxu1  ;;  %v872_v61 = vpop.f32.mrb[6].mxu0  ;;  %v424_v15 = vadd.f32 %v1053_v32, %v423_v59  ;;  %v464_v27 = vadd.f32 %v879_v58, %v1053_v32 }
 0x104   : > { %v880_v62 = vpop.f32.mrb[6].mxu1  ;;  %v426_v3 = vpop.f32.mrb[7].mxu0  ;;  %v435_v8 = vadd.f32 %v872_v61, %v1053_v32  ;;  %v1098_v14 = vadd.f32 %v476_v10, %v432_v7  ;;  %v456_v19 = vadd.f32 %v1053_v32, %v455_v60 }
 0x105   : > { %v458_v4 = vpop.f32.mrb[7].mxu1  ;;  %v427_v16 = vadd.f32 %v1053_v32, %v426_v3  ;;  %v1112_v24 = vadd.f32 %v474_v18, %v424_v15  ;;  %v467_v28 = vadd.f32 %v880_v62, %v1053_v32  ;;  %v1128_v33 = vadd.f32 %v484_v30, %v464_v27 }
 0x106   : > { %524 = vadd.xlane.f32.xlu1 %v1081_v1  ;;  %v1096_v13 = vadd.f32 %v477_v9, %v435_v8  ;;  %v459_v20 = vadd.f32 %v1053_v32, %v458_v4  ;;  %v1118_v26 = vadd.f32 %v482_v22, %v456_v19 }
 0x107   : > { %518 = vadd.xlane.f32.xlu0 %v1083_v2  ;;  %v1110_v23 = vadd.f32 %v475_v17, %v427_v16  ;;  %v1126_v31 = vadd.f32 %v485_v29, %v467_v28 }
 0x108   : > { %v1116_v25 = vadd.f32 %v483_v21, %v459_v20 }
 0x10a   : > { %520 = vadd.xlane.f32.xlu1 %v1093_v11 }
 0x10b   : > { %504 = vadd.xlane.f32.xlu0 %v487_v12 }
 0x10e   : > { %516 = vadd.xlane.f32.xlu1 %v1096_v13 }
 0x10f   : > { %514 = vadd.xlane.f32.xlu0 %v1098_v14 }
 0x112   : > { %512 = vadd.xlane.f32.xlu1 %v1110_v23 }
 0x113   : > { %510 = vadd.xlane.f32.xlu0 %v1112_v24 }
 0x116   : > { %528 = vadd.xlane.f32.xlu1 %v1116_v25 }
 0x117   : > { %526 = vadd.xlane.f32.xlu0 %v1118_v26 }
 0x11a   : > { %532 = vadd.xlane.f32.xlu1 %v1126_v31 }
 0x11b   : > { %530 = vadd.xlane.f32.xlu0 %v1128_v33 }
 0x18b   : > { %v507_v35 = vpop.xlane.xlu1 %506 }
 0x18c   : > { %v523_v34 = vpop.xlane.xlu0 %522  ;;  %v537_v37 = vmul.f32 0.0078125, %v507_v35 }
 0x18d   : > { %v545_v36 = vmul.f32 0.0078125, %v523_v34 }
 0x18e   : > { %v1133_v32 = vsub.f32 %v1063_v48, %v537_v37 }
 0x18f   : > { %v509_v38 = vpop.xlane.xlu1 %508  ;;  %v1136_v40 = vsub.f32 %v1061_v47, %v545_v36 }
 0x190   : > { %v503_v39 = vpop.xlane.xlu0 %502  ;;  %v538_v41 = vmul.f32 0.0078125, %v509_v38  ;;  %v569_v43 = vmul.f32 %v1133_v32, %v1133_v32 }
 0x191   : > { %v535_v42 = vmul.f32 0.0078125, %v503_v39  ;;  %v577_v51 = vmul.f32 %v1136_v40, %v1136_v40 }
 0x192   : > { %v1141_v44 = vsub.f32 %v1071_v53, %v538_v41  ;;  %587 = vadd.xlane.f32.xlu0 %v569_v43 }
 0x193   : > { %v1144_v45 = vsub.f32 %v1073_v54, %v535_v42  ;;  %v525_v46 = vpop.xlane.xlu1 %524 }
 0x194   : > { %v519_v48 = vpop.xlane.xlu0 %518  ;;  %v546_v49 = vmul.f32 0.0078125, %v525_v46  ;;  %v570_v47 = vmul.f32 %v1141_v44, %v1141_v44 }
 0x195   : > { %v543_v50 = vmul.f32 0.0078125, %v519_v48  ;;  %v567_v54 = vmul.f32 %v1144_v45, %v1144_v45 }
 0x196   : > { %v1151_v52 = vsub.f32 %v1081_v1, %v546_v49  ;;  %589 = vadd.xlane.f32.xlu1 %v570_v47  ;;  %603 = vadd.xlane.f32.xlu0 %v577_v51 }
 0x197   : > { %v521_v53 = vpop.xlane.xlu1 %520  ;;  %v1156_v56 = vsub.f32 %v1083_v2, %v543_v50 }
 0x198   : > { %v505_v55 = vpop.xlane.xlu0 %504  ;;  %v544_v57 = vmul.f32 0.0078125, %v521_v53  ;;  %v578_v59 = vmul.f32 %v1151_v52, %v1151_v52 }
 0x199   : > { %v536_v58 = vmul.f32 0.0078125, %v505_v55  ;;  %v575_v2 = vmul.f32 %v1156_v56, %v1156_v56 }
 0x19a   : > { %605 = vadd.xlane.f32.xlu1 %v578_v59  ;;  %583 = vadd.xlane.f32.xlu0 %v567_v54  ;;  %v1163_v61 = vsub.f32 %v1093_v11, %v544_v57  ;;  %v1214_v59 = vld [vmem:[%s1298_s4] ss:$0 sm:$0xff] }
 0x19b   : > { %v1160_v60 = vsub.f32 %v487_v12, %v536_v58  ;;  %v517_v62 = vpop.xlane.xlu1 %516 }
 0x19c   : > { %v515_v63 = vpop.xlane.xlu0 %514  ;;  %v542_v0 = vmul.f32 0.0078125, %v517_v62  ;;  %v576_v7 = vmul.f32 %v1163_v61, %v1163_v61 }
 0x19d   : > { %v541_v1 = vmul.f32 0.0078125, %v515_v63  ;;  %v568_v3 = vmul.f32 %v1160_v60, %v1160_v60 }
 0x19e   : > { %599 = vadd.xlane.f32.xlu0 %v575_v2  ;;  %v1175_v8 = vsub.f32 %v1096_v13, %v542_v0 }
 0x19f   : > { %v1170_v4 = vsub.f32 %v1098_v14, %v541_v1  ;;  %585 = vadd.xlane.f32.xlu1 %v568_v3  ;;  %v513_v5 = vpop.xlane.xlu1 %512  ;;  %v1220_v3 = vld [vmem:[%s1299_s5] ss:$0 sm:$0xff] }
 0x1a0   : > { %v511_v6 = vpop.xlane.xlu0 %510  ;;  %v540_v9 = vmul.f32 0.0078125, %v513_v5  ;;  %v574_v13 = vmul.f32 %v1175_v8, %v1175_v8 }
 0x1a1   : > { %v539_v10 = vmul.f32 0.0078125, %v511_v6  ;;  %v573_v11 = vmul.f32 %v1170_v4, %v1170_v4 }
 0x1a2   : > { %v1183_v14 = vsub.f32 %v1110_v23, %v540_v9 }
 0x1a3   : > { %v1180_v12 = vsub.f32 %v1112_v24, %v539_v10  ;;  %601 = vadd.xlane.f32.xlu1 %v576_v7  ;;  %595 = vadd.xlane.f32.xlu0 %v573_v11  ;;  %v529_v15 = vpop.xlane.xlu1 %528 }
 0x1a4   : > { %v527_v16 = vpop.xlane.xlu0 %526  ;;  %v548_v17 = vmul.f32 0.0078125, %v529_v15  ;;  %v572_v23 = vmul.f32 %v1183_v14, %v1183_v14 }
 0x1a5   : > { %v547_v18 = vmul.f32 0.0078125, %v527_v16  ;;  %v571_v19 = vmul.f32 %v1180_v12, %v1180_v12 }
 0x1a6   : > { %v1195_v24 = vsub.f32 %v1116_v25, %v548_v17 }
 0x1a7   : > { %v1190_v20 = vsub.f32 %v1118_v26, %v547_v18  ;;  %597 = vadd.xlane.f32.xlu1 %v574_v13  ;;  %591 = vadd.xlane.f32.xlu0 %v571_v19  ;;  %v533_v21 = vpop.xlane.xlu1 %532 }
 0x1a8   : > { %v531_v22 = vpop.xlane.xlu0 %530  ;;  %v550_v27 = vmul.f32 0.0078125, %v533_v21  ;;  %v580_v34 = vmul.f32 %v1195_v24, %v1195_v24 }
 0x1a9   : > { %v549_v28 = vmul.f32 0.0078125, %v531_v22  ;;  %v579_v29 = vmul.f32 %v1190_v20, %v1190_v20 }
 0x1aa   : > { %v1203_v26 = vsub.f32 %v1126_v31, %v550_v27 }
 0x1ab   : > { %v1200_v30 = vsub.f32 %v1128_v33, %v549_v28  ;;  %593 = vadd.xlane.f32.xlu1 %v572_v23  ;;  %607 = vadd.xlane.f32.xlu0 %v579_v29 }
 0x1ac   : > { %v582_v35 = vmul.f32 %v1203_v26, %v1203_v26 }
 0x1ad   : > { %v581_v25 = vmul.f32 %v1200_v30, %v1200_v30 }
 0x1af   : > { %609 = vadd.xlane.f32.xlu1 %v580_v34  ;;  %611 = vadd.xlane.f32.xlu0 %v581_v25 }
 0x1b3   : > { %613 = vadd.xlane.f32.xlu1 %v582_v35 }
 0x21f   : > { %v588_v36 = vpop.xlane.xlu0 %587 }
 0x220   : > { %v617_v33 = vmul.f32 0.0078125, %v588_v36 }
 0x222   : > { %v633_v37 = vadd.f32 1e-05, %v617_v33 }
 0x223   : > { %v590_v38 = vpop.xlane.xlu1 %589  ;;  %v604_v39 = vpop.xlane.xlu0 %603 }
 0x224   : > { %913 = vrsqrt.f32 %v633_v37  ;;  %v618_v31 = vmul.f32 0.0078125, %v590_v38  ;;  %v625_v41 = vmul.f32 0.0078125, %v604_v39 }
 0x226   : > { %v634_v42 = vadd.f32 1e-05, %v618_v31  ;;  %v641_v43 = vadd.f32 1e-05, %v625_v41 }
 0x227   : > { %v606_v46 = vpop.xlane.xlu1 %605  ;;  %v584_v48 = vpop.xlane.xlu0 %583 }
 0x228   : > { %915 = vrsqrt.f32 %v634_v42  ;;  %v626_v49 = vmul.f32 0.0078125, %v606_v46  ;;  %v615_v50 = vmul.f32 0.0078125, %v584_v48 }
 0x229   : > { %917 = vrsqrt.f32 %v641_v43 }
 0x22a   : > { %v642_v47 = vadd.f32 1e-05, %v626_v49  ;;  %v631_v51 = vadd.f32 1e-05, %v615_v50 }
 0x22b   : > { %v600_v55 = vpop.xlane.xlu0 %599 }
 0x22c   : > { %v586_v53 = vpop.xlane.xlu1 %585  ;;  %919 = vrsqrt.f32 %v642_v47  ;;  %v623_v57 = vmul.f32 0.0078125, %v600_v55 }
 0x22d   : > { %v616_v54 = vmul.f32 0.0078125, %v586_v53  ;;  %921 = vrsqrt.f32 %v631_v51 }
 0x22e   : > { %v914_v58 = vpop.eup %913  ;;  %v639_v63 = vadd.f32 1e-05, %v623_v57 }
 0x22f   : > { %v632_v62 = vadd.f32 1e-05, %v616_v54  ;;  %v665_v0 = vmul.f32 %v914_v58, %v1133_v32 }
 0x230   : > { %v602_v1 = vpop.xlane.xlu1 %601  ;;  %v596_v2 = vpop.xlane.xlu0 %595 }
 0x231   : > { %923 = vrsqrt.f32 %v632_v62  ;;  %v624_v5 = vmul.f32 0.0078125, %v602_v1  ;;  %v621_v6 = vmul.f32 0.0078125, %v596_v2  ;;  %v688_v7 = vmul.f32 %v1214_v59, %v665_v0 }
 0x232   : > { %925 = vrsqrt.f32 %v639_v63  ;;  %v916_v9 = vpop.eup %915 }
 0x233   : > { %v640_v32 = vadd.f32 1e-05, %v624_v5  ;;  %v637_v10 = vadd.f32 1e-05, %v621_v6  ;;  %v918_v11 = vpop.eup %917  ;;  %v711_v15 = vadd.f32 %v1220_v3, %v688_v7  ;;  %v666_v16 = vmul.f32 %v916_v9, %v1141_v44 }
 0x234   : > { %v598_v17 = vpop.xlane.xlu1 %597  ;;  %v592_v18 = vpop.xlane.xlu0 %591  ;;  %v673_v13 = vmul.f32 %v918_v11, %v1136_v40 }
 0x235   : > { %927 = vrsqrt.f32 %v640_v32  ;;  %v622_v19 = vmul.f32 0.0078125, %v598_v17  ;;  %v619_v21 = vmul.f32 0.0078125, %v592_v18  ;;  %727 = vst [vmem:[%s1227_s9 + $0x10] sm:$0xff] %v711_v15  ;;  %v689_v22 = vmul.f32 %v1214_v59, %v666_v16 }
 0x236   : > { %929 = vrsqrt.f32 %v637_v10  ;;  %v920_v23 = vpop.eup %919  ;;  %v696_v27 = vmul.f32 %v1214_v59, %v673_v13 }
 0x237   : > { %v638_v28 = vadd.f32 1e-05, %v622_v19  ;;  %v635_v29 = vadd.f32 1e-05, %v619_v21  ;;  %v922_v34 = vpop.eup %921  ;;  %v712_v44 = vadd.f32 %v1220_v3, %v689_v22  ;;  %v674_v25 = vmul.f32 %v920_v23, %v1151_v52 }
 0x238   : > { %v594_v40 = vpop.xlane.xlu1 %593  ;;  %v608_v35 = vpop.xlane.xlu0 %607  ;;  %v719_v36 = vadd.f32 %v1220_v3, %v696_v27  ;;  %v663_v33 = vmul.f32 %v922_v34, %v1144_v45 }
 0x239   : > { %931 = vrsqrt.f32 %v638_v28  ;;  %v620_v37 = vmul.f32 0.0078125, %v594_v40  ;;  %728 = vst [vmem:[%s1227_s9 + $0x18] sm:$0xff] %v712_v44  ;;  %v697_v38 = vmul.f32 %v1214_v59, %v674_v25  ;;  %v627_v39 = vmul.f32 0.0078125, %v608_v35 }
 0x23a   : > { %933 = vrsqrt.f32 %v635_v29  ;;  %735 = vst [vmem:[%s1227_s9 + $0x50] sm:$0xff] %v719_v36  ;;  %v686_v41 = vmul.f32 %v1214_v59, %v663_v33 }
 0x23b   : > { %v924_v31 = vpop.eup %923  ;;  %v636_v42 = vadd.f32 1e-05, %v620_v37  ;;  %v720_v43 = vadd.f32 %v1220_v3, %v697_v38  ;;  %v643_v45 = vadd.f32 1e-05, %v627_v39 }
 0x23c   : > { %v926_v52 = vpop.eup %925  ;;  %v664_v46 = vmul.f32 %v924_v31, %v1160_v60  ;;  %v610_v48 = vpop.xlane.xlu1 %609  ;;  %v709_v50 = vadd.f32 %v1220_v3, %v686_v41 }
 0x23d   : > { %v612_v49 = vpop.xlane.xlu0 %611  ;;  %v671_v47 = vmul.f32 %v926_v52, %v1156_v56  ;;  %935 = vrsqrt.f32 %v636_v42  ;;  %v628_v51 = vmul.f32 0.0078125, %v610_v48  ;;  %736 = vst [vmem:[%s1227_s9 + $0x58] sm:$0xff] %v720_v43 }
 0x23e   : > { %v687_v53 = vmul.f32 %v1214_v59, %v664_v46  ;;  %937 = vrsqrt.f32 %v643_v45  ;;  %v629_v55 = vmul.f32 0.0078125, %v612_v49  ;;  %725 = vst [vmem:[%s1227_s9] sm:$0xff] %v709_v50 }
 0x23f   : > { %v928_v54 = vpop.eup %927  ;;  %v694_v60 = vmul.f32 %v1214_v59, %v671_v47  ;;  %v644_v57 = vadd.f32 1e-05, %v628_v51 }
 0x240   : > { %v930_v58 = vpop.eup %929  ;;  %v710_v62 = vadd.f32 %v1220_v3, %v687_v53  ;;  %v672_v63 = vmul.f32 %v928_v54, %v1163_v61  ;;  %v645_v56 = vadd.f32 1e-05, %v629_v55  ;;  %v614_v0 = vpop.xlane.xlu1 %613 }
 0x241   : > { %v717_v1 = vadd.f32 %v1220_v3, %v694_v60  ;;  %v669_v2 = vmul.f32 %v930_v58, %v1170_v4  ;;  %939 = vrsqrt.f32 %v644_v57  ;;  %v630_v5 = vmul.f32 0.0078125, %v614_v0 }
 0x242   : > { %726 = vst [vmem:[%s1227_s9 + $0x8] sm:$0xff] %v710_v62  ;;  %v695_v6 = vmul.f32 %v1214_v59, %v672_v63  ;;  %941 = vrsqrt.f32 %v645_v56 }
 0x243   : > { %v932_v7 = vpop.eup %931  ;;  %733 = vst [vmem:[%s1227_s9 + $0x40] sm:$0xff] %v717_v1  ;;  %v692_v9 = vmul.f32 %v1214_v59, %v669_v2  ;;  %v646_v32 = vadd.f32 1e-05, %v630_v5 }
 0x244   : > { %v934_v61 = vpop.eup %933  ;;  %v718_v10 = vadd.f32 %v1220_v3, %v695_v6  ;;  %v670_v11 = vmul.f32 %v932_v7, %v1175_v8 }
 0x245   : > { %v715_v4 = vadd.f32 %v1220_v3, %v692_v9  ;;  %v667_v15 = vmul.f32 %v934_v61, %v1180_v12  ;;  %943 = vrsqrt.f32 %v646_v32 }
 0x246   : > { %734 = vst [vmem:[%s1227_s9 + $0x48] sm:$0xff] %v718_v10  ;;  %v693_v16 = vmul.f32 %v1214_v59, %v670_v11 }
 0x247   : > { %v936_v17 = vpop.eup %935  ;;  %731 = vst [vmem:[%s1227_s9 + $0x30] sm:$0xff] %v715_v4  ;;  %v690_v18 = vmul.f32 %v1214_v59, %v667_v15 }
 0x248   : > { %v938_v13 = vpop.eup %937  ;;  %v716_v19 = vadd.f32 %v1220_v3, %v693_v16  ;;  %v668_v21 = vmul.f32 %v936_v17, %v1183_v14 }
 0x249   : > { %v713_v8 = vadd.f32 %v1220_v3, %v690_v18  ;;  %v675_v22 = vmul.f32 %v938_v13, %v1190_v20 }
 0x24a   : > { %732 = vst [vmem:[%s1227_s9 + $0x38] sm:$0xff] %v716_v19  ;;  %v691_v12 = vmul.f32 %v1214_v59, %v668_v21 }
 0x24b   : > { %v940_v23 = vpop.eup %939  ;;  %729 = vst [vmem:[%s1227_s9 + $0x20] sm:$0xff] %v713_v8  ;;  %v698_v27 = vmul.f32 %v1214_v59, %v675_v22 }
 0x24c   : > { %v942_v28 = vpop.eup %941  ;;  %v714_v29 = vadd.f32 %v1220_v3, %v691_v12  ;;  %v676_v14 = vmul.f32 %v940_v23, %v1195_v24 }
 0x24d   : > { %v721_v34 = vadd.f32 %v1220_v3, %v698_v27  ;;  %v677_v44 = vmul.f32 %v942_v28, %v1200_v30 }
 0x24e   : > { %730 = vst [vmem:[%s1227_s9 + $0x28] sm:$0xff] %v714_v29  ;;  %v699_v20 = vmul.f32 %v1214_v59, %v676_v14 }
 0x24f   : > { %v944_v25 = vpop.eup %943  ;;  %737 = vst [vmem:[%s1227_s9 + $0x60] sm:$0xff] %v721_v34  ;;  %v700_v40 = vmul.f32 %v1214_v59, %v677_v44 }
 0x250   : > { %v722_v35 = vadd.f32 %v1220_v3, %v699_v20  ;;  %v678_v36 = vmul.f32 %v944_v25, %v1203_v26 }
 0x251   : > { %v723_v33 = vadd.f32 %v1220_v3, %v700_v40 }
 0x252   : > { %738 = vst [vmem:[%s1227_s9 + $0x68] sm:$0xff] %v722_v35  ;;  %v701_v24 = vmul.f32 %v1214_v59, %v678_v36 }
 0x253   : > { %739 = vst [vmem:[%s1227_s9 + $0x70] sm:$0xff] %v723_v33 }
 0x254   : > { %v724_v37 = vadd.f32 %v1220_v3, %v701_v24 }
 0x256   : > { %740 = vst [vmem:[%s1227_s9 + $0x78] sm:$0xff] %v724_v37 }
 0x257 PF: > { %s16_s21 = sadd.s32 1, %s951_s21  }
 0x258   : > { %p13_p4 = scmp.ge.s32.totalorder %s16_s21, 4  }
 0x25a   :  { %15 = sbr.rel (!%p13_p4) target bundleno = 1 (0x1), region = 77 }

// kernel: transformer_lm_forward.12
= control target key start
LH: loop header
LB: loop body
LE: loop exit
PB: predicated region body
PF: predicated region fallthrough
CT: control target
= control target key end

     0   :  { %s999_s12 = smov 0   ;;  %s1001_s13 = smov 0   ;;  %s1241_s0 = inlined_call_operand.vmem [shape: f32[256,128], index: 0, kind: input, shape index: {}]   ;;  %s1242_s1 = inlined_call_operand.vmem [shape: bf16[128,384], index: 1, kind: input, shape index: {}]   ;;  %s1243_s2 = inlined_call_operand.vmem [shape: f32[1,384], index: 2, kind: input, shape index: {}]   ;;  %s1244_s3 = inlined_call_operand.vmem [shape: f32[256,384], index: 3, kind: output, shape index: {}]  }
   0x1   :  { %s1003_s14 = smov 0  }
   0x2 LB: > { %s25_s15 = sadd.s32 1, %s972_s13  ;;  %p817_p0 = scmp.ge.s32.totalorder %s976_s14, 1  ;;  %s976_s14 = sphi %s1003_s14, %s13_s14   ;;  %s972_s13 = sphi %s1001_s13, %s1246_s13   ;;  %s968_s12 = sphi %s999_s12, %s1245_s12  }
   0x3   : > { %p27_p1 = scmp.ge.s32.totalorder %s25_s15, 2  ;;  %p173_p2 = scmp.lt.s32.totalorder %s976_s14, 3 }
   0x5   : > { %s1248_s15 = smov (%p27_p1, %s25_s15), 0  ;;  %p174_p3 = pnand %p817_p0, %p173_p2 }
   0x6   : > { %v922_v0 = vld [vmem:[%s1242_s1 + $0x4] ss:$12 sps:$4 sm:$0xff] (!%p174_p3)   ;;  %s818_s18 = sshll.u32 (!%p174_p3), %s968_s12, 4  ;;  %v924_v1 = vld [vmem:[%s1242_s1] ss:$12 sps:$4 sm:$0xff] (!%p174_p3)   ;;  %v978_v2 = vmov (!%p174_p3), 0   ;;  %v299_v49 = vlaneseq (!%p174_p3) }
   0x7   : > { %177 = sbr.rel (%p174_p3) target bundleno = 313 (0x139), region = 32  ;;  %474 = vmatprep.mubr.bf16.mxu0 (!%p174_p3), %v978_v2  ;;  %p212_p4 = scmp.lt.s32.totalorder (!%p174_p3), %s818_s18, 31  ;;  %442 = vmatprep.subr.bf16.mxu0 (!%p174_p3), %v922_v0  ;;  %v925_v3 = vld [vmem:[%s1242_s1 + $0x1c] ss:$12 sps:$4 sm:$0xff] (!%p174_p3)   ;;  %v927_v4 = vld [vmem:[%s1242_s1 + $0x18] ss:$12 sps:$4 sm:$0xff] (!%p174_p3)  }
   0x8   : > { %443 = vmatpush1.bf16.msra.mxu0 (!%p174_p3), %v924_v1  ;;  %v928_v5 = vld [vmem:[%s1242_s1 + $0x34] ss:$12 sps:$4 sm:$0xff] (!%p174_p3)   ;;  %v930_v6 = vld [vmem:[%s1242_s1 + $0x30] ss:$12 sps:$4 sm:$0xff] (!%p174_p3)   ;;  %v931_v7 = vld [vmem:[%s1242_s1 + $0x4c] ss:$12 sps:$4 sm:$0xff] (!%p174_p3)  }
   0x9   : > { %444 = vmatprep.subr.bf16.mxu0 (!%p174_p3), %v925_v3  ;;  %v933_v8 = vld [vmem:[%s1242_s1 + $0x48] ss:$12 sps:$4 sm:$0xff] (!%p174_p3)   ;;  %v934_v9 = vld [vmem:[%s1242_s1 + $0x64] ss:$12 sps:$4 sm:$0xff] (!%p174_p3)   ;;  %v947_v13 = vld [vmem:[%s1242_s1 + $0x20] ss:$12 sps:$4 sm:$0xff] (!%p174_p3)  }
   0xa   : > { %v946_v10 = vld [vmem:[%s1242_s1 + $0x8] ss:$12 sps:$4 sm:$0xff] (!%p174_p3)   ;;  %v936_v14 = vld [vmem:[%s1242_s1 + $0x60] ss:$12 sps:$4 sm:$0xff] (!%p174_p3)   ;;  %v948_v16 = vld [vmem:[%s1242_s1 + $0x38] ss:$12 sps:$4 sm:$0xff] (!%p174_p3)  }
   0xb   : > { %864 = vmatprep.subr.bf16.mxu1 (!%p174_p3), %v946_v10  ;;  %v937_v17 = vld [vmem:[%s1242_s1 + $0x7c] ss:$12 sps:$4 sm:$0xff] (!%p174_p3)   ;;  %v939_v18 = vld [vmem:[%s1242_s1 + $0x78] ss:$12 sps:$4 sm:$0xff] (!%p174_p3)   ;;  %v940_v20 = vld [vmem:[%s1242_s1 + $0x94] ss:$12 sps:$4 sm:$0xff] (!%p174_p3)  }
   0xc   : > { %445 = vmatpush1.bf16.msra.mxu0 (!%p174_p3), %v927_v4  ;;  %865 = vmatpush3.bf16.msra.mxu1 (!%p174_p3), %v946_v10  ;;  %v949_v19 = vld [vmem:[%s1242_s1 + $0x50] ss:$12 sps:$4 sm:$0xff] (!%p174_p3)   ;;  %v950_v22 = vld [vmem:[%s1242_s1 + $0x68] ss:$12 sps:$4 sm:$0xff] (!%p174_p3)   ;;  %v943_v23 = vld [vmem:[%s1242_s1 + $0xac] ss:$12 sps:$4 sm:$0xff] (!%p174_p3)  }
   0xd   : > { %446 = vmatprep.subr.bf16.mxu0 (!%p174_p3), %v928_v5  ;;  %866 = vmatprep.subr.bf16.mxu1 (!%p174_p3), %v947_v13  ;;  %v942_v21 = vld [vmem:[%s1242_s1 + $0x90] ss:$12 sps:$4 sm:$0xff] (!%p174_p3)   ;;  %v945_v24 = vld [vmem:[%s1242_s1 + $0xa8] ss:$12 sps:$4 sm:$0xff] (!%p174_p3)   ;;  %v951_v25 = vld [vmem:[%s1242_s1 + $0x80] ss:$12 sps:$4 sm:$0xff] (!%p174_p3)  }
   0xe   : > { %s1250_s18 = smov (!%p212_p4, %s818_s18), 31  ;;  %v952_v26 = vld [vmem:[%s1242_s1 + $0x98] ss:$12 sps:$4 sm:$0xff]   ;;  %v953_v29 = vld [vmem:[%s1242_s1 + $0xb0] ss:$12 sps:$4 sm:$0xff]   ;;  %v300_v50 = vshrl.u32 %v299_v49, 7 }
   0xf   : > { %s819_s27 = sshll.u32 %s1250_s18, 3  ;;  %v297_v52 = vld [vmem:[%s1243_s2] sm:$0x7] }
  0x10   : > { %s1045_s7 = scalar_lea.vmem %s1241_s0, %s819_s27  ;;  %447 = vmatpush1.bf16.msra.mxu0 %v930_v6  ;;  %867 = vmatpush3.bf16.msra.mxu1 %v947_v13  ;;  %v301_v51 = vsub.s32 0, %v300_v50  ;;  %v305_v53 = vsub.s32 1, %v300_v50  ;;  %v309_v0 = vsub.s32 2, %v300_v50 }
  0x11   : > { %v241_v11 = vld [vmem:[%s1045_s7] sm:$0xff]  ;;  %448 = vmatprep.subr.bf16.mxu0 %v931_v7  ;;  %v242_v12 = vld [vmem:[%s1045_s7 + $0x8] sm:$0xff]  ;;  %868 = vmatprep.subr.bf16.mxu1 %v948_v16  ;;  %v243_v27 = vld [vmem:[%s1045_s7 + $0x10] sm:$0xff] }
  0x12   : > { %v257_v15 = vpack.c.bf16 %v242_v12, %v241_v11  ;;  %v244_v28 = vld [vmem:[%s1045_s7 + $0x18] sm:$0xff]  ;;  %v245_v31 = vld [vmem:[%s1045_s7 + $0x20] sm:$0xff]  ;;  %v246_v32 = vld [vmem:[%s1045_s7 + $0x28] sm:$0xff]  ;;  %v1125_v54 = vrot.slane %v297_v52, %v301_v51  ;;  %v1127_v55 = vrot.slane %v297_v52, %v305_v53 }
  0x13   : > { %v258_v30 = vpack.c.bf16 %v244_v28, %v243_v27  ;;  %v259_v33 = vpack.c.bf16 %v246_v32, %v245_v31  ;;  %v247_v34 = vld [vmem:[%s1045_s7 + $0x30] sm:$0xff]  ;;  %v248_v35 = vld [vmem:[%s1045_s7 + $0x38] sm:$0xff]  ;;  %v249_v36 = vld [vmem:[%s1045_s7 + $0x40] sm:$0xff] }
  0x14   : > { %449 = vmatpush1.bf16.msra.mxu0 %v933_v8  ;;  %880 = vmatprep.mubr.bf16.mxu1 %v257_v15  ;;  %v250_v37 = vld [vmem:[%s1045_s7 + $0x48] sm:$0xff]  ;;  %v260_v38 = vpack.c.bf16 %v248_v35, %v247_v34  ;;  %v251_v40 = vld [vmem:[%s1045_s7 + $0x50] sm:$0xff]  ;;  %v252_v41 = vld [vmem:[%s1045_s7 + $0x58] sm:$0xff] }
  0x15   : > { %450 = vmatprep.subr.bf16.mxu0 %v934_v9  ;;  %869 = vmatpush3.bf16.msra.mxu1 %v948_v16  ;;  %v261_v39 = vpack.c.bf16 %v250_v37, %v249_v36  ;;  %v253_v42 = vld [vmem:[%s1045_s7 + $0x60] sm:$0xff]  ;;  %v254_v43 = vld [vmem:[%s1045_s7 + $0x68] sm:$0xff]  ;;  %v262_v44 = vpack.c.bf16 %v252_v41, %v251_v40  ;;  %v255_v46 = vld [vmem:[%s1045_s7 + $0x70] sm:$0xff] }
  0x16   : > { %870 = vmatprep.subr.bf16.mxu1 %v949_v19  ;;  %v263_v45 = vpack.c.bf16 %v254_v43, %v253_v42  ;;  %v256_v47 = vld [vmem:[%s1045_s7 + $0x78] sm:$0xff]  ;;  %s896_s7 = smul.u32 24, %s1250_s18 }
  0x17   : > { %v264_v48 = vpack.c.bf16 %v256_v47, %v255_v46 }
  0x18   : > { %451 = vmatpush1.bf16.msra.mxu0 %v936_v14  ;;  %s1132_s28 = scalar_lea.vmem %s1244_s3, %s896_s7 }
  0x19   : > { %452 = vmatprep.subr.bf16.mxu0 %v937_v17  ;;  %871 = vmatpush3.bf16.msra.mxu1 %v949_v19 }
  0x1a   : > { %872 = vmatprep.subr.bf16.mxu1 %v950_v22 }
  0x1c   : > { %453 = vmatpush1.bf16.msra.mxu0 %v939_v18 }
  0x1d   : > { %454 = vmatprep.subr.bf16.mxu0 %v940_v20  ;;  %873 = vmatpush3.bf16.msra.mxu1 %v950_v22 }
  0x1e   : > { %874 = vmatprep.subr.bf16.mxu1 %v951_v25 }
  0x20   : > { %455 = vmatpush1.bf16.msra.mxu0 %v942_v21 }
  0x21   : > { %456 = vmatprep.subr.bf16.mxu0 %v943_v23  ;;  %875 = vmatpush3.bf16.msra.mxu1 %v951_v25 }
  0x22   : > { %876 = vmatprep.subr.bf16.mxu1 %v952_v26 }
  0x24   : > { %457 = vmatpush1.bf16.msra.mxu0 %v945_v24 }
  0x25   : > { %877 = vmatpush3.bf16.msra.mxu1 %v952_v26 }
  0x26   : > { %878 = vmatprep.subr.bf16.mxu1 %v953_v29 }
  0x27   : > { %475 = vmatmul.mubr.bf16.vlgmr.msra.gmra.mrb[0].mxu0 %v257_v15 }
  0x28   : > { %484 = vmatprep.mubr.bf16.mxu0 %v978_v2 }
  0x29   : > { %879 = vmatpush3.bf16.msra.mxu1 %v953_v29 }
  0x2c   : > { %881 = vmatmul.mubr.bf16.vlgmr.msra.gmra.mrb[0].mxu1 %v258_v30 }
  0x2d   : > { %884 = vmatprep.mubr.bf16.mxu1 %v259_v33 }
  0x2f   : > { %485 = vmatmul.mubr.bf16.gmra.mrb[4].mxu0 %v258_v30 }
  0x30   : > { %494 = vmatprep.mubr.bf16.mxu0 %v978_v2 }
  0x34   : > { %885 = vmatmul.mubr.bf16.gmra.mrb[4].mxu1 %v260_v38 }
  0x35   : > { %888 = vmatprep.mubr.bf16.mxu1 %v261_v39 }
  0x37   : > { %495 = vmatmul.mubr.bf16.gmra.mrb[8].mxu0 %v259_v33 }
  0x38   : > { %504 = vmatprep.mubr.bf16.mxu0 %v978_v2 }
  0x3c   : > { %889 = vmatmul.mubr.bf16.gmra.mrb[8].mxu1 %v262_v44 }
  0x3d   : > { %892 = vmatprep.mubr.bf16.mxu1 %v263_v45 }
  0x3f   : > { %505 = vmatmul.mubr.bf16.gmra.mrb[12].mxu0 %v260_v38 }
  0x40   : > { %514 = vmatprep.mubr.bf16.mxu0 %v978_v2 }
  0x44   : > { %893 = vmatmul.mubr.bf16.gmra.mrb[12].mxu1 %v264_v48 }
  0x47   : > { %515 = vmatmul.mubr.bf16.gmra.mrb[16].mxu0 %v261_v39 }
  0x48   : > { %524 = vmatprep.mubr.bf16.mxu0 %v978_v2 }
  0x4f   : > { %525 = vmatmul.mubr.bf16.gmra.mrb[20].mxu0 %v262_v44 }
  0x50   : > { %534 = vmatprep.mubr.bf16.mxu0 %v978_v2 }
  0x57   : > { %535 = vmatmul.mubr.bf16.gmra.mrb[24].mxu0 %v263_v45 }
  0x58   : > { %544 = vmatprep.mubr.bf16.mxu0 %v978_v2  ;;  %v1142_v2 = vrot.slane %v297_v52, %v309_v0 }
  0x5f   : > { %545 = vmatmul.mubr.bf16.gmra.mrb[28].mxu0 %v264_v48 }
  0xfa   : > { %v476_v56 = vpop.f32.mrb[0].mxu0 }
  0xfb   : > { %v477_v57 = vadd.f32 %v476_v56, %v1125_v54  ;;  %v478_v58 = vpop.f32.mrb[1].mxu0 }
  0xfc   : > { %v479_v59 = vadd.f32 %v478_v58, %v1127_v55  ;;  %v480_v60 = vpop.f32.mrb[2].mxu0 }
  0xfd   : > { %652 = vst [vmem:[%s1132_s28] sm:$0xff] %v477_v57  ;;  %v481_v61 = vadd.f32 %v480_v60, %v1125_v54  ;;  %v482_v62 = vpop.f32.mrb[3].mxu0 }
  0xfe   : > { %653 = vst [vmem:[%s1132_s28 + $0x8] sm:$0xff] %v479_v59  ;;  %v483_v63 = vadd.f32 %v482_v62, %v1127_v55 }
  0xff   : > { %655 = vst [vmem:[%s1132_s28 + $0x18] sm:$0xff] %v481_v61  ;;  %v882_v9 = vpop.f32.mrb[0].mxu1 }
 0x100   : > { %656 = vst [vmem:[%s1132_s28 + $0x20] sm:$0xff] %v483_v63  ;;  %v598_v11 = vadd.f32 %v882_v9, %v1142_v2  ;;  %v589_v12 = vpop.f32.mrb[1].mxu1 }
 0x101   : > { %v590_v13 = vadd.f32 %v589_v12, %v1142_v2  ;;  %v883_v14 = vpop.f32.mrb[2].mxu1 }
 0x102   : > { %v486_v1 = vpop.f32.mrb[4].mxu0  ;;  %660 = vst [vmem:[%s1132_s28 + $0x40] sm:$0xff] %v598_v11  ;;  %v601_v15 = vadd.f32 %v883_v14, %v1142_v2  ;;  %v592_v16 = vpop.f32.mrb[3].mxu1 }
 0x103   : > { %v487_v3 = vadd.f32 %v486_v1, %v1125_v54  ;;  %v488_v4 = vpop.f32.mrb[5].mxu0  ;;  %654 = vst [vmem:[%s1132_s28 + $0x10] sm:$0xff] %v590_v13  ;;  %v593_v17 = vadd.f32 %v592_v16, %v1142_v2 }
 0x104   : > { %v489_v5 = vadd.f32 %v488_v4, %v1127_v55  ;;  %v490_v6 = vpop.f32.mrb[6].mxu0  ;;  %663 = vst [vmem:[%s1132_s28 + $0x58] sm:$0xff] %v601_v15 }
 0x105   : > { %658 = vst [vmem:[%s1132_s28 + $0x30] sm:$0xff] %v487_v3  ;;  %v491_v7 = vadd.f32 %v490_v6, %v1125_v54  ;;  %v492_v8 = vpop.f32.mrb[7].mxu0  ;;  %657 = vst [vmem:[%s1132_s28 + $0x28] sm:$0xff] %v593_v17 }
 0x106   : > { %659 = vst [vmem:[%s1132_s28 + $0x38] sm:$0xff] %v489_v5  ;;  %v493_v10 = vadd.f32 %v492_v8, %v1127_v55 }
 0x107   : > { %661 = vst [vmem:[%s1132_s28 + $0x48] sm:$0xff] %v491_v7  ;;  %v886_v25 = vpop.f32.mrb[4].mxu1 }
 0x108   : > { %662 = vst [vmem:[%s1132_s28 + $0x50] sm:$0xff] %v493_v10  ;;  %v614_v27 = vadd.f32 %v886_v25, %v1142_v2  ;;  %v605_v28 = vpop.f32.mrb[5].mxu1 }
 0x109   : > { %v606_v29 = vadd.f32 %v605_v28, %v1142_v2  ;;  %v887_v30 = vpop.f32.mrb[6].mxu1 }
 0x10a   : > { %v496_v18 = vpop.f32.mrb[8].mxu0  ;;  %672 = vst [vmem:[%s1132_s28 + $0xa0] sm:$0xff] %v614_v27  ;;  %v617_v31 = vadd.f32 %v887_v30, %v1142_v2  ;;  %v608_v32 = vpop.f32.mrb[7].mxu1 }
 0x10b   : > { %v497_v19 = vadd.f32 %v496_v18, %v1125_v54  ;;  %v498_v20 = vpop.f32.mrb[9].mxu0  ;;  %666 = vst [vmem:[%s1132_s28 + $0x70] sm:$0xff] %v606_v29  ;;  %v609_v33 = vadd.f32 %v608_v32, %v1142_v2 }
 0x10c   : > { %v499_v21 = vadd.f32 %v498_v20, %v1127_v55  ;;  %v500_v22 = vpop.f32.mrb[10].mxu0  ;;  %675 = vst [vmem:[%s1132_s28 + $0xb8] sm:$0xff] %v617_v31 }
 0x10d   : > { %664 = vst [vmem:[%s1132_s28 + $0x60] sm:$0xff] %v497_v19  ;;  %v501_v23 = vadd.f32 %v500_v22, %v1125_v54  ;;  %v502_v24 = vpop.f32.mrb[11].mxu0  ;;  %669 = vst [vmem:[%s1132_s28 + $0x88] sm:$0xff] %v609_v33 }
 0x10e   : > { %665 = vst [vmem:[%s1132_s28 + $0x68] sm:$0xff] %v499_v21  ;;  %v503_v26 = vadd.f32 %v502_v24, %v1127_v55 }
 0x10f   : > { %667 = vst [vmem:[%s1132_s28 + $0x78] sm:$0xff] %v501_v23  ;;  %v890_v41 = vpop.f32.mrb[8].mxu1 }
 0x110   : > { %668 = vst [vmem:[%s1132_s28 + $0x80] sm:$0xff] %v503_v26  ;;  %v630_v43 = vadd.f32 %v890_v41, %v1142_v2  ;;  %v621_v44 = vpop.f32.mrb[9].mxu1 }
 0x111   : > { %v622_v45 = vadd.f32 %v621_v44, %v1142_v2  ;;  %v891_v46 = vpop.f32.mrb[10].mxu1 }
 0x112   : > { %v506_v34 = vpop.f32.mrb[12].mxu0  ;;  %684 = vst [vmem:[%s1132_s28 + $0x100] sm:$0xff] %v630_v43  ;;  %v633_v47 = vadd.f32 %v891_v46, %v1142_v2  ;;  %v624_v48 = vpop.f32.mrb[11].mxu1 }
 0x113   : > { %v507_v35 = vadd.f32 %v506_v34, %v1125_v54  ;;  %v508_v36 = vpop.f32.mrb[13].mxu0  ;;  %678 = vst [vmem:[%s1132_s28 + $0xd0] sm:$0xff] %v622_v45  ;;  %v625_v49 = vadd.f32 %v624_v48, %v1142_v2 }
 0x114   : > { %v509_v37 = vadd.f32 %v508_v36, %v1127_v55  ;;  %v510_v38 = vpop.f32.mrb[14].mxu0  ;;  %687 = vst [vmem:[%s1132_s28 + $0x118] sm:$0xff] %v633_v47 }
 0x115   : > { %670 = vst [vmem:[%s1132_s28 + $0x90] sm:$0xff] %v507_v35  ;;  %v511_v39 = vadd.f32 %v510_v38, %v1125_v54  ;;  %v512_v40 = vpop.f32.mrb[15].mxu0  ;;  %681 = vst [vmem:[%s1132_s28 + $0xe8] sm:$0xff] %v625_v49 }
 0x116   : > { %671 = vst [vmem:[%s1132_s28 + $0x98] sm:$0xff] %v509_v37  ;;  %v513_v42 = vadd.f32 %v512_v40, %v1127_v55 }
 0x117   : > { %673 = vst [vmem:[%s1132_s28 + $0xa8] sm:$0xff] %v511_v39  ;;  %v894_v59 = vpop.f32.mrb[12].mxu1 }
 0x118   : > { %674 = vst [vmem:[%s1132_s28 + $0xb0] sm:$0xff] %v513_v42  ;;  %v646_v61 = vadd.f32 %v894_v59, %v1142_v2  ;;  %v637_v62 = vpop.f32.mrb[13].mxu1 }
 0x119   : > { %v638_v63 = vadd.f32 %v637_v62, %v1142_v2  ;;  %v895_v0 = vpop.f32.mrb[14].mxu1 }
 0x11a   : > { %v516_v50 = vpop.f32.mrb[16].mxu0  ;;  %696 = vst [vmem:[%s1132_s28 + $0x160] sm:$0xff] %v646_v61  ;;  %v649_v1 = vadd.f32 %v895_v0, %v1142_v2  ;;  %v640_v3 = vpop.f32.mrb[15].mxu1 }
 0x11b   : > { %v517_v51 = vadd.f32 %v516_v50, %v1125_v54  ;;  %v518_v52 = vpop.f32.mrb[17].mxu0  ;;  %690 = vst [vmem:[%s1132_s28 + $0x130] sm:$0xff] %v638_v63  ;;  %v641_v4 = vadd.f32 %v640_v3, %v1142_v2 }
 0x11c   : > { %v519_v53 = vadd.f32 %v518_v52, %v1127_v55  ;;  %v520_v56 = vpop.f32.mrb[18].mxu0  ;;  %699 = vst [vmem:[%s1132_s28 + $0x178] sm:$0xff] %v649_v1 }
 0x11d   : > { %676 = vst [vmem:[%s1132_s28 + $0xc0] sm:$0xff] %v517_v51  ;;  %v521_v57 = vadd.f32 %v520_v56, %v1125_v54  ;;  %v522_v58 = vpop.f32.mrb[19].mxu0  ;;  %693 = vst [vmem:[%s1132_s28 + $0x148] sm:$0xff] %v641_v4 }
 0x11e   : > { %677 = vst [vmem:[%s1132_s28 + $0xc8] sm:$0xff] %v519_v53  ;;  %v523_v60 = vadd.f32 %v522_v58, %v1127_v55 }
 0x11f   : > { %679 = vst [vmem:[%s1132_s28 + $0xd8] sm:$0xff] %v521_v57 }
 0x120   : > { %680 = vst [vmem:[%s1132_s28 + $0xe0] sm:$0xff] %v523_v60 }
 0x122   : > { %v526_v5 = vpop.f32.mrb[20].mxu0 }
 0x123   : > { %v527_v6 = vadd.f32 %v526_v5, %v1125_v54  ;;  %v528_v7 = vpop.f32.mrb[21].mxu0 }
 0x124   : > { %v529_v8 = vadd.f32 %v528_v7, %v1127_v55  ;;  %v530_v9 = vpop.f32.mrb[22].mxu0 }
 0x125   : > { %682 = vst [vmem:[%s1132_s28 + $0xf0] sm:$0xff] %v527_v6  ;;  %v531_v10 = vadd.f32 %v530_v9, %v1125_v54  ;;  %v532_v11 = vpop.f32.mrb[23].mxu0 }
 0x126   : > { %683 = vst [vmem:[%s1132_s28 + $0xf8] sm:$0xff] %v529_v8  ;;  %v533_v2 = vadd.f32 %v532_v11, %v1127_v55 }
 0x127   : > { %685 = vst [vmem:[%s1132_s28 + $0x108] sm:$0xff] %v531_v10 }
 0x128   : > { %686 = vst [vmem:[%s1132_s28 + $0x110] sm:$0xff] %v533_v2 }
 0x12a   : > { %v536_v12 = vpop.f32.mrb[24].mxu0 }
 0x12b   : > { %v537_v13 = vadd.f32 %v536_v12, %v1125_v54  ;;  %v538_v14 = vpop.f32.mrb[25].mxu0 }
 0x12c   : > { %v539_v15 = vadd.f32 %v538_v14, %v1127_v55  ;;  %v540_v16 = vpop.f32.mrb[26].mxu0 }
 0x12d   : > { %688 = vst [vmem:[%s1132_s28 + $0x120] sm:$0xff] %v537_v13  ;;  %v541_v17 = vadd.f32 %v540_v16, %v1125_v54  ;;  %v542_v18 = vpop.f32.mrb[27].mxu0 }
 0x12e   : > { %689 = vst [vmem:[%s1132_s28 + $0x128] sm:$0xff] %v539_v15  ;;  %v543_v19 = vadd.f32 %v542_v18, %v1127_v55 }
 0x12f   : > { %691 = vst [vmem:[%s1132_s28 + $0x138] sm:$0xff] %v541_v17 }
 0x130   : > { %692 = vst [vmem:[%s1132_s28 + $0x140] sm:$0xff] %v543_v19 }
 0x132   : > { %v546_v20 = vpop.f32.mrb[28].mxu0 }
 0x133   : > { %v547_v21 = vadd.f32 %v546_v20, %v1125_v54  ;;  %v548_v22 = vpop.f32.mrb[29].mxu0 }
 0x134   : > { %v549_v23 = vadd.f32 %v548_v22, %v1127_v55  ;;  %v550_v24 = vpop.f32.mrb[30].mxu0 }
 0x135   : > { %694 = vst [vmem:[%s1132_s28 + $0x150] sm:$0xff] %v547_v21  ;;  %v551_v25 = vadd.f32 %v550_v24, %v1125_v54  ;;  %v552_v26 = vpop.f32.mrb[31].mxu0 }
 0x136   : > { %695 = vst [vmem:[%s1132_s28 + $0x158] sm:$0xff] %v549_v23  ;;  %v553_v27 = vadd.f32 %v552_v26, %v1127_v55 }
 0x137   : > { %697 = vst [vmem:[%s1132_s28 + $0x168] sm:$0xff] %v551_v25 }
 0x138   : > { %698 = vst [vmem:[%s1132_s28 + $0x170] sm:$0xff] %v553_v27 }
 0x139 PF: > { %s13_s14 = sadd.s32 1, %s976_s14   ;;  %s1245_s12 = smov %s972_s13 }
 0x13a   : > { %p10_p5 = scmp.ge.s32.totalorder %s13_s14, 4   ;;  %s1246_s13 = smov %s1248_s15 }
 0x13c   :  { %12 = sbr.rel (!%p10_p5) target bundleno = 2 (0x2), region = 68 }

// kernel: transformer_lm_forward.15
= control target key start
LH: loop header
LB: loop body
LE: loop exit
PB: predicated region body
PF: predicated region fallthrough
CT: control target
= control target key end

     0   :  { %s1813_s12 = smov 0   ;;  %s1815_s13 = smov 0   ;;  %s2452_s0 = inlined_call_operand.vmem [shape: f32[256,128], index: 0, kind: input, shape index: {}]   ;;  %s2453_s1 = inlined_call_operand.vmem [shape: bf16[128,512], index: 1, kind: input, shape index: {}]   ;;  %s2454_s2 = inlined_call_operand.vmem [shape: f32[1,512], index: 2, kind: input, shape index: {}]   ;;  %s2455_s3 = inlined_call_operand.vmem [shape: f32[256,512], index: 3, kind: output, shape index: {}]  }
   0x1   :  { %s1817_s14 = smov 0  }
   0x2 LB: > { %s25_s15 = sadd.s32 1, %s1786_s13  ;;  %p1334_p0 = scmp.ge.s32.totalorder %s1790_s14, 1  ;;  %s1790_s14 = sphi %s1817_s14, %s13_s14   ;;  %s1786_s13 = sphi %s1815_s13, %s2466_s13   ;;  %s1782_s12 = sphi %s1813_s12, %s2465_s12  }
   0x3   : > { %p27_p1 = scmp.ge.s32.totalorder %s25_s15, 2  ;;  %p173_p2 = scmp.lt.s32.totalorder %s1790_s14, 3 }
   0x5   : > { %s2468_s15 = smov (%p27_p1, %s25_s15), 0  ;;  %p174_p3 = pnand %p1334_p0, %p173_p2 }
   0x7   : > { %177 = sbr.rel (%p174_p3) target bundleno = 410 (0x19a), region = 32 }
   0xe   : > { %v1464_v0 = vld [vmem:[%s2453_s1 + $0x4] ss:$16 sps:$4 sm:$0xff]   ;;  %v1466_v1 = vld [vmem:[%s2453_s1 + $0xc] ss:$16 sps:$4 sm:$0xff]   ;;  %v1792_v2 = vmov 0   ;;  %s1335_s23 = sshll.u32 %s1782_s12, 4  ;;  %v299_v57 = vlaneseq }
   0xf   : > { %511 = vmatprep.mubr.bf16.mxu0 %v1792_v2  ;;  %624 = vmatprep.mubr.bf16.mxu1 %v1792_v2  ;;  %v1468_v3 = vld [vmem:[%s2453_s1] ss:$16 sps:$4 sm:$0xff]   ;;  %v1469_v4 = vld [vmem:[%s2453_s1 + $0x8] ss:$16 sps:$4 sm:$0xff]   ;;  %v1470_v5 = vld [vmem:[%s2453_s1 + $0x24] ss:$16 sps:$4 sm:$0xff]  }
  0x10   : > { %479 = vmatprep.subr.bf16.mxu0 %v1464_v0  ;;  %592 = vmatprep.subr.bf16.mxu1 %v1466_v1  ;;  %v1472_v6 = vld [vmem:[%s2453_s1 + $0x2c] ss:$16 sps:$4 sm:$0xff]   ;;  %v1474_v7 = vld [vmem:[%s2453_s1 + $0x20] ss:$16 sps:$4 sm:$0xff]   ;;  %v1475_v8 = vld [vmem:[%s2453_s1 + $0x28] ss:$16 sps:$4 sm:$0xff]  }
  0x11   : > { %480 = vmatpush1.bf16.msra.mxu0 %v1468_v3  ;;  %593 = vmatpush1.bf16.msra.mxu1 %v1469_v4  ;;  %v1476_v9 = vld [vmem:[%s2453_s1 + $0x44] ss:$16 sps:$4 sm:$0xff]   ;;  %v1478_v10 = vld [vmem:[%s2453_s1 + $0x4c] ss:$16 sps:$4 sm:$0xff]   ;;  %v1480_v11 = vld [vmem:[%s2453_s1 + $0x40] ss:$16 sps:$4 sm:$0xff]  }
  0x12   : > { %481 = vmatprep.subr.bf16.mxu0 %v1470_v5  ;;  %594 = vmatprep.subr.bf16.mxu1 %v1472_v6  ;;  %v1481_v12 = vld [vmem:[%s2453_s1 + $0x48] ss:$16 sps:$4 sm:$0xff]   ;;  %v1482_v13 = vld [vmem:[%s2453_s1 + $0x64] ss:$16 sps:$4 sm:$0xff]   ;;  %v1484_v14 = vld [vmem:[%s2453_s1 + $0x6c] ss:$16 sps:$4 sm:$0xff]  }
  0x13   : > { %v1486_v15 = vld [vmem:[%s2453_s1 + $0x60] ss:$16 sps:$4 sm:$0xff]   ;;  %v1487_v16 = vld [vmem:[%s2453_s1 + $0x68] ss:$16 sps:$4 sm:$0xff]   ;;  %v1488_v17 = vld [vmem:[%s2453_s1 + $0x84] ss:$16 sps:$4 sm:$0xff]  }
  0x14   : > { %v1490_v18 = vld [vmem:[%s2453_s1 + $0x8c] ss:$16 sps:$4 sm:$0xff]   ;;  %p212_p4 = scmp.lt.s32.totalorder %s1335_s23, 31  ;;  %v1492_v19 = vld [vmem:[%s2453_s1 + $0x80] ss:$16 sps:$4 sm:$0xff]   ;;  %v300_v58 = vshrl.u32 %v299_v57, 7 }
  0x15   : > { %482 = vmatpush1.bf16.msra.mxu0 %v1474_v7  ;;  %595 = vmatpush1.bf16.msra.mxu1 %v1475_v8  ;;  %v1493_v20 = vld [vmem:[%s2453_s1 + $0x88] ss:$16 sps:$4 sm:$0xff]   ;;  %v1494_v21 = vld [vmem:[%s2453_s1 + $0xa4] ss:$16 sps:$4 sm:$0xff]   ;;  %v1496_v22 = vld [vmem:[%s2453_s1 + $0xac] ss:$16 sps:$4 sm:$0xff]  }
  0x16   : > { %483 = vmatprep.subr.bf16.mxu0 %v1476_v9  ;;  %596 = vmatprep.subr.bf16.mxu1 %v1478_v10  ;;  %s2470_s23 = smov (!%p212_p4, %s1335_s23), 31  ;;  %v1498_v23 = vld [vmem:[%s2453_s1 + $0xa0] ss:$16 sps:$4 sm:$0xff]   ;;  %v1499_v24 = vld [vmem:[%s2453_s1 + $0xa8] ss:$16 sps:$4 sm:$0xff]   ;;  %v301_v59 = vsub.s32 0, %v300_v58 }
  0x17   : > { %v1500_v25 = vld [vmem:[%s2453_s1 + $0xc4] ss:$16 sps:$4 sm:$0xff]   ;;  %v1502_v26 = vld [vmem:[%s2453_s1 + $0xcc] ss:$16 sps:$4 sm:$0xff]   ;;  %s1336_s22 = sshll.u32 %s2470_s23, 3  ;;  %v309_v60 = vsub.s32 2, %v300_v58 }
  0x18   : > { %v1504_v27 = vld [vmem:[%s2453_s1 + $0xc0] ss:$16 sps:$4 sm:$0xff]   ;;  %v1505_v28 = vld [vmem:[%s2453_s1 + $0xc8] ss:$16 sps:$4 sm:$0xff]   ;;  %v1506_v29 = vld [vmem:[%s2453_s1 + $0xe4] ss:$16 sps:$4 sm:$0xff]   ;;  %s1932_s6 = scalar_lea.vmem %s2452_s0, %s1336_s22 }
  0x19   : > { %484 = vmatpush1.bf16.msra.mxu0 %v1480_v11  ;;  %597 = vmatpush1.bf16.msra.mxu1 %v1481_v12  ;;  %v1508_v30 = vld [vmem:[%s2453_s1 + $0xec] ss:$16 sps:$4 sm:$0xff]   ;;  %v1510_v31 = vld [vmem:[%s2453_s1 + $0xe0] ss:$16 sps:$4 sm:$0xff]   ;;  %v1511_v32 = vld [vmem:[%s2453_s1 + $0xe8] ss:$16 sps:$4 sm:$0xff]  }
  0x1a   : > { %485 = vmatprep.subr.bf16.mxu0 %v1482_v13  ;;  %598 = vmatprep.subr.bf16.mxu1 %v1484_v14  ;;  %v241_v33 = vld [vmem:[%s1932_s6] sm:$0xff]  ;;  %v242_v34 = vld [vmem:[%s1932_s6 + $0x8] sm:$0xff]  ;;  %v243_v36 = vld [vmem:[%s1932_s6 + $0x10] sm:$0xff]  ;;  %v305_v62 = vsub.s32 1, %v300_v58  ;;  %v313_v63 = vsub.s32 3, %v300_v58  ;;  %s1438_s17 = sshll.u32 %s2470_s23, 5 }
  0x1b   : > { %v257_v35 = vpack.c.bf16 %v242_v34, %v241_v33  ;;  %v244_v37 = vld [vmem:[%s1932_s6 + $0x18] sm:$0xff]  ;;  %v245_v39 = vld [vmem:[%s1932_s6 + $0x20] sm:$0xff]  ;;  %v246_v40 = vld [vmem:[%s1932_s6 + $0x28] sm:$0xff]  ;;  %s2073_s19 = scalar_lea.vmem %s2455_s3, %s1438_s17 }
  0x1c   : > { %v258_v38 = vpack.c.bf16 %v244_v37, %v243_v36  ;;  %v259_v41 = vpack.c.bf16 %v246_v40, %v245_v39  ;;  %v247_v42 = vld [vmem:[%s1932_s6 + $0x30] sm:$0xff]  ;;  %v248_v43 = vld [vmem:[%s1932_s6 + $0x38] sm:$0xff]  ;;  %v249_v45 = vld [vmem:[%s1932_s6 + $0x40] sm:$0xff] }
  0x1d   : > { %486 = vmatpush1.bf16.msra.mxu0 %v1486_v15  ;;  %599 = vmatpush1.bf16.msra.mxu1 %v1487_v16  ;;  %v260_v44 = vpack.c.bf16 %v248_v43, %v247_v42  ;;  %v250_v46 = vld [vmem:[%s1932_s6 + $0x48] sm:$0xff]  ;;  %v251_v48 = vld [vmem:[%s1932_s6 + $0x50] sm:$0xff]  ;;  %v252_v49 = vld [vmem:[%s1932_s6 + $0x58] sm:$0xff] }
  0x1e   : > { %487 = vmatprep.subr.bf16.mxu0 %v1488_v17  ;;  %600 = vmatprep.subr.bf16.mxu1 %v1490_v18  ;;  %v261_v47 = vpack.c.bf16 %v250_v46, %v249_v45  ;;  %v262_v50 = vpack.c.bf16 %v252_v49, %v251_v48  ;;  %v253_v51 = vld [vmem:[%s1932_s6 + $0x60] sm:$0xff]  ;;  %v254_v52 = vld [vmem:[%s1932_s6 + $0x68] sm:$0xff]  ;;  %v255_v54 = vld [vmem:[%s1932_s6 + $0x70] sm:$0xff] }
  0x1f   : > { %v263_v53 = vpack.c.bf16 %v254_v52, %v253_v51  ;;  %v256_v55 = vld [vmem:[%s1932_s6 + $0x78] sm:$0xff]  ;;  %v297_v61 = vld [vmem:[%s2454_s2] sm:$0xf] }
  0x20   : > { %v264_v56 = vpack.c.bf16 %v256_v55, %v255_v54  ;;  %v1973_v0 = vrot.slane %v297_v61, %v301_v59  ;;  %v1975_v1 = vrot.slane %v297_v61, %v309_v60  ;;  %v1979_v3 = vrot.slane %v297_v61, %v313_v63 }
  0x21   : > { %488 = vmatpush1.bf16.msra.mxu0 %v1492_v19  ;;  %601 = vmatpush1.bf16.msra.mxu1 %v1493_v20 }
  0x22   : > { %489 = vmatprep.subr.bf16.mxu0 %v1494_v21  ;;  %602 = vmatprep.subr.bf16.mxu1 %v1496_v22 }
  0x25   : > { %490 = vmatpush1.bf16.msra.mxu0 %v1498_v23  ;;  %603 = vmatpush1.bf16.msra.mxu1 %v1499_v24 }
  0x26   : > { %491 = vmatprep.subr.bf16.mxu0 %v1500_v25  ;;  %604 = vmatprep.subr.bf16.mxu1 %v1502_v26 }
  0x29   : > { %492 = vmatpush1.bf16.msra.mxu0 %v1504_v27  ;;  %605 = vmatpush1.bf16.msra.mxu1 %v1505_v28 }
  0x2a   : > { %493 = vmatprep.subr.bf16.mxu0 %v1506_v29  ;;  %606 = vmatprep.subr.bf16.mxu1 %v1508_v30 }
  0x2d   : > { %494 = vmatpush1.bf16.msra.mxu0 %v1510_v31  ;;  %607 = vmatpush1.bf16.msra.mxu1 %v1511_v32 }
  0x30   : > { %512 = vmatmul.mubr.bf16.vlgmr.msra.gmra.mrb[0].mxu0 %v257_v35  ;;  %625 = vmatmul.mubr.bf16.vlgmr.msra.gmra.mrb[0].mxu1 %v257_v35 }
  0x31   : > { %521 = vmatprep.mubr.bf16.mxu0 %v1792_v2  ;;  %634 = vmatprep.mubr.bf16.mxu1 %v1792_v2 }
  0x38   : > { %522 = vmatmul.mubr.bf16.gmra.mrb[4].mxu0 %v258_v38  ;;  %635 = vmatmul.mubr.bf16.gmra.mrb[4].mxu1 %v258_v38 }
  0x39   : > { %531 = vmatprep.mubr.bf16.mxu0 %v1792_v2  ;;  %644 = vmatprep.mubr.bf16.mxu1 %v1792_v2 }
  0x40   : > { %532 = vmatmul.mubr.bf16.gmra.mrb[8].mxu0 %v259_v41  ;;  %645 = vmatmul.mubr.bf16.gmra.mrb[8].mxu1 %v259_v41 }
  0x41   : > { %541 = vmatprep.mubr.bf16.mxu0 %v1792_v2  ;;  %654 = vmatprep.mubr.bf16.mxu1 %v1792_v2 }
  0x48   : > { %542 = vmatmul.mubr.bf16.gmra.mrb[12].mxu0 %v260_v44  ;;  %655 = vmatmul.mubr.bf16.gmra.mrb[12].mxu1 %v260_v44 }
  0x49   : > { %551 = vmatprep.mubr.bf16.mxu0 %v1792_v2  ;;  %664 = vmatprep.mubr.bf16.mxu1 %v1792_v2 }
  0x50   : > { %552 = vmatmul.mubr.bf16.gmra.mrb[16].mxu0 %v261_v47  ;;  %665 = vmatmul.mubr.bf16.gmra.mrb[16].mxu1 %v261_v47 }
  0x51   : > { %561 = vmatprep.mubr.bf16.mxu0 %v1792_v2  ;;  %674 = vmatprep.mubr.bf16.mxu1 %v1792_v2 }
  0x58   : > { %562 = vmatmul.mubr.bf16.gmra.mrb[20].mxu0 %v262_v50  ;;  %675 = vmatmul.mubr.bf16.gmra.mrb[20].mxu1 %v262_v50 }
  0x59   : > { %571 = vmatprep.mubr.bf16.mxu0 %v1792_v2  ;;  %684 = vmatprep.mubr.bf16.mxu1 %v1792_v2 }
  0x60   : > { %572 = vmatmul.mubr.bf16.gmra.mrb[24].mxu0 %v263_v53  ;;  %685 = vmatmul.mubr.bf16.gmra.mrb[24].mxu1 %v263_v53 }
  0x61   : > { %581 = vmatprep.mubr.bf16.mxu0 %v1792_v2  ;;  %694 = vmatprep.mubr.bf16.mxu1 %v1792_v2  ;;  %v1977_v2 = vrot.slane %v297_v61, %v305_v62 }
  0x68   : > { %582 = vmatmul.mubr.bf16.gmra.mrb[28].mxu0 %v264_v56  ;;  %695 = vmatmul.mubr.bf16.gmra.mrb[28].mxu1 %v264_v56 }
 0x103   : > { %v513_v4 = vpop.f32.mrb[0].mxu0  ;;  %v626_v5 = vpop.f32.mrb[0].mxu1 }
 0x104   : > { %v1982_v6 = vadd.f32 %v513_v4, %v1973_v0  ;;  %v1985_v7 = vadd.f32 %v626_v5, %v1975_v1  ;;  %v515_v8 = vpop.f32.mrb[1].mxu0  ;;  %v628_v9 = vpop.f32.mrb[1].mxu1 }
 0x105   : > { %v1988_v10 = vadd.f32 %v515_v8, %v1977_v2  ;;  %v1991_v11 = vadd.f32 %v628_v9, %v1979_v3  ;;  %v517_v12 = vpop.f32.mrb[2].mxu0  ;;  %v630_v13 = vpop.f32.mrb[2].mxu1 }
 0x106   : > { %v1372_v14 = vmul.f32 -1.442695, %v1982_v6  ;;  %v1374_v15 = vmul.f32 -1.442695, %v1985_v7  ;;  %v1996_v16 = vadd.f32 %v517_v12, %v1973_v0  ;;  %v1999_v17 = vadd.f32 %v630_v13, %v1975_v1  ;;  %v519_v18 = vpop.f32.mrb[3].mxu0  ;;  %v632_v19 = vpop.f32.mrb[3].mxu1 }
 0x107   : > { %v1373_v20 = vmul.f32 -1.442695, %v1988_v10  ;;  %v1375_v21 = vmul.f32 -1.442695, %v1991_v11  ;;  %v2004_v22 = vadd.f32 %v519_v18, %v1977_v2  ;;  %v2007_v23 = vadd.f32 %v632_v19, %v1979_v3 }
 0x108   : > { %1512 = vpow2.f32 %v1372_v14  ;;  %v1376_v24 = vmul.f32 -1.442695, %v1996_v16  ;;  %v1378_v25 = vmul.f32 -1.442695, %v1999_v17 }
 0x109   : > { %1514 = vpow2.f32 %v1374_v15  ;;  %v1377_v26 = vmul.f32 -1.442695, %v2004_v22  ;;  %v1379_v27 = vmul.f32 -1.442695, %v2007_v23 }
 0x10a   : > { %1516 = vpow2.f32 %v1373_v20 }
 0x10b   : > { %1518 = vpow2.f32 %v1375_v21  ;;  %v523_v28 = vpop.f32.mrb[4].mxu0  ;;  %v636_v29 = vpop.f32.mrb[4].mxu1 }
 0x10c   : > { %1520 = vpow2.f32 %v1376_v24  ;;  %v2014_v30 = vadd.f32 %v523_v28, %v1973_v0  ;;  %v2017_v31 = vadd.f32 %v636_v29, %v1975_v1  ;;  %v525_v32 = vpop.f32.mrb[5].mxu0  ;;  %v638_v33 = vpop.f32.mrb[5].mxu1 }
 0x10d   : > { %1522 = vpow2.f32 %v1378_v25  ;;  %v2020_v34 = vadd.f32 %v525_v32, %v1977_v2  ;;  %v2023_v35 = vadd.f32 %v638_v33, %v1979_v3  ;;  %v527_v36 = vpop.f32.mrb[6].mxu0  ;;  %v640_v37 = vpop.f32.mrb[6].mxu1 }
 0x10e   : > { %1524 = vpow2.f32 %v1377_v26  ;;  %v1380_v38 = vmul.f32 -1.442695, %v2014_v30  ;;  %v1382_v39 = vmul.f32 -1.442695, %v2017_v31  ;;  %v2028_v40 = vadd.f32 %v527_v36, %v1973_v0  ;;  %v529_v41 = vpop.f32.mrb[7].mxu0  ;;  %v642_v42 = vpop.f32.mrb[7].mxu1 }
 0x10f   : > { %1526 = vpow2.f32 %v1379_v27  ;;  %v1381_v43 = vmul.f32 -1.442695, %v2020_v34  ;;  %v1383_v44 = vmul.f32 -1.442695, %v2023_v35  ;;  %v2040_v15 = vadd.f32 %v640_v37, %v1975_v1 }
 0x110   : > { %1528 = vpow2.f32 %v1380_v38  ;;  %v1384_v45 = vmul.f32 -1.442695, %v2028_v40  ;;  %v2043_v20 = vadd.f32 %v529_v41, %v1977_v2  ;;  %v2049_v26 = vadd.f32 %v642_v42, %v1979_v3 }
 0x111   : > { %1530 = vpow2.f32 %v1382_v39  ;;  %v1386_v41 = vmul.f32 -1.442695, %v2040_v15 }
 0x112   : > { %v1513_v46 = vpop.eup %1512  ;;  %1532 = vpow2.f32 %v1381_v43 }
 0x113   : > { %v1515_v47 = vpop.eup %1514  ;;  %v897_v48 = vadd.f32 1.0, %v1513_v46  ;;  %1534 = vpow2.f32 %v1383_v44  ;;  %v533_v49 = vpop.f32.mrb[8].mxu0 }
 0x114   : > { %v646_v50 = vpop.f32.mrb[8].mxu1  ;;  %v1517_v51 = vpop.eup %1516  ;;  %v899_v52 = vadd.f32 1.0, %v1515_v47  ;;  %1536 = vpow2.f32 %v1384_v45  ;;  %v2056_v33 = vadd.f32 %v533_v49, %v1973_v0  ;;  %v1385_v47 = vmul.f32 -1.442695, %v2043_v20 }
 0x115   : > { %v535_v53 = vpop.f32.mrb[9].mxu0  ;;  %v648_v54 = vpop.f32.mrb[9].mxu1  ;;  %1538 = vrcp.f32 %v897_v48  ;;  %v898_v56 = vadd.f32 1.0, %v1517_v51  ;;  %v2064_v42 = vadd.f32 %v646_v50, %v1975_v1 }
 0x116   : > { %v1519_v55 = vpop.eup %1518  ;;  %v537_v57 = vpop.f32.mrb[10].mxu0  ;;  %1540 = vrcp.f32 %v899_v52  ;;  %v2077_v48 = vadd.f32 %v535_v53, %v1977_v2  ;;  %v1387_v52 = vmul.f32 -1.442695, %v2049_v26 }
 0x117   : > { %v2033_v58 = vpop.f32.mrb[10].mxu1  ;;  %v1521_v59 = vpop.eup %1520  ;;  %v900_v60 = vadd.f32 1.0, %v1519_v55  ;;  %1542 = vrcp.f32 %v898_v56  ;;  %v2084_v55 = vadd.f32 %v648_v54, %v1979_v3  ;;  %v2089_v53 = vadd.f32 %v537_v57, %v1973_v0 }
 0x118   : > { %v2035_v61 = vpop.f32.mrb[11].mxu0  ;;  %v1523_v62 = vpop.eup %1522  ;;  %v901_v63 = vadd.f32 1.0, %v1521_v59  ;;  %v2096_v54 = vadd.f32 %v2033_v58, %v1975_v1  ;;  %v1389_v57 = vmul.f32 -1.442695, %v2077_v48 }
 0x119   : > { %v2037_v4 = vpop.f32.mrb[11].mxu1  ;;  %v1525_v5 = vpop.eup %1524  ;;  %1544 = vrcp.f32 %v900_v60  ;;  %v903_v8 = vadd.f32 1.0, %v1523_v62  ;;  %v1388_v60 = vmul.f32 -1.442695, %v2056_v33 }
 0x11a   : > { %v1527_v9 = vpop.eup %1526  ;;  %1546 = vrcp.f32 %v901_v63  ;;  %v902_v12 = vadd.f32 1.0, %v1525_v5  ;;  %v1390_v63 = vmul.f32 -1.442695, %v2064_v42 }
 0x11b   : > { %v1529_v13 = vpop.eup %1528  ;;  %1548 = vrcp.f32 %v903_v8  ;;  %v904_v14 = vadd.f32 1.0, %v1527_v9  ;;  %v2045_v21 = vpop.f32.mrb[12].mxu0  ;;  %v2103_v8 = vadd.f32 %v2035_v61, %v1977_v2 }
 0x11c   : > { %v1531_v18 = vpop.eup %1530  ;;  %1550 = vrcp.f32 %v902_v12  ;;  %v905_v19 = vadd.f32 1.0, %v1529_v13  ;;  %v2051_v27 = vpop.f32.mrb[12].mxu1  ;;  %v1391_v13 = vmul.f32 -1.442695, %v2084_v55 }
 0x11d   : > { %v1533_v24 = vpop.eup %1532  ;;  %1552 = vrcp.f32 %v904_v14  ;;  %v907_v25 = vadd.f32 1.0, %v1531_v18  ;;  %v2053_v28 = vpop.f32.mrb[13].mxu0 }
 0x11e   : > { %v1535_v29 = vpop.eup %1534  ;;  %1554 = vrcp.f32 %v905_v19  ;;  %v906_v32 = vadd.f32 1.0, %v1533_v24  ;;  %v2058_v36 = vpop.f32.mrb[13].mxu1  ;;  %v1392_v24 = vmul.f32 -1.442695, %v2089_v53 }
 0x11f   : > { %v2060_v37 = vpop.f32.mrb[14].mxu0  ;;  %v1537_v38 = vpop.eup %1536  ;;  %1556 = vrcp.f32 %v907_v25  ;;  %v908_v39 = vadd.f32 1.0, %v1535_v29 }
 0x120   : > { %v2066_v43 = vpop.f32.mrb[14].mxu1  ;;  %v2068_v44 = vpop.f32.mrb[15].mxu0  ;;  %1558 = vrcp.f32 %v906_v32  ;;  %v909_v46 = vadd.f32 1.0, %v1537_v38  ;;  %v1394_v38 = vmul.f32 -1.442695, %v2096_v54 }
 0x121   : > { %v1539_v45 = vpop.eup %1538  ;;  %v2079_v49 = vpop.f32.mrb[15].mxu1  ;;  %1560 = vrcp.f32 %v908_v39 }
 0x122   : > { %v1541_v50 = vpop.eup %1540  ;;  %v1089_v51 = vmul.f32 %v1539_v45, %v1982_v6  ;;  %1562 = vrcp.f32 %v909_v46  ;;  %v1393_v46 = vmul.f32 -1.442695, %v2103_v8 }
 0x123   : > { %v1543_v56 = vpop.eup %1542  ;;  %v1091_v59 = vmul.f32 %v1541_v50, %v1985_v7  ;;  %1564 = vpow2.f32 %v1386_v41  ;;  %v2107_v9 = vpop.f32.mrb[16].mxu1  ;;  %v2148_v50 = vadd.f32 %v2053_v28, %v1977_v2 }
 0x124   : > { %v1545_v62 = vpop.eup %1544  ;;  %1153 = vst [vmem:[%s2073_s19] sm:$0xff] %v1089_v51  ;;  %v1090_v6 = vmul.f32 %v1543_v56, %v1988_v10  ;;  %1566 = vpow2.f32 %v1385_v47  ;;  %v2105_v10 = vpop.f32.mrb[16].mxu0 }
 0x125   : > { %v1547_v5 = vpop.eup %1546  ;;  %1155 = vst [vmem:[%s2073_s19 + $0x10] sm:$0xff] %v1091_v59  ;;  %v1092_v7 = vmul.f32 %v1545_v62, %v1991_v11  ;;  %1568 = vpow2.f32 %v1387_v52  ;;  %v2114_v11 = vadd.f32 %v2037_v4, %v1979_v3  ;;  %v2116_v14 = vpop.f32.mrb[17].mxu0 }
 0x126   : > { %v1549_v12 = vpop.eup %1548  ;;  %1154 = vst [vmem:[%s2073_s19 + $0x8] sm:$0xff] %v1090_v6  ;;  %v1093_v58 = vmul.f32 %v1547_v5, %v1996_v16  ;;  %v2118_v61 = vpop.f32.mrb[17].mxu1  ;;  %1570 = vpow2.f32 %v1388_v60  ;;  %v2125_v16 = vadd.f32 %v2045_v21, %v1973_v0 }
 0x127   : > { %v1551_v18 = vpop.eup %1550  ;;  %1156 = vst [vmem:[%s2073_s19 + $0x18] sm:$0xff] %v1092_v7  ;;  %v1095_v19 = vmul.f32 %v1549_v12, %v1999_v17  ;;  %v2127_v25 = vpop.f32.mrb[18].mxu0  ;;  %1572 = vpow2.f32 %v1390_v63  ;;  %v2136_v17 = vadd.f32 %v2051_v27, %v1975_v1  ;;  %v1395_v27 = vmul.f32 -1.442695, %v2114_v11 }
 0x128   : > { %v2129_v4 = vpop.f32.mrb[18].mxu1  ;;  %v1553_v29 = vpop.eup %1552  ;;  %1157 = vst [vmem:[%s2073_s19 + $0x20] sm:$0xff] %v1093_v58  ;;  %v1094_v32 = vmul.f32 %v1551_v18, %v2004_v22  ;;  %1574 = vpow2.f32 %v1389_v57  ;;  %v2168_v7 = vmul.f32 -1.442695, %v2148_v50 }
 0x129   : > { %v2138_v39 = vpop.f32.mrb[19].mxu0  ;;  %v672_v21 = vpop.f32.mrb[19].mxu1  ;;  %1159 = vst [vmem:[%s2073_s19 + $0x30] sm:$0xff] %v1095_v19  ;;  %v1096_v45 = vmul.f32 %v1553_v29, %v2007_v23  ;;  %1576 = vpow2.f32 %v1391_v13  ;;  %v1396_v23 = vmul.f32 -1.442695, %v2125_v16 }
 0x12a   : > { %v1555_v41 = vpop.eup %1554  ;;  %1158 = vst [vmem:[%s2073_s19 + $0x28] sm:$0xff] %v1094_v32  ;;  %1578 = vpow2.f32 %v1392_v24  ;;  %v1398_v59 = vmul.f32 -1.442695, %v2136_v17  ;;  %v2157_v60 = vadd.f32 %v672_v21, %v1979_v3  ;;  %v2183_v32 = vadd.f32 %v2060_v37, %v1973_v0 }
 0x12b   : > { %v1557_v22 = vpop.eup %1556  ;;  %v1097_v47 = vmul.f32 %v1555_v41, %v2014_v30  ;;  %1160 = vst [vmem:[%s2073_s19 + $0x38] sm:$0xff] %v1096_v45  ;;  %1580 = vpow2.f32 %v1394_v38  ;;  %v563_v6 = vpop.f32.mrb[20].mxu0  ;;  %v2197_v37 = vadd.f32 %v2068_v44, %v1977_v2 }
 0x12c   : > { %v1559_v51 = vpop.eup %1558  ;;  %v1099_v52 = vmul.f32 %v1557_v22, %v2017_v31  ;;  %1582 = vpow2.f32 %v1393_v46  ;;  %v2163_v31 = vadd.f32 %v2058_v36, %v1979_v3  ;;  %v676_v63 = vpop.f32.mrb[20].mxu1  ;;  %v2171_v57 = vadd.f32 %v563_v6, %v1973_v0 }
 0x12d   : > { %v1561_v56 = vpop.eup %1560  ;;  %1161 = vst [vmem:[%s2073_s19 + $0x40] sm:$0xff] %v1097_v47  ;;  %v1098_v30 = vmul.f32 %v1559_v51, %v2020_v34  ;;  %1584 = vpow2.f32 %v1395_v27  ;;  %v678_v12 = vpop.f32.mrb[21].mxu1  ;;  %v2175_v13 = vadd.f32 %v676_v63, %v1975_v1  ;;  %v2193_v47 = vadd.f32 %v2066_v43, %v1975_v1 }
 0x12e   : > { %v1563_v28 = vpop.eup %1562  ;;  %1163 = vst [vmem:[%s2073_s19 + $0x50] sm:$0xff] %v1099_v52  ;;  %v1100_v62 = vmul.f32 %v1561_v56, %v2023_v35  ;;  %v565_v35 = vpop.f32.mrb[21].mxu0  ;;  %1586 = vpow2.f32 %v1396_v23  ;;  %v2186_v38 = vadd.f32 %v678_v12, %v1979_v3  ;;  %v2189_v22 = vmul.f32 -1.442695, %v2163_v31 }
 0x12f   : > { %v1565_v5 = vpop.eup %1564  ;;  %1162 = vst [vmem:[%s2073_s19 + $0x48] sm:$0xff] %v1098_v30  ;;  %v1101_v34 = vmul.f32 %v1563_v28, %v2028_v40  ;;  %v2178_v18 = vadd.f32 %v565_v35, %v1977_v2  ;;  %v567_v40 = vpop.f32.mrb[22].mxu0  ;;  %1588 = vpow2.f32 %v1398_v59 }
 0x130   : > { %v1567_v58 = vpop.eup %1566  ;;  %1164 = vst [vmem:[%s2073_s19 + $0x58] sm:$0xff] %v1100_v62  ;;  %v911_v36 = vadd.f32 1.0, %v1565_v5  ;;  %v680_v19 = vpop.f32.mrb[22].mxu1  ;;  %v2200_v52 = vadd.f32 %v567_v40, %v1973_v0  ;;  %v2209_v62 = vmul.f32 -1.442695, %v2183_v32 }
 0x131   : > { %v1569_v24 = vpop.eup %1568  ;;  %1165 = vst [vmem:[%s2073_s19 + $0x60] sm:$0xff] %v1101_v34  ;;  %v910_v29 = vadd.f32 1.0, %v1567_v58  ;;  %v569_v21 = vpop.f32.mrb[23].mxu0  ;;  %v2203_v30 = vadd.f32 %v680_v19, %v1975_v1  ;;  %v2215_v5 = vmul.f32 -1.442695, %v2193_v47  ;;  %v2219_v34 = vadd.f32 %v2079_v49, %v1979_v3 }
 0x132   : > { %v682_v41 = vpop.f32.mrb[23].mxu1  ;;  %v1571_v45 = vpop.eup %1570  ;;  %1590 = vrcp.f32 %v911_v36  ;;  %v912_v46 = vadd.f32 1.0, %v1569_v24  ;;  %v2206_v59 = vadd.f32 %v569_v21, %v1977_v2  ;;  %v2222_v36 = vmul.f32 -1.442695, %v2197_v37 }
 0x133   : > { %v1573_v27 = vpop.eup %1572  ;;  %1592 = vrcp.f32 %v910_v29  ;;  %v913_v51 = vadd.f32 1.0, %v1571_v45  ;;  %v2212_v44 = vadd.f32 %v682_v41, %v1979_v3  ;;  %v573_v35 = vpop.f32.mrb[24].mxu0 }
 0x134   : > { %v1575_v23 = vpop.eup %1574  ;;  %1594 = vrcp.f32 %v912_v46  ;;  %v915_v56 = vadd.f32 1.0, %v1573_v27  ;;  %v2225_v40 = vadd.f32 %v573_v35, %v1973_v0  ;;  %v686_v19 = vpop.f32.mrb[24].mxu1  ;;  %v2241_v35 = vmul.f32 -1.442695, %v2219_v34 }
 0x135   : > { %v1577_v43 = vpop.eup %1576  ;;  %1596 = vrcp.f32 %v913_v51  ;;  %v914_v28 = vadd.f32 1.0, %v1575_v23  ;;  %v575_v24 = vpop.f32.mrb[25].mxu0  ;;  %v2228_v41 = vadd.f32 %v686_v19, %v1975_v1  ;;  %v2235_v23 = vadd.f32 %v2105_v10, %v1973_v0 }
 0x136   : > { %v1579_v6 = vpop.eup %1578  ;;  %1598 = vrcp.f32 %v915_v56  ;;  %v916_v63 = vadd.f32 1.0, %v1577_v43  ;;  %v2231_v49 = vadd.f32 %v575_v24, %v1977_v2  ;;  %v688_v45 = vpop.f32.mrb[25].mxu1  ;;  %v2249_v24 = vadd.f32 %v2116_v14, %v1977_v2 }
 0x137   : > { %v1581_v12 = vpop.eup %1580  ;;  %1600 = vrcp.f32 %v914_v28  ;;  %v917_v58 = vadd.f32 1.0, %v1579_v6  ;;  %v577_v46 = vpop.f32.mrb[26].mxu0  ;;  %v2238_v56 = vadd.f32 %v688_v45, %v1979_v3  ;;  %v1404_v14 = vmul.f32 -1.442695, %v2235_v23 }
 0x138   : > { %v1583_v29 = vpop.eup %1582  ;;  %1602 = vrcp.f32 %v916_v63  ;;  %v919_v21 = vadd.f32 1.0, %v1581_v12  ;;  %v690_v43 = vpop.f32.mrb[26].mxu1  ;;  %v2245_v12 = vadd.f32 %v2107_v9, %v1975_v1 }
 0x139   : > { %v1585_v27 = vpop.eup %1584  ;;  %1604 = vrcp.f32 %v917_v58  ;;  %v918_v51 = vadd.f32 1.0, %v1583_v29  ;;  %2459 = vst [vmem:[#allocation2_spill] sm:$0xff] %v2238_v56  ;;  %v579_v28 = vpop.f32.mrb[27].mxu0  ;;  %v2252_v29 = vadd.f32 %v577_v46, %v1973_v0 }
 0x13a   : > { %v1587_v6 = vpop.eup %1586  ;;  %1606 = vrcp.f32 %v919_v21  ;;  %v920_v63 = vadd.f32 1.0, %v1585_v27  ;;  %v692_v58 = vpop.f32.mrb[27].mxu1  ;;  %v2255_v27 = vadd.f32 %v690_v43, %v1975_v1  ;;  %v2258_v9 = vadd.f32 %v579_v28, %v1977_v2 }
 0x13b   : > { %v1589_v19 = vpop.eup %1588  ;;  %1608 = vrcp.f32 %v918_v51  ;;  %v921_v10 = vadd.f32 1.0, %v1587_v6  ;;  %v2263_v6 = vadd.f32 %v692_v58, %v1979_v3  ;;  %v1406_v43 = vmul.f32 -1.442695, %v2245_v12 }
 0x13c   : > { %v1591_v21 = vpop.eup %1590  ;;  %1610 = vrcp.f32 %v920_v63  ;;  %v923_v45 = vadd.f32 1.0, %v1589_v19  ;;  %2460 = vst [vmem:[#allocation3_spill] sm:$0xff] %v2258_v9  ;;  %v2269_v28 = vadd.f32 %v2118_v61, %v1979_v3  ;;  %v583_v19 = vpop.f32.mrb[28].mxu0  ;;  %v1405_v58 = vmul.f32 -1.442695, %v2249_v24 }
 0x13d   : > { %v1593_v56 = vpop.eup %1592  ;;  %v1103_v51 = vmul.f32 %v1591_v21, %v2040_v15  ;;  %1612 = vrcp.f32 %v921_v10  ;;  %v696_v9 = vpop.f32.mrb[28].mxu1 }
 0x13e   : > { %v1595_v46 = vpop.eup %1594  ;;  %v1102_v63 = vmul.f32 %v1593_v56, %v2043_v20  ;;  %1614 = vrcp.f32 %v923_v45  ;;  %v2276_v20 = vadd.f32 %v583_v19, %v1973_v0  ;;  %v585_v56 = vpop.f32.mrb[29].mxu0 }
 0x13f   : > { %v1597_v15 = vpop.eup %1596  ;;  %1167 = vst [vmem:[%s2073_s19 + $0x70] sm:$0xff] %v1103_v51  ;;  %v1104_v10 = vmul.f32 %v1595_v46, %v2049_v26  ;;  %1616 = vpow2.f32 %v2168_v7  ;;  %v698_v21 = vpop.f32.mrb[29].mxu1  ;;  %v2282_v51 = vadd.f32 %v696_v9, %v1975_v1  ;;  %v2285_v26 = vadd.f32 %v585_v56, %v1977_v2 }
 0x140   : > { %2461 = vst [vmem:[#allocation4_spill] sm:$0xff] %v2276_v20  ;;  %v1599_v45 = vpop.eup %1598  ;;  %1166 = vst [vmem:[%s2073_s19 + $0x68] sm:$0xff] %v1102_v63  ;;  %v1105_v61 = vmul.f32 %v1597_v15, %v2056_v33  ;;  %1618 = vpow2.f32 %v2189_v22  ;;  %v587_v7 = vpop.f32.mrb[30].mxu0  ;;  %v2292_v33 = vadd.f32 %v2127_v25, %v1973_v0  ;;  %v2295_v22 = vadd.f32 %v698_v21, %v1979_v3 }
 0x141   : > { %v700_v46 = vpop.f32.mrb[30].mxu1  ;;  %v1601_v19 = vpop.eup %1600  ;;  %1168 = vst [vmem:[%s2073_s19 + $0x78] sm:$0xff] %v1104_v10  ;;  %v1107_v20 = vmul.f32 %v1599_v45, %v2064_v42  ;;  %1620 = vpow2.f32 %v2209_v62  ;;  %v1407_v42 = vmul.f32 -1.442695, %v2269_v28  ;;  %v2303_v62 = vadd.f32 %v2129_v4, %v1975_v1 }
 0x142   : > { %v589_v9 = vpop.f32.mrb[31].mxu0  ;;  %v702_v63 = vpop.f32.mrb[31].mxu1  ;;  %1169 = vst [vmem:[%s2073_s19 + $0x80] sm:$0xff] %v1105_v61  ;;  %v1106_v56 = vmul.f32 %v1601_v19, %v2077_v48  ;;  %1622 = vpow2.f32 %v2215_v5  ;;  %v2310_v21 = vadd.f32 %v2138_v39, %v1977_v2  ;;  %v2313_v48 = vadd.f32 %v587_v7, %v1973_v0 }
 0x143   : > { %v1603_v15 = vpop.eup %1602  ;;  %1171 = vst [vmem:[%s2073_s19 + $0x90] sm:$0xff] %v1107_v20  ;;  %1624 = vpow2.f32 %v2222_v36  ;;  %v2319_v4 = vadd.f32 %v700_v46, %v1975_v1  ;;  %v1408_v0 = vmul.f32 -1.442695, %v2292_v33  ;;  %v2328_v20 = vadd.f32 %v702_v63, %v1979_v3 }
 0x144   : > { %v1605_v25 = vpop.eup %1604  ;;  %v1108_v10 = vmul.f32 %v1603_v15, %v2084_v55  ;;  %1170 = vst [vmem:[%s2073_s19 + $0x88] sm:$0xff] %v1106_v56  ;;  %1626 = vpow2.f32 %v2241_v35  ;;  %v2322_v55 = vadd.f32 %v589_v9, %v1977_v2  ;;  %v1410_v2 = vmul.f32 -1.442695, %v2303_v62 }
 0x145   : > { %v1607_v5 = vpop.eup %1606  ;;  %v1109_v45 = vmul.f32 %v1605_v25, %v2089_v53  ;;  %1628 = vpow2.f32 %v1404_v14 }
 0x146   : > { %v1609_v36 = vpop.eup %1608  ;;  %1172 = vst [vmem:[%s2073_s19 + $0x98] sm:$0xff] %v1108_v10  ;;  %v1111_v39 = vmul.f32 %v1607_v5, %v2096_v54  ;;  %1630 = vpow2.f32 %v1406_v43  ;;  %v1409_v54 = vmul.f32 -1.442695, %v2310_v21 }
 0x147   : > { %v1611_v53 = vpop.eup %1610  ;;  %1173 = vst [vmem:[%s2073_s19 + $0xa0] sm:$0xff] %v1109_v45  ;;  %v1110_v1 = vmul.f32 %v1609_v36, %v2103_v8  ;;  %1632 = vpow2.f32 %v1405_v58 }
 0x148   : > { %v1613_v35 = vpop.eup %1612  ;;  %1175 = vst [vmem:[%s2073_s19 + $0xb0] sm:$0xff] %v1111_v39  ;;  %v1112_v61 = vmul.f32 %v1611_v53, %v2114_v11  ;;  %1634 = vpow2.f32 %v1407_v42 }
 0x149   : > { %v1615_v14 = vpop.eup %1614  ;;  %1174 = vst [vmem:[%s2073_s19 + $0xa8] sm:$0xff] %v1110_v1  ;;  %v1113_v3 = vmul.f32 %v1613_v35, %v2125_v16  ;;  %1636 = vpow2.f32 %v1408_v0 }
 0x14a   : > { %v1617_v7 = vpop.eup %1616  ;;  %1176 = vst [vmem:[%s2073_s19 + $0xb8] sm:$0xff] %v1112_v61  ;;  %v1115_v8 = vmul.f32 %v1615_v14, %v2136_v17  ;;  %1638 = vpow2.f32 %v1410_v2 }
 0x14b   : > { %v1619_v43 = vpop.eup %1618  ;;  %1177 = vst [vmem:[%s2073_s19 + $0xc0] sm:$0xff] %v1113_v3  ;;  %v922_v46 = vadd.f32 1.0, %v1617_v7  ;;  %1640 = vpow2.f32 %v1409_v54  ;;  %v1411_v54 = vmul.f32 -1.442695, %v2157_v60  ;;  %v1412_v7 = vmul.f32 -1.442695, %v2171_v57 }
 0x14c   : > { %v1621_v19 = vpop.eup %1620  ;;  %1179 = vst [vmem:[%s2073_s19 + $0xd0] sm:$0xff] %v1115_v8  ;;  %v924_v11 = vadd.f32 1.0, %v1619_v43 }
 0x14d   : > { %v1623_v58 = vpop.eup %1622  ;;  %1642 = vrcp.f32 %v922_v46  ;;  %v925_v9 = vadd.f32 1.0, %v1621_v19  ;;  %v1414_v46 = vmul.f32 -1.442695, %v2175_v13 }
 0x14e   : > { %v1625_v63 = vpop.eup %1624  ;;  %1644 = vrcp.f32 %v924_v11  ;;  %v927_v16 = vadd.f32 1.0, %v1623_v58  ;;  %v1413_v58 = vmul.f32 -1.442695, %v2178_v18 }
 0x14f   : > { %v1627_v15 = vpop.eup %1626  ;;  %1646 = vrcp.f32 %v925_v9  ;;  %v926_v56 = vadd.f32 1.0, %v1625_v63 }
 0x150   : > { %v1629_v42 = vpop.eup %1628  ;;  %1648 = vrcp.f32 %v927_v16  ;;  %v928_v17 = vadd.f32 1.0, %v1627_v15  ;;  %v1415_v16 = vmul.f32 -1.442695, %v2186_v38 }
 0x151   : > { %v1631_v25 = vpop.eup %1630  ;;  %1650 = vrcp.f32 %v926_v56  ;;  %v929_v10 = vadd.f32 1.0, %v1629_v42  ;;  %v1416_v56 = vmul.f32 -1.442695, %v2200_v52 }
 0x152   : > { %v1633_v5 = vpop.eup %1632  ;;  %1652 = vrcp.f32 %v928_v17  ;;  %v931_v45 = vadd.f32 1.0, %v1631_v25  ;;  %v1418_v17 = vmul.f32 -1.442695, %v2203_v30 }
 0x153   : > { %v1635_v36 = vpop.eup %1634  ;;  %1654 = vrcp.f32 %v929_v10  ;;  %v930_v39 = vadd.f32 1.0, %v1633_v5  ;;  %v1417_v10 = vmul.f32 -1.442695, %v2206_v59 }
 0x154   : > { %v1637_v0 = vpop.eup %1636  ;;  %1656 = vrcp.f32 %v931_v45  ;;  %v932_v53 = vadd.f32 1.0, %v1635_v36  ;;  %v1419_v45 = vmul.f32 -1.442695, %v2212_v44 }
 0x155   : > { %v1639_v1 = vpop.eup %1638  ;;  %1658 = vrcp.f32 %v930_v39  ;;  %v933_v2 = vadd.f32 1.0, %v1637_v0  ;;  %v1420_v39 = vmul.f32 -1.442695, %v2225_v40 }
 0x156   : > { %v1641_v35 = vpop.eup %1640  ;;  %1660 = vrcp.f32 %v932_v53  ;;  %v935_v61 = vadd.f32 1.0, %v1639_v1  ;;  %v1422_v53 = vmul.f32 -1.442695, %v2228_v41 }
 0x157   : > { %v1643_v14 = vpop.eup %1642  ;;  %1662 = vrcp.f32 %v933_v2  ;;  %v934_v3 = vadd.f32 1.0, %v1641_v35 }
 0x158   : > { %v1645_v8 = vpop.eup %1644  ;;  %v1114_v43 = vmul.f32 %v1643_v14, %v2148_v50  ;;  %1664 = vrcp.f32 %v935_v61  ;;  %v2462_v61 = vld [vmem:[#allocation2_spill] sm:$0xff] }
 0x159   : > { %v1647_v19 = vpop.eup %1646  ;;  %v1116_v11 = vmul.f32 %v1645_v8, %v2163_v31  ;;  %1666 = vrcp.f32 %v934_v3 }
 0x15a   : > { %v1649_v9 = vpop.eup %1648  ;;  %1178 = vst [vmem:[%s2073_s19 + $0xc8] sm:$0xff] %v1114_v43  ;;  %v1117_v63 = vmul.f32 %v1647_v19, %v2183_v32  ;;  %1668 = vpow2.f32 %v1411_v54 }
 0x15b   : > { %v1651_v15 = vpop.eup %1650  ;;  %1180 = vst [vmem:[%s2073_s19 + $0xd8] sm:$0xff] %v1116_v11  ;;  %v1119_v50 = vmul.f32 %v1649_v9, %v2193_v47  ;;  %1670 = vpow2.f32 %v1412_v7 }
 0x15c   : > { %v1653_v31 = vpop.eup %1652  ;;  %1181 = vst [vmem:[%s2073_s19 + $0xe0] sm:$0xff] %v1117_v63  ;;  %v1118_v42 = vmul.f32 %v1651_v15, %v2197_v37  ;;  %1672 = vpow2.f32 %v1414_v46 }
 0x15d   : > { %v1655_v32 = vpop.eup %1654  ;;  %1183 = vst [vmem:[%s2073_s19 + $0xf0] sm:$0xff] %v1119_v50  ;;  %v1120_v25 = vmul.f32 %v1653_v31, %v2219_v34  ;;  %1674 = vpow2.f32 %v1413_v58 }
 0x15e   : > { %v1657_v47 = vpop.eup %1656  ;;  %1182 = vst [vmem:[%s2073_s19 + $0xe8] sm:$0xff] %v1118_v42  ;;  %v1121_v5 = vmul.f32 %v1655_v32, %v2235_v23  ;;  %1676 = vpow2.f32 %v1415_v16 }
 0x15f   : > { %v1659_v37 = vpop.eup %1658  ;;  %1184 = vst [vmem:[%s2073_s19 + $0xf8] sm:$0xff] %v1120_v25  ;;  %v1123_v36 = vmul.f32 %v1657_v47, %v2245_v12  ;;  %1678 = vpow2.f32 %v1416_v56  ;;  %v1421_v12 = vmul.f32 -1.442695, %v2231_v49 }
 0x160   : > { %v1661_v34 = vpop.eup %1660  ;;  %1185 = vst [vmem:[%s2073_s19 + $0x100] sm:$0xff] %v1121_v5  ;;  %v1122_v0 = vmul.f32 %v1659_v37, %v2249_v24  ;;  %1680 = vpow2.f32 %v1418_v17  ;;  %v1423_v24 = vmul.f32 -1.442695, %v2462_v61 }
 0x161   : > { %v1663_v23 = vpop.eup %1662  ;;  %1187 = vst [vmem:[%s2073_s19 + $0x110] sm:$0xff] %v1123_v36  ;;  %v1124_v1 = vmul.f32 %v1661_v34, %v2269_v28  ;;  %1682 = vpow2.f32 %v1417_v10 }
 0x162   : > { %v1665_v2 = vpop.eup %1664  ;;  %1186 = vst [vmem:[%s2073_s19 + $0x108] sm:$0xff] %v1122_v0  ;;  %v1125_v35 = vmul.f32 %v1663_v23, %v2292_v33  ;;  %1684 = vpow2.f32 %v1419_v45  ;;  %v1424_v45 = vmul.f32 -1.442695, %v2252_v29 }
 0x163   : > { %v1667_v54 = vpop.eup %1666  ;;  %1188 = vst [vmem:[%s2073_s19 + $0x118] sm:$0xff] %v1124_v1  ;;  %v1127_v14 = vmul.f32 %v1665_v2, %v2303_v62  ;;  %1686 = vpow2.f32 %v1420_v39  ;;  %v1426_v39 = vmul.f32 -1.442695, %v2255_v27  ;;  %v1427_v2 = vmul.f32 -1.442695, %v2263_v6 }
 0x164   : > { %v1669_v3 = vpop.eup %1668  ;;  %1189 = vst [vmem:[%s2073_s19 + $0x120] sm:$0xff] %v1125_v35  ;;  %v1126_v28 = vmul.f32 %v1667_v54, %v2310_v21  ;;  %1688 = vpow2.f32 %v1422_v53  ;;  %v2463_v53 = vld [vmem:[#allocation3_spill] sm:$0xff]  ;;  %v2464_v54 = vld [vmem:[#allocation4_spill] sm:$0xff] }
 0x165   : > { %v1671_v7 = vpop.eup %1670  ;;  %1191 = vst [vmem:[%s2073_s19 + $0x130] sm:$0xff] %v1127_v14  ;;  %v936_v8 = vadd.f32 1.0, %v1669_v3  ;;  %1690 = vpow2.f32 %v1421_v12  ;;  %v1425_v23 = vmul.f32 -1.442695, %v2463_v53  ;;  %v1428_v14 = vmul.f32 -1.442695, %v2464_v54 }
 0x166   : > { %v1673_v43 = vpop.eup %1672  ;;  %1190 = vst [vmem:[%s2073_s19 + $0x128] sm:$0xff] %v1126_v28  ;;  %v937_v33 = vadd.f32 1.0, %v1671_v7  ;;  %1692 = vpow2.f32 %v1423_v24  ;;  %v1430_v28 = vmul.f32 -1.442695, %v2282_v51 }
 0x167   : > { %v1675_v46 = vpop.eup %1674  ;;  %1694 = vrcp.f32 %v936_v8  ;;  %v939_v19 = vadd.f32 1.0, %v1673_v43  ;;  %v1429_v8 = vmul.f32 -1.442695, %v2285_v26 }
 0x168   : > { %v1677_v11 = vpop.eup %1676  ;;  %1696 = vrcp.f32 %v937_v33  ;;  %v938_v62 = vadd.f32 1.0, %v1675_v46  ;;  %v1431_v33 = vmul.f32 -1.442695, %v2295_v22 }
 0x169   : > { %v1679_v58 = vpop.eup %1678  ;;  %1698 = vrcp.f32 %v939_v19  ;;  %v940_v9 = vadd.f32 1.0, %v1677_v11  ;;  %v1432_v19 = vmul.f32 -1.442695, %v2313_v48 }
 0x16a   : > { %v1681_v63 = vpop.eup %1680  ;;  %1700 = vrcp.f32 %v938_v62  ;;  %v941_v21 = vadd.f32 1.0, %v1679_v58  ;;  %v1434_v62 = vmul.f32 -1.442695, %v2319_v4 }
 0x16b   : > { %v1683_v16 = vpop.eup %1682  ;;  %1702 = vrcp.f32 %v940_v9  ;;  %v943_v15 = vadd.f32 1.0, %v1681_v63 }
 0x16c   : > { %v1685_v50 = vpop.eup %1684  ;;  %1704 = vrcp.f32 %v941_v21  ;;  %v942_v56 = vadd.f32 1.0, %v1683_v16 }
 0x16d   : > { %v1687_v31 = vpop.eup %1686  ;;  %1706 = vrcp.f32 %v943_v15  ;;  %v944_v42 = vadd.f32 1.0, %v1685_v50 }
 0x16e   : > { %v1689_v17 = vpop.eup %1688  ;;  %1708 = vrcp.f32 %v942_v56  ;;  %v945_v32 = vadd.f32 1.0, %v1687_v31 }
 0x16f   : > { %v1691_v25 = vpop.eup %1690  ;;  %1710 = vrcp.f32 %v944_v42  ;;  %v947_v10 = vadd.f32 1.0, %v1689_v17 }
 0x170   : > { %v1693_v47 = vpop.eup %1692  ;;  %1712 = vrcp.f32 %v945_v32  ;;  %v946_v5 = vadd.f32 1.0, %v1691_v25 }
 0x171   : > { %v1695_v37 = vpop.eup %1694  ;;  %1714 = vrcp.f32 %v947_v10  ;;  %v948_v36 = vadd.f32 1.0, %v1693_v47 }
 0x172   : > { %v1697_v34 = vpop.eup %1696  ;;  %v1128_v0 = vmul.f32 %v1695_v37, %v2157_v60  ;;  %1716 = vrcp.f32 %v946_v5 }
 0x173   : > { %v1699_v1 = vpop.eup %1698  ;;  %v1129_v12 = vmul.f32 %v1697_v34, %v2171_v57  ;;  %1718 = vrcp.f32 %v948_v36 }
 0x174   : > { %v1701_v35 = vpop.eup %1700  ;;  %1192 = vst [vmem:[%s2073_s19 + $0x138] sm:$0xff] %v1128_v0  ;;  %v1131_v24 = vmul.f32 %v1699_v1, %v2175_v13  ;;  %1720 = vpow2.f32 %v1424_v45 }
 0x175   : > { %v1703_v3 = vpop.eup %1702  ;;  %1193 = vst [vmem:[%s2073_s19 + $0x140] sm:$0xff] %v1129_v12  ;;  %v1130_v60 = vmul.f32 %v1701_v35, %v2178_v18  ;;  %1722 = vpow2.f32 %v1426_v39 }
 0x176   : > { %v1705_v57 = vpop.eup %1704  ;;  %1195 = vst [vmem:[%s2073_s19 + $0x150] sm:$0xff] %v1131_v24  ;;  %v1132_v7 = vmul.f32 %v1703_v3, %v2186_v38  ;;  %1724 = vpow2.f32 %v1425_v23 }
 0x177   : > { %v1707_v13 = vpop.eup %1706  ;;  %1194 = vst [vmem:[%s2073_s19 + $0x148] sm:$0xff] %v1130_v60  ;;  %v1133_v43 = vmul.f32 %v1705_v57, %v2200_v52  ;;  %1726 = vpow2.f32 %v1427_v2 }
 0x178   : > { %v1709_v18 = vpop.eup %1708  ;;  %1196 = vst [vmem:[%s2073_s19 + $0x158] sm:$0xff] %v1132_v7  ;;  %v1135_v46 = vmul.f32 %v1707_v13, %v2203_v30  ;;  %1728 = vpow2.f32 %v1428_v14  ;;  %v1433_v30 = vmul.f32 -1.442695, %v2322_v55 }
 0x179   : > { %v1711_v38 = vpop.eup %1710  ;;  %1197 = vst [vmem:[%s2073_s19 + $0x160] sm:$0xff] %v1133_v43  ;;  %v1134_v11 = vmul.f32 %v1709_v18, %v2206_v59  ;;  %1730 = vpow2.f32 %v1430_v28  ;;  %v1435_v59 = vmul.f32 -1.442695, %v2328_v20 }
 0x17a   : > { %v1713_v52 = vpop.eup %1712  ;;  %1199 = vst [vmem:[%s2073_s19 + $0x170] sm:$0xff] %v1135_v46  ;;  %v1136_v58 = vmul.f32 %v1711_v38, %v2212_v44  ;;  %1732 = vpow2.f32 %v1429_v8 }
 0x17b   : > { %v1715_v9 = vpop.eup %1714  ;;  %1198 = vst [vmem:[%s2073_s19 + $0x168] sm:$0xff] %v1134_v11  ;;  %v1137_v63 = vmul.f32 %v1713_v52, %v2225_v40  ;;  %1734 = vpow2.f32 %v1431_v33 }
 0x17c   : > { %v1717_v21 = vpop.eup %1716  ;;  %1200 = vst [vmem:[%s2073_s19 + $0x178] sm:$0xff] %v1136_v58  ;;  %v1139_v16 = vmul.f32 %v1715_v9, %v2228_v41  ;;  %1736 = vpow2.f32 %v1432_v19 }
 0x17d   : > { %v1719_v15 = vpop.eup %1718  ;;  %1201 = vst [vmem:[%s2073_s19 + $0x180] sm:$0xff] %v1137_v63  ;;  %v1138_v44 = vmul.f32 %v1717_v21, %v2231_v49  ;;  %1738 = vpow2.f32 %v1434_v62 }
 0x17e   : > { %v1721_v50 = vpop.eup %1720  ;;  %1203 = vst [vmem:[%s2073_s19 + $0x190] sm:$0xff] %v1139_v16  ;;  %v1140_v56 = vmul.f32 %v1719_v15, %v2462_v61  ;;  %1740 = vpow2.f32 %v1433_v30 }
 0x17f   : > { %v1723_v40 = vpop.eup %1722  ;;  %1202 = vst [vmem:[%s2073_s19 + $0x188] sm:$0xff] %v1138_v44  ;;  %v949_v31 = vadd.f32 1.0, %v1721_v50  ;;  %1742 = vpow2.f32 %v1435_v59 }
 0x180   : > { %v1725_v42 = vpop.eup %1724  ;;  %1204 = vst [vmem:[%s2073_s19 + $0x198] sm:$0xff] %v1140_v56  ;;  %v951_v17 = vadd.f32 1.0, %v1723_v40 }
 0x181   : > { %v1727_v32 = vpop.eup %1726  ;;  %1744 = vrcp.f32 %v949_v31  ;;  %v950_v41 = vadd.f32 1.0, %v1725_v42 }
 0x182   : > { %v1729_v25 = vpop.eup %1728  ;;  %1746 = vrcp.f32 %v951_v17  ;;  %v952_v10 = vadd.f32 1.0, %v1727_v32 }
 0x183   : > { %v1731_v49 = vpop.eup %1730  ;;  %1748 = vrcp.f32 %v950_v41  ;;  %v953_v47 = vadd.f32 1.0, %v1729_v25 }
 0x184   : > { %v1733_v5 = vpop.eup %1732  ;;  %1750 = vrcp.f32 %v952_v10  ;;  %v955_v61 = vadd.f32 1.0, %v1731_v49 }
 0x185   : > { %v1735_v45 = vpop.eup %1734  ;;  %1752 = vrcp.f32 %v953_v47  ;;  %v954_v37 = vadd.f32 1.0, %v1733_v5 }
 0x186   : > { %v1737_v36 = vpop.eup %1736  ;;  %1754 = vrcp.f32 %v955_v61  ;;  %v956_v39 = vadd.f32 1.0, %v1735_v45 }
 0x187   : > { %v1739_v34 = vpop.eup %1738  ;;  %1756 = vrcp.f32 %v954_v37  ;;  %v957_v0 = vadd.f32 1.0, %v1737_v36 }
 0x188   : > { %v1741_v23 = vpop.eup %1740  ;;  %1758 = vrcp.f32 %v956_v39  ;;  %v959_v1 = vadd.f32 1.0, %v1739_v34 }
 0x189   : > { %v1743_v12 = vpop.eup %1742  ;;  %1760 = vrcp.f32 %v957_v0  ;;  %v958_v2 = vadd.f32 1.0, %v1741_v23 }
 0x18a   : > { %1762 = vrcp.f32 %v959_v1  ;;  %v960_v35 = vadd.f32 1.0, %v1743_v12 }
 0x18b   : > { %v1745_v24 = vpop.eup %1744  ;;  %1764 = vrcp.f32 %v958_v2 }
 0x18c   : > { %v1747_v14 = vpop.eup %1746  ;;  %v1141_v3 = vmul.f32 %v1745_v24, %v2252_v29  ;;  %1766 = vrcp.f32 %v960_v35 }
 0x18d   : > { %v1749_v60 = vpop.eup %1748  ;;  %v1143_v28 = vmul.f32 %v1747_v14, %v2255_v27 }
 0x18e   : > { %v1751_v57 = vpop.eup %1750  ;;  %1205 = vst [vmem:[%s2073_s19 + $0x1a0] sm:$0xff] %v1141_v3  ;;  %v1142_v7 = vmul.f32 %v1749_v60, %v2463_v53 }
 0x18f   : > { %v1753_v8 = vpop.eup %1752  ;;  %1207 = vst [vmem:[%s2073_s19 + $0x1b0] sm:$0xff] %v1143_v28  ;;  %v1144_v13 = vmul.f32 %v1751_v57, %v2263_v6 }
 0x190   : > { %v1755_v43 = vpop.eup %1754  ;;  %1206 = vst [vmem:[%s2073_s19 + $0x1a8] sm:$0xff] %v1142_v7  ;;  %v1145_v29 = vmul.f32 %v1753_v8, %v2464_v54 }
 0x191   : > { %v1757_v33 = vpop.eup %1756  ;;  %1208 = vst [vmem:[%s2073_s19 + $0x1b8] sm:$0xff] %v1144_v13  ;;  %v1147_v27 = vmul.f32 %v1755_v43, %v2282_v51 }
 0x192   : > { %v1759_v18 = vpop.eup %1758  ;;  %1209 = vst [vmem:[%s2073_s19 + $0x1c0] sm:$0xff] %v1145_v29  ;;  %v1146_v53 = vmul.f32 %v1757_v33, %v2285_v26 }
 0x193   : > { %v1761_v46 = vpop.eup %1760  ;;  %1211 = vst [vmem:[%s2073_s19 + $0x1d0] sm:$0xff] %v1147_v27  ;;  %v1148_v6 = vmul.f32 %v1759_v18, %v2295_v22 }
 0x194   : > { %v1763_v19 = vpop.eup %1762  ;;  %1210 = vst [vmem:[%s2073_s19 + $0x1c8] sm:$0xff] %v1146_v53  ;;  %v1149_v54 = vmul.f32 %v1761_v46, %v2313_v48 }
 0x195   : > { %v1765_v38 = vpop.eup %1764  ;;  %1212 = vst [vmem:[%s2073_s19 + $0x1d8] sm:$0xff] %v1148_v6  ;;  %v1151_v11 = vmul.f32 %v1763_v19, %v2319_v4 }
 0x196   : > { %v1767_v51 = vpop.eup %1766  ;;  %1213 = vst [vmem:[%s2073_s19 + $0x1e0] sm:$0xff] %v1149_v54  ;;  %v1150_v62 = vmul.f32 %v1765_v38, %v2322_v55 }
 0x197   : > { %1215 = vst [vmem:[%s2073_s19 + $0x1f0] sm:$0xff] %v1151_v11  ;;  %v1152_v26 = vmul.f32 %v1767_v51, %v2328_v20 }
 0x198   : > { %1214 = vst [vmem:[%s2073_s19 + $0x1e8] sm:$0xff] %v1150_v62 }
 0x199   : > { %1216 = vst [vmem:[%s2073_s19 + $0x1f8] sm:$0xff] %v1152_v26 }
 0x19a PF: > { %s13_s14 = sadd.s32 1, %s1790_s14   ;;  %s2465_s12 = smov %s1786_s13 }
 0x19b   : > { %p10_p5 = scmp.ge.s32.totalorder %s13_s14, 4   ;;  %s2466_s13 = smov %s2468_s15 }
 0x19d   :  { %12 = sbr.rel (!%p10_p5) target bundleno = 2 (0x2), region = 68 }

// kernel: transformer_lm_forward.13
= control target key start
LH: loop header
LB: loop body
LE: loop exit
PB: predicated region body
PF: predicated region fallthrough
CT: control target
= control target key end

     0   :  { %s3183_s6 = smov 0   ;;  %s4725_s0 = inlined_call_operand.vmem [shape: f32[2,128,384], index: 0, kind: input, shape index: {}]   ;;  %s4726_s1 = inlined_call_operand.vmem [shape: f32[2,128,128], index: 1, kind: output, shape index: {}]  }
   0x1 LB: > { %s2435_s7 = sadd.s32 4294967295, %s3168_s6   ;;  %p2439_p0 = scmp.ge.s32.totalorder %s3168_s6, 1  ;;  %s3168_s6 = sphi %s3183_s6, %s11_s6  }
   0x2   : > { %p87_p1 = scmp.lt.s32.totalorder %s3168_s6, 3 }
   0x4   : > { %p88_p2 = pnand %p2439_p0, %p87_p1 }
   0x6   : > { %91 = sbr.rel (%p88_p2) target bundleno = 2913 (0xb61), region = 24 }
   0xd   : > { %p107_p3 = scmp.lt.s32.totalorder %s2435_s7, 1  ;;  %vm225_vm0 = vcmask 261120   ;;  %s3170_s12 = smov 96  }
   0xe   : > { %s3171_s13 = smov 64   ;;  %s3172_s14 = smov 32  }
   0xf   : > { %s4885_s7 = smov (!%p107_p3, %s2435_s7), 1 }
  0x10   : > { %s2894_s8 = smul.u32 384, %s4885_s7  ;;  %s2477_s15 = sshll.u32 %s4885_s7, 7 }
  0x11   : > { %s4636_s18 = scalar_lea.vmem %s4726_s1, %s2477_s15 }
  0x12   : > { %s3197_s11 = scalar_lea.vmem %s4725_s0, %s2894_s8 }
  0x13   : > { %v119_v0 = vld [vmem:[%s3197_s11 + $0x8] sm:$0xff]  ;;  %v122_v1 = vld [vmem:[%s3197_s11 + $0x20] sm:$0xff]  ;;  %v125_v2 = vld [vmem:[%s3197_s11 + $0x38] sm:$0xff] }
  0x14   : > { %v3202_v3 = vpack.c.bf16 %v122_v1, %v119_v0  ;;  %v128_v4 = vld [vmem:[%s3197_s11 + $0x50] sm:$0xff]  ;;  %v118_v7 = vld [vmem:[%s3197_s11] sm:$0xff]  ;;  %v121_v8 = vld [vmem:[%s3197_s11 + $0x18] sm:$0xff] }
  0x15   : > { %v3205_v5 = vpack.c.bf16 %v128_v4, %v125_v2  ;;  %v131_v9 = vld [vmem:[%s3197_s11 + $0x68] sm:$0xff]  ;;  %v134_v10 = vld [vmem:[%s3197_s11 + $0x80] sm:$0xff]  ;;  %v3221_v11 = vpack.c.bf16 %v121_v8, %v118_v7  ;;  %v137_v14 = vld [vmem:[%s3197_s11 + $0x98] sm:$0xff] }
  0x16   : > { %2862 = vmatprep.subr.msk.bf16.mxu0 %vm225_vm0, %v3202_v3  ;;  %v251_v6 = vsel %vm225_vm0, %v3202_v3, 0  ;;  %684 = vrot.lane.b32.xlu0 %v3202_v3, %s3170_s12  ;;  %v3227_v13 = vpack.c.bf16 %v134_v10, %v131_v9  ;;  %v140_v15 = vld [vmem:[%s3197_s11 + $0xb0] sm:$0xff]  ;;  %v143_v18 = vld [vmem:[%s3197_s11 + $0xc8] sm:$0xff]  ;;  %v146_v19 = vld [vmem:[%s3197_s11 + $0xe0] sm:$0xff] }
  0x17   : > { %2607 = vmatpush3.bf16.xpose.msra.mxu0 %v251_v6  ;;  %686 = vrot.lane.b32.xlu1 %v3205_v5, %s3170_s12  ;;  %v254_v12 = vsel %vm225_vm0, %v3205_v5, 0  ;;  %v3235_v17 = vpack.c.bf16 %v140_v15, %v137_v14  ;;  %v3243_v21 = vpack.c.bf16 %v146_v19, %v143_v18  ;;  %v149_v22 = vld [vmem:[%s3197_s11 + $0xf8] sm:$0xff]  ;;  %v152_v23 = vld [vmem:[%s3197_s11 + $0x110] sm:$0xff]  ;;  %v155_v26 = vld [vmem:[%s3197_s11 + $0x128] sm:$0xff] }
  0x18   : > { %2863 = vmatprep.subr.msk.bf16.mxu0 %vm225_vm0, %v3205_v5  ;;  %2622 = vmatprep.mubr.msk.bf16.mxu0 %vm225_vm0, %v3221_v11  ;;  %4762 = vst [vmem:[#allocation2_spill] sm:$0xff] %v3227_v13  ;;  %v257_v16 = vsel %vm225_vm0, %v3227_v13, 0  ;;  %v3251_v25 = vpack.c.bf16 %v152_v23, %v149_v22  ;;  %v158_v27 = vld [vmem:[%s3197_s11 + $0x140] sm:$0xff]  ;;  %v161_v30 = vld [vmem:[%s3197_s11 + $0x158] sm:$0xff]  ;;  %v164_v31 = vld [vmem:[%s3197_s11 + $0x170] sm:$0xff]  ;;  %v166_v23 = vlaneseq }
  0x19   : > { %4763 = vst [vmem:[#allocation3_spill] sm:$0xff] %v3235_v17  ;;  %v260_v20 = vsel %vm225_vm0, %v3235_v17, 0  ;;  %4764 = vst [vmem:[#allocation4_spill] sm:$0xff] %v3243_v21  ;;  %v263_v24 = vsel %vm225_vm0, %v3243_v21, 0  ;;  %v3259_v29 = vpack.c.bf16 %v158_v27, %v155_v26  ;;  %v3267_v33 = vpack.c.bf16 %v164_v31, %v161_v30  ;;  %v124_v35 = vld [vmem:[%s3197_s11 + $0x30] sm:$0xff]  ;;  %v127_v36 = vld [vmem:[%s3197_s11 + $0x48] sm:$0xff] }
  0x1a   : > { %4765 = vst [vmem:[#allocation5_spill] sm:$0xff] %v3251_v25  ;;  %v266_v28 = vsel %vm225_vm0, %v3251_v25, 0  ;;  %v130_v37 = vld [vmem:[%s3197_s11 + $0x60] sm:$0xff]  ;;  %v133_v38 = vld [vmem:[%s3197_s11 + $0x78] sm:$0xff]  ;;  %v3277_v39 = vpack.c.bf16 %v127_v36, %v124_v35  ;;  %v136_v41 = vld [vmem:[%s3197_s11 + $0x90] sm:$0xff]  ;;  %v3372_v27 = vand.u32 127, %v166_v23 }
  0x1b   : > { %v269_v32 = vsel %vm225_vm0, %v3259_v29, 0  ;;  %v272_v34 = vsel %vm225_vm0, %v3267_v33, 0  ;;  %v3279_v40 = vpack.c.bf16 %v133_v38, %v130_v37  ;;  %v139_v42 = vld [vmem:[%s3197_s11 + $0xa8] sm:$0xff]  ;;  %v142_v43 = vld [vmem:[%s3197_s11 + $0xc0] sm:$0xff]  ;;  %v145_v44 = vld [vmem:[%s3197_s11 + $0xd8] sm:$0xff] }
  0x1c   : > { %v3289_v45 = vpack.c.bf16 %v139_v42, %v136_v41  ;;  %v3291_v46 = vpack.c.bf16 %v145_v44, %v142_v43  ;;  %v148_v47 = vld [vmem:[%s3197_s11 + $0xf0] sm:$0xff]  ;;  %v151_v48 = vld [vmem:[%s3197_s11 + $0x108] sm:$0xff]  ;;  %v154_v49 = vld [vmem:[%s3197_s11 + $0x120] sm:$0xff] }
  0x1d   : > { %v157_v50 = vld [vmem:[%s3197_s11 + $0x138] sm:$0xff]  ;;  %v3301_v51 = vpack.c.bf16 %v151_v48, %v148_v47  ;;  %v160_v53 = vld [vmem:[%s3197_s11 + $0x150] sm:$0xff]  ;;  %v163_v54 = vld [vmem:[%s3197_s11 + $0x168] sm:$0xff] }
  0x1e   : > { %v3303_v52 = vpack.c.bf16 %v157_v50, %v154_v49  ;;  %v3311_v55 = vpack.c.bf16 %v163_v54, %v160_v53  ;;  %v120_v56 = vld [vmem:[%s3197_s11 + $0x10] sm:$0xff]  ;;  %v123_v57 = vld [vmem:[%s3197_s11 + $0x28] sm:$0xff]  ;;  %v126_v58 = vld [vmem:[%s3197_s11 + $0x40] sm:$0xff] }
  0x1f   : > { %2609 = vmatpush3.bf16.xpose.msra.mxu0 %v254_v12  ;;  %v3318_v59 = vpack.c.bf16 %v123_v57, %v120_v56  ;;  %v129_v60 = vld [vmem:[%s3197_s11 + $0x58] sm:$0xff]  ;;  %v132_v62 = vld [vmem:[%s3197_s11 + $0x70] sm:$0xff]  ;;  %v135_v63 = vld [vmem:[%s3197_s11 + $0x88] sm:$0xff] }
  0x20   : > { %2864 = vmatprep.subr.msk.bf16.mxu0 %vm225_vm0, %v3227_v13  ;;  %v3321_v61 = vpack.c.bf16 %v129_v60, %v126_v58  ;;  %v3328_v0 = vpack.c.bf16 %v135_v63, %v132_v62  ;;  %v138_v1 = vld [vmem:[%s3197_s11 + $0xa0] sm:$0xff]  ;;  %v141_v2 = vld [vmem:[%s3197_s11 + $0xb8] sm:$0xff]  ;;  %v144_v6 = vld [vmem:[%s3197_s11 + $0xd0] sm:$0xff] }
  0x21   : > { %2638 = vmatprep.subr.bf16.mxu1 %v3318_v59  ;;  %v3334_v4 = vpack.c.bf16 %v141_v2, %v138_v1  ;;  %v147_v7 = vld [vmem:[%s3197_s11 + $0xe8] sm:$0xff]  ;;  %v150_v9 = vld [vmem:[%s3197_s11 + $0x100] sm:$0xff]  ;;  %v153_v10 = vld [vmem:[%s3197_s11 + $0x118] sm:$0xff] }
  0x22   : > { %2639 = vmatpush3.bf16.msra.mxu1 %v3318_v59  ;;  %v3340_v8 = vpack.c.bf16 %v147_v7, %v144_v6  ;;  %v3347_v12 = vpack.c.bf16 %v153_v10, %v150_v9  ;;  %v156_v14 = vld [vmem:[%s3197_s11 + $0x130] sm:$0xff]  ;;  %v159_v15 = vld [vmem:[%s3197_s11 + $0x148] sm:$0xff]  ;;  %v165_v19 = vld [vmem:[%s3197_s11 + $0x178] sm:$0xff] }
  0x23   : > { %2640 = vmatprep.subr.bf16.mxu1 %v3321_v61  ;;  %4766 = vst [vmem:[#allocation6_spill] sm:$0xff] %v3334_v4  ;;  %v3354_v18 = vpack.c.bf16 %v159_v15, %v156_v14 }
  0x24   : > { %4767 = vst [vmem:[#allocation7_spill] sm:$0xff] %v3340_v8  ;;  %4768 = vst [vmem:[#allocation8_spill] sm:$0xff] %v3347_v12 }
  0x25   : > { %4769 = vst [vmem:[#allocation9_spill] sm:$0xff] %v3354_v18 }
  0x26   : > { %2641 = vmatpush3.bf16.msra.mxu1 %v3321_v61 }
  0x27   : > { %2611 = vmatpush3.bf16.xpose.msra.mxu0 %v257_v16  ;;  %2642 = vmatprep.subr.bf16.mxu1 %v3328_v0  ;;  %v162_v16 = vld [vmem:[%s3197_s11 + $0x160] sm:$0xff] }
  0x28   : > { %2865 = vmatprep.subr.msk.bf16.mxu0 %vm225_vm0, %v3235_v17 }
  0x2a   : > { %2643 = vmatpush3.bf16.msra.mxu1 %v3328_v0 }
  0x2b   : > { %2644 = vmatprep.subr.bf16.mxu1 %v3334_v4 }
  0x2e   : > { %2645 = vmatpush3.bf16.msra.mxu1 %v3334_v4 }
  0x2f   : > { %2613 = vmatpush3.bf16.xpose.msra.mxu0 %v260_v20  ;;  %2646 = vmatprep.subr.bf16.mxu1 %v3340_v8  ;;  %v3357_v20 = vpack.c.bf16 %v165_v19, %v162_v16 }
  0x30   : > { %2866 = vmatprep.subr.msk.bf16.mxu0 %vm225_vm0, %v3243_v21 }
  0x31   : > { %4770 = vst [vmem:[#allocation10_spill] sm:$0xff] %v3357_v20 }
  0x32   : > { %2647 = vmatpush3.bf16.msra.mxu1 %v3340_v8 }
  0x33   : > { %2648 = vmatprep.subr.bf16.mxu1 %v3347_v12 }
  0x36   : > { %2649 = vmatpush3.bf16.msra.mxu1 %v3347_v12 }
  0x37   : > { %2615 = vmatpush3.bf16.xpose.msra.mxu0 %v263_v24  ;;  %2650 = vmatprep.subr.bf16.mxu1 %v3354_v18  ;;  %v3367_v24 = vshrl.u32 %v166_v23, 7 }
  0x38   : > { %2867 = vmatprep.subr.msk.bf16.mxu0 %vm225_vm0, %v3251_v25 }
  0x39   : > { %v3370_v26 = vadd.s32 16, %v3367_v24  ;;  %v3377_v30 = vadd.s32 24, %v3367_v24  ;;  %vm185_vm2 = vcmp.le.s32.totalorder %v3372_v27, %v3367_v24  ;;  %v3398_v44 = vadd.s32 48, %v3367_v24 }
  0x3a   : > { %2651 = vmatpush3.bf16.msra.mxu1 %v3354_v18  ;;  %v3404_v47 = vadd.s32 56, %v3367_v24  ;;  %v3412_v49 = vadd.s32 32, %v3367_v24  ;;  %v3423_v54 = vadd.s32 40, %v3367_v24  ;;  %v3438_v6 = vadd.s32 80, %v3367_v24 }
  0x3b   : > { %2652 = vmatprep.subr.bf16.mxu1 %v3357_v20  ;;  %vm187_vm1 = vcmp.le.s32.totalorder %v3372_v27, %v3370_v26  ;;  %vm188_vm3 = vcmp.le.s32.totalorder %v3372_v27, %v3377_v30  ;;  %vm191_vm5 = vcmp.le.s32.totalorder %v3372_v27, %v3398_v44  ;;  %v3453_v10 = vadd.s32 88, %v3367_v24 }
  0x3c   : > { %4771 = vst [vmem:[#allocation11_spill] sm:$0xff] %v3412_v49  ;;  %4772 = vst [vmem:[#allocation12_spill] sm:$0xff] %v3423_v54  ;;  %vm192_vm6 = vcmp.le.s32.totalorder %v3372_v27, %v3404_v47  ;;  %vm189_vm7 = vcmp.le.s32.totalorder %v3372_v27, %v3412_v49  ;;  %vm190_vm8 = vcmp.le.s32.totalorder %v3372_v27, %v3423_v54  ;;  %v3461_v15 = vadd.s32 64, %v3367_v24 }
  0x3d   : > { %4773 = vst [vmem:[#allocation13_spill] sm:$0xff] %v3438_v6  ;;  %4774 = vst [vmem:[#allocation14_spill] sm:$0xff] %v3453_v10  ;;  %vm195_vm9 = vcmp.le.s32.totalorder %v3372_v27, %v3438_v6  ;;  %v3466_v19 = vadd.s32 72, %v3367_v24  ;;  %vm196_vm10 = vcmp.le.s32.totalorder %v3372_v27, %v3453_v10 }
  0x3e   : > { %2653 = vmatpush3.bf16.msra.mxu1 %v3357_v20  ;;  %4775 = vst [vmem:[#allocation15_spill] sm:$0xff] %v3461_v15  ;;  %vm193_vm11 = vcmp.le.s32.totalorder %v3372_v27, %v3461_v15 }
  0x3f   : > { %2617 = vmatpush3.bf16.xpose.msra.mxu0 %v266_v28  ;;  %4776 = vst [vmem:[#allocation16_spill] sm:$0xff] %v3466_v19  ;;  %vm4756_vm12 = vcmp.le.s32.totalorder %v3372_v27, %v3466_v19 }
  0x40   : > { %2868 = vmatprep.subr.msk.bf16.mxu0 %vm225_vm0, %v3259_v29 }
  0x47   : > { %2619 = vmatpush3.bf16.xpose.msra.mxu0 %v269_v32 }
  0x48   : > { %2869 = vmatprep.subr.msk.bf16.mxu0 %vm225_vm0, %v3267_v33 }
  0x4f   : > { %2621 = vmatpush3.bf16.xpose.msra.mxu0 %v272_v34  ;;  %v3382_v34 = vadd.s32 8, %v3367_v24 }
  0x51   : > { %vm186_vm4 = vcmp.le.s32.totalorder %v3372_v27, %v3382_v34 }
  0x56   : > { %2623 = vmatmul.mubr.msk.bf16.vlgmr.msra.gmra.mrb[0].mxu0 %vm225_vm0, %v3277_v39 }
  0x57   : > { %2626 = vmatprep.mubr.msk.bf16.mxu0 %vm225_vm0, %v3279_v40 }
  0x5e   : > { %2627 = vmatmul.mubr.msk.bf16.gmra.mrb[4].mxu0 %vm225_vm0, %v3289_v45 }
  0x5f   : > { %2630 = vmatprep.mubr.msk.bf16.mxu0 %vm225_vm0, %v3291_v46 }
  0x66   : > { %2631 = vmatmul.mubr.msk.bf16.gmra.mrb[8].mxu0 %vm225_vm0, %v3301_v51 }
  0x67   : > { %2634 = vmatprep.mubr.msk.bf16.mxu0 %vm225_vm0, %v3303_v52 }
  0x6e   : > { %2635 = vmatmul.mubr.msk.bf16.gmra.mrb[12].mxu0 %vm225_vm0, %v3311_v55 }
  0x88   : > { %v3362_v22 = vpop.permute.xlu0 %684 }
  0x89   : > { %2870 = vmatprep.subr.msk.bf16.mxu1 %vm225_vm0, %v3362_v22 }
 0x129   : > { %v2624_v28 = vpop.f32.mrb[0].mxu0 }
 0x12a   : > { %v373_v31 = vmul.f32 0.17677669, %v2624_v28  ;;  %v308_v32 = vpop.f32.mrb[1].mxu0 }
 0x12b   : > { %v371_v35 = vmul.f32 0.17677669, %v308_v32  ;;  %v2625_v36 = vpop.f32.mrb[2].mxu0 }
 0x12c   : > { %v374_v37 = vmul.f32 0.17677669, %v2625_v36  ;;  %v311_v38 = vpop.f32.mrb[3].mxu0  ;;  %v3387_v41 = vsel %vm187_vm1, %v373_v31, -1e+30 }
 0x12d   : > { %v372_v42 = vmul.f32 0.17677669, %v311_v38  ;;  %407 = vmax.xlane.f32.xlu1 %v3387_v41  ;;  %v3393_v43 = vsel %vm185_vm2, %v371_v35, -1e+30 }
 0x12e   : > { %403 = vmax.xlane.f32.xlu0 %v3393_v43  ;;  %v3409_v48 = vsel %vm188_vm3, %v374_v37, -1e+30 }
 0x12f   : > { %v3418_v53 = vsel %vm186_vm4, %v372_v42, -1e+30  ;;  %v3482_v42 = vadd.s32 112, %v3367_v24 }
 0x131   : > { %409 = vmax.xlane.f32.xlu1 %v3409_v48  ;;  %v2628_v50 = vpop.f32.mrb[4].mxu0  ;;  %4777 = vst [vmem:[#allocation17_spill] sm:$0xff] %v3482_v42  ;;  %vm199_vm13 = vcmp.le.s32.totalorder %v3372_v27, %v3482_v42 }
 0x132   : > { %v377_v56 = vmul.f32 0.17677669, %v2628_v50  ;;  %405 = vmax.xlane.f32.xlu0 %v3418_v53  ;;  %v324_v57 = vpop.f32.mrb[5].mxu0 }
 0x133   : > { %v375_v58 = vmul.f32 0.17677669, %v324_v57  ;;  %v2629_v60 = vpop.f32.mrb[6].mxu0 }
 0x134   : > { %v378_v62 = vmul.f32 0.17677669, %v2629_v60  ;;  %v3431_v63 = vsel %vm191_vm5, %v377_v56, -1e+30  ;;  %v327_v1 = vpop.f32.mrb[7].mxu0 }
 0x135   : > { %v376_v2 = vmul.f32 0.17677669, %v327_v1  ;;  %v3450_v9 = vsel %vm189_vm7, %v375_v58, -1e+30  ;;  %v3502_v58 = vadd.s32 96, %v3367_v24 }
 0x136   : > { %415 = vmax.xlane.f32.xlu0 %v3431_v63  ;;  %v3444_v7 = vsel %vm192_vm6, %v378_v62, -1e+30 }
 0x137   : > { %417 = vmax.xlane.f32.xlu1 %v3444_v7  ;;  %v3458_v14 = vsel %vm190_vm8, %v376_v2, -1e+30  ;;  %4778 = vst [vmem:[#allocation18_spill] sm:$0xff] %v3502_v58  ;;  %vm4727_vm14 = vcmp.le.s32.totalorder %v3372_v27, %v3502_v58 }
 0x139   : > { %v2632_v16 = vpop.f32.mrb[8].mxu0 }
 0x13a   : > { %v381_v23 = vmul.f32 0.17677669, %v2632_v16  ;;  %411 = vmax.xlane.f32.xlu0 %v3450_v9  ;;  %v340_v28 = vpop.f32.mrb[9].mxu0 }
 0x13b   : > { %v379_v31 = vmul.f32 0.17677669, %v340_v28  ;;  %413 = vmax.xlane.f32.xlu1 %v3458_v14  ;;  %v2633_v32 = vpop.f32.mrb[10].mxu0 }
 0x13c   : > { %v382_v35 = vmul.f32 0.17677669, %v2633_v32  ;;  %v3475_v36 = vsel %vm195_vm9, %v381_v23, -1e+30  ;;  %v343_v37 = vpop.f32.mrb[11].mxu0  ;;  %v3527_v32 = vadd.s32 120, %v3367_v24 }
 0x13d   : > { %v380_v38 = vmul.f32 0.17677669, %v343_v37  ;;  %v3494_v56 = vsel %vm193_vm11, %v379_v31, -1e+30  ;;  %v3532_v37 = vadd.s32 104, %v3367_v24 }
 0x13e   : > { %423 = vmax.xlane.f32.xlu0 %v3475_v36  ;;  %v3488_v50 = vsel %vm196_vm10, %v382_v35, -1e+30  ;;  %4779 = vst [vmem:[#allocation19_spill] sm:$0xff] %v3527_v32  ;;  %vm200_vm15 = vcmp.le.s32.totalorder %v3372_v27, %v3527_v32 }
 0x13f   : > { %425 = vmax.xlane.f32.xlu1 %v3488_v50  ;;  %v3499_v57 = vsel %vm4756_vm12, %v380_v38, -1e+30  ;;  %4780 = vst [vmem:[#allocation20_spill] sm:$0xff] %v3532_v37 }
 0x141   : > { %v2636_v60 = vpop.f32.mrb[12].mxu0 }
 0x142   : > { %419 = vmax.xlane.f32.xlu0 %v3494_v56  ;;  %v385_v62 = vmul.f32 0.17677669, %v2636_v60  ;;  %v356_v1 = vpop.f32.mrb[13].mxu0 }
 0x143   : > { %421 = vmax.xlane.f32.xlu1 %v3499_v57  ;;  %v383_v2 = vmul.f32 0.17677669, %v356_v1  ;;  %v2637_v16 = vpop.f32.mrb[14].mxu0  ;;  %v3548_v1 = vpop.permute.xlu1 %686 }
 0x144   : > { %v3511_v23 = vsel %vm199_vm13, %v385_v62, -1e+30  ;;  %v359_v28 = vpop.f32.mrb[15].mxu0  ;;  %v386_v35 = vmul.f32 0.17677669, %v2637_v16 }
 0x145   : > { %v3519_v31 = vsel %vm4727_vm14, %v383_v2, -1e+30  ;;  %v384_v60 = vmul.f32 0.17677669, %v359_v28  ;;  %vm198_vm14 = vcmp.le.s32.totalorder %v3372_v27, %v3532_v37 }
 0x146   : > { %431 = vmax.xlane.f32.xlu0 %v3511_v23  ;;  %v3537_v38 = vsel %vm200_vm15, %v386_v35, -1e+30 }
 0x147   : > { %v3545_v62 = vsel %vm198_vm14, %v384_v60, -1e+30 }
 0x14a   : > { %427 = vmax.xlane.f32.xlu0 %v3519_v31 }
 0x154   : > { %690 = vrot.lane.b32.xlu1 %v3235_v17, %s3170_s12 }
 0x160   : > { %688 = vrot.lane.b32.xlu0 %v3227_v13, %s3170_s12 }
 0x178   : > { %433 = vmax.xlane.f32.xlu1 %v3537_v38 }
 0x17c   : > { %429 = vmax.xlane.f32.xlu1 %v3545_v62 }
 0x1ba   : > { %v408_v2 = vpop.xlane.xlu1 %407 }
 0x1bb   : > { %v437_v16 = vsub.f32 %v3387_v41, %v408_v2  ;;  %v404_v35 = vpop.xlane.xlu0 %403 }
 0x1bc   : > { %v435_v28 = vsub.f32 %v3393_v43, %v404_v35 }
 0x1bd   : > { %v455_v32 = vmul.f32 1.442695, %v437_v16 }
 0x1be   : > { %v451_v13 = vmul.f32 1.442695, %v435_v28  ;;  %v410_v17 = vpop.xlane.xlu1 %409 }
 0x1bf   : > { %2906 = vpow2.f32 %v455_v32  ;;  %v438_v58 = vsub.f32 %v3409_v48, %v410_v17  ;;  %v406_v42 = vpop.xlane.xlu0 %405 }
 0x1c0   : > { %v436_v60 = vsub.f32 %v3418_v53, %v406_v42  ;;  %2908 = vpow2.f32 %v451_v13 }
 0x1c1   : > { %v457_v37 = vmul.f32 1.442695, %v438_v58 }
 0x1c2   : > { %v453_v15 = vmul.f32 1.442695, %v436_v60 }
 0x1c3   : > { %2910 = vpow2.f32 %v457_v37  ;;  %v416_v13 = vpop.xlane.xlu0 %415 }
 0x1c4   : > { %2912 = vpow2.f32 %v453_v15  ;;  %v418_v15 = vpop.xlane.xlu1 %417  ;;  %v441_v32 = vsub.f32 %v3431_v63, %v416_v13 }
 0x1c5   : > { %v442_v60 = vsub.f32 %v3444_v7, %v418_v15 }
 0x1c6   : > { %v463_v16 = vmul.f32 1.442695, %v441_v32 }
 0x1c7   : > { %v412_v48 = vpop.xlane.xlu0 %411  ;;  %v465_v49 = vmul.f32 1.442695, %v442_v60 }
 0x1c8   : > { %v414_v58 = vpop.xlane.xlu1 %413  ;;  %v439_v37 = vsub.f32 %v3450_v9, %v412_v48  ;;  %2914 = vpow2.f32 %v463_v16 }
 0x1c9   : > { %v3554_v19 = vpop.eup %2906  ;;  %v440_v35 = vsub.f32 %v3458_v14, %v414_v58 }
 0x1ca   : > { %487 = vadd.xlane.f32.xlu0 %v3554_v19  ;;  %v3557_v41 = vpop.eup %2908  ;;  %v459_v6 = vmul.f32 1.442695, %v439_v37 }
 0x1cb   : > { %v424_v53 = vpop.xlane.xlu0 %423 }
 0x1cc   : > { %v426_v28 = vpop.xlane.xlu1 %425  ;;  %2916 = vpow2.f32 %v459_v6  ;;  %v445_v54 = vsub.f32 %v3475_v36, %v424_v53 }
 0x1cd   : > { %v3559_v43 = vpop.eup %2910  ;;  %v446_v6 = vsub.f32 %v3488_v50, %v426_v28 }
 0x1ce   : > { %483 = vadd.xlane.f32.xlu0 %v3557_v41  ;;  %489 = vadd.xlane.f32.xlu1 %v3559_v43  ;;  %v3563_v17 = vpop.eup %2912  ;;  %v471_v14 = vmul.f32 1.442695, %v445_v54 }
 0x1cf   : > { %v420_v42 = vpop.xlane.xlu0 %419 }
 0x1d0   : > { %v422_v63 = vpop.xlane.xlu1 %421  ;;  %v443_v48 = vsub.f32 %v3494_v56, %v420_v42 }
 0x1d1   : > { %v444_v56 = vsub.f32 %v3499_v57, %v422_v63 }
 0x1d2   : > { %485 = vadd.xlane.f32.xlu1 %v3563_v17  ;;  %v3580_v58 = vpop.eup %2914  ;;  %v467_v36 = vmul.f32 1.442695, %v443_v48 }
 0x1d3   : > { %v432_v2 = vpop.xlane.xlu0 %431 }
 0x1d4   : > { %v3578_v15 = vpop.permute.xlu1 %690 }
 0x1d7   : > { %v428_v10 = vpop.xlane.xlu0 %427 }
 0x1d8   : > { %v447_v13 = vsub.f32 %v3519_v31, %v428_v10  ;;  %v473_v10 = vmul.f32 1.442695, %v446_v6 }
 0x1da   : > { %v475_v7 = vmul.f32 1.442695, %v447_v13 }
 0x1db   : > { %v689_v60 = vpop.permute.xlu0 %688 }
 0x1e3   : > { %694 = vrot.lane.b32.xlu1 %v3251_v25, %s3170_s12  ;;  %v461_v25 = vmul.f32 1.442695, %v440_v35 }
 0x1e4   : > { %692 = vrot.lane.b32.xlu0 %v3243_v21, %s3170_s12  ;;  %v449_v21 = vsub.f32 %v3511_v23, %v432_v2 }
 0x1e5   : > { %2918 = vpow2.f32 %v461_v25 }
 0x1e6   : > { %v479_v9 = vmul.f32 1.442695, %v449_v21  ;;  %2920 = vpow2.f32 %v465_v49  ;;  %v3584_v21 = vpop.eup %2916 }
 0x1e8   : > { %2922 = vpow2.f32 %v479_v9 }
 0x1e9   : > { %2924 = vpow2.f32 %v471_v14 }
 0x1ea   : > { %2926 = vpow2.f32 %v475_v7 }
 0x1eb   : > { %2928 = vpow2.f32 %v467_v36 }
 0x1ef   : > { %v3586_v49 = vpop.eup %2918 }
 0x1f0   : > { %v3592_v31 = vpop.eup %2920 }
 0x1f2   : > { %v3594_v53 = vpop.eup %2922 }
 0x1f3   : > { %v3599_v32 = vpop.eup %2924 }
 0x1f4   : > { %v3601_v37 = vpop.eup %2926 }
 0x1f5   : > { %v3605_v2 = vpop.eup %2928 }
 0x203   : > { %495 = vadd.xlane.f32.xlu0 %v3580_v58 }
 0x205   : > { %v434_v25 = vpop.xlane.xlu1 %433 }
 0x206   : > { %v450_v54 = vsub.f32 %v3537_v38, %v434_v25  ;;  %v469_v38 = vmul.f32 1.442695, %v444_v56 }
 0x207   : > { %493 = vadd.xlane.f32.xlu0 %v3586_v49  ;;  %491 = vadd.xlane.f32.xlu1 %v3584_v21 }
 0x208   : > { %v481_v23 = vmul.f32 1.442695, %v450_v54 }
 0x209   : > { %v430_v50 = vpop.xlane.xlu1 %429 }
 0x20a   : > { %2930 = vpow2.f32 %v481_v23  ;;  %v448_v42 = vsub.f32 %v3545_v62, %v430_v50 }
 0x20b   : > { %511 = vadd.xlane.f32.xlu0 %v3594_v53  ;;  %497 = vadd.xlane.f32.xlu1 %v3592_v31  ;;  %2932 = vpow2.f32 %v473_v10 }
 0x20c   : > { %2934 = vpow2.f32 %v469_v38  ;;  %v477_v57 = vmul.f32 1.442695, %v448_v42  ;;  %v725_v38 = vsel %vm225_vm0, %v3362_v22, 0 }
 0x20e   : > { %2936 = vpow2.f32 %v477_v57 }
 0x20f   : > { %507 = vadd.xlane.f32.xlu0 %v3601_v37  ;;  %503 = vadd.xlane.f32.xlu1 %v3599_v32 }
 0x213   : > { %499 = vadd.xlane.f32.xlu1 %v3605_v2 }
 0x214   : > { %v3608_v16 = vpop.eup %2930 }
 0x215   : > { %513 = vadd.xlane.f32.xlu0 %v3608_v16  ;;  %v3611_v62 = vpop.eup %2932 }
 0x216   : > { %v3614_v35 = vpop.eup %2934 }
 0x217   : > { %505 = vadd.xlane.f32.xlu1 %v3611_v62 }
 0x218   : > { %v3617_v28 = vpop.eup %2936 }
 0x21b   : > { %501 = vadd.xlane.f32.xlu1 %v3614_v35 }
 0x21f   : > { %509 = vadd.xlane.f32.xlu1 %v3617_v28 }
 0x22b   : > { %696 = vrot.lane.b32.xlu0 %v3259_v29, %s3170_s12 }
 0x22f   : > { %660 = vrot.lane.b32.xlu0 %v3221_v11, %s3170_s12 }
 0x230   : > { %698 = vrot.lane.b32.xlu1 %v3267_v33, %s3170_s12 }
 0x233   : > { %664 = vrot.lane.b32.xlu0 %v3279_v40, %s3170_s12 }
 0x234   : > { %662 = vrot.lane.b32.xlu1 %v3277_v39, %s3170_s12 }
 0x237   : > { %668 = vrot.lane.b32.xlu0 %v3291_v46, %s3170_s12 }
 0x238   : > { %666 = vrot.lane.b32.xlu1 %v3289_v45, %s3170_s12 }
 0x23b   : > { %672 = vrot.lane.b32.xlu0 %v3303_v52, %s3170_s12 }
 0x23c   : > { %670 = vrot.lane.b32.xlu1 %v3301_v51, %s3170_s12 }
 0x23f   : > { %1037 = vrot.lane.b32.xlu0 %v3318_v59, %s3170_s12 }
 0x240   : > { %674 = vrot.lane.b32.xlu1 %v3311_v55, %s3170_s12 }
 0x243   : > { %1041 = vrot.lane.b32.xlu0 %v3328_v0, %s3170_s12 }
 0x244   : > { %1039 = vrot.lane.b32.xlu1 %v3321_v61, %s3170_s12 }
 0x247   : > { %1045 = vrot.lane.b32.xlu0 %v3340_v8, %s3170_s12 }
 0x248   : > { %1043 = vrot.lane.b32.xlu1 %v3334_v4, %s3170_s12 }
 0x24b   : > { %1049 = vrot.lane.b32.xlu0 %v3354_v18, %s3170_s12 }
 0x24c   : > { %1047 = vrot.lane.b32.xlu1 %v3347_v12, %s3170_s12 }
 0x24f   : > { %1174 = vrot.lane.b32.xlu0 %v3202_v3, %s3171_s13 }
 0x250   : > { %1051 = vrot.lane.b32.xlu1 %v3357_v20, %s3170_s12 }
 0x254   : > { %1176 = vrot.lane.b32.xlu1 %v3205_v5, %s3171_s13 }
 0x257   : > { %v488_v63 = vpop.xlane.xlu0 %487 }
 0x25b   : > { %v484_v9 = vpop.xlane.xlu0 %483  ;;  %v490_v13 = vpop.xlane.xlu1 %489 }
 0x25c   : > { %2938 = vrcp.f32 %v490_v13 }
 0x25d   : > { %2940 = vrcp.f32 %v484_v9 }
 0x25e   : > { %2942 = vrcp.f32 %v488_v63 }
 0x25f   : > { %v486_v14 = vpop.xlane.xlu1 %485  ;;  %v693_v22 = vpop.permute.xlu0 %692 }
 0x260   : > { %2944 = vrcp.f32 %v486_v14 }
 0x266   : > { %v2939_v48 = vpop.eup %2938 }
 0x267   : > { %v2941_v7 = vpop.eup %2940  ;;  %v534_v25 = vmul.f32 %v2939_v48, %v3559_v43  ;;  %v728_v43 = vsel %vm225_vm0, %v3548_v1, 0 }
 0x268   : > { %v2943_v6 = vpop.eup %2942  ;;  %v531_v54 = vmul.f32 %v2941_v7, %v3557_v41  ;;  %v731_v41 = vsel %vm225_vm0, %v689_v60, 0 }
 0x269   : > { %v533_v56 = vmul.f32 %v2943_v6, %v3554_v19  ;;  %v734_v19 = vsel %vm225_vm0, %v3578_v15, 0 }
 0x26a   : > { %v2945_v36 = vpop.eup %2944 }
 0x26b   : > { %v532_v10 = vmul.f32 %v2945_v36, %v3563_v17  ;;  %v548_v50 = vpack.c.bf16 %v534_v25, %v533_v56  ;;  %v695_v17 = vpop.permute.xlu1 %694 }
 0x26c   : > { %v740_v9 = vsel %vm225_vm0, %v695_v17, 0 }
 0x26d   : > { %v547_v23 = vpack.c.bf16 %v532_v10, %v531_v54 }
 0x26f   : > { %2654 = vmatprep.mubr.bf16.mxu1 %v547_v23 }
 0x270   : > { %2655 = vmatmul.mubr.bf16.vlgmr.msra.gmra.mrb[0].mxu1 %v548_v50 }
 0x271   : > { %2671 = vmatpush3.bf16.xpose.msra.mxu1 %v725_v38 }
 0x272   : > { %2871 = vmatprep.subr.msk.bf16.mxu1 %vm225_vm0, %v3548_v1  ;;  %v737_v1 = vsel %vm225_vm0, %v693_v22, 0 }
 0x279   : > { %2673 = vmatpush3.bf16.xpose.msra.mxu1 %v728_v43 }
 0x27a   : > { %2872 = vmatprep.subr.msk.bf16.mxu1 %vm225_vm0, %v689_v60 }
 0x281   : > { %2675 = vmatpush3.bf16.xpose.msra.mxu1 %v731_v41 }
 0x282   : > { %2873 = vmatprep.subr.msk.bf16.mxu1 %vm225_vm0, %v3578_v15 }
 0x289   : > { %2677 = vmatpush3.bf16.xpose.msra.mxu1 %v734_v19 }
 0x28a   : > { %2874 = vmatprep.subr.msk.bf16.mxu1 %vm225_vm0, %v693_v22 }
 0x290   : > { %v496_v42 = vpop.xlane.xlu0 %495 }
 0x291   : > { %2679 = vmatpush3.bf16.xpose.msra.mxu1 %v737_v1 }
 0x292   : > { %2875 = vmatprep.subr.msk.bf16.mxu1 %vm225_vm0, %v695_v17 }
 0x294   : > { %v494_v57 = vpop.xlane.xlu0 %493  ;;  %v492_v60 = vpop.xlane.xlu1 %491 }
 0x295   : > { %2946 = vrcp.f32 %v494_v57 }
 0x296   : > { %2948 = vrcp.f32 %v492_v60 }
 0x297   : > { %2950 = vrcp.f32 %v496_v42 }
 0x298   : > { %v512_v63 = vpop.xlane.xlu0 %511  ;;  %v498_v15 = vpop.xlane.xlu1 %497 }
 0x299   : > { %2681 = vmatpush3.bf16.xpose.msra.mxu1 %v740_v9  ;;  %2952 = vrcp.f32 %v498_v15 }
 0x29c   : > { %v504_v13 = vpop.xlane.xlu1 %503  ;;  %v508_v14 = vpop.xlane.xlu0 %507 }
 0x29f   : > { %v2947_v48 = vpop.eup %2946 }
 0x2a0   : > { %v2949_v7 = vpop.eup %2948  ;;  %v500_v6 = vpop.xlane.xlu1 %499  ;;  %v536_v36 = vmul.f32 %v2947_v48, %v3586_v49 }
 0x2a1   : > { %v535_v25 = vmul.f32 %v2949_v7, %v3584_v21  ;;  %v2951_v54 = vpop.eup %2950 }
 0x2a2   : > { %v514_v10 = vpop.xlane.xlu0 %513  ;;  %v537_v38 = vmul.f32 %v2951_v54, %v3580_v58 }
 0x2a3   : > { %v549_v56 = vpack.c.bf16 %v536_v36, %v535_v25  ;;  %v2953_v23 = vpop.eup %2952 }
 0x2a4   : > { %v506_v50 = vpop.xlane.xlu1 %505  ;;  %v538_v43 = vmul.f32 %v2953_v23, %v3592_v31 }
 0x2a5   : > { %2658 = vmatprep.mubr.bf16.mxu1 %v549_v56  ;;  %2954 = vrcp.f32 %v506_v50 }
 0x2a6   : > { %v697_v41 = vpop.permute.xlu0 %696  ;;  %2956 = vrcp.f32 %v500_v6  ;;  %v550_v19 = vpack.c.bf16 %v538_v43, %v537_v38 }
 0x2a7   : > { %2876 = vmatprep.subr.msk.bf16.mxu1 %vm225_vm0, %v697_v41  ;;  %v743_v49 = vsel %vm225_vm0, %v697_v41, 0  ;;  %2958 = vrcp.f32 %v504_v13 }
 0x2a8   : > { %v502_v21 = vpop.xlane.xlu1 %501  ;;  %2683 = vmatpush3.bf16.xpose.msra.mxu1 %v743_v49 }
 0x2a9   : > { %2659 = vmatmul.mubr.bf16.gmra.mrb[4].mxu1 %v550_v19  ;;  %2960 = vrcp.f32 %v502_v21 }
 0x2aa   : > { %2962 = vrcp.f32 %v508_v14  ;;  %v661_v56 = vpop.permute.xlu0 %660 }
 0x2ac   : > { %v510_v22 = vpop.xlane.xlu1 %509 }
 0x2ad   : > { %2964 = vrcp.f32 %v510_v22 }
 0x2ae   : > { %2966 = vrcp.f32 %v514_v10  ;;  %v665_v23 = vpop.permute.xlu0 %664 }
 0x2af   : > { %v2955_v58 = vpop.eup %2954  ;;  %2968 = vrcp.f32 %v512_v63 }
 0x2b0   : > { %v699_v31 = vpop.permute.xlu1 %698  ;;  %v2957_v17 = vpop.eup %2956  ;;  %v542_v60 = vmul.f32 %v2955_v58, %v3611_v62 }
 0x2b1   : > { %2877 = vmatprep.subr.msk.bf16.mxu1 %vm225_vm0, %v699_v31  ;;  %v746_v42 = vsel %vm225_vm0, %v699_v31, 0  ;;  %v2959_v1 = vpop.eup %2958  ;;  %v539_v9 = vmul.f32 %v2957_v17, %v3605_v2 }
 0x2b2   : > { %2685 = vmatpush3.bf16.xpose.msra.mxu1 %v746_v42  ;;  %v541_v14 = vmul.f32 %v2959_v1, %v3599_v32 }
 0x2b3   : > { %v2961_v57 = vpop.eup %2960 }
 0x2b4   : > { %v540_v15 = vmul.f32 %v2961_v57, %v3614_v35  ;;  %v2963_v13 = vpop.eup %2962  ;;  %v552_v7 = vpack.c.bf16 %v542_v60, %v541_v14  ;;  %v663_v32 = vpop.permute.xlu1 %662 }
 0x2b5   : > { %v543_v36 = vmul.f32 %v2963_v13, %v3601_v37 }
 0x2b6   : > { %v551_v48 = vpack.c.bf16 %v540_v15, %v539_v9 }
 0x2b7   : > { %v2965_v63 = vpop.eup %2964 }
 0x2b8   : > { %v2967_v6 = vpop.eup %2966  ;;  %2662 = vmatprep.mubr.bf16.mxu1 %v551_v48  ;;  %v544_v25 = vmul.f32 %v2965_v63, %v3617_v28  ;;  %v667_v37 = vpop.permute.xlu1 %666 }
 0x2b9   : > { %2663 = vmatmul.mubr.bf16.gmra.mrb[8].mxu1 %v552_v7  ;;  %v2969_v54 = vpop.eup %2968  ;;  %v546_v62 = vmul.f32 %v2967_v6, %v3608_v16  ;;  %v669_v28 = vpop.permute.xlu0 %668 }
 0x2ba   : > { %v553_v10 = vpack.c.bf16 %v544_v25, %v543_v36  ;;  %v545_v2 = vmul.f32 %v2969_v54, %v3594_v53 }
 0x2bc   : > { %2666 = vmatprep.mubr.bf16.mxu1 %v553_v10  ;;  %v554_v35 = vpack.c.bf16 %v546_v62, %v545_v2  ;;  %v671_v16 = vpop.permute.xlu1 %670 }
 0x2bd   : > { %v673_v50 = vpop.permute.xlu0 %672 }
 0x2c0   : > { %v675_v53 = vpop.permute.xlu1 %674 }
 0x2c1   : > { %2667 = vmatmul.mubr.bf16.gmra.mrb[12].mxu1 %v554_v35  ;;  %v1038_v49 = vpop.permute.xlu0 %1037 }
 0x2c2   : > { %2686 = vmatprep.mubr.msk.bf16.mxu1 %vm225_vm0, %v661_v56  ;;  %2702 = vmatprep.subr.bf16.mxu0 %v1038_v49 }
 0x2c3   : > { %2703 = vmatpush3.bf16.msra.mxu0 %v1038_v49 }
 0x2c4   : > { %v1040_v21 = vpop.permute.xlu1 %1039 }
 0x2c5   : > { %2704 = vmatprep.subr.bf16.mxu0 %v1040_v21  ;;  %v1042_v22 = vpop.permute.xlu0 %1041 }
 0x2c7   : > { %2705 = vmatpush3.bf16.msra.mxu0 %v1040_v21 }
 0x2c8   : > { %2706 = vmatprep.subr.bf16.mxu0 %v1042_v22  ;;  %v1044_v58 = vpop.permute.xlu1 %1043 }
 0x2c9   : > { %2687 = vmatmul.mubr.msk.bf16.vlgmr.msra.gmra.mrb[16].mxu1 %vm225_vm0, %v663_v32  ;;  %v1046_v31 = vpop.permute.xlu0 %1045 }
 0x2ca   : > { %2690 = vmatprep.mubr.msk.bf16.mxu1 %vm225_vm0, %v665_v23 }
 0x2cb   : > { %2707 = vmatpush3.bf16.msra.mxu0 %v1042_v22 }
 0x2cc   : > { %2708 = vmatprep.subr.bf16.mxu0 %v1044_v58  ;;  %v1048_v17 = vpop.permute.xlu1 %1047 }
 0x2cd   : > { %v1050_v42 = vpop.permute.xlu0 %1049 }
 0x2cf   : > { %2709 = vmatpush3.bf16.msra.mxu0 %v1044_v58 }
 0x2d0   : > { %2710 = vmatprep.subr.bf16.mxu0 %v1046_v31  ;;  %v1052_v1 = vpop.permute.xlu1 %1051 }
 0x2d1   : > { %2691 = vmatmul.mubr.msk.bf16.gmra.mrb[20].mxu1 %vm225_vm0, %v667_v37  ;;  %v3712_v57 = vpop.permute.xlu0 %1174 }
 0x2d2   : > { %2694 = vmatprep.mubr.msk.bf16.mxu1 %vm225_vm0, %v669_v28 }
 0x2d3   : > { %2711 = vmatpush3.bf16.msra.mxu0 %v1046_v31 }
 0x2d4   : > { %2712 = vmatprep.subr.bf16.mxu0 %v1048_v17 }
 0x2d7   : > { %2713 = vmatpush3.bf16.msra.mxu0 %v1048_v17 }
 0x2d8   : > { %2714 = vmatprep.subr.bf16.mxu0 %v1050_v42 }
 0x2d9   : > { %2695 = vmatmul.mubr.msk.bf16.gmra.mrb[24].mxu1 %vm225_vm0, %v671_v16 }
 0x2da   : > { %2698 = vmatprep.mubr.msk.bf16.mxu1 %vm225_vm0, %v673_v50 }
 0x2db   : > { %2715 = vmatpush3.bf16.msra.mxu0 %v1050_v42 }
 0x2dc   : > { %2716 = vmatprep.subr.bf16.mxu0 %v1052_v1 }
 0x2df   : > { %2717 = vmatpush3.bf16.msra.mxu0 %v1052_v1 }
 0x2e0   : > { %2878 = vmatprep.subr.msk.bf16.mxu0 %vm225_vm0, %v3712_v57 }
 0x2e1   : > { %2699 = vmatmul.mubr.msk.bf16.gmra.mrb[28].mxu1 %vm225_vm0, %v675_v53 }
 0x343   : > { %v3704_v38 = vpop.f32.mrb[0].mxu1 }
 0x344   : > { %4781 = vst [vmem:[#allocation21_spill] sm:$0xff] %v3704_v38  ;;  %v3706_v43 = vpop.f32.mrb[1].mxu1 }
 0x345   : > { %4782 = vst [vmem:[#allocation22_spill] sm:$0xff] %v3706_v43  ;;  %v3708_v41 = vpop.f32.mrb[2].mxu1 }
 0x346   : > { %4783 = vst [vmem:[#allocation23_spill] sm:$0xff] %v3708_v41  ;;  %v3710_v19 = vpop.f32.mrb[3].mxu1 }
 0x347   : > { %4784 = vst [vmem:[#allocation24_spill] sm:$0xff] %v3710_v19 }
 0x37c   : > { %v3716_v60 = vpop.f32.mrb[4].mxu1 }
 0x37d   : > { %4785 = vst [vmem:[#allocation25_spill] sm:$0xff] %v3716_v60  ;;  %v3718_v9 = vpop.f32.mrb[5].mxu1 }
 0x37e   : > { %4786 = vst [vmem:[#allocation26_spill] sm:$0xff] %v3718_v9  ;;  %v3720_v15 = vpop.f32.mrb[6].mxu1 }
 0x37f   : > { %4787 = vst [vmem:[#allocation27_spill] sm:$0xff] %v3720_v15  ;;  %v3722_v13 = vpop.f32.mrb[7].mxu1 }
 0x380   : > { %4788 = vst [vmem:[#allocation28_spill] sm:$0xff] %v3722_v13 }
 0x38c   : > { %v3724_v14 = vpop.f32.mrb[8].mxu1 }
 0x38d   : > { %4789 = vst [vmem:[#allocation29_spill] sm:$0xff] %v3724_v14  ;;  %v3726_v48 = vpop.f32.mrb[9].mxu1 }
 0x38e   : > { %4790 = vst [vmem:[#allocation30_spill] sm:$0xff] %v3726_v48  ;;  %v3728_v63 = vpop.f32.mrb[10].mxu1 }
 0x38f   : > { %4791 = vst [vmem:[#allocation31_spill] sm:$0xff] %v3728_v63  ;;  %v3730_v7 = vpop.f32.mrb[11].mxu1 }
 0x390   : > { %4792 = vst [vmem:[#allocation32_spill] sm:$0xff] %v3730_v7 }
 0x394   : > { %v3732_v6 = vpop.f32.mrb[12].mxu1 }
 0x395   : > { %4793 = vst [vmem:[#allocation33_spill] sm:$0xff] %v3732_v6  ;;  %v3734_v36 = vpop.f32.mrb[13].mxu1 }
 0x396   : > { %4794 = vst [vmem:[#allocation34_spill] sm:$0xff] %v3734_v36  ;;  %v3736_v25 = vpop.f32.mrb[14].mxu1  ;;  %v4807_v36 = vld [vmem:[#allocation2_spill] sm:$0xff] }
 0x397   : > { %4795 = vst [vmem:[#allocation35_spill] sm:$0xff] %v3736_v25  ;;  %v3738_v54 = vpop.f32.mrb[15].mxu1 }
 0x398   : > { %4796 = vst [vmem:[#allocation36_spill] sm:$0xff] %v3738_v54  ;;  %v3837_v54 = vpop.permute.xlu1 %1176 }
 0x39c   : > { %v2688_v10 = vpop.f32.mrb[16].mxu1 }
 0x39d   : > { %v847_v62 = vmul.f32 0.17677669, %v2688_v10  ;;  %v782_v2 = vpop.f32.mrb[17].mxu1 }
 0x39e   : > { %v2689_v35 = vpop.f32.mrb[18].mxu1  ;;  %v845_v56 = vmul.f32 0.17677669, %v782_v2 }
 0x39f   : > { %v785_v32 = vpop.f32.mrb[19].mxu1  ;;  %v3743_v23 = vsel %vm187_vm1, %v847_v62, -1e+30  ;;  %v848_v16 = vmul.f32 0.17677669, %v2689_v35 }
 0x3a0   : > { %v846_v37 = vmul.f32 0.17677669, %v785_v32  ;;  %881 = vmax.xlane.f32.xlu0 %v3743_v23  ;;  %v3755_v50 = vsel %vm185_vm2, %v845_v56, -1e+30 }
 0x3a1   : > { %v864_v31 = vsel %vm188_vm3, %v848_v16, -1e+30 }
 0x3a2   : > { %v3749_v28 = vsel %vm186_vm4, %v846_v37, -1e+30 }
 0x3a3   : > { %879 = vmax.xlane.f32.xlu1 %v3749_v28 }
 0x3a4   : > { %877 = vmax.xlane.f32.xlu0 %v3755_v50  ;;  %v2692_v53 = vpop.f32.mrb[20].mxu1 }
 0x3a5   : > { %v851_v49 = vmul.f32 0.17677669, %v2692_v53  ;;  %v798_v21 = vpop.f32.mrb[21].mxu1 }
 0x3a6   : > { %v2693_v22 = vpop.f32.mrb[22].mxu1  ;;  %v849_v62 = vmul.f32 0.17677669, %v798_v21 }
 0x3a7   : > { %v852_v58 = vmul.f32 0.17677669, %v2693_v22  ;;  %v801_v17 = vpop.f32.mrb[23].mxu1  ;;  %v3769_v10 = vsel %vm191_vm5, %v851_v49, -1e+30 }
 0x3a8   : > { %883 = vmax.xlane.f32.xlu0 %v864_v31  ;;  %v850_v42 = vmul.f32 0.17677669, %v801_v17  ;;  %v3782_v22 = vsel %vm189_vm7, %v849_v62, -1e+30 }
 0x3a9   : > { %v3764_v1 = vsel %vm192_vm6, %v852_v58, -1e+30 }
 0x3aa   : > { %891 = vmax.xlane.f32.xlu1 %v3764_v1  ;;  %v3775_v35 = vsel %vm190_vm8, %v850_v42, -1e+30 }
 0x3ac   : > { %889 = vmax.xlane.f32.xlu0 %v3769_v10  ;;  %v2696_v56 = vpop.f32.mrb[24].mxu1 }
 0x3ad   : > { %v855_v32 = vmul.f32 0.17677669, %v2696_v56  ;;  %v814_v37 = vpop.f32.mrb[25].mxu1 }
 0x3ae   : > { %887 = vmax.xlane.f32.xlu1 %v3775_v35  ;;  %v2697_v16 = vpop.f32.mrb[26].mxu1 }
 0x3af   : > { %v856_v53 = vmul.f32 0.17677669, %v2697_v16  ;;  %v817_v21 = vpop.f32.mrb[27].mxu1  ;;  %v3793_v63 = vsel %vm195_vm9, %v855_v32, -1e+30 }
 0x3b0   : > { %885 = vmax.xlane.f32.xlu0 %v3782_v22  ;;  %v854_v58 = vmul.f32 0.17677669, %v817_v21  ;;  %v853_v16 = vmul.f32 0.17677669, %v814_v37 }
 0x3b1   : > { %v3788_v42 = vsel %vm196_vm10, %v856_v53, -1e+30 }
 0x3b2   : > { %899 = vmax.xlane.f32.xlu1 %v3788_v42  ;;  %v3799_v14 = vsel %vm4756_vm12, %v854_v58, -1e+30  ;;  %v3806_v32 = vsel %vm193_vm11, %v853_v16, -1e+30  ;;  %v4806_v16 = vld [vmem:[#allocation3_spill] sm:$0xff] }
 0x3b4   : > { %897 = vmax.xlane.f32.xlu0 %v3793_v63  ;;  %v2700_v21 = vpop.f32.mrb[28].mxu1 }
 0x3b5   : > { %v859_v15 = vmul.f32 0.17677669, %v2700_v21  ;;  %v830_v60 = vpop.f32.mrb[29].mxu1  ;;  %v4804_v21 = vld [vmem:[#allocation18_spill] sm:$0xff] }
 0x3b6   : > { %895 = vmax.xlane.f32.xlu1 %v3799_v14  ;;  %v2701_v53 = vpop.f32.mrb[30].mxu1  ;;  %v857_v38 = vmul.f32 0.17677669, %v830_v60  ;;  %vm4805_vm12 = vcmp.le.s32.totalorder %v3372_v27, %v4804_v21 }
 0x3b7   : > { %v833_v41 = vpop.f32.mrb[31].mxu1  ;;  %v3812_v58 = vsel %vm199_vm13, %v859_v15, -1e+30  ;;  %v860_v48 = vmul.f32 0.17677669, %v2701_v53 }
 0x3b8   : > { %893 = vmax.xlane.f32.xlu0 %v3806_v32  ;;  %v3818_v6 = vsel %vm4805_vm12, %v857_v38, -1e+30  ;;  %v858_v9 = vmul.f32 0.17677669, %v833_v41 }
 0x3b9   : > { %v3828_v60 = vsel %vm200_vm15, %v860_v48, -1e+30 }
 0x3ba   : > { %v3834_v25 = vsel %vm198_vm14, %v858_v9, -1e+30 }
 0x3bc   : > { %905 = vmax.xlane.f32.xlu0 %v3812_v58 }
 0x3c0   : > { %901 = vmax.xlane.f32.xlu0 %v3818_v6 }
 0x3c7   : > { %1180 = vrot.lane.b32.xlu1 %v4806_v16, %s3171_s13 }
 0x3d6   : > { %1178 = vrot.lane.b32.xlu0 %v4807_v36, %s3171_s13 }
 0x3eb   : > { %907 = vmax.xlane.f32.xlu1 %v3828_v60 }
 0x3ef   : > { %903 = vmax.xlane.f32.xlu1 %v3834_v25 }
 0x42d   : > { %v882_v7 = vpop.xlane.xlu0 %881 }
 0x42e   : > { %v911_v53 = vsub.f32 %v3743_v23, %v882_v7 }
 0x430   : > { %v929_v41 = vmul.f32 1.442695, %v911_v53  ;;  %v880_v13 = vpop.xlane.xlu1 %879 }
 0x431   : > { %v910_v19 = vsub.f32 %v3749_v28, %v880_v13  ;;  %v878_v48 = vpop.xlane.xlu0 %877  ;;  %v4811_v28 = vld [vmem:[#allocation4_spill] sm:$0xff] }
 0x432   : > { %2970 = vpow2.f32 %v929_v41  ;;  %v909_v15 = vsub.f32 %v3755_v50, %v878_v48 }
 0x433   : > { %v927_v36 = vmul.f32 1.442695, %v910_v19 }
 0x434   : > { %v925_v16 = vmul.f32 1.442695, %v909_v15 }
 0x435   : > { %2972 = vpow2.f32 %v927_v36  ;;  %v884_v9 = vpop.xlane.xlu0 %883  ;;  %v4810_v36 = vld [vmem:[#allocation5_spill] sm:$0xff] }
 0x436   : > { %2974 = vpow2.f32 %v925_v16  ;;  %v912_v38 = vsub.f32 %v864_v31, %v884_v9 }
 0x437   : > { %v892_v31 = vpop.xlane.xlu1 %891 }
 0x438   : > { %v931_v21 = vmul.f32 1.442695, %v912_v38  ;;  %v916_v62 = vsub.f32 %v3764_v1, %v892_v31 }
 0x439   : > { %v890_v13 = vpop.xlane.xlu0 %889 }
 0x43a   : > { %2976 = vpow2.f32 %v931_v21  ;;  %v915_v16 = vsub.f32 %v3769_v10, %v890_v13  ;;  %v939_v17 = vmul.f32 1.442695, %v916_v62 }
 0x43b   : > { %v888_v15 = vpop.xlane.xlu1 %887 }
 0x43c   : > { %v3842_v37 = vpop.eup %2970  ;;  %v937_v53 = vmul.f32 1.442695, %v915_v16  ;;  %v914_v48 = vsub.f32 %v3775_v35, %v888_v15 }
 0x43d   : > { %961 = vadd.xlane.f32.xlu1 %v3842_v37  ;;  %v886_v50 = vpop.xlane.xlu0 %885 }
 0x43e   : > { %v913_v41 = vsub.f32 %v3782_v22, %v886_v50  ;;  %2978 = vpow2.f32 %v937_v53  ;;  %v935_v56 = vmul.f32 1.442695, %v914_v48 }
 0x43f   : > { %v3845_v7 = vpop.eup %2972  ;;  %v900_v9 = vpop.xlane.xlu1 %899 }
 0x440   : > { %v3847_v23 = vpop.eup %2974  ;;  %959 = vadd.xlane.f32.xlu0 %v3845_v7  ;;  %v920_v1 = vsub.f32 %v3788_v42, %v900_v9 }
 0x441   : > { %957 = vadd.xlane.f32.xlu1 %v3847_v23  ;;  %v898_v21 = vpop.xlane.xlu0 %897 }
 0x443   : > { %v896_v49 = vpop.xlane.xlu1 %895 }
 0x444   : > { %v3851_v19 = vpop.eup %2976  ;;  %v918_v62 = vsub.f32 %v3799_v14, %v896_v49 }
 0x445   : > { %963 = vadd.xlane.f32.xlu1 %v3851_v19  ;;  %v894_v38 = vpop.xlane.xlu0 %893 }
 0x446   : > { %v917_v22 = vsub.f32 %v3806_v32, %v894_v38 }
 0x448   : > { %v941_v31 = vmul.f32 1.442695, %v917_v22  ;;  %v3867_v15 = vpop.eup %2978 }
 0x449   : > { %v906_v43 = vpop.xlane.xlu0 %905 }
 0x44a   : > { %v923_v10 = vsub.f32 %v3812_v58, %v906_v43  ;;  %v943_v58 = vmul.f32 1.442695, %v918_v62 }
 0x44c   : > { %v953_v35 = vmul.f32 1.442695, %v923_v10 }
 0x44d   : > { %v902_v50 = vpop.xlane.xlu0 %901 }
 0x44e   : > { %v921_v16 = vsub.f32 %v3818_v6, %v902_v50 }
 0x450   : > { %v949_v43 = vmul.f32 1.442695, %v921_v16 }
 0x456   : > { %1184 = vrot.lane.b32.xlu1 %v4810_v36, %s3171_s13  ;;  %1182 = vrot.lane.b32.xlu0 %v4811_v28, %s3171_s13  ;;  %v933_v36 = vmul.f32 1.442695, %v913_v41  ;;  %v919_v28 = vsub.f32 %v3793_v63, %v898_v21  ;;  %v3869_v63 = vpop.permute.xlu1 %1180 }
 0x458   : > { %2980 = vpow2.f32 %v933_v36  ;;  %v945_v13 = vmul.f32 1.442695, %v919_v28 }
 0x459   : > { %2982 = vpow2.f32 %v935_v56  ;;  %v947_v56 = vmul.f32 1.442695, %v920_v1 }
 0x45a   : > { %2984 = vpow2.f32 %v939_v17 }
 0x45b   : > { %2986 = vpow2.f32 %v945_v13  ;;  %v1179_v13 = vpop.permute.xlu0 %1178 }
 0x45c   : > { %2988 = vpow2.f32 %v953_v35 }
 0x45d   : > { %2990 = vpow2.f32 %v941_v31 }
 0x45e   : > { %2992 = vpow2.f32 %v949_v43 }
 0x45f   : > { %2994 = vpow2.f32 %v947_v56 }
 0x462   : > { %v3873_v17 = vpop.eup %2980 }
 0x463   : > { %v3875_v6 = vpop.eup %2982 }
 0x464   : > { %v3880_v28 = vpop.eup %2984 }
 0x465   : > { %v3882_v14 = vpop.eup %2986 }
 0x466   : > { %v3887_v38 = vpop.eup %2988 }
 0x467   : > { %v3889_v53 = vpop.eup %2990 }
 0x468   : > { %v3893_v41 = vpop.eup %2992 }
 0x469   : > { %v3895_v48 = vpop.eup %2994 }
 0x475   : > { %969 = vadd.xlane.f32.xlu0 %v3867_v15 }
 0x478   : > { %v908_v32 = vpop.xlane.xlu1 %907 }
 0x479   : > { %v924_v42 = vsub.f32 %v3828_v60, %v908_v32  ;;  %965 = vadd.xlane.f32.xlu0 %v3873_v17 }
 0x47a   : > { %967 = vadd.xlane.f32.xlu1 %v3875_v6 }
 0x47b   : > { %v955_v36 = vmul.f32 1.442695, %v924_v42 }
 0x47c   : > { %v904_v21 = vpop.xlane.xlu1 %903 }
 0x47d   : > { %2996 = vpow2.f32 %v955_v36  ;;  %v922_v49 = vsub.f32 %v3834_v25, %v904_v21  ;;  %971 = vadd.xlane.f32.xlu0 %v3880_v28 }
 0x47e   : > { %977 = vadd.xlane.f32.xlu1 %v3882_v14  ;;  %2998 = vpow2.f32 %v943_v58 }
 0x47f   : > { %v951_v60 = vmul.f32 1.442695, %v922_v49  ;;  %v1215_v49 = vsel %vm225_vm0, %v3712_v57, 0 }
 0x481   : > { %985 = vadd.xlane.f32.xlu0 %v3887_v38  ;;  %3000 = vpow2.f32 %v951_v60 }
 0x482   : > { %973 = vadd.xlane.f32.xlu1 %v3889_v53 }
 0x485   : > { %981 = vadd.xlane.f32.xlu0 %v3893_v41 }
 0x486   : > { %979 = vadd.xlane.f32.xlu1 %v3895_v48 }
 0x487   : > { %v3899_v25 = vpop.eup %2996 }
 0x488   : > { %v3901_v9 = vpop.eup %2998 }
 0x489   : > { %987 = vadd.xlane.f32.xlu0 %v3899_v25 }
 0x48a   : > { %975 = vadd.xlane.f32.xlu1 %v3901_v9 }
 0x48b   : > { %v3905_v10 = vpop.eup %3000 }
 0x48e   : > { %983 = vadd.xlane.f32.xlu1 %v3905_v10 }
 0x49f   : > { %1186 = vrot.lane.b32.xlu0 %v3259_v29, %s3171_s13  ;;  %1188 = vrot.lane.b32.xlu1 %v3267_v33, %s3171_s13 }
 0x4a3   : > { %1158 = vrot.lane.b32.xlu0 %v3221_v11, %s3171_s13  ;;  %1160 = vrot.lane.b32.xlu1 %v3277_v39, %s3171_s13 }
 0x4a7   : > { %1162 = vrot.lane.b32.xlu0 %v3279_v40, %s3171_s13  ;;  %1164 = vrot.lane.b32.xlu1 %v3289_v45, %s3171_s13 }
 0x4ab   : > { %1166 = vrot.lane.b32.xlu0 %v3291_v46, %s3171_s13  ;;  %1168 = vrot.lane.b32.xlu1 %v3301_v51, %s3171_s13 }
 0x4af   : > { %1170 = vrot.lane.b32.xlu0 %v3303_v52, %s3171_s13  ;;  %1172 = vrot.lane.b32.xlu1 %v3311_v55, %s3171_s13 }
 0x4b3   : > { %1519 = vrot.lane.b32.xlu0 %v3318_v59, %s3171_s13  ;;  %1521 = vrot.lane.b32.xlu1 %v3321_v61, %s3171_s13 }
 0x4b7   : > { %1523 = vrot.lane.b32.xlu0 %v3328_v0, %s3171_s13  ;;  %1525 = vrot.lane.b32.xlu1 %v3334_v4, %s3171_s13 }
 0x4bb   : > { %1527 = vrot.lane.b32.xlu0 %v3340_v8, %s3171_s13  ;;  %1529 = vrot.lane.b32.xlu1 %v3347_v12, %s3171_s13 }
 0x4bf   : > { %1531 = vrot.lane.b32.xlu0 %v3354_v18, %s3171_s13  ;;  %1533 = vrot.lane.b32.xlu1 %v3357_v20, %s3171_s13 }
 0x4c3   : > { %1658 = vrot.lane.b32.xlu1 %v3205_v5, %s3172_s14  ;;  %1656 = vrot.lane.b32.xlu0 %v3202_v3, %s3172_s14 }
 0x4ca   : > { %v962_v22 = vpop.xlane.xlu1 %961 }
 0x4cd   : > { %v960_v50 = vpop.xlane.xlu0 %959 }
 0x4ce   : > { %3002 = vrcp.f32 %v960_v50  ;;  %v958_v35 = vpop.xlane.xlu1 %957 }
 0x4cf   : > { %3004 = vrcp.f32 %v958_v35 }
 0x4d0   : > { %3006 = vrcp.f32 %v962_v22 }
 0x4d1   : > { %v1183_v57 = vpop.permute.xlu0 %1182 }
 0x4d2   : > { %v964_v16 = vpop.xlane.xlu1 %963  ;;  %v1227_v60 = vsel %vm225_vm0, %v1183_v57, 0 }
 0x4d3   : > { %3008 = vrcp.f32 %v964_v16 }
 0x4d8   : > { %v3003_v1 = vpop.eup %3002 }
 0x4d9   : > { %v3005_v31 = vpop.eup %3004  ;;  %v1006_v43 = vmul.f32 %v3003_v1, %v3845_v7  ;;  %v1218_v7 = vsel %vm225_vm0, %v3837_v54, 0 }
 0x4da   : > { %v1005_v56 = vmul.f32 %v3005_v31, %v3847_v23  ;;  %v3007_v62 = vpop.eup %3006  ;;  %v1224_v23 = vsel %vm225_vm0, %v3869_v63, 0 }
 0x4db   : > { %v1007_v58 = vmul.f32 %v3007_v62, %v3842_v37  ;;  %v1221_v37 = vsel %vm225_vm0, %v1179_v13, 0 }
 0x4dc   : > { %v1021_v32 = vpack.c.bf16 %v1006_v43, %v1005_v56 }
 0x4dd   : > { %v3009_v42 = vpop.eup %3008 }
 0x4de   : > { %v1008_v36 = vmul.f32 %v3009_v42, %v3851_v19  ;;  %2718 = vmatprep.mubr.bf16.mxu0 %v1021_v32 }
 0x4e0   : > { %v1022_v21 = vpack.c.bf16 %v1008_v36, %v1007_v58 }
 0x4e2   : > { %2719 = vmatmul.mubr.bf16.vlgmr.msra.gmra.mrb[16].mxu0 %v1022_v21 }
 0x4e3   : > { %2735 = vmatpush3.bf16.xpose.msra.mxu0 %v1215_v49 }
 0x4e4   : > { %2879 = vmatprep.subr.msk.bf16.mxu0 %vm225_vm0, %v3837_v54  ;;  %v1185_v54 = vpop.permute.xlu1 %1184 }
 0x4e5   : > { %v1230_v35 = vsel %vm225_vm0, %v1185_v54, 0 }
 0x4eb   : > { %2737 = vmatpush3.bf16.xpose.msra.mxu0 %v1218_v7 }
 0x4ec   : > { %2880 = vmatprep.subr.msk.bf16.mxu0 %vm225_vm0, %v1179_v13 }
 0x4f3   : > { %2739 = vmatpush3.bf16.xpose.msra.mxu0 %v1221_v37 }
 0x4f4   : > { %2881 = vmatprep.subr.msk.bf16.mxu0 %vm225_vm0, %v3869_v63 }
 0x4fb   : > { %2741 = vmatpush3.bf16.xpose.msra.mxu0 %v1224_v23 }
 0x4fc   : > { %2882 = vmatprep.subr.msk.bf16.mxu0 %vm225_vm0, %v1183_v57 }
 0x502   : > { %v970_v19 = vpop.xlane.xlu0 %969 }
 0x503   : > { %2743 = vmatpush3.bf16.xpose.msra.mxu0 %v1227_v60 }
 0x504   : > { %2883 = vmatprep.subr.msk.bf16.mxu0 %vm225_vm0, %v1185_v54 }
 0x506   : > { %v966_v22 = vpop.xlane.xlu0 %965 }
 0x507   : > { %3010 = vrcp.f32 %v966_v22  ;;  %v968_v13 = vpop.xlane.xlu1 %967 }
 0x508   : > { %3012 = vrcp.f32 %v968_v13 }
 0x509   : > { %3014 = vrcp.f32 %v970_v19 }
 0x50a   : > { %v972_v50 = vpop.xlane.xlu0 %971 }
 0x50b   : > { %3016 = vrcp.f32 %v972_v50  ;;  %2745 = vmatpush3.bf16.xpose.msra.mxu0 %v1230_v35  ;;  %v978_v63 = vpop.xlane.xlu1 %977 }
 0x50e   : > { %v986_v16 = vpop.xlane.xlu0 %985 }
 0x50f   : > { %v974_v1 = vpop.xlane.xlu1 %973 }
 0x511   : > { %v3011_v31 = vpop.eup %3010 }
 0x512   : > { %v3013_v43 = vpop.eup %3012  ;;  %v982_v56 = vpop.xlane.xlu0 %981  ;;  %v1009_v62 = vmul.f32 %v3011_v31, %v3873_v17 }
 0x513   : > { %v3015_v32 = vpop.eup %3014  ;;  %v980_v42 = vpop.xlane.xlu1 %979  ;;  %v1010_v58 = vmul.f32 %v3013_v43, %v3875_v6 }
 0x514   : > { %3018 = vrcp.f32 %v980_v42  ;;  %v1011_v7 = vmul.f32 %v3015_v32, %v3867_v15 }
 0x515   : > { %v3017_v36 = vpop.eup %3016  ;;  %v1023_v21 = vpack.c.bf16 %v1010_v58, %v1009_v62  ;;  %3020 = vrcp.f32 %v974_v1 }
 0x516   : > { %v988_v49 = vpop.xlane.xlu0 %987  ;;  %v1012_v37 = vmul.f32 %v3017_v36, %v3880_v28  ;;  %3022 = vrcp.f32 %v978_v63 }
 0x517   : > { %2722 = vmatprep.mubr.bf16.mxu0 %v1023_v21  ;;  %v976_v23 = vpop.xlane.xlu1 %975 }
 0x518   : > { %3024 = vrcp.f32 %v976_v23  ;;  %v1024_v57 = vpack.c.bf16 %v1012_v37, %v1011_v7 }
 0x519   : > { %3026 = vrcp.f32 %v982_v56 }
 0x51a   : > { %2723 = vmatmul.mubr.bf16.gmra.mrb[20].mxu0 %v1024_v57  ;;  %v1187_v17 = vpop.permute.xlu0 %1186 }
 0x51b   : > { %v984_v19 = vpop.xlane.xlu1 %983  ;;  %2884 = vmatprep.subr.msk.bf16.mxu0 %vm225_vm0, %v1187_v17  ;;  %v1233_v6 = vsel %vm225_vm0, %v1187_v17, 0 }
 0x51c   : > { %3028 = vrcp.f32 %v984_v19  ;;  %2747 = vmatpush3.bf16.xpose.msra.mxu0 %v1233_v6 }
 0x51d   : > { %3030 = vrcp.f32 %v988_v49 }
 0x51e   : > { %v3019_v60 = vpop.eup %3018  ;;  %3032 = vrcp.f32 %v986_v16 }
 0x51f   : > { %v1189_v15 = vpop.permute.xlu1 %1188  ;;  %v3021_v28 = vpop.eup %3020  ;;  %v1016_v50 = vmul.f32 %v3019_v60, %v3895_v48 }
 0x520   : > { %2885 = vmatprep.subr.msk.bf16.mxu0 %vm225_vm0, %v1189_v15  ;;  %v3023_v54 = vpop.eup %3022  ;;  %v1236_v22 = vsel %vm225_vm0, %v1189_v15, 0  ;;  %v1013_v35 = vmul.f32 %v3021_v28, %v3889_v53 }
 0x521   : > { %v1015_v31 = vmul.f32 %v3023_v54, %v3882_v14  ;;  %v1159_v14 = vpop.permute.xlu0 %1158 }
 0x522   : > { %v3025_v13 = vpop.eup %3024 }
 0x523   : > { %v1014_v63 = vmul.f32 %v3025_v13, %v3901_v9  ;;  %v3027_v1 = vpop.eup %3026  ;;  %v1026_v56 = vpack.c.bf16 %v1016_v50, %v1015_v31  ;;  %v1161_v21 = vpop.permute.xlu1 %1160 }
 0x524   : > { %2749 = vmatpush3.bf16.xpose.msra.mxu0 %v1236_v22  ;;  %v1017_v32 = vmul.f32 %v3027_v1, %v3893_v41 }
 0x525   : > { %v1025_v43 = vpack.c.bf16 %v1014_v63, %v1013_v35  ;;  %v1163_v49 = vpop.permute.xlu0 %1162 }
 0x526   : > { %v3029_v16 = vpop.eup %3028 }
 0x527   : > { %v3031_v62 = vpop.eup %3030  ;;  %2726 = vmatprep.mubr.bf16.mxu0 %v1025_v43  ;;  %v1018_v42 = vmul.f32 %v3029_v16, %v3905_v10  ;;  %v1165_v41 = vpop.permute.xlu1 %1164 }
 0x528   : > { %2727 = vmatmul.mubr.bf16.gmra.mrb[24].mxu0 %v1026_v56  ;;  %v3033_v58 = vpop.eup %3032  ;;  %v1020_v53 = vmul.f32 %v3031_v62, %v3899_v25 }
 0x529   : > { %v1027_v48 = vpack.c.bf16 %v1018_v42, %v1017_v32  ;;  %v1019_v9 = vmul.f32 %v3033_v58, %v3887_v38  ;;  %v1167_v10 = vpop.permute.xlu0 %1166 }
 0x52b   : > { %2730 = vmatprep.mubr.bf16.mxu0 %v1027_v48  ;;  %v1028_v36 = vpack.c.bf16 %v1020_v53, %v1019_v9  ;;  %v1169_v25 = vpop.permute.xlu1 %1168 }
 0x52d   : > { %v1171_v7 = vpop.permute.xlu0 %1170 }
 0x52f   : > { %v1173_v38 = vpop.permute.xlu1 %1172 }
 0x530   : > { %2731 = vmatmul.mubr.bf16.gmra.mrb[28].mxu0 %v1028_v36 }
 0x531   : > { %2750 = vmatprep.mubr.msk.bf16.mxu0 %vm225_vm0, %v1159_v14  ;;  %v1520_v57 = vpop.permute.xlu0 %1519 }
 0x532   : > { %2766 = vmatprep.subr.bf16.mxu1 %v1520_v57 }
 0x533   : > { %v1522_v19 = vpop.permute.xlu1 %1521  ;;  %2767 = vmatpush3.bf16.msra.mxu1 %v1520_v57 }
 0x534   : > { %2768 = vmatprep.subr.bf16.mxu1 %v1522_v19 }
 0x535   : > { %v1524_v60 = vpop.permute.xlu0 %1523 }
 0x537   : > { %2769 = vmatpush3.bf16.msra.mxu1 %v1522_v19  ;;  %v1526_v5 = vpop.permute.xlu1 %1525 }
 0x538   : > { %2751 = vmatmul.mubr.msk.bf16.vlgmr.msra.gmra.mrb[32].mxu0 %vm225_vm0, %v1161_v21  ;;  %2770 = vmatprep.subr.bf16.mxu1 %v1524_v60 }
 0x539   : > { %2754 = vmatprep.mubr.msk.bf16.mxu0 %vm225_vm0, %v1163_v49  ;;  %v1528_v3 = vpop.permute.xlu0 %1527 }
 0x53b   : > { %2771 = vmatpush3.bf16.msra.mxu1 %v1524_v60  ;;  %v1530_v15 = vpop.permute.xlu1 %1529 }
 0x53c   : > { %2772 = vmatprep.subr.bf16.mxu1 %v1526_v5 }
 0x53d   : > { %v1532_v28 = vpop.permute.xlu0 %1531 }
 0x53f   : > { %2773 = vmatpush3.bf16.msra.mxu1 %v1526_v5  ;;  %v1534_v54 = vpop.permute.xlu1 %1533 }
 0x540   : > { %2755 = vmatmul.mubr.msk.bf16.gmra.mrb[36].mxu0 %vm225_vm0, %v1165_v41  ;;  %2774 = vmatprep.subr.bf16.mxu1 %v1528_v3 }
 0x541   : > { %2758 = vmatprep.mubr.msk.bf16.mxu0 %vm225_vm0, %v1167_v10  ;;  %v4000_v22 = vpop.permute.xlu0 %1656 }
 0x543   : > { %2775 = vmatpush3.bf16.msra.mxu1 %v1528_v3 }
 0x544   : > { %2776 = vmatprep.subr.bf16.mxu1 %v1530_v15 }
 0x547   : > { %2777 = vmatpush3.bf16.msra.mxu1 %v1530_v15 }
 0x548   : > { %2759 = vmatmul.mubr.msk.bf16.gmra.mrb[40].mxu0 %vm225_vm0, %v1169_v25  ;;  %2778 = vmatprep.subr.bf16.mxu1 %v1532_v28 }
 0x549   : > { %2762 = vmatprep.mubr.msk.bf16.mxu0 %vm225_vm0, %v1171_v7 }
 0x54b   : > { %2779 = vmatpush3.bf16.msra.mxu1 %v1532_v28 }
 0x54c   : > { %2780 = vmatprep.subr.bf16.mxu1 %v1534_v54 }
 0x54f   : > { %2781 = vmatpush3.bf16.msra.mxu1 %v1534_v54 }
 0x550   : > { %2763 = vmatmul.mubr.msk.bf16.gmra.mrb[44].mxu0 %vm225_vm0, %v1173_v38  ;;  %2886 = vmatprep.subr.msk.bf16.mxu1 %vm225_vm0, %v4000_v22 }
 0x5b5   : > { %v3992_v37 = vpop.f32.mrb[16].mxu0 }
 0x5b6   : > { %4812 = vst [vmem:[#allocation12_spill] sm:$0xff] %v3992_v37  ;;  %v3994_v23 = vpop.f32.mrb[17].mxu0 }
 0x5b7   : > { %4813 = vst [vmem:[#allocation37_spill] sm:$0xff] %v3994_v23  ;;  %v3996_v17 = vpop.f32.mrb[18].mxu0  ;;  %v4838_v23 = vld [vmem:[#allocation2_spill] sm:$0xff] }
 0x5b8   : > { %4814 = vst [vmem:[#allocation38_spill] sm:$0xff] %v3996_v17  ;;  %v3998_v6 = vpop.f32.mrb[19].mxu0 }
 0x5b9   : > { %4815 = vst [vmem:[#allocation39_spill] sm:$0xff] %v3998_v6 }
 0x5ed   : > { %v4004_v13 = vpop.f32.mrb[20].mxu0 }
 0x5ee   : > { %4816 = vst [vmem:[#allocation40_spill] sm:$0xff] %v4004_v13  ;;  %v4006_v50 = vpop.f32.mrb[21].mxu0 }
 0x5ef   : > { %4817 = vst [vmem:[#allocation41_spill] sm:$0xff] %v4006_v50  ;;  %v4008_v35 = vpop.f32.mrb[22].mxu0 }
 0x5f0   : > { %4818 = vst [vmem:[#allocation42_spill] sm:$0xff] %v4008_v35  ;;  %v4010_v63 = vpop.f32.mrb[23].mxu0 }
 0x5f1   : > { %4819 = vst [vmem:[#allocation43_spill] sm:$0xff] %v4010_v63 }
 0x5fb   : > { %v4012_v1 = vpop.f32.mrb[24].mxu0 }
 0x5fc   : > { %4820 = vst [vmem:[#allocation44_spill] sm:$0xff] %v4012_v1  ;;  %v4014_v31 = vpop.f32.mrb[25].mxu0  ;;  %v4845_v1 = vld [vmem:[#allocation7_spill] sm:$0xff] }
 0x5fd   : > { %4821 = vst [vmem:[#allocation45_spill] sm:$0xff] %v4014_v31  ;;  %v4016_v43 = vpop.f32.mrb[26].mxu0 }
 0x5fe   : > { %4822 = vst [vmem:[#allocation46_spill] sm:$0xff] %v4016_v43  ;;  %v4018_v16 = vpop.f32.mrb[27].mxu0 }
 0x5ff   : > { %4823 = vst [vmem:[#allocation47_spill] sm:$0xff] %v4018_v16 }
 0x603   : > { %v4020_v56 = vpop.f32.mrb[28].mxu0 }
 0x604   : > { %4824 = vst [vmem:[#allocation48_spill] sm:$0xff] %v4020_v56  ;;  %v4022_v62 = vpop.f32.mrb[29].mxu0 }
 0x605   : > { %4825 = vst [vmem:[#allocation49_spill] sm:$0xff] %v4022_v62  ;;  %v4024_v32 = vpop.f32.mrb[30].mxu0 }
 0x606   : > { %4826 = vst [vmem:[#allocation50_spill] sm:$0xff] %v4024_v32  ;;  %v4026_v42 = vpop.f32.mrb[31].mxu0 }
 0x607   : > { %4827 = vst [vmem:[#allocation51_spill] sm:$0xff] %v4026_v42 }
 0x60b   : > { %v2752_v58 = vpop.f32.mrb[32].mxu0 }
 0x60c   : > { %v1337_v48 = vmul.f32 0.17677669, %v2752_v58  ;;  %v1272_v53 = vpop.f32.mrb[33].mxu0 }
 0x60d   : > { %v2753_v9 = vpop.f32.mrb[34].mxu0  ;;  %v1335_v36 = vmul.f32 0.17677669, %v1272_v53 }
 0x60e   : > { %v1275_v14 = vpop.f32.mrb[35].mxu0  ;;  %v4031_v21 = vsel %vm187_vm1, %v1337_v48, -1e+30  ;;  %v1338_v10 = vmul.f32 0.17677669, %v2753_v9 }
 0x60f   : > { %v1336_v49 = vmul.f32 0.17677669, %v1275_v14  ;;  %1371 = vmax.xlane.f32.xlu0 %v4031_v21  ;;  %v4043_v25 = vsel %vm185_vm2, %v1335_v36, -1e+30 }
 0x610   : > { %v1354_v5 = vsel %vm188_vm3, %v1338_v10, -1e+30 }
 0x611   : > { %v4037_v41 = vsel %vm186_vm4, %v1336_v49, -1e+30 }
 0x612   : > { %1369 = vmax.xlane.f32.xlu1 %v4037_v41 }
 0x613   : > { %1367 = vmax.xlane.f32.xlu0 %v4043_v25  ;;  %v2756_v7 = vpop.f32.mrb[36].mxu0 }
 0x614   : > { %v1341_v38 = vmul.f32 0.17677669, %v2756_v7  ;;  %v1288_v57 = vpop.f32.mrb[37].mxu0 }
 0x615   : > { %v2757_v19 = vpop.f32.mrb[38].mxu0  ;;  %v1339_v58 = vmul.f32 0.17677669, %v1288_v57 }
 0x616   : > { %v1342_v60 = vmul.f32 0.17677669, %v2757_v19  ;;  %v1291_v3 = vpop.f32.mrb[39].mxu0  ;;  %v4057_v54 = vsel %vm191_vm5, %v1341_v38, -1e+30 }
 0x617   : > { %1373 = vmax.xlane.f32.xlu0 %v1354_v5  ;;  %v1340_v15 = vmul.f32 0.17677669, %v1291_v3  ;;  %v4070_v7 = vsel %vm189_vm7, %v1339_v58, -1e+30  ;;  %v4831_v58 = vld [vmem:[#allocation16_spill] sm:$0xff] }
 0x618   : > { %v4052_v28 = vsel %vm192_vm6, %v1342_v60, -1e+30  ;;  %vm4832_vm12 = vcmp.le.s32.totalorder %v3372_v27, %v4831_v58 }
 0x619   : > { %1381 = vmax.xlane.f32.xlu1 %v4052_v28  ;;  %v4063_v48 = vsel %vm190_vm8, %v1340_v15, -1e+30 }
 0x61b   : > { %1379 = vmax.xlane.f32.xlu0 %v4057_v54  ;;  %v2760_v53 = vpop.f32.mrb[40].mxu0 }
 0x61c   : > { %v1345_v9 = vmul.f32 0.17677669, %v2760_v53  ;;  %v1304_v36 = vpop.f32.mrb[41].mxu0 }
 0x61d   : > { %1377 = vmax.xlane.f32.xlu1 %v4063_v48  ;;  %v2761_v14 = vpop.f32.mrb[42].mxu0  ;;  %v1343_v53 = vmul.f32 0.17677669, %v1304_v36 }
 0x61e   : > { %v1346_v49 = vmul.f32 0.17677669, %v2761_v14  ;;  %v1307_v38 = vpop.f32.mrb[43].mxu0  ;;  %v4081_v15 = vsel %vm195_vm9, %v1345_v9, -1e+30 }
 0x61f   : > { %1375 = vmax.xlane.f32.xlu0 %v4070_v7  ;;  %v1344_v57 = vmul.f32 0.17677669, %v1307_v38  ;;  %v4094_v9 = vsel %vm193_vm11, %v1343_v53, -1e+30  ;;  %v4837_v53 = vld [vmem:[#allocation3_spill] sm:$0xff] }
 0x620   : > { %v4076_v60 = vsel %vm196_vm10, %v1346_v49, -1e+30 }
 0x621   : > { %1389 = vmax.xlane.f32.xlu1 %v4076_v60  ;;  %v4087_v14 = vsel %vm4832_vm12, %v1344_v57, -1e+30 }
 0x623   : > { %1387 = vmax.xlane.f32.xlu0 %v4081_v15  ;;  %v2764_v38 = vpop.f32.mrb[44].mxu0 }
 0x624   : > { %v1349_v56 = vmul.f32 0.17677669, %v2764_v38  ;;  %v1320_v62 = vpop.f32.mrb[45].mxu0  ;;  %v4835_v38 = vld [vmem:[#allocation18_spill] sm:$0xff] }
 0x625   : > { %1385 = vmax.xlane.f32.xlu1 %v4087_v14  ;;  %v2765_v49 = vpop.f32.mrb[46].mxu0  ;;  %v1347_v13 = vmul.f32 0.17677669, %v1320_v62  ;;  %vm4836_vm12 = vcmp.le.s32.totalorder %v3372_v27, %v4835_v38 }
 0x626   : > { %v1323_v31 = vpop.f32.mrb[47].mxu0  ;;  %v4100_v57 = vsel %vm199_vm13, %v1349_v56, -1e+30  ;;  %v1350_v32 = vmul.f32 0.17677669, %v2765_v49 }
 0x627   : > { %1383 = vmax.xlane.f32.xlu0 %v4094_v9  ;;  %v4106_v50 = vsel %vm4836_vm12, %v1347_v13, -1e+30  ;;  %v1348_v42 = vmul.f32 0.17677669, %v1323_v31 }
 0x628   : > { %v4116_v62 = vsel %vm200_vm15, %v1350_v32, -1e+30 }
 0x629   : > { %v4122_v43 = vsel %vm198_vm14, %v1348_v42, -1e+30 }
 0x62b   : > { %1395 = vmax.xlane.f32.xlu0 %v4100_v57 }
 0x62f   : > { %1391 = vmax.xlane.f32.xlu0 %v4106_v50 }
 0x636   : > { %1662 = vrot.lane.b32.xlu1 %v4837_v53, %s3172_s14  ;;  %v4125_v53 = vpop.permute.xlu1 %1658 }
 0x645   : > { %1660 = vrot.lane.b32.xlu0 %v4838_v23, %s3172_s14 }
 0x65a   : > { %1397 = vmax.xlane.f32.xlu1 %v4116_v62 }
 0x65e   : > { %1393 = vmax.xlane.f32.xlu1 %v4122_v43 }
 0x69c   : > { %v1372_v16 = vpop.xlane.xlu0 %1371 }
 0x69d   : > { %v1401_v23 = vsub.f32 %v4031_v21, %v1372_v16 }
 0x69f   : > { %v1419_v31 = vmul.f32 1.442695, %v1401_v23  ;;  %v1370_v49 = vpop.xlane.xlu1 %1369 }
 0x6a0   : > { %v1400_v35 = vsub.f32 %v4037_v41, %v1370_v49  ;;  %v1368_v32 = vpop.xlane.xlu0 %1367 }
 0x6a1   : > { %3034 = vpow2.f32 %v1419_v31  ;;  %v1399_v63 = vsub.f32 %v4043_v25, %v1368_v32 }
 0x6a2   : > { %v1417_v17 = vmul.f32 1.442695, %v1400_v35 }
 0x6a3   : > { %v1415_v37 = vmul.f32 1.442695, %v1399_v63 }
 0x6a4   : > { %3036 = vpow2.f32 %v1417_v17  ;;  %v1374_v42 = vpop.xlane.xlu0 %1373  ;;  %v4842_v17 = vld [vmem:[#allocation4_spill] sm:$0xff] }
 0x6a5   : > { %3038 = vpow2.f32 %v1415_v37  ;;  %v1402_v18 = vsub.f32 %v1354_v5, %v1374_v42 }
 0x6a6   : > { %v1382_v63 = vpop.xlane.xlu1 %1381 }
 0x6a7   : > { %v1421_v6 = vmul.f32 1.442695, %v1402_v18  ;;  %v4841_v18 = vld [vmem:[#allocation5_spill] sm:$0xff]  ;;  %v1406_v13 = vsub.f32 %v4052_v28, %v1382_v63 }
 0x6a8   : > { %v1380_v37 = vpop.xlane.xlu0 %1379 }
 0x6a9   : > { %3040 = vpow2.f32 %v1421_v6  ;;  %v1405_v25 = vsub.f32 %v4057_v54, %v1380_v37  ;;  %v1429_v4 = vmul.f32 1.442695, %v1406_v13 }
 0x6aa   : > { %v1378_v5 = vpop.xlane.xlu1 %1377 }
 0x6ab   : > { %v4130_v20 = vpop.eup %3034  ;;  %v1427_v31 = vmul.f32 1.442695, %v1405_v25  ;;  %v1404_v32 = vsub.f32 %v4063_v48, %v1378_v5 }
 0x6ac   : > { %1451 = vadd.xlane.f32.xlu1 %v4130_v20  ;;  %v1376_v6 = vpop.xlane.xlu0 %1375 }
 0x6ad   : > { %v1403_v49 = vsub.f32 %v4070_v7, %v1376_v6  ;;  %3042 = vpow2.f32 %v1427_v31  ;;  %v1425_v56 = vmul.f32 1.442695, %v1404_v32 }
 0x6ae   : > { %v4133_v16 = vpop.eup %3036  ;;  %v1390_v42 = vpop.xlane.xlu1 %1389 }
 0x6af   : > { %v4135_v21 = vpop.eup %3038  ;;  %1449 = vadd.xlane.f32.xlu0 %v4133_v16  ;;  %v1410_v28 = vsub.f32 %v4076_v60, %v1390_v42 }
 0x6b0   : > { %1447 = vadd.xlane.f32.xlu1 %v4135_v21  ;;  %v1388_v41 = vpop.xlane.xlu0 %1387 }
 0x6b2   : > { %v1386_v8 = vpop.xlane.xlu1 %1385 }
 0x6b3   : > { %v4139_v35 = vpop.eup %3040 }
 0x6b4   : > { %1453 = vadd.xlane.f32.xlu1 %v4139_v35  ;;  %v1384_v23 = vpop.xlane.xlu0 %1383 }
 0x6b5   : > { %v1407_v7 = vsub.f32 %v4094_v9, %v1384_v23  ;;  %v1408_v9 = vsub.f32 %v4087_v14, %v1386_v8 }
 0x6b7   : > { %v1431_v63 = vmul.f32 1.442695, %v1407_v7  ;;  %v4155_v5 = vpop.eup %3042  ;;  %v1433_v13 = vmul.f32 1.442695, %v1408_v9 }
 0x6b8   : > { %v1396_v12 = vpop.xlane.xlu0 %1395 }
 0x6b9   : > { %v1413_v54 = vsub.f32 %v4100_v57, %v1396_v12  ;;  %v1437_v57 = vmul.f32 1.442695, %v1410_v28 }
 0x6bb   : > { %v1443_v48 = vmul.f32 1.442695, %v1413_v54 }
 0x6bc   : > { %v1392_v6 = vpop.xlane.xlu0 %1391 }
 0x6bd   : > { %v1411_v25 = vsub.f32 %v4106_v50, %v1392_v6  ;;  %v1697_v6 = vsel %vm225_vm0, %v4000_v22, 0 }
 0x6bf   : > { %v1439_v12 = vmul.f32 1.442695, %v1411_v25 }
 0x6c5   : > { %1666 = vrot.lane.b32.xlu1 %v4841_v18, %s3172_s14  ;;  %1664 = vrot.lane.b32.xlu0 %v4842_v17, %s3172_s14  ;;  %v1423_v18 = vmul.f32 1.442695, %v1403_v49  ;;  %v1409_v17 = vsub.f32 %v4081_v15, %v1388_v41  ;;  %v4157_v15 = vpop.permute.xlu1 %1662 }
 0x6c7   : > { %3044 = vpow2.f32 %v1423_v18  ;;  %v1435_v37 = vmul.f32 1.442695, %v1409_v17 }
 0x6c8   : > { %3046 = vpow2.f32 %v1425_v56 }
 0x6c9   : > { %3048 = vpow2.f32 %v1429_v4 }
 0x6ca   : > { %3050 = vpow2.f32 %v1435_v37 }
 0x6cb   : > { %3052 = vpow2.f32 %v1443_v48 }
 0x6cc   : > { %3054 = vpow2.f32 %v1431_v63 }
 0x6cd   : > { %3056 = vpow2.f32 %v1439_v12 }
 0x6ce   : > { %3058 = vpow2.f32 %v1437_v57 }
 0x6d1   : > { %v4161_v4 = vpop.eup %3044 }
 0x6d2   : > { %v4163_v50 = vpop.eup %3046 }
 0x6d3   : > { %v4168_v23 = vpop.eup %3048 }
 0x6d4   : > { %v4170_v8 = vpop.eup %3050 }
 0x6d5   : > { %v4175_v49 = vpop.eup %3052 }
 0x6d6   : > { %v4177_v32 = vpop.eup %3054 }
 0x6d7   : > { %v4181_v42 = vpop.eup %3056 }
 0x6d8   : > { %v4183_v18 = vpop.eup %3058 }
 0x6e4   : > { %1459 = vadd.xlane.f32.xlu0 %v4155_v5 }
 0x6e7   : > { %v1398_v56 = vpop.xlane.xlu1 %1397 }
 0x6e8   : > { %v1414_v60 = vsub.f32 %v4116_v62, %v1398_v56  ;;  %1455 = vadd.xlane.f32.xlu0 %v4161_v4 }
 0x6e9   : > { %1457 = vadd.xlane.f32.xlu1 %v4163_v50 }
 0x6ea   : > { %v1445_v41 = vmul.f32 1.442695, %v1414_v60 }
 0x6eb   : > { %v1394_v31 = vpop.xlane.xlu1 %1393 }
 0x6ec   : > { %3060 = vpow2.f32 %v1445_v41  ;;  %v1412_v14 = vsub.f32 %v4122_v43, %v1394_v31  ;;  %1461 = vadd.xlane.f32.xlu0 %v4168_v23 }
 0x6ed   : > { %1467 = vadd.xlane.f32.xlu1 %v4170_v8  ;;  %3062 = vpow2.f32 %v1433_v13 }
 0x6ee   : > { %v1441_v62 = vmul.f32 1.442695, %v1412_v14 }
 0x6f0   : > { %1475 = vadd.xlane.f32.xlu0 %v4175_v49  ;;  %3064 = vpow2.f32 %v1441_v62 }
 0x6f1   : > { %1463 = vadd.xlane.f32.xlu1 %v4177_v32 }
 0x6f4   : > { %1471 = vadd.xlane.f32.xlu0 %v4181_v42 }
 0x6f5   : > { %1469 = vadd.xlane.f32.xlu1 %v4183_v18 }
 0x6f6   : > { %v4187_v43 = vpop.eup %3060 }
 0x6f7   : > { %v4189_v17 = vpop.eup %3062 }
 0x6f8   : > { %1477 = vadd.xlane.f32.xlu0 %v4187_v43 }
 0x6f9   : > { %1465 = vadd.xlane.f32.xlu1 %v4189_v17 }
 0x6fa   : > { %v4193_v54 = vpop.eup %3064 }
 0x6fd   : > { %1473 = vadd.xlane.f32.xlu1 %v4193_v54 }
 0x70e   : > { %1668 = vrot.lane.b32.xlu0 %v3259_v29, %s3172_s14  ;;  %1670 = vrot.lane.b32.xlu1 %v3267_v33, %s3172_s14 }
 0x712   : > { %1640 = vrot.lane.b32.xlu0 %v3221_v11, %s3172_s14  ;;  %1642 = vrot.lane.b32.xlu1 %v3277_v39, %s3172_s14  ;;  %v1661_v11 = vpop.permute.xlu0 %1660 }
 0x716   : > { %1644 = vrot.lane.b32.xlu0 %v3279_v40, %s3172_s14  ;;  %1646 = vrot.lane.b32.xlu1 %v3289_v45, %s3172_s14 }
 0x71a   : > { %1648 = vrot.lane.b32.xlu0 %v3291_v46, %s3172_s14  ;;  %1650 = vrot.lane.b32.xlu1 %v3301_v51, %s3172_s14 }
 0x71e   : > { %1652 = vrot.lane.b32.xlu0 %v3303_v52, %s3172_s14  ;;  %1654 = vrot.lane.b32.xlu1 %v3311_v55, %s3172_s14 }
 0x722   : > { %2001 = vrot.lane.b32.xlu0 %v3318_v59, %s3172_s14  ;;  %2003 = vrot.lane.b32.xlu1 %v3321_v61, %s3172_s14 }
 0x726   : > { %2005 = vrot.lane.b32.xlu0 %v3328_v0, %s3172_s14 }
 0x739   : > { %v1452_v29 = vpop.xlane.xlu1 %1451 }
 0x73c   : > { %v1450_v33 = vpop.xlane.xlu0 %1449 }
 0x73d   : > { %3066 = vrcp.f32 %v1450_v33  ;;  %v1448_v39 = vpop.xlane.xlu1 %1447 }
 0x73e   : > { %3068 = vrcp.f32 %v1448_v39 }
 0x73f   : > { %3070 = vrcp.f32 %v1452_v29 }
 0x740   : > { %v1665_v22 = vpop.permute.xlu0 %1664 }
 0x741   : > { %v1454_v40 = vpop.xlane.xlu1 %1453  ;;  %v1709_v48 = vsel %vm225_vm0, %v1665_v22, 0 }
 0x742   : > { %3072 = vrcp.f32 %v1454_v40 }
 0x747   : > { %v3067_v45 = vpop.eup %3066 }
 0x748   : > { %v3069_v46 = vpop.eup %3068  ;;  %v1496_v51 = vmul.f32 %v3067_v45, %v4133_v16  ;;  %v1700_v16 = vsel %vm225_vm0, %v4125_v53, 0 }
 0x749   : > { %v1495_v52 = vmul.f32 %v3069_v46, %v4135_v21  ;;  %v3071_v55 = vpop.eup %3070  ;;  %v1706_v21 = vsel %vm225_vm0, %v4157_v15, 0 }
 0x74a   : > { %v1497_v0 = vmul.f32 %v3071_v55, %v4130_v20  ;;  %v1703_v20 = vsel %vm225_vm0, %v1661_v11, 0 }
 0x74b   : > { %v1511_v59 = vpack.c.bf16 %v1496_v51, %v1495_v52 }
 0x74c   : > { %v3073_v61 = vpop.eup %3072 }
 0x74d   : > { %v1498_v37 = vmul.f32 %v3073_v61, %v4139_v35  ;;  %2782 = vmatprep.mubr.bf16.mxu1 %v1511_v59 }
 0x74f   : > { %v1512_v7 = vpack.c.bf16 %v1498_v37, %v1497_v0 }
 0x751   : > { %2783 = vmatmul.mubr.bf16.vlgmr.msra.gmra.mrb[32].mxu1 %v1512_v7 }
 0x752   : > { %2799 = vmatpush3.bf16.xpose.msra.mxu1 %v1697_v6 }
 0x753   : > { %2887 = vmatprep.subr.msk.bf16.mxu1 %vm225_vm0, %v4125_v53  ;;  %v1667_v53 = vpop.permute.xlu1 %1666 }
 0x754   : > { %v1712_v12 = vsel %vm225_vm0, %v1667_v53, 0 }
 0x75a   : > { %2801 = vmatpush3.bf16.xpose.msra.mxu1 %v1700_v16 }
 0x75b   : > { %2888 = vmatprep.subr.msk.bf16.mxu1 %vm225_vm0, %v1661_v11 }
 0x762   : > { %2803 = vmatpush3.bf16.xpose.msra.mxu1 %v1703_v20 }
 0x763   : > { %2889 = vmatprep.subr.msk.bf16.mxu1 %vm225_vm0, %v4157_v15 }
 0x76a   : > { %2805 = vmatpush3.bf16.xpose.msra.mxu1 %v1706_v21 }
 0x76b   : > { %2890 = vmatprep.subr.msk.bf16.mxu1 %vm225_vm0, %v1665_v22 }
 0x771   : > { %v1460_v35 = vpop.xlane.xlu0 %1459 }
 0x772   : > { %2807 = vmatpush3.bf16.xpose.msra.mxu1 %v1709_v48 }
 0x773   : > { %2891 = vmatprep.subr.msk.bf16.mxu1 %vm225_vm0, %v1667_v53 }
 0x775   : > { %v1456_v25 = vpop.xlane.xlu0 %1455 }
 0x776   : > { %3074 = vrcp.f32 %v1456_v25  ;;  %v1458_v28 = vpop.xlane.xlu1 %1457 }
 0x777   : > { %3076 = vrcp.f32 %v1458_v28 }
 0x778   : > { %3078 = vrcp.f32 %v1460_v35 }
 0x779   : > { %v1462_v63 = vpop.xlane.xlu0 %1461 }
 0x77a   : > { %3080 = vrcp.f32 %v1462_v63  ;;  %2809 = vmatpush3.bf16.xpose.msra.mxu1 %v1712_v12  ;;  %v1468_v15 = vpop.xlane.xlu1 %1467 }
 0x77d   : > { %v1476_v57 = vpop.xlane.xlu0 %1475 }
 0x77e   : > { %v1464_v9 = vpop.xlane.xlu1 %1463 }
 0x780   : > { %v3075_v56 = vpop.eup %3074 }
 0x781   : > { %v3077_v60 = vpop.eup %3076  ;;  %v1472_v13 = vpop.xlane.xlu0 %1471  ;;  %v1499_v41 = vmul.f32 %v3075_v56, %v4161_v4 }
 0x782   : > { %v3079_v31 = vpop.eup %3078  ;;  %v1470_v14 = vpop.xlane.xlu1 %1469  ;;  %v1500_v62 = vmul.f32 %v3077_v60, %v4163_v50 }
 0x783   : > { %3082 = vrcp.f32 %v1470_v14  ;;  %v1501_v39 = vmul.f32 %v3079_v31, %v4155_v5 }
 0x784   : > { %v3081_v11 = vpop.eup %3080  ;;  %v1513_v29 = vpack.c.bf16 %v1500_v62, %v1499_v41  ;;  %3084 = vrcp.f32 %v1464_v9 }
 0x785   : > { %v1478_v33 = vpop.xlane.xlu0 %1477  ;;  %v1502_v40 = vmul.f32 %v3081_v11, %v4168_v23  ;;  %3086 = vrcp.f32 %v1468_v15 }
 0x786   : > { %2786 = vmatprep.mubr.bf16.mxu1 %v1513_v29  ;;  %v1466_v45 = vpop.xlane.xlu1 %1465 }
 0x787   : > { %3088 = vrcp.f32 %v1466_v45  ;;  %v1514_v46 = vpack.c.bf16 %v1502_v40, %v1501_v39 }
 0x788   : > { %3090 = vrcp.f32 %v1472_v13 }
 0x789   : > { %2787 = vmatmul.mubr.bf16.gmra.mrb[36].mxu1 %v1514_v46  ;;  %v1669_v4 = vpop.permute.xlu0 %1668 }
 0x78a   : > { %v1474_v51 = vpop.xlane.xlu1 %1473  ;;  %v1715_v50 = vsel %vm225_vm0, %v1669_v4, 0  ;;  %2892 = vmatprep.subr.msk.bf16.mxu1 %vm225_vm0, %v1669_v4 }
 0x78b   : > { %3092 = vrcp.f32 %v1474_v51  ;;  %2811 = vmatpush3.bf16.xpose.msra.mxu1 %v1715_v50 }
 0x78c   : > { %3094 = vrcp.f32 %v1478_v33 }
 0x78d   : > { %v3083_v52 = vpop.eup %3082  ;;  %3096 = vrcp.f32 %v1476_v57 }
 0x78e   : > { %v1671_v5 = vpop.permute.xlu1 %1670  ;;  %v3085_v23 = vpop.eup %3084  ;;  %v1506_v0 = vmul.f32 %v3083_v52, %v4183_v18 }
 0x78f   : > { %2893 = vmatprep.subr.msk.bf16.mxu1 %vm225_vm0, %v1671_v5  ;;  %v3087_v55 = vpop.eup %3086  ;;  %v1718_v59 = vsel %vm225_vm0, %v1671_v5, 0  ;;  %v1503_v37 = vmul.f32 %v3085_v23, %v4177_v32 }
 0x790   : > { %v1505_v16 = vmul.f32 %v3087_v55, %v4170_v8  ;;  %v1641_v8 = vpop.permute.xlu0 %1640 }
 0x791   : > { %v3089_v61 = vpop.eup %3088 }
 0x792   : > { %v1504_v7 = vmul.f32 %v3089_v61, %v4189_v17  ;;  %v3091_v6 = vpop.eup %3090  ;;  %v1516_v22 = vpack.c.bf16 %v1506_v0, %v1505_v16  ;;  %v1643_v63 = vpop.permute.xlu1 %1642 }
 0x793   : > { %2813 = vmatpush3.bf16.xpose.msra.mxu1 %v1718_v59  ;;  %v1507_v48 = vmul.f32 %v3091_v6, %v4181_v42 }
 0x794   : > { %v1515_v20 = vpack.c.bf16 %v1504_v7, %v1503_v37  ;;  %v1645_v12 = vpop.permute.xlu0 %1644 }
 0x795   : > { %v3093_v21 = vpop.eup %3092 }
 0x796   : > { %v3095_v35 = vpop.eup %3094  ;;  %2790 = vmatprep.mubr.bf16.mxu1 %v1515_v20  ;;  %v1508_v53 = vmul.f32 %v3093_v21, %v4193_v54  ;;  %v1647_v42 = vpop.permute.xlu1 %1646 }
 0x797   : > { %2791 = vmatmul.mubr.bf16.gmra.mrb[40].mxu1 %v1516_v22  ;;  %v3097_v25 = vpop.eup %3096  ;;  %v1510_v32 = vmul.f32 %v3095_v35, %v4187_v43 }
 0x798   : > { %v1517_v18 = vpack.c.bf16 %v1508_v53, %v1507_v48  ;;  %v1509_v17 = vmul.f32 %v3097_v25, %v4175_v49  ;;  %v1649_v54 = vpop.permute.xlu0 %1648 }
 0x79a   : > { %2794 = vmatprep.mubr.bf16.mxu1 %v1517_v18  ;;  %v1518_v28 = vpack.c.bf16 %v1510_v32, %v1509_v17  ;;  %v1651_v43 = vpop.permute.xlu1 %1650 }
 0x79c   : > { %v1653_v15 = vpop.permute.xlu0 %1652 }
 0x79e   : > { %v1655_v49 = vpop.permute.xlu1 %1654 }
 0x79f   : > { %2795 = vmatmul.mubr.bf16.gmra.mrb[44].mxu1 %v1518_v28 }
 0x7a0   : > { %2814 = vmatprep.mubr.msk.bf16.mxu1 %vm225_vm0, %v1641_v8  ;;  %v2002_v13 = vpop.permute.xlu0 %2001 }
 0x7a1   : > { %2830 = vmatprep.subr.bf16.mxu0 %v2002_v13 }
 0x7a2   : > { %2831 = vmatpush3.bf16.msra.mxu0 %v2002_v13  ;;  %v2004_v41 = vpop.permute.xlu1 %2003 }
 0x7a3   : > { %2832 = vmatprep.subr.bf16.mxu0 %v2004_v41 }
 0x7a4   : > { %v2006_v31 = vpop.permute.xlu0 %2005 }
 0x7a6   : > { %2833 = vmatpush3.bf16.msra.mxu0 %v2004_v41 }
 0x7a7   : > { %2815 = vmatmul.mubr.msk.bf16.vlgmr.msra.gmra.mrb[48].mxu1 %vm225_vm0, %v1643_v63  ;;  %2834 = vmatprep.subr.bf16.mxu0 %v2006_v31 }
 0x7a8   : > { %2818 = vmatprep.mubr.msk.bf16.mxu1 %vm225_vm0, %v1645_v12 }
 0x7aa   : > { %2835 = vmatpush3.bf16.msra.mxu0 %v2006_v31 }
 0x7af   : > { %2819 = vmatmul.mubr.msk.bf16.gmra.mrb[52].mxu1 %vm225_vm0, %v1647_v42 }
 0x7b0   : > { %2822 = vmatprep.mubr.msk.bf16.mxu1 %vm225_vm0, %v1649_v54 }
 0x7b7   : > { %2823 = vmatmul.mubr.msk.bf16.gmra.mrb[56].mxu1 %vm225_vm0, %v1651_v43 }
 0x7b8   : > { %2826 = vmatprep.mubr.msk.bf16.mxu1 %vm225_vm0, %v1653_v15 }
 0x7bf   : > { %2827 = vmatmul.mubr.msk.bf16.gmra.mrb[60].mxu1 %vm225_vm0, %v1655_v49 }
 0x824   : > { %v4266_v57 = vpop.f32.mrb[32].mxu1 }
 0x825   : > { %v4268_v9 = vpop.f32.mrb[33].mxu1 }
 0x826   : > { %v4270_v56 = vpop.f32.mrb[34].mxu1 }
 0x827   : > { %v4272_v60 = vpop.f32.mrb[35].mxu1 }
 0x85c   : > { %v4274_v14 = vpop.f32.mrb[36].mxu1 }
 0x85d   : > { %v4276_v62 = vpop.f32.mrb[37].mxu1 }
 0x85e   : > { %v4278_v11 = vpop.f32.mrb[38].mxu1 }
 0x85f   : > { %v4280_v29 = vpop.f32.mrb[39].mxu1 }
 0x86a   : > { %v4282_v33 = vpop.f32.mrb[40].mxu1 }
 0x86b   : > { %v4284_v39 = vpop.f32.mrb[41].mxu1 }
 0x86c   : > { %v4286_v40 = vpop.f32.mrb[42].mxu1 }
 0x86d   : > { %v4288_v45 = vpop.f32.mrb[43].mxu1 }
 0x872   : > { %v4290_v46 = vpop.f32.mrb[44].mxu1 }
 0x873   : > { %v4292_v4 = vpop.f32.mrb[45].mxu1 }
 0x874   : > { %v4294_v51 = vpop.f32.mrb[46].mxu1 }
 0x875   : > { %v4296_v50 = vpop.f32.mrb[47].mxu1 }
 0x87a   : > { %v2816_v52 = vpop.f32.mrb[48].mxu1 }
 0x87b   : > { %v1819_v5 = vmul.f32 0.17677669, %v2816_v52  ;;  %v1754_v23 = vpop.f32.mrb[49].mxu1  ;;  %v4846_v52 = vld [vmem:[#allocation6_spill] sm:$0xff] }
 0x87c   : > { %v2817_v55 = vpop.f32.mrb[50].mxu1  ;;  %v1817_v59 = vmul.f32 0.17677669, %v1754_v23 }
 0x87d   : > { %v1757_v61 = vpop.f32.mrb[51].mxu1  ;;  %v4301_v0 = vsel %vm187_vm1, %v1819_v5, -1e+30  ;;  %v1820_v6 = vmul.f32 0.17677669, %v2817_v55  ;;  %vm4843_vm1 = vcmp.le.s32.totalorder %v3372_v27, %v4831_v58 }
 0x87e   : > { %v1818_v37 = vmul.f32 0.17677669, %v1757_v61  ;;  %1853 = vmax.xlane.f32.xlu0 %v4301_v0  ;;  %v1833_v16 = vsel %vm185_vm2, %v1817_v59, -1e+30  ;;  %vm4844_vm2 = vmmov %vm4836_vm12  ;;  %v4849_v61 = vld [vmem:[#allocation8_spill] sm:$0xff] }
 0x87f   : > { %v1836_v48 = vsel %vm188_vm3, %v1820_v6, -1e+30  ;;  %vm2330_vm3 = vcmask 523264  }
 0x880   : > { %v4307_v7 = vsel %vm186_vm4, %v1818_v37, -1e+30  ;;  %vm2347_vm4 = vcmask 785408  }
 0x881   : > { %1851 = vmax.xlane.f32.xlu1 %v4307_v7 }
 0x882   : > { %1849 = vmax.xlane.f32.xlu0 %v1833_v16  ;;  %v2820_v20 = vpop.f32.mrb[52].mxu1 }
 0x883   : > { %v1823_v26 = vmul.f32 0.17677669, %v2820_v20  ;;  %v1770_v21 = vpop.f32.mrb[53].mxu1 }
 0x884   : > { %v2821_v22 = vpop.f32.mrb[54].mxu1  ;;  %v1821_v18 = vmul.f32 0.17677669, %v1770_v21 }
 0x885   : > { %v1824_v35 = vmul.f32 0.17677669, %v2821_v22  ;;  %v1773_v34 = vpop.f32.mrb[55].mxu1  ;;  %v4324_v24 = vsel %vm191_vm5, %v1823_v26, -1e+30 }
 0x886   : > { %1855 = vmax.xlane.f32.xlu0 %v1836_v48  ;;  %v1822_v53 = vmul.f32 0.17677669, %v1773_v34  ;;  %v1837_v44 = vsel %vm189_vm7, %v1821_v18, -1e+30 }
 0x887   : > { %v4319_v25 = vsel %vm192_vm6, %v1824_v35, -1e+30 }
 0x888   : > { %1863 = vmax.xlane.f32.xlu1 %v4319_v25  ;;  %v4331_v28 = vsel %vm190_vm8, %v1822_v53, -1e+30 }
 0x88a   : > { %1861 = vmax.xlane.f32.xlu0 %v4324_v24  ;;  %v2824_v30 = vpop.f32.mrb[56].mxu1 }
 0x88b   : > { %v1827_v32 = vmul.f32 0.17677669, %v2824_v30  ;;  %v1786_v17 = vpop.f32.mrb[57].mxu1 }
 0x88c   : > { %1859 = vmax.xlane.f32.xlu1 %v4331_v28  ;;  %v2825_v47 = vpop.f32.mrb[58].mxu1  ;;  %v1825_v54 = vmul.f32 0.17677669, %v1786_v17 }
 0x88d   : > { %v1828_v8 = vmul.f32 0.17677669, %v2825_v47  ;;  %v1789_v63 = vpop.f32.mrb[59].mxu1  ;;  %v4345_v2 = vsel %vm195_vm9, %v1827_v32, -1e+30 }
 0x88e   : > { %1857 = vmax.xlane.f32.xlu0 %v1837_v44  ;;  %v1826_v12 = vmul.f32 0.17677669, %v1789_v63  ;;  %v4358_v3 = vsel %vm193_vm11, %v1825_v54, -1e+30 }
 0x88f   : > { %v4340_v42 = vsel %vm196_vm10, %v1828_v8, -1e+30 }
 0x890   : > { %1871 = vmax.xlane.f32.xlu1 %v4340_v42  ;;  %v4351_v10 = vsel %vm4843_vm1, %v1826_v12, -1e+30 }
 0x892   : > { %1869 = vmax.xlane.f32.xlu0 %v4345_v2  ;;  %v2828_v43 = vpop.f32.mrb[60].mxu1 }
 0x893   : > { %v1831_v15 = vmul.f32 0.17677669, %v2828_v43  ;;  %v1802_v19 = vpop.f32.mrb[61].mxu1 }
 0x894   : > { %1867 = vmax.xlane.f32.xlu1 %v4351_v10  ;;  %v2829_v49 = vpop.f32.mrb[62].mxu1  ;;  %v1829_v41 = vmul.f32 0.17677669, %v1802_v19 }
 0x895   : > { %v1805_v13 = vpop.f32.mrb[63].mxu1  ;;  %v4364_v58 = vsel %vm199_vm13, %v1831_v15, -1e+30  ;;  %v1832_v5 = vmul.f32 0.17677669, %v2829_v49 }
 0x896   : > { %1865 = vmax.xlane.f32.xlu0 %v4358_v3  ;;  %v4370_v31 = vsel %vm4844_vm2, %v1829_v41, -1e+30  ;;  %v1830_v36 = vmul.f32 0.17677669, %v1805_v13 }
 0x897   : > { %v4380_v55 = vsel %vm200_vm15, %v1832_v5, -1e+30 }
 0x898   : > { %v4386_v59 = vsel %vm198_vm14, %v1830_v36, -1e+30 }
 0x89a   : > { %1877 = vmax.xlane.f32.xlu0 %v4364_v58 }
 0x89e   : > { %1873 = vmax.xlane.f32.xlu0 %v4370_v31 }
 0x8a5   : > { %2009 = vrot.lane.b32.xlu1 %v4845_v1, %s3172_s14 }
 0x8b4   : > { %2007 = vrot.lane.b32.xlu0 %v4846_v52, %s3172_s14 }
 0x8c9   : > { %1879 = vmax.xlane.f32.xlu1 %v4380_v55 }
 0x8cd   : > { %1875 = vmax.xlane.f32.xlu1 %v4386_v59 }
 0x8de   : > { %2011 = vrot.lane.b32.xlu1 %v4849_v61, %s3172_s14 }
 0x90b   : > { %v1854_v37 = vpop.xlane.xlu0 %1853 }
 0x90c   : > { %v1883_v6 = vsub.f32 %v4301_v0, %v1854_v37 }
 0x90e   : > { %v1901_v20 = vmul.f32 1.442695, %v1883_v6  ;;  %v1852_v21 = vpop.xlane.xlu1 %1851 }
 0x90f   : > { %v1850_v26 = vpop.xlane.xlu0 %1849  ;;  %v1882_v34 = vsub.f32 %v4307_v7, %v1852_v21 }
 0x910   : > { %3098 = vpow2.f32 %v1901_v20  ;;  %v1881_v22 = vsub.f32 %v1833_v16, %v1850_v26 }
 0x911   : > { %v1899_v32 = vmul.f32 1.442695, %v1882_v34 }
 0x912   : > { %v1897_v35 = vmul.f32 1.442695, %v1881_v22 }
 0x913   : > { %v1856_v53 = vpop.xlane.xlu0 %1855 }
 0x914   : > { %3100 = vpow2.f32 %v1897_v35  ;;  %v1884_v27 = vsub.f32 %v1836_v48, %v1856_v53 }
 0x915   : > { %v1864_v18 = vpop.xlane.xlu1 %1863 }
 0x916   : > { %v1903_v30 = vmul.f32 1.442695, %v1884_v27  ;;  %v1888_v7 = vsub.f32 %v4319_v25, %v1864_v18 }
 0x917   : > { %v1862_v17 = vpop.xlane.xlu0 %1861 }
 0x918   : > { %3102 = vpow2.f32 %v1903_v30  ;;  %v1887_v47 = vsub.f32 %v4324_v24, %v1862_v17  ;;  %v1911_v49 = vmul.f32 1.442695, %v1888_v7  ;;  %v4851_v17 = vld [vmem:[#allocation39_spill] sm:$0xff] }
 0x919   : > { %v1860_v8 = vpop.xlane.xlu1 %1859  ;;  %3104 = vpow2.f32 %v1899_v32  ;;  %v4850_v32 = vld [vmem:[#allocation10_spill] sm:$0xff]  ;;  %v4855_v7 = vld [vmem:[#allocation43_spill] sm:$0xff] }
 0x91a   : > { %v4394_v0 = vpop.eup %3098  ;;  %v1909_v63 = vmul.f32 1.442695, %v1887_v47  ;;  %v1886_v12 = vsub.f32 %v4331_v28, %v1860_v8  ;;  %v4852_v47 = vld [vmem:[#allocation9_spill] sm:$0xff]  ;;  %v4853_v8 = vld [vmem:[#allocation12_spill] sm:$0xff] }
 0x91b   : > { %v1858_v16 = vpop.xlane.xlu0 %1857  ;;  %1933 = vadd.xlane.f32.xlu1 %v4394_v0 }
 0x91c   : > { %3106 = vpow2.f32 %v1909_v63  ;;  %v1907_v48 = vmul.f32 1.442695, %v1886_v12  ;;  %v1885_v54 = vsub.f32 %v1837_v44, %v1858_v16  ;;  %v4854_v12 = vld [vmem:[#allocation38_spill] sm:$0xff] }
 0x91d   : > { %v1872_v19 = vpop.xlane.xlu1 %1871 }
 0x91e   : > { %v4399_v43 = vpop.eup %3100  ;;  %v1905_v15 = vmul.f32 1.442695, %v1885_v54  ;;  %3108 = vpow2.f32 %v1907_v48  ;;  %v1892_v41 = vsub.f32 %v4340_v42, %v1872_v19 }
 0x91f   : > { %v1870_v24 = vpop.xlane.xlu0 %1869  ;;  %1929 = vadd.xlane.f32.xlu1 %v4399_v43 }
 0x920   : > { %3110 = vpow2.f32 %v1905_v15  ;;  %v1891_v28 = vsub.f32 %v4345_v2, %v1870_v24  ;;  %v1919_v38 = vmul.f32 1.442695, %v1892_v41  ;;  %v4856_v15 = vld [vmem:[#allocation42_spill] sm:$0xff] }
 0x921   : > { %3112 = vpow2.f32 %v1911_v49  ;;  %v1868_v44 = vpop.xlane.xlu1 %1867  ;;  %v4857_v49 = vld [vmem:[#allocation47_spill] sm:$0xff]  ;;  %v4858_v41 = vld [vmem:[#allocation46_spill] sm:$0xff] }
 0x922   : > { %v4403_v13 = vpop.eup %3102  ;;  %v1917_v25 = vmul.f32 1.442695, %v1891_v28  ;;  %v1890_v2 = vsub.f32 %v4351_v10, %v1868_v44  ;;  %v4861_v44 = vld [vmem:[#allocation37_spill] sm:$0xff] }
 0x923   : > { %v1866_v1 = vpop.xlane.xlu0 %1865  ;;  %1935 = vadd.xlane.f32.xlu1 %v4403_v13  ;;  %v4408_v5 = vpop.eup %3104 }
 0x924   : > { %v1889_v52 = vsub.f32 %v4358_v3, %v1866_v1  ;;  %3114 = vpow2.f32 %v1917_v25  ;;  %v1915_v20 = vmul.f32 1.442695, %v1890_v2  ;;  %v4860_v1 = vld [vmem:[#allocation50_spill] sm:$0xff] }
 0x925   : > { %v2010_v34 = vpop.permute.xlu1 %2009 }
 0x926   : > { %v4410_v36 = vpop.eup %3106  ;;  %v1913_v23 = vmul.f32 1.442695, %v1889_v52 }
 0x927   : > { %v1878_v61 = vpop.xlane.xlu0 %1877  ;;  %1941 = vadd.xlane.f32.xlu0 %v4410_v36  ;;  %1931 = vadd.xlane.f32.xlu1 %v4408_v5 }
 0x928   : > { %3116 = vpow2.f32 %v1913_v23  ;;  %v1895_v42 = vsub.f32 %v4364_v58, %v1878_v61  ;;  %v4416_v37 = vpop.eup %3108 }
 0x929   : > { %3118 = vpow2.f32 %v1919_v38 }
 0x92a   : > { %v4418_v3 = vpop.eup %3110  ;;  %v1925_v6 = vmul.f32 1.442695, %v1895_v42 }
 0x92b   : > { %1937 = vadd.xlane.f32.xlu0 %v4418_v3  ;;  %v1874_v26 = vpop.xlane.xlu0 %1873  ;;  %1939 = vadd.xlane.f32.xlu1 %v4416_v37  ;;  %v4423_v21 = vpop.eup %3112 }
 0x92c   : > { %3120 = vpow2.f32 %v1925_v6  ;;  %v1893_v10 = vsub.f32 %v4370_v31, %v1874_v26 }
 0x92d   : > { %3122 = vpow2.f32 %v1915_v20 }
 0x92e   : > { %v1921_v22 = vmul.f32 1.442695, %v1893_v10  ;;  %v4426_v35 = vpop.eup %3114 }
 0x92f   : > { %v2008_v58 = vpop.permute.xlu0 %2007  ;;  %1943 = vadd.xlane.f32.xlu0 %v4423_v21 }
 0x930   : > { %3124 = vpow2.f32 %v1921_v22  ;;  %2836 = vmatprep.subr.bf16.mxu0 %v2008_v58 }
 0x931   : > { %2837 = vmatpush3.bf16.msra.mxu0 %v2008_v58 }
 0x932   : > { %v4428_v53 = vpop.eup %3116  ;;  %2838 = vmatprep.subr.bf16.mxu0 %v2010_v34 }
 0x933   : > { %1949 = vadd.xlane.f32.xlu0 %v4426_v35  ;;  %1945 = vadd.xlane.f32.xlu1 %v4428_v53  ;;  %v4432_v31 = vpop.eup %3118 }
 0x935   : > { %2839 = vmatpush3.bf16.msra.mxu0 %v2010_v34 }
 0x936   : > { %v4434_v27 = vpop.eup %3120 }
 0x937   : > { %1957 = vadd.xlane.f32.xlu1 %v4434_v27  ;;  %1951 = vadd.xlane.f32.xlu0 %v4432_v31  ;;  %v4438_v18 = vpop.eup %3122 }
 0x93a   : > { %v4440_v30 = vpop.eup %3124 }
 0x93b   : > { %1953 = vadd.xlane.f32.xlu1 %v4440_v30  ;;  %1947 = vadd.xlane.f32.xlu0 %v4438_v18 }
 0x94c   : > { %2015 = vrot.lane.b32.xlu1 %v4850_v32, %s3172_s14 }
 0x950   : > { %2140 = vrot.lane.b32.xlu1 %v4851_v17, %s3172_s14 }
 0x951   : > { %2013 = vrot.lane.b32.xlu0 %v4852_v47, %s3172_s14 }
 0x954   : > { %2142 = vrot.lane.b32.xlu1 %v4853_v8, %s3172_s14 }
 0x956   : > { %v1880_v63 = vpop.xlane.xlu1 %1879 }
 0x957   : > { %v1896_v19 = vsub.f32 %v4380_v55, %v1880_v63 }
 0x958   : > { %2144 = vrot.lane.b32.xlu1 %v4854_v12, %s3172_s14  ;;  %v4868_v12 = vld [vmem:[#allocation24_spill] sm:$0xff] }
 0x959   : > { %v1927_v28 = vmul.f32 1.442695, %v1896_v19 }
 0x95a   : > { %v1876_v16 = vpop.xlane.xlu1 %1875 }
 0x95b   : > { %v1894_v48 = vsub.f32 %v4386_v59, %v1876_v16  ;;  %v4859_v59 = vld [vmem:[#allocation51_spill] sm:$0xff] }
 0x95c   : > { %2148 = vrot.lane.b32.xlu1 %v4855_v7, %s3172_s14 }
 0x95d   : > { %v1923_v24 = vmul.f32 1.442695, %v1894_v48 }
 0x95e   : > { %v2012_v54 = vpop.permute.xlu1 %2011 }
 0x95f   : > { %2840 = vmatprep.subr.bf16.mxu0 %v2012_v54  ;;  %3126 = vpow2.f32 %v1923_v24 }
 0x960   : > { %2152 = vrot.lane.b32.xlu1 %v4856_v15, %s3172_s14  ;;  %2841 = vmatpush3.bf16.msra.mxu0 %v2012_v54  ;;  %3128 = vpow2.f32 %v1927_v28 }
 0x964   : > { %2156 = vrot.lane.b32.xlu1 %v4857_v49, %s3172_s14 }
 0x968   : > { %2160 = vrot.lane.b32.xlu1 %v4858_v41, %s3172_s14 }
 0x969   : > { %v4466_v25 = vpop.eup %3126 }
 0x96a   : > { %v4471_v55 = vpop.eup %3128 }
 0x96c   : > { %2164 = vrot.lane.b32.xlu1 %v4859_v59, %s3172_s14 }
 0x970   : > { %2168 = vrot.lane.b32.xlu1 %v4860_v1, %s3172_s14  ;;  %1955 = vadd.xlane.f32.xlu0 %v4466_v25 }
 0x974   : > { %2204 = vrot.lane.b32.xlu1 %v4272_v60, %s3171_s13  ;;  %1959 = vadd.xlane.f32.xlu0 %v4471_v55  ;;  %v4863_v60 = vld [vmem:[#allocation40_spill] sm:$0xff] }
 0x978   : > { %2208 = vrot.lane.b32.xlu1 %v4270_v56, %s3171_s13  ;;  %v4862_v56 = vld [vmem:[#allocation41_spill] sm:$0xff] }
 0x97c   : > { %2212 = vrot.lane.b32.xlu1 %v4280_v29, %s3171_s13  ;;  %v4865_v29 = vld [vmem:[#allocation44_spill] sm:$0xff] }
 0x980   : > { %2216 = vrot.lane.b32.xlu1 %v4278_v11, %s3171_s13  ;;  %v4864_v11 = vld [vmem:[#allocation45_spill] sm:$0xff] }
 0x984   : > { %2220 = vrot.lane.b32.xlu1 %v4288_v45, %s3171_s13  ;;  %v4867_v45 = vld [vmem:[#allocation48_spill] sm:$0xff] }
 0x988   : > { %2224 = vrot.lane.b32.xlu1 %v4286_v40, %s3171_s13  ;;  %v4866_v40 = vld [vmem:[#allocation49_spill] sm:$0xff] }
 0x98a   : > { %2138 = vrot.lane.b32.xlu0 %v4861_v44, %s3172_s14 }
 0x98c   : > { %2228 = vrot.lane.b32.xlu1 %v4296_v50, %s3171_s13 }
 0x98e   : > { %2146 = vrot.lane.b32.xlu0 %v4862_v56, %s3172_s14  ;;  %v4869_v56 = vld [vmem:[#allocation28_spill] sm:$0xff] }
 0x990   : > { %2232 = vrot.lane.b32.xlu1 %v4294_v51, %s3171_s13 }
 0x992   : > { %2150 = vrot.lane.b32.xlu0 %v4863_v60, %s3172_s14 }
 0x996   : > { %2154 = vrot.lane.b32.xlu0 %v4864_v11, %s3172_s14 }
 0x99a   : > { %2158 = vrot.lane.b32.xlu0 %v4865_v29, %s3172_s14 }
 0x99e   : > { %2162 = vrot.lane.b32.xlu0 %v4866_v40, %s3172_s14 }
 0x9a2   : > { %2166 = vrot.lane.b32.xlu0 %v4867_v45, %s3172_s14 }
 0x9a6   : > { %2202 = vrot.lane.b32.xlu0 %v4268_v9, %s3171_s13 }
 0x9a8   : > { %v1934_v50 = vpop.xlane.xlu1 %1933 }
 0x9aa   : > { %2206 = vrot.lane.b32.xlu0 %v4266_v57, %s3171_s13 }
 0x9ac   : > { %v1930_v51 = vpop.xlane.xlu1 %1929 }
 0x9ad   : > { %3130 = vrcp.f32 %v1930_v51 }
 0x9ae   : > { %2210 = vrot.lane.b32.xlu0 %v4276_v62, %s3171_s13 }
 0x9b0   : > { %v1936_v52 = vpop.xlane.xlu1 %1935 }
 0x9b2   : > { %2214 = vrot.lane.b32.xlu0 %v4274_v14, %s3171_s13 }
 0x9b4   : > { %v1942_v23 = vpop.xlane.xlu0 %1941  ;;  %v1932_v38 = vpop.xlane.xlu1 %1931 }
 0x9b5   : > { %3132 = vrcp.f32 %v1932_v38 }
 0x9b6   : > { %2218 = vrot.lane.b32.xlu0 %v4284_v39, %s3171_s13  ;;  %3134 = vrcp.f32 %v1936_v52  ;;  %v4871_v52 = vld [vmem:[#allocation36_spill] sm:$0xff] }
 0x9b7   : > { %v3131_v61 = vpop.eup %3130 }
 0x9b8   : > { %v1938_v9 = vpop.xlane.xlu0 %1937  ;;  %v1940_v57 = vpop.xlane.xlu1 %1939  ;;  %v1977_v6 = vmul.f32 %v3131_v61, %v4399_v43 }
 0x9b9   : > { %3136 = vrcp.f32 %v1938_v9  ;;  %v4872_v9 = vld [vmem:[#allocation35_spill] sm:$0xff] }
 0x9ba   : > { %2222 = vrot.lane.b32.xlu0 %v4282_v33, %s3171_s13  ;;  %3138 = vrcp.f32 %v1940_v57 }
 0x9bb   : > { %3140 = vrcp.f32 %v1934_v50 }
 0x9bc   : > { %v1944_v2 = vpop.xlane.xlu0 %1943 }
 0x9bd   : > { %3142 = vrcp.f32 %v1944_v2 }
 0x9be   : > { %2226 = vrot.lane.b32.xlu0 %v4292_v4, %s3171_s13 }
 0x9bf   : > { %v3133_v62 = vpop.eup %3132 }
 0x9c0   : > { %v1950_v42 = vpop.xlane.xlu0 %1949  ;;  %v1946_v14 = vpop.xlane.xlu1 %1945  ;;  %v1978_v20 = vmul.f32 %v3133_v62, %v4408_v5 }
 0x9c1   : > { %v3135_v22 = vpop.eup %3134 }
 0x9c2   : > { %2230 = vrot.lane.b32.xlu0 %v4290_v46, %s3171_s13  ;;  %v1993_v33 = vpack.c.bf16 %v1978_v20, %v1977_v6  ;;  %v1980_v32 = vmul.f32 %v3135_v22, %v4403_v13 }
 0x9c3   : > { %v3137_v58 = vpop.eup %3136 }
 0x9c4   : > { %v1952_v39 = vpop.xlane.xlu0 %1951  ;;  %v4522_v26 = vpop.xlane.xlu1 %1957  ;;  %2846 = vmatprep.mubr.bf16.mxu0 %v1993_v33  ;;  %v1981_v47 = vmul.f32 %v3137_v58, %v4418_v3 }
 0x9c5   : > { %v3139_v34 = vpop.eup %3138 }
 0x9c6   : > { %v3141_v46 = vpop.eup %3140  ;;  %v1982_v8 = vmul.f32 %v3139_v34, %v4416_v37 }
 0x9c7   : > { %v1979_v63 = vmul.f32 %v3141_v46, %v4394_v0  ;;  %v3143_v48 = vpop.eup %3142 }
 0x9c8   : > { %v1948_v4 = vpop.xlane.xlu0 %1947  ;;  %v1954_v10 = vpop.xlane.xlu1 %1953  ;;  %v1995_v13 = vpack.c.bf16 %v1982_v8, %v1981_v47  ;;  %v1984_v37 = vmul.f32 %v3143_v48, %v4423_v21 }
 0x9c9   : > { %3144 = vrcp.f32 %v1948_v4  ;;  %v1994_v7 = vpack.c.bf16 %v1980_v32, %v1979_v63  ;;  %v4874_v63 = vld [vmem:[#allocation30_spill] sm:$0xff] }
 0x9ca   : > { %3146 = vrcp.f32 %v1942_v23 }
 0x9cb   : > { %3148 = vrcp.f32 %v1946_v14 }
 0x9cc   : > { %v2014_v43 = vpop.permute.xlu0 %2013  ;;  %v2016_v5 = vpop.permute.xlu1 %2015  ;;  %3150 = vrcp.f32 %v1952_v39 }
 0x9cd   : > { %2842 = vmatprep.subr.bf16.mxu0 %v2014_v43  ;;  %3152 = vrcp.f32 %v1950_v42 }
 0x9ce   : > { %2843 = vmatpush3.bf16.msra.mxu0 %v2014_v43  ;;  %3154 = vrcp.f32 %v1954_v10  ;;  %v4873_v43 = vld [vmem:[#allocation26_spill] sm:$0xff] }
 0x9cf   : > { %2844 = vmatprep.subr.bf16.mxu0 %v2016_v5 }
 0x9d0   : > { %v2141_v17 = vpop.permute.xlu1 %2140 }
 0x9d1   : > { %v4530_v16 = vsel %vm225_vm0, %v4868_v12, %v2141_v17 }
 0x9d2   : > { %2845 = vmatpush3.bf16.msra.mxu0 %v2016_v5 }
 0x9d3   : > { %v3145_v15 = vpop.eup %3144 }
 0x9d4   : > { %v4532_v54 = vpop.permute.xlu1 %2142  ;;  %v3147_v19 = vpop.eup %3146  ;;  %v1986_v24 = vmul.f32 %v3145_v15, %v4438_v18 }
 0x9d5   : > { %2847 = vmatmul.mubr.bf16.vlgmr.msra.gmra.mrb[48].mxu0 %v1994_v7  ;;  %v3149_v3 = vpop.eup %3148  ;;  %v1983_v49 = vmul.f32 %v3147_v19, %v4410_v36 }
 0x9d6   : > { %2850 = vmatprep.mubr.bf16.mxu0 %v1995_v13  ;;  %v1985_v28 = vmul.f32 %v3149_v3, %v4428_v53  ;;  %v3151_v59 = vpop.eup %3150  ;;  %v4870_v53 = vld [vmem:[#allocation32_spill] sm:$0xff]  ;;  %v4875_v13 = vld [vmem:[#allocation34_spill] sm:$0xff]  ;;  %v4876_v3 = vld [vmem:[#allocation33_spill] sm:$0xff] }
 0x9d7   : > { %v1996_v41 = vpack.c.bf16 %v1984_v37, %v1983_v49  ;;  %v3153_v11 = vpop.eup %3152  ;;  %v1988_v21 = vmul.f32 %v3151_v59, %v4432_v31 }
 0x9d8   : > { %v4535_v0 = vpop.permute.xlu1 %2144  ;;  %v1997_v44 = vpack.c.bf16 %v1986_v24, %v1985_v28  ;;  %v1987_v18 = vmul.f32 %v3153_v11, %v4426_v35  ;;  %v3155_v20 = vpop.eup %3154 }
 0x9d9   : > { %v1989_v10 = vmul.f32 %v3155_v20, %v4440_v30 }
 0x9da   : > { %v1998_v36 = vpack.c.bf16 %v1988_v21, %v1987_v18 }
 0x9dc   : > { %v2149_v1 = vpop.permute.xlu1 %2148 }
 0x9dd   : > { %v4542_v60 = vsel %vm225_vm0, %v4869_v56, %v2149_v1  ;;  %2851 = vmatmul.mubr.bf16.gmra.mrb[52].mxu0 %v1996_v41 }
 0x9de   : > { %2854 = vmatprep.mubr.bf16.mxu0 %v1997_v44 }
 0x9e0   : > { %v4545_v29 = vpop.permute.xlu1 %2152 }
 0x9e4   : > { %v2157_v40 = vpop.permute.xlu1 %2156 }
 0x9e5   : > { %v4550_v45 = vsel %vm225_vm0, %v4870_v53, %v2157_v40  ;;  %2855 = vmatmul.mubr.bf16.gmra.mrb[56].mxu0 %v1998_v36 }
 0x9e8   : > { %v4552_v50 = vpop.permute.xlu1 %2160 }
 0x9ec   : > { %v2165_v51 = vpop.permute.xlu1 %2164 }
 0x9ed   : > { %v2327_v23 = vsel %vm225_vm0, %v4871_v52, %v2165_v51 }
 0x9f0   : > { %v2169_v38 = vpop.permute.xlu1 %2168 }
 0x9f1   : > { %v4558_v31 = vsel %vm225_vm0, %v4872_v9, %v2169_v38 }
 0x9f4   : > { %v4560_v57 = vpop.permute.xlu1 %2204 }
 0x9f8   : > { %v4562_v35 = vpop.permute.xlu1 %2208 }
 0x9fc   : > { %v4564_v2 = vpop.permute.xlu1 %2212 }
 0x9fd   : > { %v1956_v61 = vpop.xlane.xlu0 %1955 }
 0x9fe   : > { %3156 = vrcp.f32 %v1956_v61 }
 0x9ff   : > { %3158 = vrcp.f32 %v4522_v26 }
 0xa00   : > { %v4567_v62 = vpop.permute.xlu1 %2216 }
 0xa01   : > { %v1960_v42 = vpop.xlane.xlu0 %1959 }
 0xa02   : > { %3160 = vrcp.f32 %v1960_v42 }
 0xa04   : > { %v4569_v14 = vpop.permute.xlu1 %2220 }
 0xa05   : > { %v4571_v6 = vpop.permute.xlu0 %2138 }
 0xa08   : > { %v3157_v33 = vpop.eup %3156  ;;  %v4573_v39 = vpop.permute.xlu1 %2224 }
 0xa09   : > { %v2147_v4 = vpop.permute.xlu0 %2146  ;;  %v1990_v22 = vmul.f32 %v3157_v33, %v4466_v25  ;;  %v3159_v58 = vpop.eup %3158 }
 0xa0a   : > { %v4579_v26 = vsel %vm225_vm0, %v4873_v43, %v2147_v4  ;;  %v1991_v47 = vmul.f32 %v3159_v58, %v4434_v27 }
 0xa0b   : > { %v1999_v5 = vpack.c.bf16 %v1990_v22, %v1989_v10  ;;  %v4877_v10 = vld [vmem:[#allocation21_spill] sm:$0xff] }
 0xa0c   : > { %v3161_v34 = vpop.eup %3160  ;;  %v2229_v46 = vpop.permute.xlu1 %2228  ;;  %v2316_v22 = vsel %vm225_vm0, %v4877_v10, %v4532_v54 }
 0xa0d   : > { %v4582_v32 = vsel %vm2330_vm3, %v2327_v23, %v2229_v46  ;;  %v4584_v17 = vpop.permute.xlu0 %2150  ;;  %2858 = vmatprep.mubr.bf16.mxu0 %v1999_v5  ;;  %v1992_v30 = vmul.f32 %v3161_v34, %v4471_v55  ;;  %v4878_v5 = vld [vmem:[#allocation23_spill] sm:$0xff] }
 0xa0e   : > { %v2317_v34 = vsel %vm225_vm0, %v4878_v5, %v4535_v0 }
 0xa0f   : > { %v2000_v25 = vpack.c.bf16 %v1992_v30, %v1991_v47  ;;  %v2334_v54 = vsel %vm2330_vm3, %v2317_v34, %v4562_v35  ;;  %v4879_v30 = vld [vmem:[#allocation22_spill] sm:$0xff]  ;;  %v2332_v35 = vsel %vm2330_vm3, %v4530_v16, %v4560_v57 }
 0xa10   : > { %v4628_v4 = vpop.permute.xlu1 %2232 }
 0xa11   : > { %v2155_v8 = vpop.permute.xlu0 %2154  ;;  %2859 = vmatmul.mubr.bf16.gmra.mrb[60].mxu0 %v2000_v25  ;;  %v2314_v25 = vsel %vm225_vm0, %v4879_v30, %v4571_v6 }
 0xa12   : > { %v4590_v12 = vsel %vm225_vm0, %v4874_v63, %v2155_v8 }
 0xa15   : > { %v4592_v7 = vpop.permute.xlu0 %2158 }
 0xa19   : > { %v2163_v48 = vpop.permute.xlu0 %2162 }
 0xa1a   : > { %v2326_v15 = vsel %vm225_vm0, %v4875_v13, %v2163_v48 }
 0xa1d   : > { %v2167_v19 = vpop.permute.xlu0 %2166 }
 0xa1e   : > { %v4598_v37 = vsel %vm225_vm0, %v4876_v3, %v2167_v19 }
 0xa21   : > { %v2203_v27 = vpop.permute.xlu0 %2202 }
 0xa22   : > { %v2331_v63 = vsel %vm2330_vm3, %v2314_v25, %v2203_v27 }
 0xa25   : > { %v2207_v55 = vpop.permute.xlu0 %2206 }
 0xa26   : > { %v2333_v58 = vsel %vm2330_vm3, %v2316_v22, %v2207_v55  ;;  %v4881_v55 = vld [vmem:[#allocation27_spill] sm:$0xff] }
 0xa29   : > { %v4600_v24 = vpop.permute.xlu0 %2210 }
 0xa2d   : > { %v2215_v49 = vpop.permute.xlu0 %2214 }
 0xa31   : > { %v4602_v28 = vpop.permute.xlu0 %2218 }
 0xa35   : > { %v4604_v41 = vpop.permute.xlu0 %2222 }
 0xa39   : > { %v2227_v59 = vpop.permute.xlu0 %2226 }
 0xa3a   : > { %v4607_v1 = vsel %vm2330_vm3, %v2326_v15, %v2227_v59  ;;  %v4880_v15 = vld [vmem:[#allocation25_spill] sm:$0xff]  ;;  %v2321_v59 = vsel %vm225_vm0, %v4881_v55, %v4545_v29  ;;  %v2336_v29 = vsel %vm2330_vm3, %v4542_v60, %v4564_v2 }
 0xa3b   : > { %v2320_v6 = vsel %vm225_vm0, %v4880_v15, %v4584_v17  ;;  %v2338_v57 = vsel %vm2330_vm3, %v2321_v59, %v4567_v62 }
 0xa3c   : > { %v2337_v3 = vsel %vm2330_vm3, %v2320_v6, %v2215_v49  ;;  %v2335_v49 = vsel %vm2330_vm3, %v4579_v26, %v4600_v24 }
 0xa3d   : > { %v4625_v33 = vpop.permute.xlu0 %2230 }
 0xaa8   : > { %v2848_v44 = vpop.f32.mrb[48].mxu0 }
 0xaa9   : > { %2270 = vrot.lane.b32.xlu0 %v2848_v44, %s3170_s12  ;;  %v2059_v56 = vpop.f32.mrb[49].mxu0 }
 0xaaa   : > { %v2849_v11 = vpop.f32.mrb[50].mxu0 }
 0xaab   : > { %2272 = vrot.lane.b32.xlu1 %v2849_v11, %s3170_s12  ;;  %v2062_v21 = vpop.f32.mrb[51].mxu0 }
 0xaad   : > { %2266 = vrot.lane.b32.xlu0 %v2059_v56, %s3170_s12 }
 0xaaf   : > { %2268 = vrot.lane.b32.xlu1 %v2062_v21, %s3170_s12  ;;  %v4882_v21 = vld [vmem:[#allocation29_spill] sm:$0xff] }
 0xab0   : > { %v2852_v18 = vpop.f32.mrb[52].mxu0 }
 0xab1   : > { %2278 = vrot.lane.b32.xlu0 %v2852_v18, %s3170_s12  ;;  %v2075_v36 = vpop.f32.mrb[53].mxu0  ;;  %v2324_v18 = vsel %vm225_vm0, %v4882_v21, %v4592_v7 }
 0xab2   : > { %v2853_v40 = vpop.f32.mrb[54].mxu0  ;;  %v2341_v26 = vsel %vm2330_vm3, %v2324_v18, %v4604_v41  ;;  %v2339_v41 = vsel %vm2330_vm3, %v4590_v12, %v4602_v28 }
 0xab3   : > { %2280 = vrot.lane.b32.xlu1 %v2853_v40, %s3170_s12  ;;  %v2078_v53 = vpop.f32.mrb[55].mxu0  ;;  %v4883_v40 = vld [vmem:[#allocation31_spill] sm:$0xff] }
 0xab5   : > { %2274 = vrot.lane.b32.xlu0 %v2075_v36, %s3170_s12 }
 0xab7   : > { %2276 = vrot.lane.b32.xlu1 %v2078_v53, %s3170_s12  ;;  %v2325_v53 = vsel %vm225_vm0, %v4883_v40, %v4552_v50  ;;  %v2340_v50 = vsel %vm2330_vm3, %v4550_v45, %v4569_v14 }
 0xab8   : > { %v2856_v51 = vpop.f32.mrb[56].mxu0  ;;  %v2342_v2 = vsel %vm2330_vm3, %v2325_v53, %v4573_v39 }
 0xab9   : > { %2286 = vrot.lane.b32.xlu0 %v2856_v51, %s3170_s12  ;;  %v2091_v52 = vpop.f32.mrb[57].mxu0 }
 0xaba   : > { %v2857_v23 = vpop.f32.mrb[58].mxu0 }
 0xabb   : > { %2288 = vrot.lane.b32.xlu1 %v2857_v23, %s3170_s12  ;;  %v2094_v38 = vpop.f32.mrb[59].mxu0 }
 0xabd   : > { %2282 = vrot.lane.b32.xlu0 %v2091_v52, %s3170_s12 }
 0xabf   : > { %2284 = vrot.lane.b32.xlu1 %v2094_v38, %s3170_s12 }
 0xae4   : > { %v2860_v9 = vpop.f32.mrb[60].mxu0 }
 0xae5   : > { %v2107_v61 = vpop.f32.mrb[61].mxu0 }
 0xae6   : > { %2290 = vrot.lane.b32.xlu0 %v2107_v61, %s3170_s12  ;;  %v2861_v42 = vpop.f32.mrb[62].mxu0 }
 0xae7   : > { %v2110_v20 = vpop.f32.mrb[63].mxu0 }
 0xae8   : > { %2292 = vrot.lane.b32.xlu1 %v2110_v20, %s3170_s12  ;;  %v2346_v20 = vsel %vm2330_vm3, %v4558_v31, %v4628_v4 }
 0xaea   : > { %2294 = vrot.lane.b32.xlu0 %v2860_v9, %s3170_s12 }
 0xaec   : > { %2296 = vrot.lane.b32.xlu1 %v2861_v42, %s3170_s12  ;;  %v2345_v42 = vsel %vm2330_vm3, %v4598_v37, %v4625_v33 }
 0xb1b   : > { %v2271_v43 = vpop.permute.xlu0 %2270 }
 0xb1c   : > { %v2350_v46 = vsel %vm2347_vm4, %v2333_v58, %v2271_v43 }
 0xb1d   : > { %2366 = vst [vmem:[%s4636_s18 + $0x10] sm:$0xff] %v2350_v46  ;;  %v2273_v47 = vpop.permute.xlu1 %2272 }
 0xb1e   : > { %v2351_v8 = vsel %vm2347_vm4, %v2334_v54, %v2273_v47 }
 0xb1f   : > { %2367 = vst [vmem:[%s4636_s18 + $0x18] sm:$0xff] %v2351_v8  ;;  %v2267_v48 = vpop.permute.xlu0 %2266 }
 0xb20   : > { %v2348_v0 = vsel %vm2347_vm4, %v2331_v63, %v2267_v48 }
 0xb21   : > { %2364 = vst [vmem:[%s4636_s18] sm:$0xff] %v2348_v0  ;;  %v2269_v13 = vpop.permute.xlu1 %2268 }
 0xb22   : > { %v2349_v19 = vsel %vm2347_vm4, %v2332_v35, %v2269_v13 }
 0xb23   : > { %2365 = vst [vmem:[%s4636_s18 + $0x8] sm:$0xff] %v2349_v19  ;;  %v2279_v27 = vpop.permute.xlu0 %2278 }
 0xb24   : > { %v2354_v16 = vsel %vm2347_vm4, %v2337_v3, %v2279_v27 }
 0xb25   : > { %2370 = vst [vmem:[%s4636_s18 + $0x30] sm:$0xff] %v2354_v16  ;;  %v2281_v44 = vpop.permute.xlu1 %2280 }
 0xb26   : > { %v2355_v17 = vsel %vm2347_vm4, %v2338_v57, %v2281_v44 }
 0xb27   : > { %2371 = vst [vmem:[%s4636_s18 + $0x38] sm:$0xff] %v2355_v17  ;;  %v2275_v56 = vpop.permute.xlu0 %2274 }
 0xb28   : > { %v2352_v11 = vsel %vm2347_vm4, %v2335_v49, %v2275_v56 }
 0xb29   : > { %2368 = vst [vmem:[%s4636_s18 + $0x20] sm:$0xff] %v2352_v11  ;;  %v2277_v62 = vpop.permute.xlu1 %2276 }
 0xb2a   : > { %v2353_v36 = vsel %vm2347_vm4, %v2336_v29, %v2277_v62 }
 0xb2b   : > { %2369 = vst [vmem:[%s4636_s18 + $0x28] sm:$0xff] %v2353_v36  ;;  %v2287_v24 = vpop.permute.xlu0 %2286 }
 0xb2c   : > { %v2358_v60 = vsel %vm2347_vm4, %v2341_v26, %v2287_v24 }
 0xb2d   : > { %2374 = vst [vmem:[%s4636_s18 + $0x50] sm:$0xff] %v2358_v60  ;;  %v2289_v7 = vpop.permute.xlu1 %2288 }
 0xb2e   : > { %v2359_v51 = vsel %vm2347_vm4, %v2342_v2, %v2289_v7 }
 0xb2f   : > { %2375 = vst [vmem:[%s4636_s18 + $0x58] sm:$0xff] %v2359_v51  ;;  %v2283_v52 = vpop.permute.xlu0 %2282 }
 0xb30   : > { %v2356_v23 = vsel %vm2347_vm4, %v2339_v41, %v2283_v52 }
 0xb31   : > { %2372 = vst [vmem:[%s4636_s18 + $0x40] sm:$0xff] %v2356_v23  ;;  %v2285_v39 = vpop.permute.xlu1 %2284 }
 0xb32   : > { %v2357_v38 = vsel %vm2347_vm4, %v2340_v50, %v2285_v39 }
 0xb33   : > { %2373 = vst [vmem:[%s4636_s18 + $0x48] sm:$0xff] %v2357_v38 }
 0xb58   : > { %v2291_v9 = vpop.permute.xlu0 %2290 }
 0xb59   : > { %v2360_v61 = vsel %vm2347_vm4, %v4607_v1, %v2291_v9 }
 0xb5a   : > { %2376 = vst [vmem:[%s4636_s18 + $0x60] sm:$0xff] %v2360_v61  ;;  %v2293_v12 = vpop.permute.xlu1 %2292 }
 0xb5b   : > { %v2361_v28 = vsel %vm2347_vm4, %v4582_v32, %v2293_v12 }
 0xb5c   : > { %2377 = vst [vmem:[%s4636_s18 + $0x68] sm:$0xff] %v2361_v28  ;;  %v2295_v45 = vpop.permute.xlu0 %2294 }
 0xb5d   : > { %v2362_v14 = vsel %vm2347_vm4, %v2345_v42, %v2295_v45 }
 0xb5e   : > { %2378 = vst [vmem:[%s4636_s18 + $0x70] sm:$0xff] %v2362_v14  ;;  %v2297_v10 = vpop.permute.xlu1 %2296 }
 0xb5f   : > { %v2363_v1 = vsel %vm2347_vm4, %v2346_v20, %v2297_v10 }
 0xb60   : > { %2379 = vst [vmem:[%s4636_s18 + $0x78] sm:$0xff] %v2363_v1 }
 0xb61 PF: > { %s11_s6 = sadd.s32 1, %s3168_s6  }
 0xb62   : > { %p8_p4 = scmp.ge.s32.totalorder %s11_s6, 4  }
 0xb64   :  { %10 = sbr.rel (!%p8_p4) target bundleno = 1 (0x1), region = 54 }

// kernel: transformer_lm_forward.22
= control target key start
LH: loop header
LB: loop body
LE: loop exit
PB: predicated region body
PF: predicated region fallthrough
CT: control target
= control target key end

     0   :  { %s446_s9 = smov 0   ;;  %s607_s0 = inlined_call_operand.vmem [shape: f32[256,128], index: 0, kind: input, shape index: {}]   ;;  %s608_s1 = inlined_call_operand.vmem [shape: f32[1,128], index: 1, kind: input, shape index: {}]   ;;  %s609_s2 = inlined_call_operand.vmem [shape: f32[256,128], index: 2, kind: output, shape index: {}]  }
   0x1 LB: > { %s371_s10 = sadd.s32 4294967295, %s429_s9   ;;  %p375_p0 = scmp.ge.s32.totalorder %s429_s9, 1  ;;  %s429_s9 = sphi %s446_s9, %s12_s9  }
   0x2   : > { %p113_p1 = scmp.lt.s32.totalorder %s429_s9, 3 }
   0x4   : > { %p114_p2 = pnand %p375_p0, %p113_p1 }
   0x5   : > { %s376_s11 = sshll.u32 (!%p114_p2), %s371_s10, 4  ;;  %v547_v55 = vld [vmem:[%s608_s1] ss:$0 sm:$0xff] (!%p114_p2) }
   0x6   : > { %117 = sbr.rel (%p114_p2) target bundleno = 210 (0xd2), region = 28  ;;  %p136_p3 = scmp.lt.s32.totalorder (!%p114_p2), %s376_s11, 31 }
   0xd   : > { %s611_s11 = smov (!%p136_p3, %s376_s11), 31 }
   0xe   : > { %s377_s12 = sshll.u32 %s611_s11, 3 }
   0xf   : > { %s462_s15 = scalar_lea.vmem %s607_s0, %s377_s12  ;;  %s555_s20 = scalar_lea.vmem %s609_s2, %s377_s12 }
  0x10   : > { %v465_v0 = vld [vmem:[%s462_s15 + $0x10] sm:$0xff]  ;;  %v468_v1 = vld [vmem:[%s462_s15] sm:$0xff]  ;;  %v471_v2 = vld [vmem:[%s462_s15 + $0x18] sm:$0xff] }
  0x11   : > { %v165_v3 = vmul.f32 %v465_v0, %v465_v0  ;;  %v163_v4 = vmul.f32 %v468_v1, %v468_v1  ;;  %v478_v5 = vld [vmem:[%s462_s15 + $0x8] sm:$0xff]  ;;  %v166_v6 = vmul.f32 %v471_v2, %v471_v2  ;;  %v488_v9 = vld [vmem:[%s462_s15 + $0x20] sm:$0xff]  ;;  %v495_v12 = vld [vmem:[%s462_s15 + $0x38] sm:$0xff] }
  0x12   : > { %v164_v7 = vmul.f32 %v478_v5, %v478_v5  ;;  %v485_v8 = vld [vmem:[%s462_s15 + $0x28] sm:$0xff]  ;;  %v167_v11 = vmul.f32 %v488_v9, %v488_v9  ;;  %v498_v13 = vld [vmem:[%s462_s15 + $0x30] sm:$0xff]  ;;  %v170_v14 = vmul.f32 %v495_v12, %v495_v12  ;;  %v508_v17 = vld [vmem:[%s462_s15 + $0x40] sm:$0xff] }
  0x13   : > { %183 = vadd.xlane.f32.xlu1 %v165_v3  ;;  %179 = vadd.xlane.f32.xlu0 %v163_v4  ;;  %v168_v10 = vmul.f32 %v485_v8, %v485_v8  ;;  %v169_v15 = vmul.f32 %v498_v13, %v498_v13  ;;  %v505_v16 = vld [vmem:[%s462_s15 + $0x48] sm:$0xff]  ;;  %v171_v19 = vmul.f32 %v508_v17, %v508_v17  ;;  %v515_v20 = vld [vmem:[%s462_s15 + $0x58] sm:$0xff]  ;;  %v518_v21 = vld [vmem:[%s462_s15 + $0x50] sm:$0xff] }
  0x14   : > { %v172_v18 = vmul.f32 %v505_v16, %v505_v16  ;;  %v174_v22 = vmul.f32 %v515_v20, %v515_v20  ;;  %v173_v23 = vmul.f32 %v518_v21, %v518_v21  ;;  %v525_v24 = vld [vmem:[%s462_s15 + $0x68] sm:$0xff]  ;;  %v528_v25 = vld [vmem:[%s462_s15 + $0x60] sm:$0xff]  ;;  %v535_v28 = vld [vmem:[%s462_s15 + $0x78] sm:$0xff] }
  0x15   : > { %v176_v26 = vmul.f32 %v525_v24, %v525_v24  ;;  %v175_v27 = vmul.f32 %v528_v25, %v528_v25  ;;  %v538_v29 = vld [vmem:[%s462_s15 + $0x70] sm:$0xff]  ;;  %v178_v30 = vmul.f32 %v535_v28, %v535_v28 }
  0x16   : > { %v177_v31 = vmul.f32 %v538_v29, %v538_v29 }
  0x17   : > { %185 = vadd.xlane.f32.xlu1 %v166_v6  ;;  %181 = vadd.xlane.f32.xlu0 %v164_v7 }
  0x1b   : > { %189 = vadd.xlane.f32.xlu1 %v168_v10  ;;  %187 = vadd.xlane.f32.xlu0 %v167_v11 }
  0x1f   : > { %193 = vadd.xlane.f32.xlu1 %v170_v14  ;;  %191 = vadd.xlane.f32.xlu0 %v169_v15 }
  0x23   : > { %197 = vadd.xlane.f32.xlu1 %v172_v18  ;;  %195 = vadd.xlane.f32.xlu0 %v171_v19 }
  0x27   : > { %201 = vadd.xlane.f32.xlu1 %v174_v22  ;;  %199 = vadd.xlane.f32.xlu0 %v173_v23 }
  0x2b   : > { %205 = vadd.xlane.f32.xlu1 %v176_v26  ;;  %203 = vadd.xlane.f32.xlu0 %v175_v27 }
  0x2f   : > { %209 = vadd.xlane.f32.xlu1 %v178_v30  ;;  %207 = vadd.xlane.f32.xlu0 %v177_v31 }
  0xa0   : > { %v184_v32 = vpop.xlane.xlu1 %183  ;;  %v180_v33 = vpop.xlane.xlu0 %179 }
  0xa1   : > { %v214_v34 = vmul.f32 0.0078125, %v184_v32  ;;  %v212_v35 = vmul.f32 0.0078125, %v180_v33 }
  0xa3   : > { %v230_v36 = vadd.f32 1.1920929e-07, %v214_v34  ;;  %v228_v37 = vadd.f32 1.1920929e-07, %v212_v35 }
  0xa4   : > { %v186_v38 = vpop.xlane.xlu1 %185  ;;  %v182_v39 = vpop.xlane.xlu0 %181 }
  0xa5   : > { %391 = vrsqrt.f32 %v230_v36  ;;  %v215_v40 = vmul.f32 0.0078125, %v186_v38  ;;  %v213_v41 = vmul.f32 0.0078125, %v182_v39 }
  0xa6   : > { %393 = vrsqrt.f32 %v228_v37 }
  0xa7   : > { %v231_v42 = vadd.f32 1.1920929e-07, %v215_v40  ;;  %v229_v43 = vadd.f32 1.1920929e-07, %v213_v41 }
  0xa8   : > { %v190_v44 = vpop.xlane.xlu1 %189  ;;  %v188_v45 = vpop.xlane.xlu0 %187 }
  0xa9   : > { %395 = vrsqrt.f32 %v231_v42  ;;  %v217_v46 = vmul.f32 0.0078125, %v190_v44  ;;  %v216_v47 = vmul.f32 0.0078125, %v188_v45 }
  0xaa   : > { %397 = vrsqrt.f32 %v229_v43 }
  0xab   : > { %v233_v48 = vadd.f32 1.1920929e-07, %v217_v46  ;;  %v232_v49 = vadd.f32 1.1920929e-07, %v216_v47 }
  0xac   : > { %v194_v50 = vpop.xlane.xlu1 %193  ;;  %v192_v51 = vpop.xlane.xlu0 %191 }
  0xad   : > { %399 = vrsqrt.f32 %v233_v48  ;;  %v219_v52 = vmul.f32 0.0078125, %v194_v50  ;;  %v218_v53 = vmul.f32 0.0078125, %v192_v51 }
  0xae   : > { %401 = vrsqrt.f32 %v232_v49 }
  0xaf   : > { %v392_v54 = vpop.eup %391  ;;  %v235_v56 = vadd.f32 1.1920929e-07, %v219_v52  ;;  %v234_v57 = vadd.f32 1.1920929e-07, %v218_v53 }
  0xb0   : > { %v394_v58 = vpop.eup %393  ;;  %v262_v59 = vmul.f32 %v392_v54, %v465_v0  ;;  %v198_v60 = vpop.xlane.xlu1 %197 }
  0xb1   : > { %v196_v61 = vpop.xlane.xlu0 %195  ;;  %v260_v62 = vmul.f32 %v394_v58, %v468_v1  ;;  %403 = vrsqrt.f32 %v235_v56  ;;  %v221_v63 = vmul.f32 0.0078125, %v198_v60 }
  0xb2   : > { %v220_v3 = vmul.f32 0.0078125, %v196_v61  ;;  %v285_v4 = vmul.f32 %v547_v55, %v262_v59  ;;  %405 = vrsqrt.f32 %v234_v57 }
  0xb3   : > { %v396_v6 = vpop.eup %395  ;;  %v283_v0 = vmul.f32 %v547_v55, %v260_v62  ;;  %v237_v7 = vadd.f32 1.1920929e-07, %v221_v63 }
  0xb4   : > { %v236_v10 = vadd.f32 1.1920929e-07, %v220_v3  ;;  %v398_v11 = vpop.eup %397  ;;  %301 = vst [vmem:[%s555_s20 + $0x10] sm:$0xff] %v285_v4  ;;  %v263_v14 = vmul.f32 %v396_v6, %v471_v2  ;;  %v202_v15 = vpop.xlane.xlu1 %201 }
  0xb5   : > { %v200_v18 = vpop.xlane.xlu0 %199  ;;  %299 = vst [vmem:[%s555_s20] sm:$0xff] %v283_v0  ;;  %v261_v1 = vmul.f32 %v398_v11, %v478_v5  ;;  %407 = vrsqrt.f32 %v237_v7  ;;  %v223_v19 = vmul.f32 0.0078125, %v202_v15 }
  0xb6   : > { %v222_v22 = vmul.f32 0.0078125, %v200_v18  ;;  %v286_v23 = vmul.f32 %v547_v55, %v263_v14  ;;  %409 = vrsqrt.f32 %v236_v10 }
  0xb7   : > { %v400_v26 = vpop.eup %399  ;;  %v284_v27 = vmul.f32 %v547_v55, %v261_v1  ;;  %v239_v30 = vadd.f32 1.1920929e-07, %v223_v19 }
  0xb8   : > { %v238_v31 = vadd.f32 1.1920929e-07, %v222_v22  ;;  %v402_v32 = vpop.eup %401  ;;  %302 = vst [vmem:[%s555_s20 + $0x18] sm:$0xff] %v286_v23  ;;  %v265_v2 = vmul.f32 %v400_v26, %v485_v8  ;;  %v206_v33 = vpop.xlane.xlu1 %205 }
  0xb9   : > { %v204_v34 = vpop.xlane.xlu0 %203  ;;  %300 = vst [vmem:[%s555_s20 + $0x8] sm:$0xff] %v284_v27  ;;  %v264_v5 = vmul.f32 %v402_v32, %v488_v9  ;;  %411 = vrsqrt.f32 %v239_v30  ;;  %v225_v35 = vmul.f32 0.0078125, %v206_v33 }
  0xba   : > { %v224_v36 = vmul.f32 0.0078125, %v204_v34  ;;  %v288_v37 = vmul.f32 %v547_v55, %v265_v2  ;;  %413 = vrsqrt.f32 %v238_v31 }
  0xbb   : > { %v404_v38 = vpop.eup %403  ;;  %v287_v39 = vmul.f32 %v547_v55, %v264_v5  ;;  %v241_v40 = vadd.f32 1.1920929e-07, %v225_v35 }
  0xbc   : > { %v240_v41 = vadd.f32 1.1920929e-07, %v224_v36  ;;  %v406_v42 = vpop.eup %405  ;;  %304 = vst [vmem:[%s555_s20 + $0x28] sm:$0xff] %v288_v37  ;;  %v267_v8 = vmul.f32 %v404_v38, %v495_v12  ;;  %v210_v43 = vpop.xlane.xlu1 %209 }
  0xbd   : > { %v208_v44 = vpop.xlane.xlu0 %207  ;;  %303 = vst [vmem:[%s555_s20 + $0x20] sm:$0xff] %v287_v39  ;;  %v266_v9 = vmul.f32 %v406_v42, %v498_v13  ;;  %415 = vrsqrt.f32 %v241_v40  ;;  %v227_v45 = vmul.f32 0.0078125, %v210_v43 }
  0xbe   : > { %v226_v46 = vmul.f32 0.0078125, %v208_v44  ;;  %v290_v47 = vmul.f32 %v547_v55, %v267_v8  ;;  %417 = vrsqrt.f32 %v240_v41 }
  0xbf   : > { %v408_v48 = vpop.eup %407  ;;  %v289_v49 = vmul.f32 %v547_v55, %v266_v9  ;;  %v243_v50 = vadd.f32 1.1920929e-07, %v227_v45 }
  0xc0   : > { %v242_v51 = vadd.f32 1.1920929e-07, %v226_v46  ;;  %v410_v12 = vpop.eup %409  ;;  %306 = vst [vmem:[%s555_s20 + $0x38] sm:$0xff] %v290_v47  ;;  %v269_v52 = vmul.f32 %v408_v48, %v505_v16 }
  0xc1   : > { %305 = vst [vmem:[%s555_s20 + $0x30] sm:$0xff] %v289_v49  ;;  %v268_v13 = vmul.f32 %v410_v12, %v508_v17  ;;  %419 = vrsqrt.f32 %v243_v50 }
  0xc2   : > { %v292_v53 = vmul.f32 %v547_v55, %v269_v52  ;;  %421 = vrsqrt.f32 %v242_v51 }
  0xc3   : > { %v412_v54 = vpop.eup %411  ;;  %v291_v56 = vmul.f32 %v547_v55, %v268_v13 }
  0xc4   : > { %v414_v57 = vpop.eup %413  ;;  %308 = vst [vmem:[%s555_s20 + $0x48] sm:$0xff] %v292_v53  ;;  %v271_v58 = vmul.f32 %v412_v54, %v515_v20 }
  0xc5   : > { %307 = vst [vmem:[%s555_s20 + $0x40] sm:$0xff] %v291_v56  ;;  %v270_v16 = vmul.f32 %v414_v57, %v518_v21 }
  0xc6   : > { %v294_v59 = vmul.f32 %v547_v55, %v271_v58 }
  0xc7   : > { %v416_v17 = vpop.eup %415  ;;  %v293_v60 = vmul.f32 %v547_v55, %v270_v16 }
  0xc8   : > { %v418_v61 = vpop.eup %417  ;;  %310 = vst [vmem:[%s555_s20 + $0x58] sm:$0xff] %v294_v59  ;;  %v273_v62 = vmul.f32 %v416_v17, %v525_v24 }
  0xc9   : > { %309 = vst [vmem:[%s555_s20 + $0x50] sm:$0xff] %v293_v60  ;;  %v272_v63 = vmul.f32 %v418_v61, %v528_v25 }
  0xca   : > { %v296_v20 = vmul.f32 %v547_v55, %v273_v62 }
  0xcb   : > { %v420_v3 = vpop.eup %419  ;;  %v295_v4 = vmul.f32 %v547_v55, %v272_v63 }
  0xcc   : > { %v422_v21 = vpop.eup %421  ;;  %312 = vst [vmem:[%s555_s20 + $0x68] sm:$0xff] %v296_v20  ;;  %v275_v6 = vmul.f32 %v420_v3, %v535_v28 }
  0xcd   : > { %311 = vst [vmem:[%s555_s20 + $0x60] sm:$0xff] %v295_v4  ;;  %v274_v0 = vmul.f32 %v422_v21, %v538_v29 }
  0xce   : > { %v298_v7 = vmul.f32 %v547_v55, %v275_v6 }
  0xcf   : > { %v297_v10 = vmul.f32 %v547_v55, %v274_v0 }
  0xd0   : > { %314 = vst [vmem:[%s555_s20 + $0x78] sm:$0xff] %v298_v7 }
  0xd1   : > { %313 = vst [vmem:[%s555_s20 + $0x70] sm:$0xff] %v297_v10 }
  0xd2 PF: > { %s12_s9 = sadd.s32 1, %s429_s9  }
  0xd3   : > { %p9_p4 = scmp.ge.s32.totalorder %s12_s9, 4  }
  0xd5   :  { %11 = sbr.rel (!%p9_p4) target bundleno = 1 (0x1), region = 58 }

// kernel: transformer_lm_forward.23
= control target key start
LH: loop header
LB: loop body
LE: loop exit
PB: predicated region body
PF: predicated region fallthrough
CT: control target
= control target key end

     0   :  { %s698_s12 = smov 0   ;;  %s700_s13 = smov 0   ;;  %s801_s0 = inlined_call_operand.vmem [shape: f32[256,128], index: 0, kind: input, shape index: {}]   ;;  %s802_s1 = inlined_call_operand.vmem [shape: bf16[128,128], index: 1, kind: input, shape index: {}]   ;;  %s803_s2 = inlined_call_operand.vmem [shape: f32[1,128], index: 2, kind: input, shape index: {}]   ;;  %s804_s3 = inlined_call_operand.vmem [shape: f32[256,128], index: 3, kind: output, shape index: {}]  }
   0x1   :  { %s702_s14 = smov 0  }
   0x2 LB: > { %s25_s15 = sadd.s32 1, %s672_s13  ;;  %p542_p0 = scmp.ge.s32.totalorder %s676_s14, 1  ;;  %s676_s14 = sphi %s702_s14, %s13_s14   ;;  %s672_s13 = sphi %s700_s13, %s806_s13   ;;  %s668_s12 = sphi %s698_s12, %s805_s12  }
   0x3   : > { %p27_p1 = scmp.ge.s32.totalorder %s25_s15, 2  ;;  %p169_p2 = scmp.lt.s32.totalorder %s676_s14, 3 }
   0x5   : > { %s808_s15 = smov (%p27_p1, %s25_s15), 0  ;;  %p170_p3 = pnand %p542_p0, %p169_p2 }
   0x6   : > { %v646_v0 = vld [vmem:[%s802_s1] sm:$0xff] (!%p170_p3)   ;;  %s543_s18 = sshll.u32 (!%p170_p3), %s668_s12, 4  ;;  %v647_v1 = vld [vmem:[%s802_s1 + $0x8] sm:$0xff] (!%p170_p3)   ;;  %v648_v2 = vld [vmem:[%s802_s1 + $0x10] sm:$0xff] (!%p170_p3)  }
   0x7   : > { %173 = sbr.rel (%p170_p3) target bundleno = 266 (0x10a), region = 32  ;;  %p204_p4 = scmp.lt.s32.totalorder (!%p170_p3), %s543_s18, 31  ;;  %574 = vmatprep.subr.bf16.mxu0 (!%p170_p3), %v646_v0  ;;  %606 = vmatprep.subr.bf16.mxu1 (!%p170_p3), %v646_v0  ;;  %v649_v3 = vld [vmem:[%s802_s1 + $0x18] sm:$0xff] (!%p170_p3)   ;;  %v650_v10 = vld [vmem:[%s802_s1 + $0x20] sm:$0xff] (!%p170_p3)   ;;  %v651_v11 = vld [vmem:[%s802_s1 + $0x28] sm:$0xff] (!%p170_p3)  }
   0x8   : > { %575 = vmatpush3.bf16.msra.mxu0 (!%p170_p3), %v646_v0  ;;  %614 = vmatpush3.bf16.msra.mxu1 (!%p170_p3), %v646_v0  ;;  %v652_v12 = vld [vmem:[%s802_s1 + $0x30] sm:$0xff] (!%p170_p3)   ;;  %v653_v13 = vld [vmem:[%s802_s1 + $0x38] sm:$0xff] (!%p170_p3)   ;;  %v547_v32 = vld [vmem:[%s803_s2] ss:$0 sm:$0xff] (!%p170_p3) }
   0x9   : > { %576 = vmatprep.subr.bf16.mxu0 (!%p170_p3), %v647_v1  ;;  %607 = vmatprep.subr.bf16.mxu1 (!%p170_p3), %v647_v1 }
   0xc   : > { %577 = vmatpush3.bf16.msra.mxu0 (!%p170_p3), %v647_v1  ;;  %615 = vmatpush3.bf16.msra.mxu1 (!%p170_p3), %v647_v1 }
   0xd   : > { %578 = vmatprep.subr.bf16.mxu0 (!%p170_p3), %v648_v2  ;;  %608 = vmatprep.subr.bf16.mxu1 (!%p170_p3), %v648_v2 }
   0xe   : > { %s810_s18 = smov (!%p204_p4, %s543_s18), 31 }
   0xf   : > { %s544_s23 = sshll.u32 %s810_s18, 3 }
  0x10   : > { %s733_s26 = scalar_lea.vmem %s801_s0, %s544_s23  ;;  %579 = vmatpush3.bf16.msra.mxu0 %v648_v2  ;;  %616 = vmatpush3.bf16.msra.mxu1 %v648_v2  ;;  %s774_s17 = scalar_lea.vmem %s804_s3, %s544_s23 }
  0x11   : > { %v226_v4 = vld [vmem:[%s733_s26] sm:$0xff]  ;;  %v227_v5 = vld [vmem:[%s733_s26 + $0x8] sm:$0xff]  ;;  %580 = vmatprep.subr.bf16.mxu0 %v649_v3  ;;  %609 = vmatprep.subr.bf16.mxu1 %v649_v3  ;;  %v228_v14 = vld [vmem:[%s733_s26 + $0x10] sm:$0xff] }
  0x12   : > { %v234_v6 = vld [vmem:[%s733_s26 + $0x40] sm:$0xff]  ;;  %v242_v7 = vpack.c.bf16 %v227_v5, %v226_v4  ;;  %v235_v8 = vld [vmem:[%s733_s26 + $0x48] sm:$0xff]  ;;  %v229_v15 = vld [vmem:[%s733_s26 + $0x18] sm:$0xff] }
  0x13   : > { %v246_v9 = vpack.c.bf16 %v235_v8, %v234_v6  ;;  %v236_v16 = vld [vmem:[%s733_s26 + $0x50] sm:$0xff]  ;;  %v237_v17 = vld [vmem:[%s733_s26 + $0x58] sm:$0xff]  ;;  %v230_v18 = vld [vmem:[%s733_s26 + $0x20] sm:$0xff]  ;;  %v243_v22 = vpack.c.bf16 %v229_v15, %v228_v14 }
  0x14   : > { %590 = vmatprep.mubr.bf16.mxu0 %v242_v7  ;;  %581 = vmatpush3.bf16.msra.mxu0 %v649_v3  ;;  %v231_v19 = vld [vmem:[%s733_s26 + $0x28] sm:$0xff]  ;;  %v238_v20 = vld [vmem:[%s733_s26 + $0x60] sm:$0xff]  ;;  %v247_v23 = vpack.c.bf16 %v237_v17, %v236_v16  ;;  %v232_v26 = vld [vmem:[%s733_s26 + $0x30] sm:$0xff] }
  0x15   : > { %598 = vmatprep.mubr.bf16.mxu1 %v246_v9  ;;  %617 = vmatpush3.bf16.msra.mxu1 %v649_v3  ;;  %v239_v21 = vld [vmem:[%s733_s26 + $0x68] sm:$0xff]  ;;  %v244_v24 = vpack.c.bf16 %v231_v19, %v230_v18  ;;  %v233_v27 = vld [vmem:[%s733_s26 + $0x38] sm:$0xff]  ;;  %v240_v28 = vld [vmem:[%s733_s26 + $0x70] sm:$0xff] }
  0x16   : > { %582 = vmatprep.subr.bf16.mxu0 %v650_v10  ;;  %610 = vmatprep.subr.bf16.mxu1 %v650_v10  ;;  %v248_v25 = vpack.c.bf16 %v239_v21, %v238_v20  ;;  %v241_v29 = vld [vmem:[%s733_s26 + $0x78] sm:$0xff]  ;;  %v245_v30 = vpack.c.bf16 %v233_v27, %v232_v26 }
  0x17   : > { %v249_v31 = vpack.c.bf16 %v241_v29, %v240_v28 }
  0x18   : > { %583 = vmatpush3.bf16.msra.mxu0 %v650_v10 }
  0x19   : > { %618 = vmatpush3.bf16.msra.mxu1 %v650_v10  ;;  %584 = vmatprep.subr.bf16.mxu0 %v651_v11 }
  0x1a   : > { %611 = vmatprep.subr.bf16.mxu1 %v651_v11 }
  0x1c   : > { %585 = vmatpush3.bf16.msra.mxu0 %v651_v11 }
  0x1d   : > { %619 = vmatpush3.bf16.msra.mxu1 %v651_v11  ;;  %586 = vmatprep.subr.bf16.mxu0 %v652_v12 }
  0x1e   : > { %612 = vmatprep.subr.bf16.mxu1 %v652_v12 }
  0x20   : > { %587 = vmatpush3.bf16.msra.mxu0 %v652_v12 }
  0x21   : > { %620 = vmatpush3.bf16.msra.mxu1 %v652_v12  ;;  %588 = vmatprep.subr.bf16.mxu0 %v653_v13 }
  0x22   : > { %613 = vmatprep.subr.bf16.mxu1 %v653_v13 }
  0x24   : > { %589 = vmatpush3.bf16.msra.mxu0 %v653_v13 }
  0x25   : > { %621 = vmatpush3.bf16.msra.mxu1 %v653_v13 }
  0x27   : > { %591 = vmatmul.mubr.bf16.vlgmr.msra.gmra.mrb[0].mxu0 %v243_v22 }
  0x28   : > { %599 = vmatmul.mubr.bf16.vlgmr.msra.gmra.mrb[0].mxu1 %v247_v23  ;;  %594 = vmatprep.mubr.bf16.mxu0 %v244_v24 }
  0x29   : > { %602 = vmatprep.mubr.bf16.mxu1 %v248_v25 }
  0x2f   : > { %595 = vmatmul.mubr.bf16.gmra.mrb[4].mxu0 %v245_v30 }
  0x30   : > { %603 = vmatmul.mubr.bf16.gmra.mrb[4].mxu1 %v249_v31 }
  0xfa   : > { %v592_v33 = vpop.f32.mrb[0].mxu0 }
  0xfb   : > { %v600_v34 = vpop.f32.mrb[0].mxu1  ;;  %v364_v35 = vadd.f32 %v592_v33, %v547_v32  ;;  %v355_v37 = vpop.f32.mrb[1].mxu0 }
  0xfc   : > { %v396_v36 = vadd.f32 %v600_v34, %v547_v32  ;;  %v387_v38 = vpop.f32.mrb[1].mxu1  ;;  %v356_v39 = vadd.f32 %v547_v32, %v355_v37  ;;  %v593_v41 = vpop.f32.mrb[2].mxu0 }
  0xfd   : > { %v388_v40 = vadd.f32 %v547_v32, %v387_v38  ;;  %v601_v42 = vpop.f32.mrb[2].mxu1  ;;  %420 = vst [vmem:[%s774_s17 + $0x10] sm:$0xff] %v364_v35  ;;  %v367_v43 = vadd.f32 %v593_v41, %v547_v32  ;;  %v358_v45 = vpop.f32.mrb[3].mxu0 }
  0xfe   : > { %428 = vst [vmem:[%s774_s17 + $0x50] sm:$0xff] %v396_v36  ;;  %v399_v44 = vadd.f32 %v601_v42, %v547_v32  ;;  %v390_v46 = vpop.f32.mrb[3].mxu1  ;;  %418 = vst [vmem:[%s774_s17] sm:$0xff] %v356_v39  ;;  %v359_v47 = vadd.f32 %v547_v32, %v358_v45 }
  0xff   : > { %426 = vst [vmem:[%s774_s17 + $0x40] sm:$0xff] %v388_v40  ;;  %v391_v48 = vadd.f32 %v547_v32, %v390_v46  ;;  %421 = vst [vmem:[%s774_s17 + $0x18] sm:$0xff] %v367_v43 }
 0x100   : > { %429 = vst [vmem:[%s774_s17 + $0x58] sm:$0xff] %v399_v44  ;;  %419 = vst [vmem:[%s774_s17 + $0x8] sm:$0xff] %v359_v47 }
 0x101   : > { %427 = vst [vmem:[%s774_s17 + $0x48] sm:$0xff] %v391_v48 }
 0x102   : > { %v596_v49 = vpop.f32.mrb[4].mxu0 }
 0x103   : > { %v604_v50 = vpop.f32.mrb[4].mxu1  ;;  %v380_v51 = vadd.f32 %v596_v49, %v547_v32  ;;  %v371_v53 = vpop.f32.mrb[5].mxu0 }
 0x104   : > { %v412_v52 = vadd.f32 %v604_v50, %v547_v32  ;;  %v403_v54 = vpop.f32.mrb[5].mxu1  ;;  %v372_v55 = vadd.f32 %v547_v32, %v371_v53  ;;  %v597_v57 = vpop.f32.mrb[6].mxu0 }
 0x105   : > { %v404_v56 = vadd.f32 %v547_v32, %v403_v54  ;;  %v605_v58 = vpop.f32.mrb[6].mxu1  ;;  %424 = vst [vmem:[%s774_s17 + $0x30] sm:$0xff] %v380_v51  ;;  %v383_v59 = vadd.f32 %v597_v57, %v547_v32  ;;  %v374_v61 = vpop.f32.mrb[7].mxu0 }
 0x106   : > { %432 = vst [vmem:[%s774_s17 + $0x70] sm:$0xff] %v412_v52  ;;  %v415_v60 = vadd.f32 %v605_v58, %v547_v32  ;;  %v406_v62 = vpop.f32.mrb[7].mxu1  ;;  %422 = vst [vmem:[%s774_s17 + $0x20] sm:$0xff] %v372_v55  ;;  %v375_v63 = vadd.f32 %v547_v32, %v374_v61 }
 0x107   : > { %430 = vst [vmem:[%s774_s17 + $0x60] sm:$0xff] %v404_v56  ;;  %v407_v0 = vadd.f32 %v547_v32, %v406_v62  ;;  %425 = vst [vmem:[%s774_s17 + $0x38] sm:$0xff] %v383_v59 }
 0x108   : > { %433 = vst [vmem:[%s774_s17 + $0x78] sm:$0xff] %v415_v60  ;;  %423 = vst [vmem:[%s774_s17 + $0x28] sm:$0xff] %v375_v63 }
 0x109   : > { %431 = vst [vmem:[%s774_s17 + $0x68] sm:$0xff] %v407_v0 }
 0x10a PF: > { %s13_s14 = sadd.s32 1, %s676_s14   ;;  %s805_s12 = smov %s672_s13 }
 0x10b   : > { %p10_p5 = scmp.ge.s32.totalorder %s13_s14, 4   ;;  %s806_s13 = smov %s808_s15 }
 0x10d   :  { %12 = sbr.rel (!%p10_p5) target bundleno = 2 (0x2), region = 68 }

// kernel: transformer_lm_forward.16
= control target key start
LH: loop header
LB: loop body
LE: loop exit
PB: predicated region body
PF: predicated region fallthrough
CT: control target
= control target key end

     0   :  { %s1466_s21 = smov 0   ;;  %s1901_s0 = inlined_call_operand.vmem [shape: f32[256,512], index: 0, kind: input, shape index: {}]   ;;  %s1902_s1 = inlined_call_operand.vmem [shape: bf16[512,128], index: 1, kind: input, shape index: {}]   ;;  %s1903_s2 = inlined_call_operand.vmem [shape: f32[1,128], index: 2, kind: input, shape index: {}]   ;;  %s1904_s3 = inlined_call_operand.vmem [shape: f32[256,128], index: 3, kind: input, shape index: {}]   ;;  %s1905_s4 = inlined_call_operand.vmem [shape: f32[1,128], index: 4, kind: input, shape index: {}]   ;;  %s1906_s5 = inlined_call_operand.vmem [shape: f32[1,128], index: 5, kind: input, shape index: {}]   ;;  %s1907_s6 = inlined_call_operand.vmem [shape: f32[256,128], index: 6, kind: output, shape index: {}]  }
   0x1 LB: > { %s1173_s22 = sadd.s32 4294967295, %s1429_s21   ;;  %p1177_p0 = scmp.ge.s32.totalorder %s1429_s21, 1  ;;  %s1429_s21 = sphi %s1466_s21, %s16_s21  }
   0x2   : > { %p225_p1 = scmp.lt.s32.totalorder %s1429_s21, 3 }
   0x4   : > { %p226_p2 = pnand %p1177_p0, %p225_p1 }
   0x5   : > { %v1359_v0 = vld [vmem:[%s1902_s1 + $0x40] sm:$0xff] (!%p226_p2)   ;;  %v1363_v4 = vld [vmem:[%s1902_s1 + $0x48] sm:$0xff] (!%p226_p2)   ;;  %v1367_v8 = vld [vmem:[%s1902_s1 + $0x50] sm:$0xff] (!%p226_p2)   ;;  %s1178_s9 = sshll.u32 (!%p226_p2), %s1173_s22, 4 }
   0x6   : > { %229 = sbr.rel (%p226_p2) target bundleno = 630 (0x276), region = 44  ;;  %v1360_v1 = vld [vmem:[%s1902_s1 + $0xc0] sm:$0xff] (!%p226_p2)   ;;  %1223 = vmatprep.subr.bf16.mxu0 (!%p226_p2), %v1359_v0  ;;  %v1364_v5 = vld [vmem:[%s1902_s1 + $0xc8] sm:$0xff] (!%p226_p2)   ;;  %v1368_v9 = vld [vmem:[%s1902_s1 + $0xd0] sm:$0xff] (!%p226_p2)   ;;  %p262_p3 = scmp.lt.s32.totalorder (!%p226_p2), %s1178_s9, 31 }
   0x7   : > { %v1361_v2 = vld [vmem:[%s1902_s1] sm:$0xff] (!%p226_p2)   ;;  %1287 = vmatprep.subr.bf16.mxu1 (!%p226_p2), %v1360_v1  ;;  %v1365_v6 = vld [vmem:[%s1902_s1 + $0x8] sm:$0xff] (!%p226_p2)   ;;  %v1369_v10 = vld [vmem:[%s1902_s1 + $0x10] sm:$0xff] (!%p226_p2)  }
   0x8   : > { %v1362_v3 = vld [vmem:[%s1902_s1 + $0x80] sm:$0xff] (!%p226_p2)   ;;  %1224 = vmatpush3.bf16.msra.mxu0 (!%p226_p2), %v1361_v2  ;;  %v1366_v7 = vld [vmem:[%s1902_s1 + $0x88] sm:$0xff] (!%p226_p2)   ;;  %v1370_v11 = vld [vmem:[%s1902_s1 + $0x90] sm:$0xff] (!%p226_p2)  }
   0x9   : > { %1288 = vmatpush3.bf16.msra.mxu1 (!%p226_p2), %v1362_v3  ;;  %1225 = vmatprep.subr.bf16.mxu0 (!%p226_p2), %v1363_v4  ;;  %v1371_v12 = vld [vmem:[%s1902_s1 + $0x58] sm:$0xff] (!%p226_p2)   ;;  %v1375_v16 = vld [vmem:[%s1902_s1 + $0x60] sm:$0xff] (!%p226_p2)   ;;  %v1379_v20 = vld [vmem:[%s1902_s1 + $0x68] sm:$0xff] (!%p226_p2)  }
   0xa   : > { %1289 = vmatprep.subr.bf16.mxu1 (!%p226_p2), %v1364_v5  ;;  %v1372_v13 = vld [vmem:[%s1902_s1 + $0xd8] sm:$0xff] (!%p226_p2)   ;;  %v1376_v17 = vld [vmem:[%s1902_s1 + $0xe0] sm:$0xff] (!%p226_p2)   ;;  %v1380_v21 = vld [vmem:[%s1902_s1 + $0xe8] sm:$0xff] (!%p226_p2)  }
   0xb   : > { %v1373_v14 = vld [vmem:[%s1902_s1 + $0x18] sm:$0xff] (!%p226_p2)   ;;  %v1377_v18 = vld [vmem:[%s1902_s1 + $0x20] sm:$0xff] (!%p226_p2)   ;;  %v1381_v22 = vld [vmem:[%s1902_s1 + $0x28] sm:$0xff] (!%p226_p2)  }
   0xc   : > { %1226 = vmatpush3.bf16.msra.mxu0 (!%p226_p2), %v1365_v6  ;;  %v1374_v15 = vld [vmem:[%s1902_s1 + $0x98] sm:$0xff] (!%p226_p2)   ;;  %v1378_v19 = vld [vmem:[%s1902_s1 + $0xa0] sm:$0xff] (!%p226_p2)   ;;  %v1382_v23 = vld [vmem:[%s1902_s1 + $0xa8] sm:$0xff] (!%p226_p2)  }
   0xd   : > { %1290 = vmatpush3.bf16.msra.mxu1 %v1366_v7  ;;  %1227 = vmatprep.subr.bf16.mxu0 %v1367_v8  ;;  %s1909_s9 = smov (!%p262_p3, %s1178_s9), 31  ;;  %v1383_v24 = vld [vmem:[%s1902_s1 + $0x70] sm:$0xff]   ;;  %v1387_v28 = vld [vmem:[%s1902_s1 + $0x78] sm:$0xff]  }
   0xe   : > { %1291 = vmatprep.subr.bf16.mxu1 %v1368_v9  ;;  %v1384_v25 = vld [vmem:[%s1902_s1 + $0xf0] sm:$0xff]   ;;  %s1222_s10 = sshll.u32 %s1909_s9, 5  ;;  %v1388_v29 = vld [vmem:[%s1902_s1 + $0xf8] sm:$0xff]   ;;  %s1182_s25 = sshll.u32 %s1909_s9, 3 }
   0xf   : > { %v1385_v26 = vld [vmem:[%s1902_s1 + $0x30] sm:$0xff]   ;;  %s1572_s18 = scalar_lea.vmem %s1901_s0, %s1222_s10  ;;  %v1389_v30 = vld [vmem:[%s1902_s1 + $0x38] sm:$0xff]   ;;  %s1655_s30 = scalar_lea.vmem %s1904_s3, %s1182_s25 }
  0x10   : > { %1228 = vmatpush3.bf16.msra.mxu0 %v1369_v10  ;;  %v1386_v27 = vld [vmem:[%s1902_s1 + $0xb0] sm:$0xff]   ;;  %v1390_v31 = vld [vmem:[%s1902_s1 + $0xb8] sm:$0xff]   ;;  %v282_v32 = vld [vmem:[%s1572_s18 + $0x8] sm:$0xff]  ;;  %s1834_s14 = scalar_lea.vmem %s1907_s6, %s1182_s25 }
  0x11   : > { %1292 = vmatpush3.bf16.msra.mxu1 %v1370_v11  ;;  %1229 = vmatprep.subr.bf16.mxu0 %v1371_v12  ;;  %v286_v33 = vld [vmem:[%s1572_s18 + $0x28] sm:$0xff]  ;;  %v284_v34 = vld [vmem:[%s1572_s18 + $0x18] sm:$0xff]  ;;  %v281_v37 = vld [vmem:[%s1572_s18] sm:$0xff] }
  0x12   : > { %1293 = vmatprep.subr.bf16.mxu1 %v1372_v13  ;;  %v346_v35 = vpack.c.bf16 %v286_v33, %v282_v32  ;;  %v288_v36 = vld [vmem:[%s1572_s18 + $0x38] sm:$0xff]  ;;  %v285_v38 = vld [vmem:[%s1572_s18 + $0x20] sm:$0xff]  ;;  %v283_v41 = vld [vmem:[%s1572_s18 + $0x10] sm:$0xff] }
  0x13   : > { %v348_v39 = vpack.c.bf16 %v288_v36, %v284_v34  ;;  %v345_v40 = vpack.c.bf16 %v285_v38, %v281_v37  ;;  %v287_v42 = vld [vmem:[%s1572_s18 + $0x30] sm:$0xff]  ;;  %v290_v43 = vld [vmem:[%s1572_s18 + $0x48] sm:$0xff]  ;;  %v292_v46 = vld [vmem:[%s1572_s18 + $0x58] sm:$0xff] }
  0x14   : > { %1230 = vmatpush3.bf16.msra.mxu0 %v1373_v14  ;;  %672 = vmatprep.mubr.bf16.mxu0 %v346_v35  ;;  %v347_v44 = vpack.c.bf16 %v287_v42, %v283_v41  ;;  %v294_v45 = vld [vmem:[%s1572_s18 + $0x68] sm:$0xff]  ;;  %v296_v47 = vld [vmem:[%s1572_s18 + $0x78] sm:$0xff]  ;;  %v289_v50 = vld [vmem:[%s1572_s18 + $0x40] sm:$0xff] }
  0x15   : > { %1294 = vmatpush3.bf16.msra.mxu1 %v1374_v15  ;;  %1231 = vmatprep.subr.bf16.mxu0 %v1375_v16  ;;  %v350_v48 = vpack.c.bf16 %v294_v45, %v290_v43  ;;  %v352_v49 = vpack.c.bf16 %v296_v47, %v292_v46  ;;  %v293_v51 = vld [vmem:[%s1572_s18 + $0x60] sm:$0xff]  ;;  %v291_v52 = vld [vmem:[%s1572_s18 + $0x50] sm:$0xff]  ;;  %v298_v54 = vld [vmem:[%s1572_s18 + $0x88] sm:$0xff] }
  0x16   : > { %1295 = vmatprep.subr.bf16.mxu1 %v1376_v17  ;;  %769 = vmatprep.mubr.bf16.mxu1 %v348_v39  ;;  %v295_v53 = vld [vmem:[%s1572_s18 + $0x70] sm:$0xff]  ;;  %v302_v55 = vld [vmem:[%s1572_s18 + $0xa8] sm:$0xff]  ;;  %v300_v56 = vld [vmem:[%s1572_s18 + $0x98] sm:$0xff]  ;;  %v349_v58 = vpack.c.bf16 %v293_v51, %v289_v50 }
  0x17   : > { %v304_v57 = vld [vmem:[%s1572_s18 + $0xb8] sm:$0xff]  ;;  %v351_v59 = vpack.c.bf16 %v295_v53, %v291_v52  ;;  %v354_v60 = vpack.c.bf16 %v302_v55, %v298_v54  ;;  %v297_v62 = vld [vmem:[%s1572_s18 + $0x80] sm:$0xff]  ;;  %v299_v0 = vld [vmem:[%s1572_s18 + $0x90] sm:$0xff] }
  0x18   : > { %1232 = vmatpush3.bf16.msra.mxu0 %v1377_v18  ;;  %v356_v61 = vpack.c.bf16 %v304_v57, %v300_v56  ;;  %v301_v63 = vld [vmem:[%s1572_s18 + $0xa0] sm:$0xff]  ;;  %v303_v1 = vld [vmem:[%s1572_s18 + $0xb0] sm:$0xff]  ;;  %v306_v2 = vld [vmem:[%s1572_s18 + $0xc8] sm:$0xff] }
  0x19   : > { %1296 = vmatpush3.bf16.msra.mxu1 %v1378_v19  ;;  %1233 = vmatprep.subr.bf16.mxu0 %v1379_v20  ;;  %v310_v3 = vld [vmem:[%s1572_s18 + $0xe8] sm:$0xff]  ;;  %v308_v4 = vld [vmem:[%s1572_s18 + $0xd8] sm:$0xff]  ;;  %v353_v6 = vpack.c.bf16 %v301_v63, %v297_v62  ;;  %v355_v7 = vpack.c.bf16 %v303_v1, %v299_v0  ;;  %v305_v10 = vld [vmem:[%s1572_s18 + $0xc0] sm:$0xff] }
  0x1a   : > { %1297 = vmatprep.subr.bf16.mxu1 %v1380_v21  ;;  %v312_v5 = vld [vmem:[%s1572_s18 + $0xf8] sm:$0xff]  ;;  %v358_v8 = vpack.c.bf16 %v310_v3, %v306_v2  ;;  %v309_v11 = vld [vmem:[%s1572_s18 + $0xe0] sm:$0xff]  ;;  %v307_v12 = vld [vmem:[%s1572_s18 + $0xd0] sm:$0xff] }
  0x1b   : > { %v360_v9 = vpack.c.bf16 %v312_v5, %v308_v4  ;;  %v311_v13 = vld [vmem:[%s1572_s18 + $0xf0] sm:$0xff]  ;;  %v314_v14 = vld [vmem:[%s1572_s18 + $0x108] sm:$0xff]  ;;  %v316_v16 = vld [vmem:[%s1572_s18 + $0x118] sm:$0xff]  ;;  %v357_v18 = vpack.c.bf16 %v309_v11, %v305_v10 }
  0x1c   : > { %1234 = vmatpush3.bf16.msra.mxu0 %v1381_v22  ;;  %v318_v15 = vld [vmem:[%s1572_s18 + $0x128] sm:$0xff]  ;;  %v320_v17 = vld [vmem:[%s1572_s18 + $0x138] sm:$0xff]  ;;  %v359_v19 = vpack.c.bf16 %v311_v13, %v307_v12  ;;  %v313_v22 = vld [vmem:[%s1572_s18 + $0x100] sm:$0xff] }
  0x1d   : > { %1298 = vmatpush3.bf16.msra.mxu1 %v1382_v23  ;;  %1235 = vmatprep.subr.bf16.mxu0 %v1383_v24  ;;  %v362_v20 = vpack.c.bf16 %v318_v15, %v314_v14  ;;  %v364_v21 = vpack.c.bf16 %v320_v17, %v316_v16  ;;  %v317_v23 = vld [vmem:[%s1572_s18 + $0x120] sm:$0xff]  ;;  %v315_v24 = vld [vmem:[%s1572_s18 + $0x110] sm:$0xff]  ;;  %v330_v38 = vld [vmem:[%s1572_s18 + $0x188] sm:$0xff] }
  0x1e   : > { %1299 = vmatprep.subr.bf16.mxu1 %v1384_v25  ;;  %v319_v25 = vld [vmem:[%s1572_s18 + $0x130] sm:$0xff]  ;;  %v321_v34 = vld [vmem:[%s1572_s18 + $0x140] sm:$0xff]  ;;  %v334_v39 = vld [vmem:[%s1572_s18 + $0x1a8] sm:$0xff] }
  0x1f   : > { %v325_v35 = vld [vmem:[%s1572_s18 + $0x160] sm:$0xff]  ;;  %v323_v36 = vld [vmem:[%s1572_s18 + $0x150] sm:$0xff]  ;;  %v336_v41 = vld [vmem:[%s1572_s18 + $0x1b8] sm:$0xff] }
  0x20   : > { %1236 = vmatpush3.bf16.msra.mxu0 %v1385_v26  ;;  %v322_v26 = vld [vmem:[%s1572_s18 + $0x148] sm:$0xff]  ;;  %v327_v37 = vld [vmem:[%s1572_s18 + $0x170] sm:$0xff]  ;;  %v365_v42 = vpack.c.bf16 %v325_v35, %v321_v34  ;;  %v329_v46 = vld [vmem:[%s1572_s18 + $0x180] sm:$0xff] }
  0x21   : > { %1300 = vmatpush3.bf16.msra.mxu1 %v1386_v27  ;;  %1237 = vmatprep.subr.bf16.mxu0 %v1387_v28  ;;  %v326_v27 = vld [vmem:[%s1572_s18 + $0x168] sm:$0xff]  ;;  %v324_v28 = vld [vmem:[%s1572_s18 + $0x158] sm:$0xff]  ;;  %v367_v43 = vpack.c.bf16 %v327_v37, %v323_v36  ;;  %v333_v47 = vld [vmem:[%s1572_s18 + $0x1a0] sm:$0xff] }
  0x22   : > { %1301 = vmatprep.subr.bf16.mxu1 %v1388_v29  ;;  %v328_v29 = vld [vmem:[%s1572_s18 + $0x178] sm:$0xff]  ;;  %v366_v32 = vpack.c.bf16 %v326_v27, %v322_v26  ;;  %v338_v50 = vld [vmem:[%s1572_s18 + $0x1c8] sm:$0xff]  ;;  %v369_v54 = vpack.c.bf16 %v333_v47, %v329_v46  ;;  %v1648_v2 = vld [vmem:[%s1903_s2] ss:$0 sm:$0xff] }
  0x23   : > { %v368_v33 = vpack.c.bf16 %v328_v29, %v324_v28  ;;  %v342_v51 = vld [vmem:[%s1572_s18 + $0x1e8] sm:$0xff]  ;;  %v340_v52 = vld [vmem:[%s1572_s18 + $0x1d8] sm:$0xff]  ;;  %v834_v14 = vld [vmem:[%s1655_s30] sm:$0xff] }
  0x24   : > { %1238 = vmatpush3.bf16.msra.mxu0 %v1389_v30  ;;  %v361_v30 = vpack.c.bf16 %v317_v23, %v313_v22  ;;  %v344_v53 = vld [vmem:[%s1572_s18 + $0x1f8] sm:$0xff]  ;;  %v374_v56 = vpack.c.bf16 %v342_v51, %v338_v50  ;;  %v835_v22 = vld [vmem:[%s1655_s30 + $0x8] sm:$0xff]  ;;  %v836_v34 = vld [vmem:[%s1655_s30 + $0x10] sm:$0xff] }
  0x25   : > { %1302 = vmatpush3.bf16.msra.mxu1 %v1390_v31  ;;  %v363_v31 = vpack.c.bf16 %v319_v25, %v315_v24  ;;  %v376_v57 = vpack.c.bf16 %v344_v53, %v340_v52 }
  0x27   : > { %673 = vmatmul.mubr.bf16.vlgmr.msra.gmra.mrb[0].mxu0 %v345_v40  ;;  %v332_v40 = vld [vmem:[%s1572_s18 + $0x198] sm:$0xff] }
  0x28   : > { %770 = vmatmul.mubr.bf16.vlgmr.msra.gmra.mrb[0].mxu1 %v347_v44  ;;  %680 = vmatprep.mubr.bf16.mxu0 %v350_v48  ;;  %v370_v44 = vpack.c.bf16 %v334_v39, %v330_v38  ;;  %v372_v45 = vpack.c.bf16 %v336_v41, %v332_v40  ;;  %v331_v48 = vld [vmem:[%s1572_s18 + $0x190] sm:$0xff] }
  0x29   : > { %777 = vmatprep.mubr.bf16.mxu1 %v352_v49  ;;  %v335_v49 = vld [vmem:[%s1572_s18 + $0x1b0] sm:$0xff] }
  0x2a   : > { %v371_v55 = vpack.c.bf16 %v335_v49, %v331_v48 }
  0x2f   : > { %681 = vmatmul.mubr.bf16.gmra.mrb[4].mxu0 %v349_v58  ;;  %v337_v58 = vld [vmem:[%s1572_s18 + $0x1c0] sm:$0xff] }
  0x30   : > { %778 = vmatmul.mubr.bf16.gmra.mrb[4].mxu1 %v351_v59  ;;  %688 = vmatprep.mubr.bf16.mxu0 %v354_v60  ;;  %v341_v59 = vld [vmem:[%s1572_s18 + $0x1e0] sm:$0xff]  ;;  %v339_v60 = vld [vmem:[%s1572_s18 + $0x1d0] sm:$0xff] }
  0x31   : > { %785 = vmatprep.mubr.bf16.mxu1 %v356_v61  ;;  %v343_v61 = vld [vmem:[%s1572_s18 + $0x1f0] sm:$0xff]  ;;  %v373_v62 = vpack.c.bf16 %v341_v59, %v337_v58 }
  0x32   : > { %v375_v63 = vpack.c.bf16 %v343_v61, %v339_v60 }
  0x37   : > { %689 = vmatmul.mubr.bf16.gmra.mrb[8].mxu0 %v353_v6 }
  0x38   : > { %786 = vmatmul.mubr.bf16.gmra.mrb[8].mxu1 %v355_v7  ;;  %696 = vmatprep.mubr.bf16.mxu0 %v358_v8 }
  0x39   : > { %793 = vmatprep.mubr.bf16.mxu1 %v360_v9 }
  0x3f   : > { %697 = vmatmul.mubr.bf16.gmra.mrb[12].mxu0 %v357_v18 }
  0x40   : > { %794 = vmatmul.mubr.bf16.gmra.mrb[12].mxu1 %v359_v19  ;;  %704 = vmatprep.mubr.bf16.mxu0 %v362_v20 }
  0x41   : > { %801 = vmatprep.mubr.bf16.mxu1 %v364_v21 }
  0x47   : > { %705 = vmatmul.mubr.bf16.gmra.mrb[16].mxu0 %v361_v30 }
  0x48   : > { %802 = vmatmul.mubr.bf16.gmra.mrb[16].mxu1 %v363_v31  ;;  %712 = vmatprep.mubr.bf16.mxu0 %v366_v32 }
  0x49   : > { %809 = vmatprep.mubr.bf16.mxu1 %v368_v33 }
  0x4f   : > { %713 = vmatmul.mubr.bf16.gmra.mrb[20].mxu0 %v365_v42  ;;  %v837_v42 = vld [vmem:[%s1655_s30 + $0x18] sm:$0xff] }
  0x50   : > { %810 = vmatmul.mubr.bf16.gmra.mrb[20].mxu1 %v367_v43  ;;  %720 = vmatprep.mubr.bf16.mxu0 %v370_v44 }
  0x51   : > { %817 = vmatprep.mubr.bf16.mxu1 %v372_v45 }
  0x57   : > { %721 = vmatmul.mubr.bf16.gmra.mrb[24].mxu0 %v369_v54  ;;  %v838_v54 = vld [vmem:[%s1655_s30 + $0x20] sm:$0xff] }
  0x58   : > { %818 = vmatmul.mubr.bf16.gmra.mrb[24].mxu1 %v371_v55  ;;  %728 = vmatprep.mubr.bf16.mxu0 %v374_v56 }
  0x59   : > { %825 = vmatprep.mubr.bf16.mxu1 %v376_v57  ;;  %v839_v57 = vld [vmem:[%s1655_s30 + $0x28] sm:$0xff] }
  0x5f   : > { %729 = vmatmul.mubr.bf16.gmra.mrb[28].mxu0 %v373_v62 }
  0x60   : > { %826 = vmatmul.mubr.bf16.gmra.mrb[28].mxu1 %v375_v63 }
  0xfa   : > { %v1239_v0 = vpop.f32.mrb[0].mxu0 }
  0xfb   : > { %v1303_v1 = vpop.f32.mrb[0].mxu1  ;;  %v1240_v3 = vpop.f32.mrb[1].mxu0 }
  0xfc   : > { %v1241_v4 = vadd.f32 %v1240_v3, %v1239_v0  ;;  %v1304_v5 = vpop.f32.mrb[1].mxu1  ;;  %v1242_v6 = vpop.f32.mrb[2].mxu0 }
  0xfd   : > { %v1305_v7 = vadd.f32 %v1304_v5, %v1303_v1  ;;  %v1306_v8 = vpop.f32.mrb[2].mxu1  ;;  %v1243_v9 = vpop.f32.mrb[3].mxu0 }
  0xfe   : > { %v675_v10 = vadd.f32 %v1241_v4, %v1648_v2  ;;  %v1244_v11 = vadd.f32 %v1243_v9, %v1242_v6  ;;  %v1307_v12 = vpop.f32.mrb[3].mxu1 }
  0xff   : > { %v1308_v13 = vadd.f32 %v1307_v12, %v1306_v8 }
 0x100   : > { %v772_v15 = vadd.f32 %v1305_v7, %v675_v10  ;;  %v678_v16 = vadd.f32 %v1244_v11, %v1648_v2  ;;  %v840_v11 = vld [vmem:[%s1655_s30 + $0x30] sm:$0xff] }
 0x102   : > { %v775_v17 = vadd.f32 %v1308_v13, %v678_v16  ;;  %v1245_v18 = vpop.f32.mrb[4].mxu0  ;;  %v1660_v19 = vadd.f32 %v834_v14, %v772_v15  ;;  %v841_v14 = vld [vmem:[%s1655_s30 + $0x38] sm:$0xff] }
 0x103   : > { %v1309_v20 = vpop.f32.mrb[4].mxu1  ;;  %v1246_v21 = vpop.f32.mrb[5].mxu0 }
 0x104   : > { %v1247_v23 = vadd.f32 %v1246_v21, %v1245_v18  ;;  %v1310_v24 = vpop.f32.mrb[5].mxu1  ;;  %v1248_v25 = vpop.f32.mrb[6].mxu0  ;;  %866 = vadd.xlane.f32.xlu0 %v1660_v19  ;;  %v1665_v32 = vadd.f32 %v835_v22, %v775_v17 }
 0x105   : > { %v1311_v26 = vadd.f32 %v1310_v24, %v1309_v20  ;;  %v1312_v27 = vpop.f32.mrb[6].mxu1  ;;  %v1249_v28 = vpop.f32.mrb[7].mxu0 }
 0x106   : > { %v683_v29 = vadd.f32 %v1247_v23, %v1648_v2  ;;  %v1250_v30 = vadd.f32 %v1249_v28, %v1248_v25  ;;  %v1313_v31 = vpop.f32.mrb[7].mxu1 }
 0x107   : > { %v1314_v33 = vadd.f32 %v1313_v31, %v1312_v27 }
 0x108   : > { %v780_v35 = vadd.f32 %v1311_v26, %v683_v29  ;;  %v686_v36 = vadd.f32 %v1250_v30, %v1648_v2  ;;  %868 = vadd.xlane.f32.xlu0 %v1665_v32 }
 0x10a   : > { %v783_v37 = vadd.f32 %v1314_v33, %v686_v36  ;;  %v1251_v38 = vpop.f32.mrb[8].mxu0  ;;  %v1670_v39 = vadd.f32 %v836_v34, %v780_v35  ;;  %v842_v33 = vld [vmem:[%s1655_s30 + $0x40] sm:$0xff]  ;;  %v843_v36 = vld [vmem:[%s1655_s30 + $0x48] sm:$0xff] }
 0x10b   : > { %v1315_v40 = vpop.f32.mrb[8].mxu1  ;;  %v1252_v41 = vpop.f32.mrb[9].mxu0 }
 0x10c   : > { %v1253_v43 = vadd.f32 %v1252_v41, %v1251_v38  ;;  %v1316_v44 = vpop.f32.mrb[9].mxu1  ;;  %v1254_v45 = vpop.f32.mrb[10].mxu0  ;;  %870 = vadd.xlane.f32.xlu1 %v1670_v39  ;;  %v1675_v52 = vadd.f32 %v837_v42, %v783_v37 }
 0x10d   : > { %v1317_v46 = vadd.f32 %v1316_v44, %v1315_v40  ;;  %v1318_v47 = vpop.f32.mrb[10].mxu1  ;;  %v1255_v48 = vpop.f32.mrb[11].mxu0 }
 0x10e   : > { %v691_v49 = vadd.f32 %v1253_v43, %v1648_v2  ;;  %v1256_v50 = vadd.f32 %v1255_v48, %v1254_v45  ;;  %v1319_v51 = vpop.f32.mrb[11].mxu1 }
 0x10f   : > { %v1320_v53 = vadd.f32 %v1319_v51, %v1318_v47 }
 0x110   : > { %v788_v55 = vadd.f32 %v1317_v46, %v691_v49  ;;  %v694_v56 = vadd.f32 %v1256_v50, %v1648_v2  ;;  %872 = vadd.xlane.f32.xlu1 %v1675_v52 }
 0x112   : > { %v791_v58 = vadd.f32 %v1320_v53, %v694_v56  ;;  %v1257_v59 = vpop.f32.mrb[12].mxu0  ;;  %v1681_v60 = vadd.f32 %v838_v54, %v788_v55  ;;  %v844_v55 = vld [vmem:[%s1655_s30 + $0x50] sm:$0xff] }
 0x113   : > { %v1321_v61 = vpop.f32.mrb[12].mxu1  ;;  %v1258_v62 = vpop.f32.mrb[13].mxu0 }
 0x114   : > { %v1259_v63 = vadd.f32 %v1258_v62, %v1257_v59  ;;  %v1322_v0 = vpop.f32.mrb[13].mxu1  ;;  %v1260_v1 = vpop.f32.mrb[14].mxu0  ;;  %874 = vadd.xlane.f32.xlu0 %v1681_v60  ;;  %v1684_v3 = vadd.f32 %v839_v57, %v791_v58  ;;  %v845_v58 = vld [vmem:[%s1655_s30 + $0x58] sm:$0xff] }
 0x115   : > { %v1323_v4 = vadd.f32 %v1322_v0, %v1321_v61  ;;  %v1324_v5 = vpop.f32.mrb[14].mxu1  ;;  %v1261_v6 = vpop.f32.mrb[15].mxu0 }
 0x116   : > { %v699_v7 = vadd.f32 %v1259_v63, %v1648_v2  ;;  %v1262_v8 = vadd.f32 %v1261_v6, %v1260_v1  ;;  %v1325_v9 = vpop.f32.mrb[15].mxu1  ;;  %876 = vadd.xlane.f32.xlu1 %v1684_v3 }
 0x117   : > { %v1326_v10 = vadd.f32 %v1325_v9, %v1324_v5 }
 0x118   : > { %v796_v12 = vadd.f32 %v1323_v4, %v699_v7  ;;  %v702_v13 = vadd.f32 %v1262_v8, %v1648_v2 }
 0x11a   : > { %v799_v15 = vadd.f32 %v1326_v10, %v702_v13  ;;  %v1263_v16 = vpop.f32.mrb[16].mxu0  ;;  %v1691_v17 = vadd.f32 %v840_v11, %v796_v12 }
 0x11b   : > { %v1327_v18 = vpop.f32.mrb[16].mxu1  ;;  %v1264_v20 = vpop.f32.mrb[17].mxu0 }
 0x11c   : > { %v1265_v21 = vadd.f32 %v1264_v20, %v1263_v16  ;;  %v1328_v22 = vpop.f32.mrb[17].mxu1  ;;  %v1266_v23 = vpop.f32.mrb[18].mxu0  ;;  %878 = vadd.xlane.f32.xlu0 %v1691_v17  ;;  %v1694_v24 = vadd.f32 %v841_v14, %v799_v15  ;;  %v846_v14 = vld [vmem:[%s1655_s30 + $0x60] sm:$0xff] }
 0x11d   : > { %v1329_v25 = vadd.f32 %v1328_v22, %v1327_v18  ;;  %v1330_v26 = vpop.f32.mrb[18].mxu1  ;;  %v1267_v27 = vpop.f32.mrb[19].mxu0  ;;  %v847_v18 = vld [vmem:[%s1655_s30 + $0x68] sm:$0xff] }
 0x11e   : > { %v707_v28 = vadd.f32 %v1265_v21, %v1648_v2  ;;  %v1268_v29 = vadd.f32 %v1267_v27, %v1266_v23  ;;  %v1331_v30 = vpop.f32.mrb[19].mxu1  ;;  %880 = vadd.xlane.f32.xlu1 %v1694_v24 }
 0x11f   : > { %v1332_v31 = vadd.f32 %v1331_v30, %v1330_v26 }
 0x120   : > { %v804_v34 = vadd.f32 %v1329_v25, %v707_v28  ;;  %v710_v35 = vadd.f32 %v1268_v29, %v1648_v2 }
 0x122   : > { %v807_v37 = vadd.f32 %v1332_v31, %v710_v35  ;;  %v1269_v38 = vpop.f32.mrb[20].mxu0  ;;  %v1701_v40 = vadd.f32 %v842_v33, %v804_v34 }
 0x123   : > { %v1333_v41 = vpop.f32.mrb[20].mxu1  ;;  %v1270_v42 = vpop.f32.mrb[21].mxu0 }
 0x124   : > { %v1271_v43 = vadd.f32 %v1270_v42, %v1269_v38  ;;  %v1334_v44 = vpop.f32.mrb[21].mxu1  ;;  %v1272_v45 = vpop.f32.mrb[22].mxu0  ;;  %882 = vadd.xlane.f32.xlu0 %v1701_v40  ;;  %v1704_v46 = vadd.f32 %v843_v36, %v807_v37  ;;  %v848_v38 = vld [vmem:[%s1655_s30 + $0x70] sm:$0xff] }
 0x125   : > { %v1335_v47 = vadd.f32 %v1334_v44, %v1333_v41  ;;  %v1336_v48 = vpop.f32.mrb[22].mxu1  ;;  %v1273_v49 = vpop.f32.mrb[23].mxu0 }
 0x126   : > { %v715_v50 = vadd.f32 %v1271_v43, %v1648_v2  ;;  %v1274_v51 = vadd.f32 %v1273_v49, %v1272_v45  ;;  %v1337_v53 = vpop.f32.mrb[23].mxu1  ;;  %884 = vadd.xlane.f32.xlu1 %v1704_v46  ;;  %v849_v43 = vld [vmem:[%s1655_s30 + $0x78] sm:$0xff] }
 0x127   : > { %v1338_v54 = vadd.f32 %v1337_v53, %v1336_v48 }
 0x128   : > { %v812_v56 = vadd.f32 %v1335_v47, %v715_v50  ;;  %v718_v57 = vadd.f32 %v1274_v51, %v1648_v2 }
 0x12a   : > { %v815_v59 = vadd.f32 %v1338_v54, %v718_v57  ;;  %v1275_v61 = vpop.f32.mrb[24].mxu0  ;;  %v1711_v62 = vadd.f32 %v844_v55, %v812_v56 }
 0x12b   : > { %v1339_v63 = vpop.f32.mrb[24].mxu1  ;;  %v1276_v0 = vpop.f32.mrb[25].mxu0 }
 0x12c   : > { %v1277_v1 = vadd.f32 %v1276_v0, %v1275_v61  ;;  %v1340_v4 = vpop.f32.mrb[25].mxu1  ;;  %v1278_v5 = vpop.f32.mrb[26].mxu0  ;;  %886 = vadd.xlane.f32.xlu0 %v1711_v62  ;;  %v1714_v6 = vadd.f32 %v845_v58, %v815_v59 }
 0x12d   : > { %v1341_v7 = vadd.f32 %v1340_v4, %v1339_v63  ;;  %v1342_v8 = vpop.f32.mrb[26].mxu1  ;;  %v1279_v9 = vpop.f32.mrb[27].mxu0 }
 0x12e   : > { %v723_v10 = vadd.f32 %v1277_v1, %v1648_v2  ;;  %v1280_v11 = vadd.f32 %v1279_v9, %v1278_v5  ;;  %v1343_v12 = vpop.f32.mrb[27].mxu1  ;;  %888 = vadd.xlane.f32.xlu1 %v1714_v6 }
 0x12f   : > { %v1344_v13 = vadd.f32 %v1343_v12, %v1342_v8 }
 0x130   : > { %v820_v15 = vadd.f32 %v1341_v7, %v723_v10  ;;  %v726_v16 = vadd.f32 %v1280_v11, %v1648_v2 }
 0x132   : > { %v823_v20 = vadd.f32 %v1344_v13, %v726_v16  ;;  %v1281_v21 = vpop.f32.mrb[28].mxu0  ;;  %v1721_v22 = vadd.f32 %v846_v14, %v820_v15 }
 0x133   : > { %v1345_v23 = vpop.f32.mrb[28].mxu1  ;;  %v1282_v25 = vpop.f32.mrb[29].mxu0 }
 0x134   : > { %v1283_v26 = vadd.f32 %v1282_v25, %v1281_v21  ;;  %v1346_v27 = vpop.f32.mrb[29].mxu1  ;;  %v1284_v28 = vpop.f32.mrb[30].mxu0  ;;  %890 = vadd.xlane.f32.xlu0 %v1721_v22  ;;  %v1724_v29 = vadd.f32 %v847_v18, %v823_v20 }
 0x135   : > { %v1347_v30 = vadd.f32 %v1346_v27, %v1345_v23  ;;  %v1348_v31 = vpop.f32.mrb[30].mxu1  ;;  %v1285_v33 = vpop.f32.mrb[31].mxu0 }
 0x136   : > { %v731_v34 = vadd.f32 %v1283_v26, %v1648_v2  ;;  %v1286_v35 = vadd.f32 %v1285_v33, %v1284_v28  ;;  %v1349_v36 = vpop.f32.mrb[31].mxu1  ;;  %892 = vadd.xlane.f32.xlu1 %v1724_v29 }
 0x137   : > { %v1350_v37 = vadd.f32 %v1349_v36, %v1348_v31 }
 0x138   : > { %v828_v41 = vadd.f32 %v1347_v30, %v731_v34  ;;  %v734_v42 = vadd.f32 %v1286_v35, %v1648_v2 }
 0x13a   : > { %v831_v44 = vadd.f32 %v1350_v37, %v734_v42  ;;  %v1731_v45 = vadd.f32 %v848_v38, %v828_v41 }
 0x13c   : > { %894 = vadd.xlane.f32.xlu0 %v1731_v45  ;;  %v1734_v47 = vadd.f32 %v849_v43, %v831_v44 }
 0x13e   : > { %896 = vadd.xlane.f32.xlu1 %v1734_v47 }
 0x191   : > { %v867_v48 = vpop.xlane.xlu0 %866 }
 0x192   : > { %v899_v49 = vmul.f32 0.0078125, %v867_v48 }
 0x194   : > { %v1738_v50 = vsub.f32 %v1660_v19, %v899_v49 }
 0x195   : > { %v869_v51 = vpop.xlane.xlu0 %868 }
 0x196   : > { %v900_v53 = vmul.f32 0.0078125, %v869_v51  ;;  %v931_v2 = vmul.f32 %v1738_v50, %v1738_v50 }
 0x198   : > { %v1743_v54 = vsub.f32 %v1665_v32, %v900_v53  ;;  %947 = vadd.xlane.f32.xlu0 %v931_v2 }
 0x199   : > { %v871_v55 = vpop.xlane.xlu1 %870 }
 0x19a   : > { %v901_v56 = vmul.f32 0.0078125, %v871_v55  ;;  %v932_v57 = vmul.f32 %v1743_v54, %v1743_v54 }
 0x19c   : > { %v1748_v58 = vsub.f32 %v1670_v39, %v901_v56  ;;  %949 = vadd.xlane.f32.xlu1 %v932_v57 }
 0x19d   : > { %v873_v19 = vpop.xlane.xlu1 %872 }
 0x19e   : > { %v902_v59 = vmul.f32 0.0078125, %v873_v19  ;;  %v933_v61 = vmul.f32 %v1748_v58, %v1748_v58 }
 0x1a0   : > { %v1753_v63 = vsub.f32 %v1675_v52, %v902_v59  ;;  %951 = vadd.xlane.f32.xlu0 %v933_v61 }
 0x1a1   : > { %v875_v32 = vpop.xlane.xlu0 %874 }
 0x1a2   : > { %v903_v0 = vmul.f32 0.0078125, %v875_v32  ;;  %v934_v1 = vmul.f32 %v1753_v63, %v1753_v63 }
 0x1a3   : > { %v877_v4 = vpop.xlane.xlu1 %876 }
 0x1a4   : > { %v1758_v5 = vsub.f32 %v1681_v60, %v903_v0  ;;  %v904_v39 = vmul.f32 0.0078125, %v877_v4  ;;  %953 = vadd.xlane.f32.xlu1 %v934_v1  ;;  %v1820_v0 = vld [vmem:[%s1905_s4] ss:$0 sm:$0xff] }
 0x1a6   : > { %v1761_v7 = vsub.f32 %v1684_v3, %v904_v39  ;;  %v935_v8 = vmul.f32 %v1758_v5, %v1758_v5 }
 0x1a8   : > { %955 = vadd.xlane.f32.xlu0 %v935_v8  ;;  %v936_v52 = vmul.f32 %v1761_v7, %v1761_v7  ;;  %v1826_v8 = vld [vmem:[%s1906_s5] ss:$0 sm:$0xff] }
 0x1a9   : > { %v879_v9 = vpop.xlane.xlu0 %878 }
 0x1aa   : > { %v905_v10 = vmul.f32 0.0078125, %v879_v9  ;;  %957 = vadd.xlane.f32.xlu1 %v936_v52 }
 0x1ab   : > { %v881_v11 = vpop.xlane.xlu1 %880 }
 0x1ac   : > { %v1768_v12 = vsub.f32 %v1691_v17, %v905_v10  ;;  %v906_v60 = vmul.f32 0.0078125, %v881_v11 }
 0x1ae   : > { %v1771_v13 = vsub.f32 %v1694_v24, %v906_v60  ;;  %v937_v3 = vmul.f32 %v1768_v12, %v1768_v12 }
 0x1b0   : > { %959 = vadd.xlane.f32.xlu0 %v937_v3  ;;  %v938_v14 = vmul.f32 %v1771_v13, %v1771_v13 }
 0x1b1   : > { %v883_v15 = vpop.xlane.xlu0 %882 }
 0x1b2   : > { %v907_v16 = vmul.f32 0.0078125, %v883_v15  ;;  %961 = vadd.xlane.f32.xlu1 %v938_v14 }
 0x1b3   : > { %v885_v18 = vpop.xlane.xlu1 %884 }
 0x1b4   : > { %v1778_v20 = vsub.f32 %v1701_v40, %v907_v16  ;;  %v908_v17 = vmul.f32 0.0078125, %v885_v18 }
 0x1b6   : > { %v1781_v21 = vsub.f32 %v1704_v46, %v908_v17  ;;  %v939_v24 = vmul.f32 %v1778_v20, %v1778_v20 }
 0x1b8   : > { %963 = vadd.xlane.f32.xlu0 %v939_v24  ;;  %v940_v23 = vmul.f32 %v1781_v21, %v1781_v21 }
 0x1b9   : > { %v887_v25 = vpop.xlane.xlu0 %886 }
 0x1ba   : > { %v909_v26 = vmul.f32 0.0078125, %v887_v25  ;;  %965 = vadd.xlane.f32.xlu1 %v940_v23 }
 0x1bb   : > { %v889_v27 = vpop.xlane.xlu1 %888 }
 0x1bc   : > { %v1788_v28 = vsub.f32 %v1711_v62, %v909_v26  ;;  %v910_v40 = vmul.f32 0.0078125, %v889_v27 }
 0x1be   : > { %v1791_v30 = vsub.f32 %v1714_v6, %v910_v40  ;;  %v941_v46 = vmul.f32 %v1788_v28, %v1788_v28 }
 0x1c0   : > { %967 = vadd.xlane.f32.xlu0 %v941_v46  ;;  %v942_v31 = vmul.f32 %v1791_v30, %v1791_v30 }
 0x1c1   : > { %v891_v33 = vpop.xlane.xlu0 %890 }
 0x1c2   : > { %v911_v34 = vmul.f32 0.0078125, %v891_v33  ;;  %969 = vadd.xlane.f32.xlu1 %v942_v31 }
 0x1c3   : > { %v893_v35 = vpop.xlane.xlu1 %892 }
 0x1c4   : > { %v1798_v36 = vsub.f32 %v1721_v22, %v911_v34  ;;  %v912_v62 = vmul.f32 0.0078125, %v893_v35 }
 0x1c6   : > { %v1801_v37 = vsub.f32 %v1724_v29, %v912_v62  ;;  %v943_v6 = vmul.f32 %v1798_v36, %v1798_v36 }
 0x1c8   : > { %971 = vadd.xlane.f32.xlu0 %v943_v6  ;;  %v944_v38 = vmul.f32 %v1801_v37, %v1801_v37 }
 0x1c9   : > { %v895_v41 = vpop.xlane.xlu0 %894 }
 0x1ca   : > { %v913_v42 = vmul.f32 0.0078125, %v895_v41  ;;  %973 = vadd.xlane.f32.xlu1 %v944_v38 }
 0x1cb   : > { %v897_v43 = vpop.xlane.xlu1 %896 }
 0x1cc   : > { %v1808_v44 = vsub.f32 %v1731_v45, %v913_v42  ;;  %v914_v22 = vmul.f32 0.0078125, %v897_v43 }
 0x1ce   : > { %v1811_v48 = vsub.f32 %v1734_v47, %v914_v22  ;;  %v945_v29 = vmul.f32 %v1808_v44, %v1808_v44 }
 0x1d0   : > { %975 = vadd.xlane.f32.xlu0 %v945_v29  ;;  %v946_v49 = vmul.f32 %v1811_v48, %v1811_v48 }
 0x1d2   : > { %977 = vadd.xlane.f32.xlu1 %v946_v49 }
 0x225   : > { %v948_v51 = vpop.xlane.xlu0 %947 }
 0x226   : > { %v979_v53 = vmul.f32 0.0078125, %v948_v51 }
 0x228   : > { %v995_v2 = vadd.f32 1e-05, %v979_v53 }
 0x229   : > { %v950_v55 = vpop.xlane.xlu1 %949 }
 0x22a   : > { %1391 = vrsqrt.f32 %v995_v2  ;;  %v980_v56 = vmul.f32 0.0078125, %v950_v55 }
 0x22c   : > { %v996_v45 = vadd.f32 1e-05, %v980_v56 }
 0x22d   : > { %v952_v57 = vpop.xlane.xlu0 %951 }
 0x22e   : > { %1393 = vrsqrt.f32 %v996_v45  ;;  %v981_v19 = vmul.f32 0.0078125, %v952_v57 }
 0x230   : > { %v997_v47 = vadd.f32 1e-05, %v981_v19 }
 0x231   : > { %v954_v59 = vpop.xlane.xlu1 %953 }
 0x232   : > { %1395 = vrsqrt.f32 %v997_v47  ;;  %v982_v61 = vmul.f32 0.0078125, %v954_v59 }
 0x234   : > { %v1392_v32 = vpop.eup %1391  ;;  %v998_v1 = vadd.f32 1e-05, %v982_v61 }
 0x235   : > { %v1027_v4 = vmul.f32 %v1392_v32, %v1738_v50  ;;  %v956_v39 = vpop.xlane.xlu0 %955 }
 0x236   : > { %1397 = vrsqrt.f32 %v998_v1  ;;  %v983_v52 = vmul.f32 0.0078125, %v956_v39 }
 0x237   : > { %v1050_v9 = vmul.f32 %v1820_v0, %v1027_v4  ;;  %v958_v10 = vpop.xlane.xlu1 %957 }
 0x238   : > { %v1394_v11 = vpop.eup %1393  ;;  %v999_v50 = vadd.f32 1e-05, %v983_v52  ;;  %v984_v60 = vmul.f32 0.0078125, %v958_v10 }
 0x239   : > { %v1073_v3 = vadd.f32 %v1826_v8, %v1050_v9  ;;  %v1028_v14 = vmul.f32 %v1394_v11, %v1743_v54 }
 0x23a   : > { %1399 = vrsqrt.f32 %v999_v50  ;;  %v1000_v15 = vadd.f32 1e-05, %v984_v60 }
 0x23b   : > { %1089 = vst [vmem:[%s1834_s14] sm:$0xff] %v1073_v3  ;;  %v1051_v16 = vmul.f32 %v1820_v0, %v1028_v14 }
 0x23c   : > { %v1396_v18 = vpop.eup %1395  ;;  %1401 = vrsqrt.f32 %v1000_v15 }
 0x23d   : > { %v1074_v17 = vadd.f32 %v1826_v8, %v1051_v16  ;;  %v1029_v24 = vmul.f32 %v1396_v18, %v1748_v58  ;;  %v960_v23 = vpop.xlane.xlu0 %959 }
 0x23e   : > { %v985_v25 = vmul.f32 0.0078125, %v960_v23 }
 0x23f   : > { %1090 = vst [vmem:[%s1834_s14 + $0x8] sm:$0xff] %v1074_v17  ;;  %v1052_v26 = vmul.f32 %v1820_v0, %v1029_v24  ;;  %v962_v27 = vpop.xlane.xlu1 %961 }
 0x240   : > { %v1398_v40 = vpop.eup %1397  ;;  %v1001_v54 = vadd.f32 1e-05, %v985_v25  ;;  %v986_v46 = vmul.f32 0.0078125, %v962_v27 }
 0x241   : > { %v1075_v31 = vadd.f32 %v1826_v8, %v1052_v26  ;;  %v1030_v33 = vmul.f32 %v1398_v40, %v1753_v63 }
 0x242   : > { %1403 = vrsqrt.f32 %v1001_v54  ;;  %v1002_v34 = vadd.f32 1e-05, %v986_v46 }
 0x243   : > { %1091 = vst [vmem:[%s1834_s14 + $0x10] sm:$0xff] %v1075_v31  ;;  %v1053_v35 = vmul.f32 %v1820_v0, %v1030_v33 }
 0x244   : > { %v1400_v58 = vpop.eup %1399  ;;  %1405 = vrsqrt.f32 %v1002_v34 }
 0x245   : > { %v1076_v62 = vadd.f32 %v1826_v8, %v1053_v35  ;;  %v1031_v6 = vmul.f32 %v1400_v58, %v1758_v5  ;;  %v964_v38 = vpop.xlane.xlu0 %963 }
 0x246   : > { %v1402_v41 = vpop.eup %1401  ;;  %v987_v42 = vmul.f32 0.0078125, %v964_v38 }
 0x247   : > { %1092 = vst [vmem:[%s1834_s14 + $0x18] sm:$0xff] %v1076_v62  ;;  %v1054_v43 = vmul.f32 %v1820_v0, %v1031_v6  ;;  %v1032_v63 = vmul.f32 %v1402_v41, %v1761_v7  ;;  %v966_v22 = vpop.xlane.xlu1 %965 }
 0x248   : > { %v1003_v29 = vadd.f32 1e-05, %v987_v42  ;;  %v988_v49 = vmul.f32 0.0078125, %v966_v22 }
 0x249   : > { %v1077_v51 = vadd.f32 %v1826_v8, %v1054_v43  ;;  %v1055_v53 = vmul.f32 %v1820_v0, %v1032_v63 }
 0x24a   : > { %1407 = vrsqrt.f32 %v1003_v29  ;;  %v1004_v2 = vadd.f32 1e-05, %v988_v49 }
 0x24b   : > { %1093 = vst [vmem:[%s1834_s14 + $0x20] sm:$0xff] %v1077_v51  ;;  %v1078_v5 = vadd.f32 %v1826_v8, %v1055_v53 }
 0x24c   : > { %v1404_v55 = vpop.eup %1403  ;;  %1409 = vrsqrt.f32 %v1004_v2 }
 0x24d   : > { %1094 = vst [vmem:[%s1834_s14 + $0x28] sm:$0xff] %v1078_v5  ;;  %v1033_v56 = vmul.f32 %v1404_v55, %v1768_v12  ;;  %v968_v45 = vpop.xlane.xlu0 %967 }
 0x24e   : > { %v1406_v7 = vpop.eup %1405  ;;  %v989_v57 = vmul.f32 0.0078125, %v968_v45 }
 0x24f   : > { %v1056_v19 = vmul.f32 %v1820_v0, %v1033_v56  ;;  %v1034_v47 = vmul.f32 %v1406_v7, %v1771_v13  ;;  %v970_v59 = vpop.xlane.xlu1 %969 }
 0x250   : > { %v1005_v61 = vadd.f32 1e-05, %v989_v57  ;;  %v990_v32 = vmul.f32 0.0078125, %v970_v59 }
 0x251   : > { %v1079_v1 = vadd.f32 %v1826_v8, %v1056_v19  ;;  %v1057_v4 = vmul.f32 %v1820_v0, %v1034_v47 }
 0x252   : > { %1411 = vrsqrt.f32 %v1005_v61  ;;  %v1006_v39 = vadd.f32 1e-05, %v990_v32 }
 0x253   : > { %1095 = vst [vmem:[%s1834_s14 + $0x30] sm:$0xff] %v1079_v1  ;;  %v1080_v12 = vadd.f32 %v1826_v8, %v1057_v4 }
 0x254   : > { %v1408_v52 = vpop.eup %1407  ;;  %1413 = vrsqrt.f32 %v1006_v39 }
 0x255   : > { %1096 = vst [vmem:[%s1834_s14 + $0x38] sm:$0xff] %v1080_v12  ;;  %v1035_v9 = vmul.f32 %v1408_v52, %v1778_v20  ;;  %v972_v10 = vpop.xlane.xlu0 %971 }
 0x256   : > { %v1410_v13 = vpop.eup %1409  ;;  %v991_v11 = vmul.f32 0.0078125, %v972_v10 }
 0x257   : > { %v1058_v50 = vmul.f32 %v1820_v0, %v1035_v9  ;;  %v1036_v60 = vmul.f32 %v1410_v13, %v1781_v21  ;;  %v974_v3 = vpop.xlane.xlu1 %973 }
 0x258   : > { %v1007_v14 = vadd.f32 1e-05, %v991_v11  ;;  %v992_v15 = vmul.f32 0.0078125, %v974_v3 }
 0x259   : > { %v1081_v16 = vadd.f32 %v1826_v8, %v1058_v50  ;;  %v1059_v18 = vmul.f32 %v1820_v0, %v1036_v60 }
 0x25a   : > { %1415 = vrsqrt.f32 %v1007_v14  ;;  %v1008_v17 = vadd.f32 1e-05, %v992_v15 }
 0x25b   : > { %1097 = vst [vmem:[%s1834_s14 + $0x40] sm:$0xff] %v1081_v16  ;;  %v1082_v20 = vadd.f32 %v1826_v8, %v1059_v18 }
 0x25c   : > { %v1412_v24 = vpop.eup %1411  ;;  %1417 = vrsqrt.f32 %v1008_v17 }
 0x25d   : > { %1098 = vst [vmem:[%s1834_s14 + $0x48] sm:$0xff] %v1082_v20  ;;  %v1037_v23 = vmul.f32 %v1412_v24, %v1788_v28  ;;  %v976_v25 = vpop.xlane.xlu0 %975 }
 0x25e   : > { %v1414_v21 = vpop.eup %1413  ;;  %v993_v26 = vmul.f32 0.0078125, %v976_v25 }
 0x25f   : > { %v1060_v27 = vmul.f32 %v1820_v0, %v1037_v23  ;;  %v1038_v40 = vmul.f32 %v1414_v21, %v1791_v30  ;;  %v978_v54 = vpop.xlane.xlu1 %977 }
 0x260   : > { %v1009_v46 = vadd.f32 1e-05, %v993_v26  ;;  %v994_v31 = vmul.f32 0.0078125, %v978_v54 }
 0x261   : > { %v1083_v33 = vadd.f32 %v1826_v8, %v1060_v27  ;;  %v1061_v34 = vmul.f32 %v1820_v0, %v1038_v40 }
 0x262   : > { %1419 = vrsqrt.f32 %v1009_v46  ;;  %v1010_v35 = vadd.f32 1e-05, %v994_v31 }
 0x263   : > { %1099 = vst [vmem:[%s1834_s14 + $0x50] sm:$0xff] %v1083_v33  ;;  %v1084_v28 = vadd.f32 %v1826_v8, %v1061_v34 }
 0x264   : > { %v1416_v58 = vpop.eup %1415  ;;  %1421 = vrsqrt.f32 %v1010_v35 }
 0x265   : > { %1100 = vst [vmem:[%s1834_s14 + $0x58] sm:$0xff] %v1084_v28  ;;  %v1039_v62 = vmul.f32 %v1416_v58, %v1798_v36 }
 0x266   : > { %v1418_v30 = vpop.eup %1417 }
 0x267   : > { %v1062_v6 = vmul.f32 %v1820_v0, %v1039_v62  ;;  %v1040_v38 = vmul.f32 %v1418_v30, %v1801_v37 }
 0x269   : > { %v1085_v41 = vadd.f32 %v1826_v8, %v1062_v6  ;;  %v1063_v42 = vmul.f32 %v1820_v0, %v1040_v38 }
 0x26b   : > { %1101 = vst [vmem:[%s1834_s14 + $0x60] sm:$0xff] %v1085_v41  ;;  %v1086_v43 = vadd.f32 %v1826_v8, %v1063_v42 }
 0x26c   : > { %v1420_v63 = vpop.eup %1419 }
 0x26d   : > { %1102 = vst [vmem:[%s1834_s14 + $0x68] sm:$0xff] %v1086_v43  ;;  %v1041_v22 = vmul.f32 %v1420_v63, %v1808_v44 }
 0x26e   : > { %v1422_v29 = vpop.eup %1421 }
 0x26f   : > { %v1064_v36 = vmul.f32 %v1820_v0, %v1041_v22  ;;  %v1042_v49 = vmul.f32 %v1422_v29, %v1811_v48 }
 0x271   : > { %v1087_v51 = vadd.f32 %v1826_v8, %v1064_v36  ;;  %v1065_v37 = vmul.f32 %v1820_v0, %v1042_v49 }
 0x273   : > { %1103 = vst [vmem:[%s1834_s14 + $0x70] sm:$0xff] %v1087_v51  ;;  %v1088_v53 = vadd.f32 %v1826_v8, %v1065_v37 }
 0x275   : > { %1104 = vst [vmem:[%s1834_s14 + $0x78] sm:$0xff] %v1088_v53 }
 0x276 PF: > { %s16_s21 = sadd.s32 1, %s1429_s21  }
 0x277   : > { %p13_p4 = scmp.ge.s32.totalorder %s16_s21, 4  }
 0x279   :  { %15 = sbr.rel (!%p13_p4) target bundleno = 1 (0x1), region = 77 }

</bundles_post_ra>
